<compile_context>
chip_gen: v7x
topology: tpu7x:2x2x1
jax: 0.10.0
libtpu: 0.0.40
codegen_flags: <defaults>
</compile_context>

<pallas_src>
import math
from functools import partial

import jax
import jax.numpy as jnp
from jax.experimental import pallas as pl
from jax.experimental.pallas import tpu as pltpu

D_MODEL = 32
NHEAD = 4
NUM_ENC = 2
NUM_DEC = 2
DFF = 64
EPS = 1e-5                      # nn.LayerNorm default eps
WDT = jnp.bfloat16              # MXU-operand dtype for weights (accumulation stays f32)

# Ordering of the stacked per-layer parameter arrays passed to the fused kernel.
ENC_KEYS = ("wqk", "bqk", "wv", "bv", "wo", "bo",
            "n1g", "n1b", "w1", "b1", "w2", "b2", "n2g", "n2b")
DEC_KEYS = ("s_wqk", "s_bqk", "s_wv", "s_bv", "s_wo", "s_bo",
            "c_wq", "c_bq", "c_wk", "c_bk", "c_wv", "c_bv", "c_wo", "c_bo",
            "n1g", "n1b", "n2g", "n2b", "n3g", "n3b",
            "w1", "b1", "w2", "b2")


# ----------------------------- in-kernel helpers -----------------------------

def _mm(x, w, b=None):
    """Lane-dense matmul: bf16 operands into the MXU, f32 accumulation."""
    y = jnp.dot(x.astype(w.dtype), w, preferred_element_type=jnp.float32)
    return y if b is None else y + b


def _layernorm(z, g, b):
    mu = jnp.mean(z, axis=-1, keepdims=True)
    zc = z - mu
    var = jnp.mean(zc * zc, axis=-1, keepdims=True)
    return zc * jax.lax.rsqrt(var + EPS) * g + b


def _qkv_shared(qk_in, v_in, wqk, bqk, wv, bv):
    """Q/K share their input -> one fused (L,D)@(D,2D) projection; V is (L,D)@(D,D)."""
    d = v_in.shape[-1]
    qk = _mm(qk_in, wqk, bqk)                     # (L, 2D)
    return qk[:, :d], qk[:, d:], _mm(v_in, wv, bv)


def _attention(q, k, v, wo, bo, nhead):
    """Scores/softmax/AV per head on lane slices, then ONE (Lq,D)@(D,D) out-projection."""
    d = q.shape[-1]
    dh = d // nhead
    scale = 1.0 / math.sqrt(dh)
    heads = []
    for h in range(nhead):                        # static unroll (nhead=4)
        lo, hi = h * dh, (h + 1) * dh
        s = jax.lax.dot_general(q[:, lo:hi], k[:, lo:hi],
                                (((1,), (1,)), ((), ())),      # q @ k^T (MXU trans-B path)
                                preferred_element_type=jnp.float32) * scale
        m = jnp.max(s, axis=-1, keepdims=True)
        e = jnp.exp(s - m)
        p = e * pl.reciprocal(jnp.sum(e, axis=-1, keepdims=True), approx=True)
        heads.append(jnp.dot(p, v[:, lo:hi], preferred_element_type=jnp.float32))
    o = jnp.concatenate(heads, axis=-1)           # (Lq, D) heads along lanes
    return _mm(o, wo, bo)


def _ffn(z, w1, b1, w2, b2):
    h = jnp.maximum(_mm(z, w1, b1), 0.0)          # relu (dropout = identity)
    return _mm(h, w2, b2)


# ----------------------------- fused whole-forward kernel -----------------------------

def _transformer_kernel(*refs, nhead, num_enc, num_dec):
    it = iter(refs)
    src_ref = next(it)
    pos_ref = next(it)
    qpos_ref = next(it)
    enc = {k: next(it) for k in ENC_KEYS}
    dec = {k: next(it) for k in DEC_KEYS}
    fng_ref = next(it)
    fnb_ref = next(it)
    out_ref = next(it)

    x = src_ref[0].astype(jnp.float32)            # (S, D)
    pe = pos_ref[0].astype(jnp.float32)           # (S, D)  (shared across the batch)
    qp = qpos_ref[0].astype(jnp.float32)          # (Nq, D) (shared across the batch)

    # ----- encoder stack (forward_post) -----
    for l in range(num_enc):
        q, k, v = _qkv_shared(x + pe, x, enc["wqk"][l], enc["bqk"][l],
                              enc["wv"][l], enc["bv"][l])
        attn = _attention(q, k, v, enc["wo"][l], enc["bo"][l], nhead)
        x = _layernorm(x + attn, enc["n1g"][l], enc["n1b"][l])
        f = _ffn(x, enc["w1"][l], enc["b1"][l], enc["w2"][l], enc["b2"][l])
        x = _layernorm(x + f, enc["n2g"][l], enc["n2b"][l])

    memory = x                                    # encoder output stays in vregs/VMEM
    mem_pe = memory + pe                          # hoisted: reused by every decoder layer

    # ----- decoder stack (forward_post), tgt starts at zeros -----
    t = jnp.zeros(qp.shape, jnp.float32)
    for l in range(num_dec):
        # self-attention: q = k = tgt + query_pos, value = tgt
        q, k, v = _qkv_shared(t + qp, t, dec["s_wqk"][l], dec["s_bqk"][l],
                              dec["s_wv"][l], dec["s_bv"][l])
        sa = _attention(q, k, v, dec["s_wo"][l], dec["s_bo"][l], nhead)
        t = _layernorm(t + sa, dec["n1g"][l], dec["n1b"][l])

        # cross-attention: q = tgt + query_pos, k = memory + pos, value = memory
        q = _mm(t + qp, dec["c_wq"][l], dec["c_bq"][l])
        k = _mm(mem_pe, dec["c_wk"][l], dec["c_bk"][l])
        v = _mm(memory, dec["c_wv"][l], dec["c_bv"][l])
        ca = _attention(q, k, v, dec["c_wo"][l], dec["c_bo"][l], nhead)
        t = _layernorm(t + ca, dec["n2g"][l], dec["n2b"][l])

        # feed-forward
        f = _ffn(t, dec["w1"][l], dec["b1"][l], dec["w2"][l], dec["b2"][l])
        t = _layernorm(t + f, dec["n3g"][l], dec["n3b"][l])

    # final decoder LayerNorm (TransformerDecoder.norm)
    t = _layernorm(t, fng_ref[...], fnb_ref[...])
    # TODO(synk): D=32 output gives masked (25% lane density) vst; real DETR d=256 is fine.
    out_ref[0] = t.astype(out_ref.dtype)


# ----------------------------- pallas_call wrapper -----------------------------

def _cost_estimate(B, S, Nq, D, DFF_, H, NE, ND, args, out_nbytes):
    def mm2(m, k, n):
        return 2 * m * k * n
    dh = D // H
    enc = (mm2(S, D, 2 * D) + mm2(S, D, D) + mm2(S, D, D)
           + H * (mm2(S, dh, S) + mm2(S, S, dh))
           + mm2(S, D, DFF_) + mm2(S, DFF_, D))
    dec = (mm2(Nq, D, 2 * D) + mm2(Nq, D, D) + mm2(Nq, D, D)
           + H * (mm2(Nq, dh, Nq) + mm2(Nq, Nq, dh))
           + mm2(Nq, D, D) + 2 * mm2(S, D, D) + mm2(Nq, D, D)
           + H * (mm2(Nq, dh, S) + mm2(Nq, S, dh))
           + mm2(Nq, D, DFF_) + mm2(Nq, DFF_, D))
    flops = B * (NE * enc + ND * dec)
    transcendentals = B * (NE * H * S * S + ND * H * (Nq * Nq + Nq * S))
    bytes_accessed = sum(int(a.size) * a.dtype.itemsize for a in args) + out_nbytes
    return pl.CostEstimate(flops=int(flops), transcendentals=int(transcendentals),
                           bytes_accessed=int(bytes_accessed))


def _const_index_map(ndim):
    zeros = (0,) * ndim

    def idx(b):
        return zeros

    return idx


def _run_transformer(params, src, pos, qpos, nhead):
    """src: (B, S, D); pos: (1, S, D); qpos: (1, Nq, D) -> (B, Nq, D)."""
    B, S, D = src.shape
    Nq = qpos.shape[1]
    enc, dec = params["enc"], params["dec"]
    num_enc = enc["wqk"].shape[0]
    num_dec = dec["s_wqk"].shape[0]
    dff = enc["w1"].shape[-1]

    weight_args = ([enc[k] for k in ENC_KEYS] + [dec[k] for k in DEC_KEYS]
                   + [params["final_g"], params["final_b"]])
    args = [src, pos, qpos] + weight_args

    in_specs = ([pl.BlockSpec((1, S, D), lambda b: (b, 0, 0)),     # per-batch src slice
                 pl.BlockSpec((1, S, D), lambda b: (0, 0, 0)),     # pos: shared, VMEM-resident
                 pl.BlockSpec((1, Nq, D), lambda b: (0, 0, 0))]    # query_pos: shared
                + [pl.BlockSpec(a.shape, _const_index_map(a.ndim)) for a in weight_args])

    out_nbytes = B * Nq * D * src.dtype.itemsize
    cost = _cost_estimate(B, S, Nq, D, dff, nhead, num_enc, num_dec, args, out_nbytes)

    kernel = partial(_transformer_kernel, nhead=nhead,
                     num_enc=num_enc, num_dec=num_dec)
    return pl.pallas_call(
        kernel,
        out_shape=jax.ShapeDtypeStruct((B, Nq, D), src.dtype),
        grid=(B,),
        in_specs=in_specs,
        out_specs=pl.BlockSpec((1, Nq, D), lambda b: (b, 0, 0)),
        compiler_params=pltpu.CompilerParams(dimension_semantics=("parallel",)),
        cost_estimate=cost,
    )(*args)


# --------------------------- transformer forward ---------------------------

@jax.jit
def transformer_forward(params, src, mask, query_embed, pos_embed,
                        latent_input=None, proprio_input=None,
                        additional_pos_embed=None):
    # TODO(synk): src/memory key_padding_mask (`mask`) not supported (ACT passes None).
    del mask
    if src.ndim == 4:
        bs, c, h, w = src.shape
        # Batch-major (B, L, D) layout throughout (== PyTorch's (L, B, D)).
        src_seq = src.reshape(bs, c, h * w).transpose(0, 2, 1)                 # (bs, hw, c)
        pos_seq = pos_embed.reshape(pos_embed.shape[0], c, h * w).transpose(0, 2, 1)  # (1, hw, c)
        pos_seq = jnp.concatenate([additional_pos_embed[None], pos_seq], axis=1)      # (1, 2+hw, c)
        addition = jnp.stack([latent_input, proprio_input], axis=1)            # (bs, 2, c)
        src_seq = jnp.concatenate([addition, src_seq], axis=1)                 # (bs, 2+hw, c)
    else:
        bs, hw, c = src.shape
        src_seq = src
        pos_seq = pos_embed[None] if pos_embed.ndim == 2 else pos_embed        # (1, hw, c)

    qpos = query_embed[None]                                                   # (1, nq, c)
    out = _run_transformer(params, src_seq, pos_seq, qpos, NHEAD)              # (bs, nq, c)
    # PyTorch: hs = decoder_out.unsqueeze(0).transpose(1, 2) -> (1, bs, nq, c)
    return out[None]


# ----------------------------- parameter init -----------------------------

def _xavier(key, shape):
    fan_in, fan_out = shape
    a = math.sqrt(6.0 / (fan_in + fan_out))
    return jax.random.uniform(key, shape, jnp.float32, -a, a)


def _init_attn(key, d, fuse_qk):
    ks = jax.random.split(key, 4)
    wq, wk = _xavier(ks[0], (d, d)), _xavier(ks[1], (d, d))
    wv, wo = _xavier(ks[2], (d, d)), _xavier(ks[3], (d, d))
    p = dict(wv=wv.astype(WDT), bv=jnp.zeros((1, d), jnp.float32),
             wo=wo.astype(WDT), bo=jnp.zeros((1, d), jnp.float32))
    if fuse_qk:
        # Q and K projections fused into one lane-dense (D, 2D) matmul (shared input).
        p.update(wqk=jnp.concatenate([wq, wk], axis=1).astype(WDT),
                 bqk=jnp.zeros((1, 2 * d), jnp.float32))
    else:
        p.update(wq=wq.astype(WDT), bq=jnp.zeros((1, d), jnp.float32),
                 wk=wk.astype(WDT), bk=jnp.zeros((1, d), jnp.float32))
    return p


def _init_encoder_layer(key, d, dff):
    k1, k2, k3 = jax.random.split(key, 3)
    sa = _init_attn(k1, d, fuse_qk=True)
    return dict(
        wqk=sa["wqk"], bqk=sa["bqk"], wv=sa["wv"], bv=sa["bv"], wo=sa["wo"], bo=sa["bo"],
        n1g=jnp.ones((1, d), jnp.float32), n1b=jnp.zeros((1, d), jnp.float32),
        w1=_xavier(k2, (d, dff)).astype(WDT), b1=jnp.zeros((1, dff), jnp.float32),
        w2=_xavier(k3, (dff, d)).astype(WDT), b2=jnp.zeros((1, d), jnp.float32),
        n2g=jnp.ones((1, d), jnp.float32), n2b=jnp.zeros((1, d), jnp.float32))


def _init_decoder_layer(key, d, dff):
    k1, k2, k3, k4 = jax.random.split(key, 4)
    sa = _init_attn(k1, d, fuse_qk=True)    # self-attn: q/k share input (tgt + query_pos)
    ca = _init_attn(k2, d, fuse_qk=False)   # cross-attn: q/k/v have different inputs
    return dict(
        s_wqk=sa["wqk"], s_bqk=sa["bqk"], s_wv=sa["wv"], s_bv=sa["bv"],
        s_wo=sa["wo"], s_bo=sa["bo"],
        c_wq=ca["wq"], c_bq=ca["bq"], c_wk=ca["wk"], c_bk=ca["bk"],
        c_wv=ca["wv"], c_bv=ca["bv"], c_wo=ca["wo"], c_bo=ca["bo"],
        n1g=jnp.ones((1, d), jnp.float32), n1b=jnp.zeros((1, d), jnp.float32),
        n2g=jnp.ones((1, d), jnp.float32), n2b=jnp.zeros((1, d), jnp.float32),
        n3g=jnp.ones((1, d), jnp.float32), n3b=jnp.zeros((1, d), jnp.float32),
        w1=_xavier(k3, (d, dff)).astype(WDT), b1=jnp.zeros((1, dff), jnp.float32),
        w2=_xavier(k4, (dff, d)).astype(WDT), b2=jnp.zeros((1, d), jnp.float32))


def _stack_layers(layers):
    return {k: jnp.stack([ly[k] for ly in layers], axis=0) for k in layers[0]}


def init_transformer_params(key, d=D_MODEL, dff=DFF, num_enc=NUM_ENC, num_dec=NUM_DEC):
    keys = jax.random.split(key, num_enc + num_dec)
    enc = _stack_layers([_init_encoder_layer(keys[i], d, dff) for i in range(num_enc)])
    dec = _stack_layers([_init_decoder_layer(keys[num_enc + i], d, dff)
                         for i in range(num_dec)])
    return dict(enc=enc, dec=dec,
                final_g=jnp.ones((1, d), jnp.float32),
                final_b=jnp.zeros((1, d), jnp.float32))


# ---------------------------------- main ----------------------------------

if __name__ == "__main__":
    key = jax.random.PRNGKey(0)
    pkey, dkey = jax.random.split(key)
    params = init_transformer_params(pkey)

    bs, c, h, w = 2, D_MODEL, 4, 4
    num_queries = 8
    ks = jax.random.split(dkey, 6)
    src = jax.random.normal(ks[0], (bs, c, h, w), jnp.float32)            # NCHW
    pos_embed = jax.random.normal(ks[1], (1, c, h, w), jnp.float32)
    query_embed = jax.random.normal(ks[2], (num_queries, c), jnp.float32)
    latent_input = jax.random.normal(ks[3], (bs, c), jnp.float32)
    proprio_input = jax.random.normal(ks[4], (bs, c), jnp.float32)
    additional_pos_embed = jax.random.normal(ks[5], (2, c), jnp.float32)

    hs = transformer_forward(params, src, None, query_embed, pos_embed,
                             latent_input, proprio_input, additional_pos_embed)
    hs = jax.block_until_ready(hs)
    assert hs.shape == (1, bs, num_queries, c), hs.shape
    assert bool(jnp.all(jnp.isfinite(hs)))
    print("KERNEL_OK")
</pallas_src>

<mosaic_0001>
module attributes {stable_mosaic.version = 11 : i64} {
  func.func @_transformer_kernel(%arg0: i32, %arg1: memref<1x18x32xf32, #tpu.memory_space<vmem>>, %arg2: memref<1x18x32xf32, #tpu.memory_space<vmem>>, %arg3: memref<1x8x32xf32, #tpu.memory_space<vmem>>, %arg4: memref<2x32x64xbf16, #tpu.memory_space<vmem>>, %arg5: memref<2x1x64xf32, #tpu.memory_space<vmem>>, %arg6: memref<2x32x32xbf16, #tpu.memory_space<vmem>>, %arg7: memref<2x1x32xf32, #tpu.memory_space<vmem>>, %arg8: memref<2x32x32xbf16, #tpu.memory_space<vmem>>, %arg9: memref<2x1x32xf32, #tpu.memory_space<vmem>>, %arg10: memref<2x1x32xf32, #tpu.memory_space<vmem>>, %arg11: memref<2x1x32xf32, #tpu.memory_space<vmem>>, %arg12: memref<2x32x64xbf16, #tpu.memory_space<vmem>>, %arg13: memref<2x1x64xf32, #tpu.memory_space<vmem>>, %arg14: memref<2x64x32xbf16, #tpu.memory_space<vmem>>, %arg15: memref<2x1x32xf32, #tpu.memory_space<vmem>>, %arg16: memref<2x1x32xf32, #tpu.memory_space<vmem>>, %arg17: memref<2x1x32xf32, #tpu.memory_space<vmem>>, %arg18: memref<2x32x64xbf16, #tpu.memory_space<vmem>>, %arg19: memref<2x1x64xf32, #tpu.memory_space<vmem>>, %arg20: memref<2x32x32xbf16, #tpu.memory_space<vmem>>, %arg21: memref<2x1x32xf32, #tpu.memory_space<vmem>>, %arg22: memref<2x32x32xbf16, #tpu.memory_space<vmem>>, %arg23: memref<2x1x32xf32, #tpu.memory_space<vmem>>, %arg24: memref<2x32x32xbf16, #tpu.memory_space<vmem>>, %arg25: memref<2x1x32xf32, #tpu.memory_space<vmem>>, %arg26: memref<2x32x32xbf16, #tpu.memory_space<vmem>>, %arg27: memref<2x1x32xf32, #tpu.memory_space<vmem>>, %arg28: memref<2x32x32xbf16, #tpu.memory_space<vmem>>, %arg29: memref<2x1x32xf32, #tpu.memory_space<vmem>>, %arg30: memref<2x32x32xbf16, #tpu.memory_space<vmem>>, %arg31: memref<2x1x32xf32, #tpu.memory_space<vmem>>, %arg32: memref<2x1x32xf32, #tpu.memory_space<vmem>>, %arg33: memref<2x1x32xf32, #tpu.memory_space<vmem>>, %arg34: memref<2x1x32xf32, #tpu.memory_space<vmem>>, %arg35: memref<2x1x32xf32, #tpu.memory_space<vmem>>, %arg36: memref<2x1x32xf32, #tpu.memory_space<vmem>>, %arg37: memref<2x1x32xf32, #tpu.memory_space<vmem>>, %arg38: memref<2x32x64xbf16, #tpu.memory_space<vmem>>, %arg39: memref<2x1x64xf32, #tpu.memory_space<vmem>>, %arg40: memref<2x64x32xbf16, #tpu.memory_space<vmem>>, %arg41: memref<2x1x32xf32, #tpu.memory_space<vmem>>, %arg42: memref<1x32xf32, #tpu.memory_space<vmem>>, %arg43: memref<1x32xf32, #tpu.memory_space<vmem>>, %arg44: memref<1x8x32xf32, #tpu.memory_space<vmem>>) attributes {dimension_semantics = [#tpu.dimension_semantics<parallel>], iteration_bounds = array<i64: 2>, scalar_prefetch = 0 : i64, scratch_operands = 0 : i64, tpu.core_type = #tpu.core_type<tc>, window_params = [{transform_indices = @transform_0, window_bounds = array<i64: 1, 18, 32>}, {pipeline_mode = #tpu.pipeline_mode<synchronous>, transform_indices = @transform_1, window_bounds = array<i64: 1, 18, 32>}, {pipeline_mode = #tpu.pipeline_mode<synchronous>, transform_indices = @transform_2, window_bounds = array<i64: 1, 8, 32>}, {pipeline_mode = #tpu.pipeline_mode<synchronous>, transform_indices = @transform_3, window_bounds = array<i64: 2, 32, 64>}, {pipeline_mode = #tpu.pipeline_mode<synchronous>, transform_indices = @transform_4, window_bounds = array<i64: 2, 1, 64>}, {pipeline_mode = #tpu.pipeline_mode<synchronous>, transform_indices = @transform_5, window_bounds = array<i64: 2, 32, 32>}, {pipeline_mode = #tpu.pipeline_mode<synchronous>, transform_indices = @transform_6, window_bounds = array<i64: 2, 1, 32>}, {pipeline_mode = #tpu.pipeline_mode<synchronous>, transform_indices = @transform_7, window_bounds = array<i64: 2, 32, 32>}, {pipeline_mode = #tpu.pipeline_mode<synchronous>, transform_indices = @transform_8, window_bounds = array<i64: 2, 1, 32>}, {pipeline_mode = #tpu.pipeline_mode<synchronous>, transform_indices = @transform_9, window_bounds = array<i64: 2, 1, 32>}, {pipeline_mode = #tpu.pipeline_mode<synchronous>, transform_indices = @transform_10, window_bounds = array<i64: 2, 1, 32>}, {pipeline_mode = #tpu.pipeline_mode<synchronous>, transform_indices = @transform_11, window_bounds = array<i64: 2, 32, 64>}, {pipeline_mode = #tpu.pipeline_mode<synchronous>, transform_indices = @transform_12, window_bounds = array<i64: 2, 1, 64>}, {pipeline_mode = #tpu.pipeline_mode<synchronous>, transform_indices = @transform_13, window_bounds = array<i64: 2, 64, 32>}, {pipeline_mode = #tpu.pipeline_mode<synchronous>, transform_indices = @transform_14, window_bounds = array<i64: 2, 1, 32>}, {pipeline_mode = #tpu.pipeline_mode<synchronous>, transform_indices = @transform_15, window_bounds = array<i64: 2, 1, 32>}, {pipeline_mode = #tpu.pipeline_mode<synchronous>, transform_indices = @transform_16, window_bounds = array<i64: 2, 1, 32>}, {pipeline_mode = #tpu.pipeline_mode<synchronous>, transform_indices = @transform_17, window_bounds = array<i64: 2, 32, 64>}, {pipeline_mode = #tpu.pipeline_mode<synchronous>, transform_indices = @transform_18, window_bounds = array<i64: 2, 1, 64>}, {pipeline_mode = #tpu.pipeline_mode<synchronous>, transform_indices = @transform_19, window_bounds = array<i64: 2, 32, 32>}, {pipeline_mode = #tpu.pipeline_mode<synchronous>, transform_indices = @transform_20, window_bounds = array<i64: 2, 1, 32>}, {pipeline_mode = #tpu.pipeline_mode<synchronous>, transform_indices = @transform_21, window_bounds = array<i64: 2, 32, 32>}, {pipeline_mode = #tpu.pipeline_mode<synchronous>, transform_indices = @transform_22, window_bounds = array<i64: 2, 1, 32>}, {pipeline_mode = #tpu.pipeline_mode<synchronous>, transform_indices = @transform_23, window_bounds = array<i64: 2, 32, 32>}, {pipeline_mode = #tpu.pipeline_mode<synchronous>, transform_indices = @transform_24, window_bounds = array<i64: 2, 1, 32>}, {pipeline_mode = #tpu.pipeline_mode<synchronous>, transform_indices = @transform_25, window_bounds = array<i64: 2, 32, 32>}, {pipeline_mode = #tpu.pipeline_mode<synchronous>, transform_indices = @transform_26, window_bounds = array<i64: 2, 1, 32>}, {pipeline_mode = #tpu.pipeline_mode<synchronous>, transform_indices = @transform_27, window_bounds = array<i64: 2, 32, 32>}, {pipeline_mode = #tpu.pipeline_mode<synchronous>, transform_indices = @transform_28, window_bounds = array<i64: 2, 1, 32>}, {pipeline_mode = #tpu.pipeline_mode<synchronous>, transform_indices = @transform_29, window_bounds = array<i64: 2, 32, 32>}, {pipeline_mode = #tpu.pipeline_mode<synchronous>, transform_indices = @transform_30, window_bounds = array<i64: 2, 1, 32>}, {pipeline_mode = #tpu.pipeline_mode<synchronous>, transform_indices = @transform_31, window_bounds = array<i64: 2, 1, 32>}, {pipeline_mode = #tpu.pipeline_mode<synchronous>, transform_indices = @transform_32, window_bounds = array<i64: 2, 1, 32>}, {pipeline_mode = #tpu.pipeline_mode<synchronous>, transform_indices = @transform_33, window_bounds = array<i64: 2, 1, 32>}, {pipeline_mode = #tpu.pipeline_mode<synchronous>, transform_indices = @transform_34, window_bounds = array<i64: 2, 1, 32>}, {pipeline_mode = #tpu.pipeline_mode<synchronous>, transform_indices = @transform_35, window_bounds = array<i64: 2, 1, 32>}, {pipeline_mode = #tpu.pipeline_mode<synchronous>, transform_indices = @transform_36, window_bounds = array<i64: 2, 1, 32>}, {pipeline_mode = #tpu.pipeline_mode<synchronous>, transform_indices = @transform_37, window_bounds = array<i64: 2, 32, 64>}, {pipeline_mode = #tpu.pipeline_mode<synchronous>, transform_indices = @transform_38, window_bounds = array<i64: 2, 1, 64>}, {pipeline_mode = #tpu.pipeline_mode<synchronous>, transform_indices = @transform_39, window_bounds = array<i64: 2, 64, 32>}, {pipeline_mode = #tpu.pipeline_mode<synchronous>, transform_indices = @transform_40, window_bounds = array<i64: 2, 1, 32>}, {pipeline_mode = #tpu.pipeline_mode<synchronous>, transform_indices = @transform_41, window_bounds = array<i64: 1, 32>}, {pipeline_mode = #tpu.pipeline_mode<synchronous>, transform_indices = @transform_42, window_bounds = array<i64: 1, 32>}, {transform_indices = @transform_43, window_bounds = array<i64: 1, 8, 32>}]} {
    %c0 = arith.constant 0 : index
    %c0_0 = arith.constant 0 : index
    %c0_1 = arith.constant 0 : index
    %0 = vector.load %arg1[%c0, %c0_0, %c0_1] : memref<1x18x32xf32, #tpu.memory_space<vmem>>, vector<1x18x32xf32>
    %1 = vector.shape_cast %0 : vector<1x18x32xf32> to vector<18x32xf32>
    %c0_2 = arith.constant 0 : index
    %c0_3 = arith.constant 0 : index
    %c0_4 = arith.constant 0 : index
    %2 = vector.load %arg2[%c0_2, %c0_3, %c0_4] : memref<1x18x32xf32, #tpu.memory_space<vmem>>, vector<1x18x32xf32>
    %3 = vector.shape_cast %2 : vector<1x18x32xf32> to vector<18x32xf32>
    %c0_5 = arith.constant 0 : index
    %c0_6 = arith.constant 0 : index
    %c0_7 = arith.constant 0 : index
    %4 = vector.load %arg3[%c0_5, %c0_6, %c0_7] : memref<1x8x32xf32, #tpu.memory_space<vmem>>, vector<1x8x32xf32>
    %5 = vector.shape_cast %4 : vector<1x8x32xf32> to vector<8x32xf32>
    %6 = arith.addf %1, %3 : vector<18x32xf32>
    %c0_8 = arith.constant 0 : index
    %c0_9 = arith.constant 0 : index
    %c0_10 = arith.constant 0 : index
    %7 = vector.load %arg4[%c0_8, %c0_9, %c0_10] : memref<2x32x64xbf16, #tpu.memory_space<vmem>>, vector<1x32x64xbf16>
    %8 = vector.shape_cast %7 : vector<1x32x64xbf16> to vector<32x64xbf16>
    %c0_11 = arith.constant 0 : index
    %c0_12 = arith.constant 0 : index
    %c0_13 = arith.constant 0 : index
    %9 = vector.load %arg5[%c0_11, %c0_12, %c0_13] : memref<2x1x64xf32, #tpu.memory_space<vmem>>, vector<1x1x64xf32>
    %10 = vector.shape_cast %9 : vector<1x1x64xf32> to vector<1x64xf32>
    %c0_14 = arith.constant 0 : index
    %c0_15 = arith.constant 0 : index
    %c0_16 = arith.constant 0 : index
    %11 = vector.load %arg6[%c0_14, %c0_15, %c0_16] : memref<2x32x32xbf16, #tpu.memory_space<vmem>>, vector<1x32x32xbf16>
    %12 = vector.shape_cast %11 : vector<1x32x32xbf16> to vector<32x32xbf16>
    %c0_17 = arith.constant 0 : index
    %c0_18 = arith.constant 0 : index
    %c0_19 = arith.constant 0 : index
    %13 = vector.load %arg7[%c0_17, %c0_18, %c0_19] : memref<2x1x32xf32, #tpu.memory_space<vmem>>, vector<1x1x32xf32>
    %14 = vector.shape_cast %13 : vector<1x1x32xf32> to vector<1x32xf32>
    %15 = arith.truncf %6 : vector<18x32xf32> to vector<18x32xbf16>
    %cst = arith.constant dense<0.000000e+00> : vector<18x64xf32>
    %16 = tpu.matmul %15, %8, %cst {dimension_numbers = #tpu.dot_dimension_numbers<[1], [0], [0], [1], [0, 0, 1, 1], [], []>} : vector<18x32xbf16>, vector<32x64xbf16>, vector<18x64xf32> -> vector<18x64xf32>
    %17 = vector.broadcast %10 : vector<1x64xf32> to vector<18x64xf32>
    %18 = arith.addf %16, %17 : vector<18x64xf32>
    %19 = vector.extract_strided_slice %18 {offsets = [0, 0], sizes = [18, 32], strides = [1, 1]} : vector<18x64xf32> to vector<18x32xf32>
    %20 = vector.extract_strided_slice %18 {offsets = [0, 32], sizes = [18, 32], strides = [1, 1]} : vector<18x64xf32> to vector<18x32xf32>
    %21 = arith.truncf %1 : vector<18x32xf32> to vector<18x32xbf16>
    %cst_20 = arith.constant dense<0.000000e+00> : vector<18x32xf32>
    %22 = tpu.matmul %21, %12, %cst_20 {dimension_numbers = #tpu.dot_dimension_numbers<[1], [0], [0], [1], [0, 0, 1, 1], [], []>} : vector<18x32xbf16>, vector<32x32xbf16>, vector<18x32xf32> -> vector<18x32xf32>
    %23 = vector.broadcast %14 : vector<1x32xf32> to vector<18x32xf32>
    %24 = arith.addf %22, %23 : vector<18x32xf32>
    %c0_21 = arith.constant 0 : index
    %c0_22 = arith.constant 0 : index
    %c0_23 = arith.constant 0 : index
    %25 = vector.load %arg8[%c0_21, %c0_22, %c0_23] : memref<2x32x32xbf16, #tpu.memory_space<vmem>>, vector<1x32x32xbf16>
    %26 = vector.shape_cast %25 : vector<1x32x32xbf16> to vector<32x32xbf16>
    %c0_24 = arith.constant 0 : index
    %c0_25 = arith.constant 0 : index
    %c0_26 = arith.constant 0 : index
    %27 = vector.load %arg9[%c0_24, %c0_25, %c0_26] : memref<2x1x32xf32, #tpu.memory_space<vmem>>, vector<1x1x32xf32>
    %28 = vector.shape_cast %27 : vector<1x1x32xf32> to vector<1x32xf32>
    %29 = vector.extract_strided_slice %19 {offsets = [0, 0], sizes = [18, 8], strides = [1, 1]} : vector<18x32xf32> to vector<18x8xf32>
    %30 = vector.extract_strided_slice %20 {offsets = [0, 0], sizes = [18, 8], strides = [1, 1]} : vector<18x32xf32> to vector<18x8xf32>
    %cst_27 = arith.constant dense<0.000000e+00> : vector<18x18xf32>
    %31 = tpu.matmul %29, %30, %cst_27 {dimension_numbers = #tpu.dot_dimension_numbers<[1], [1], [0], [0], [0, 0, 1, 0], [], []>} : vector<18x8xf32>, vector<18x8xf32>, vector<18x18xf32> -> vector<18x18xf32>
    %cst_28 = arith.constant 0.353553385 : f32
    %32 = vector.broadcast %cst_28 : f32 to vector<18x18xf32>
    %33 = arith.mulf %31, %32 : vector<18x18xf32>
    %cst_29 = arith.constant dense<0xFF800000> : vector<18xf32>
    %34 = vector.multi_reduction <maximumf>, %33, %cst_29 [1] : vector<18x18xf32> to vector<18xf32>
    %35 = vector.shape_cast %34 : vector<18xf32> to vector<18x1xf32>
    %36 = vector.broadcast %35 : vector<18x1xf32> to vector<18x18xf32>
    %37 = arith.subf %33, %36 : vector<18x18xf32>
    %38 = math.exp %37 : vector<18x18xf32>
    %cst_30 = arith.constant dense<0.000000e+00> : vector<18xf32>
    %39 = vector.multi_reduction <add>, %38, %cst_30 [1] : vector<18x18xf32> to vector<18xf32>
    %40 = vector.shape_cast %39 : vector<18xf32> to vector<18x1xf32>
    %41 = tpu.reciprocal %40 {approx = true} : vector<18x1xf32> -> vector<18x1xf32>
    %42 = vector.broadcast %41 : vector<18x1xf32> to vector<18x18xf32>
    %43 = arith.mulf %38, %42 : vector<18x18xf32>
    %44 = vector.extract_strided_slice %24 {offsets = [0, 0], sizes = [18, 8], strides = [1, 1]} : vector<18x32xf32> to vector<18x8xf32>
    %cst_31 = arith.constant dense<0.000000e+00> : vector<18x8xf32>
    %45 = tpu.matmul %43, %44, %cst_31 {dimension_numbers = #tpu.dot_dimension_numbers<[1], [0], [0], [1], [0, 0, 1, 1], [], []>} : vector<18x18xf32>, vector<18x8xf32>, vector<18x8xf32> -> vector<18x8xf32>
    %46 = vector.extract_strided_slice %19 {offsets = [0, 8], sizes = [18, 8], strides = [1, 1]} : vector<18x32xf32> to vector<18x8xf32>
    %47 = vector.extract_strided_slice %20 {offsets = [0, 8], sizes = [18, 8], strides = [1, 1]} : vector<18x32xf32> to vector<18x8xf32>
    %cst_32 = arith.constant dense<0.000000e+00> : vector<18x18xf32>
    %48 = tpu.matmul %46, %47, %cst_32 {dimension_numbers = #tpu.dot_dimension_numbers<[1], [1], [0], [0], [0, 0, 1, 0], [], []>} : vector<18x8xf32>, vector<18x8xf32>, vector<18x18xf32> -> vector<18x18xf32>
    %cst_33 = arith.constant 0.353553385 : f32
    %49 = vector.broadcast %cst_33 : f32 to vector<18x18xf32>
    %50 = arith.mulf %48, %49 : vector<18x18xf32>
    %cst_34 = arith.constant dense<0xFF800000> : vector<18xf32>
    %51 = vector.multi_reduction <maximumf>, %50, %cst_34 [1] : vector<18x18xf32> to vector<18xf32>
    %52 = vector.shape_cast %51 : vector<18xf32> to vector<18x1xf32>
    %53 = vector.broadcast %52 : vector<18x1xf32> to vector<18x18xf32>
    %54 = arith.subf %50, %53 : vector<18x18xf32>
    %55 = math.exp %54 : vector<18x18xf32>
    %cst_35 = arith.constant dense<0.000000e+00> : vector<18xf32>
    %56 = vector.multi_reduction <add>, %55, %cst_35 [1] : vector<18x18xf32> to vector<18xf32>
    %57 = vector.shape_cast %56 : vector<18xf32> to vector<18x1xf32>
    %58 = tpu.reciprocal %57 {approx = true} : vector<18x1xf32> -> vector<18x1xf32>
    %59 = vector.broadcast %58 : vector<18x1xf32> to vector<18x18xf32>
    %60 = arith.mulf %55, %59 : vector<18x18xf32>
    %61 = vector.extract_strided_slice %24 {offsets = [0, 8], sizes = [18, 8], strides = [1, 1]} : vector<18x32xf32> to vector<18x8xf32>
    %cst_36 = arith.constant dense<0.000000e+00> : vector<18x8xf32>
    %62 = tpu.matmul %60, %61, %cst_36 {dimension_numbers = #tpu.dot_dimension_numbers<[1], [0], [0], [1], [0, 0, 1, 1], [], []>} : vector<18x18xf32>, vector<18x8xf32>, vector<18x8xf32> -> vector<18x8xf32>
    %63 = vector.extract_strided_slice %19 {offsets = [0, 16], sizes = [18, 8], strides = [1, 1]} : vector<18x32xf32> to vector<18x8xf32>
    %64 = vector.extract_strided_slice %20 {offsets = [0, 16], sizes = [18, 8], strides = [1, 1]} : vector<18x32xf32> to vector<18x8xf32>
    %cst_37 = arith.constant dense<0.000000e+00> : vector<18x18xf32>
    %65 = tpu.matmul %63, %64, %cst_37 {dimension_numbers = #tpu.dot_dimension_numbers<[1], [1], [0], [0], [0, 0, 1, 0], [], []>} : vector<18x8xf32>, vector<18x8xf32>, vector<18x18xf32> -> vector<18x18xf32>
    %cst_38 = arith.constant 0.353553385 : f32
    %66 = vector.broadcast %cst_38 : f32 to vector<18x18xf32>
    %67 = arith.mulf %65, %66 : vector<18x18xf32>
    %cst_39 = arith.constant dense<0xFF800000> : vector<18xf32>
    %68 = vector.multi_reduction <maximumf>, %67, %cst_39 [1] : vector<18x18xf32> to vector<18xf32>
    %69 = vector.shape_cast %68 : vector<18xf32> to vector<18x1xf32>
    %70 = vector.broadcast %69 : vector<18x1xf32> to vector<18x18xf32>
    %71 = arith.subf %67, %70 : vector<18x18xf32>
    %72 = math.exp %71 : vector<18x18xf32>
    %cst_40 = arith.constant dense<0.000000e+00> : vector<18xf32>
    %73 = vector.multi_reduction <add>, %72, %cst_40 [1] : vector<18x18xf32> to vector<18xf32>
    %74 = vector.shape_cast %73 : vector<18xf32> to vector<18x1xf32>
    %75 = tpu.reciprocal %74 {approx = true} : vector<18x1xf32> -> vector<18x1xf32>
    %76 = vector.broadcast %75 : vector<18x1xf32> to vector<18x18xf32>
    %77 = arith.mulf %72, %76 : vector<18x18xf32>
    %78 = vector.extract_strided_slice %24 {offsets = [0, 16], sizes = [18, 8], strides = [1, 1]} : vector<18x32xf32> to vector<18x8xf32>
    %cst_41 = arith.constant dense<0.000000e+00> : vector<18x8xf32>
    %79 = tpu.matmul %77, %78, %cst_41 {dimension_numbers = #tpu.dot_dimension_numbers<[1], [0], [0], [1], [0, 0, 1, 1], [], []>} : vector<18x18xf32>, vector<18x8xf32>, vector<18x8xf32> -> vector<18x8xf32>
    %80 = vector.extract_strided_slice %19 {offsets = [0, 24], sizes = [18, 8], strides = [1, 1]} : vector<18x32xf32> to vector<18x8xf32>
    %81 = vector.extract_strided_slice %20 {offsets = [0, 24], sizes = [18, 8], strides = [1, 1]} : vector<18x32xf32> to vector<18x8xf32>
    %cst_42 = arith.constant dense<0.000000e+00> : vector<18x18xf32>
    %82 = tpu.matmul %80, %81, %cst_42 {dimension_numbers = #tpu.dot_dimension_numbers<[1], [1], [0], [0], [0, 0, 1, 0], [], []>} : vector<18x8xf32>, vector<18x8xf32>, vector<18x18xf32> -> vector<18x18xf32>
    %cst_43 = arith.constant 0.353553385 : f32
    %83 = vector.broadcast %cst_43 : f32 to vector<18x18xf32>
    %84 = arith.mulf %82, %83 : vector<18x18xf32>
    %cst_44 = arith.constant dense<0xFF800000> : vector<18xf32>
    %85 = vector.multi_reduction <maximumf>, %84, %cst_44 [1] : vector<18x18xf32> to vector<18xf32>
    %86 = vector.shape_cast %85 : vector<18xf32> to vector<18x1xf32>
    %87 = vector.broadcast %86 : vector<18x1xf32> to vector<18x18xf32>
    %88 = arith.subf %84, %87 : vector<18x18xf32>
    %89 = math.exp %88 : vector<18x18xf32>
    %cst_45 = arith.constant dense<0.000000e+00> : vector<18xf32>
    %90 = vector.multi_reduction <add>, %89, %cst_45 [1] : vector<18x18xf32> to vector<18xf32>
    %91 = vector.shape_cast %90 : vector<18xf32> to vector<18x1xf32>
    %92 = tpu.reciprocal %91 {approx = true} : vector<18x1xf32> -> vector<18x1xf32>
    %93 = vector.broadcast %92 : vector<18x1xf32> to vector<18x18xf32>
    %94 = arith.mulf %89, %93 : vector<18x18xf32>
    %95 = vector.extract_strided_slice %24 {offsets = [0, 24], sizes = [18, 8], strides = [1, 1]} : vector<18x32xf32> to vector<18x8xf32>
    %cst_46 = arith.constant dense<0.000000e+00> : vector<18x8xf32>
    %96 = tpu.matmul %94, %95, %cst_46 {dimension_numbers = #tpu.dot_dimension_numbers<[1], [0], [0], [1], [0, 0, 1, 1], [], []>} : vector<18x18xf32>, vector<18x8xf32>, vector<18x8xf32> -> vector<18x8xf32>
    %97 = tpu.concatenate %45, %62, %79, %96 in 1 : vector<18x8xf32>, vector<18x8xf32>, vector<18x8xf32>, vector<18x8xf32> -> vector<18x32xf32>
    %98 = arith.truncf %97 : vector<18x32xf32> to vector<18x32xbf16>
    %cst_47 = arith.constant dense<0.000000e+00> : vector<18x32xf32>
    %99 = tpu.matmul %98, %26, %cst_47 {dimension_numbers = #tpu.dot_dimension_numbers<[1], [0], [0], [1], [0, 0, 1, 1], [], []>} : vector<18x32xbf16>, vector<32x32xbf16>, vector<18x32xf32> -> vector<18x32xf32>
    %100 = vector.broadcast %28 : vector<1x32xf32> to vector<18x32xf32>
    %101 = arith.addf %99, %100 : vector<18x32xf32>
    %102 = arith.addf %1, %101 : vector<18x32xf32>
    %c0_48 = arith.constant 0 : index
    %c0_49 = arith.constant 0 : index
    %c0_50 = arith.constant 0 : index
    %103 = vector.load %arg10[%c0_48, %c0_49, %c0_50] : memref<2x1x32xf32, #tpu.memory_space<vmem>>, vector<1x1x32xf32>
    %104 = vector.shape_cast %103 : vector<1x1x32xf32> to vector<1x32xf32>
    %c0_51 = arith.constant 0 : index
    %c0_52 = arith.constant 0 : index
    %c0_53 = arith.constant 0 : index
    %105 = vector.load %arg11[%c0_51, %c0_52, %c0_53] : memref<2x1x32xf32, #tpu.memory_space<vmem>>, vector<1x1x32xf32>
    %106 = vector.shape_cast %105 : vector<1x1x32xf32> to vector<1x32xf32>
    %cst_54 = arith.constant dense<0.000000e+00> : vector<18xf32>
    %107 = vector.multi_reduction <add>, %102, %cst_54 [1] : vector<18x32xf32> to vector<18xf32>
    %108 = vector.shape_cast %107 : vector<18xf32> to vector<18x1xf32>
    %cst_55 = arith.constant 3.200000e+01 : f32
    %109 = vector.broadcast %cst_55 : f32 to vector<18x1xf32>
    %110 = arith.divf %108, %109 : vector<18x1xf32>
    %111 = vector.broadcast %110 : vector<18x1xf32> to vector<18x32xf32>
    %112 = arith.subf %102, %111 : vector<18x32xf32>
    %113 = arith.mulf %112, %112 : vector<18x32xf32>
    %cst_56 = arith.constant dense<0.000000e+00> : vector<18xf32>
    %114 = vector.multi_reduction <add>, %113, %cst_56 [1] : vector<18x32xf32> to vector<18xf32>
    %115 = vector.shape_cast %114 : vector<18xf32> to vector<18x1xf32>
    %cst_57 = arith.constant 3.200000e+01 : f32
    %116 = vector.broadcast %cst_57 : f32 to vector<18x1xf32>
    %117 = arith.divf %115, %116 : vector<18x1xf32>
    %cst_58 = arith.constant 9.99999974E-6 : f32
    %118 = vector.broadcast %cst_58 : f32 to vector<18x1xf32>
    %119 = arith.addf %117, %118 : vector<18x1xf32>
    %120 = math.rsqrt %119 : vector<18x1xf32>
    %121 = vector.broadcast %120 : vector<18x1xf32> to vector<18x32xf32>
    %122 = arith.mulf %112, %121 : vector<18x32xf32>
    %123 = vector.broadcast %104 : vector<1x32xf32> to vector<18x32xf32>
    %124 = arith.mulf %122, %123 : vector<18x32xf32>
    %125 = vector.broadcast %106 : vector<1x32xf32> to vector<18x32xf32>
    %126 = arith.addf %124, %125 : vector<18x32xf32>
    %c0_59 = arith.constant 0 : index
    %c0_60 = arith.constant 0 : index
    %c0_61 = arith.constant 0 : index
    %127 = vector.load %arg12[%c0_59, %c0_60, %c0_61] : memref<2x32x64xbf16, #tpu.memory_space<vmem>>, vector<1x32x64xbf16>
    %128 = vector.shape_cast %127 : vector<1x32x64xbf16> to vector<32x64xbf16>
    %c0_62 = arith.constant 0 : index
    %c0_63 = arith.constant 0 : index
    %c0_64 = arith.constant 0 : index
    %129 = vector.load %arg13[%c0_62, %c0_63, %c0_64] : memref<2x1x64xf32, #tpu.memory_space<vmem>>, vector<1x1x64xf32>
    %130 = vector.shape_cast %129 : vector<1x1x64xf32> to vector<1x64xf32>
    %c0_65 = arith.constant 0 : index
    %c0_66 = arith.constant 0 : index
    %c0_67 = arith.constant 0 : index
    %131 = vector.load %arg14[%c0_65, %c0_66, %c0_67] : memref<2x64x32xbf16, #tpu.memory_space<vmem>>, vector<1x64x32xbf16>
    %132 = vector.shape_cast %131 : vector<1x64x32xbf16> to vector<64x32xbf16>
    %c0_68 = arith.constant 0 : index
    %c0_69 = arith.constant 0 : index
    %c0_70 = arith.constant 0 : index
    %133 = vector.load %arg15[%c0_68, %c0_69, %c0_70] : memref<2x1x32xf32, #tpu.memory_space<vmem>>, vector<1x1x32xf32>
    %134 = vector.shape_cast %133 : vector<1x1x32xf32> to vector<1x32xf32>
    %135 = arith.truncf %126 : vector<18x32xf32> to vector<18x32xbf16>
    %cst_71 = arith.constant dense<0.000000e+00> : vector<18x64xf32>
    %136 = tpu.matmul %135, %128, %cst_71 {dimension_numbers = #tpu.dot_dimension_numbers<[1], [0], [0], [1], [0, 0, 1, 1], [], []>} : vector<18x32xbf16>, vector<32x64xbf16>, vector<18x64xf32> -> vector<18x64xf32>
    %137 = vector.broadcast %130 : vector<1x64xf32> to vector<18x64xf32>
    %138 = arith.addf %136, %137 : vector<18x64xf32>
    %cst_72 = arith.constant 0.000000e+00 : f32
    %139 = vector.broadcast %cst_72 : f32 to vector<18x64xf32>
    %140 = arith.maximumf %138, %139 : vector<18x64xf32>
    %141 = arith.truncf %140 : vector<18x64xf32> to vector<18x64xbf16>
    %cst_73 = arith.constant dense<0.000000e+00> : vector<18x32xf32>
    %142 = tpu.matmul %141, %132, %cst_73 {dimension_numbers = #tpu.dot_dimension_numbers<[1], [0], [0], [1], [0, 0, 1, 1], [], []>} : vector<18x64xbf16>, vector<64x32xbf16>, vector<18x32xf32> -> vector<18x32xf32>
    %143 = vector.broadcast %134 : vector<1x32xf32> to vector<18x32xf32>
    %144 = arith.addf %142, %143 : vector<18x32xf32>
    %145 = arith.addf %126, %144 : vector<18x32xf32>
    %c0_74 = arith.constant 0 : index
    %c0_75 = arith.constant 0 : index
    %c0_76 = arith.constant 0 : index
    %146 = vector.load %arg16[%c0_74, %c0_75, %c0_76] : memref<2x1x32xf32, #tpu.memory_space<vmem>>, vector<1x1x32xf32>
    %147 = vector.shape_cast %146 : vector<1x1x32xf32> to vector<1x32xf32>
    %c0_77 = arith.constant 0 : index
    %c0_78 = arith.constant 0 : index
    %c0_79 = arith.constant 0 : index
    %148 = vector.load %arg17[%c0_77, %c0_78, %c0_79] : memref<2x1x32xf32, #tpu.memory_space<vmem>>, vector<1x1x32xf32>
    %149 = vector.shape_cast %148 : vector<1x1x32xf32> to vector<1x32xf32>
    %cst_80 = arith.constant dense<0.000000e+00> : vector<18xf32>
    %150 = vector.multi_reduction <add>, %145, %cst_80 [1] : vector<18x32xf32> to vector<18xf32>
    %151 = vector.shape_cast %150 : vector<18xf32> to vector<18x1xf32>
    %cst_81 = arith.constant 3.200000e+01 : f32
    %152 = vector.broadcast %cst_81 : f32 to vector<18x1xf32>
    %153 = arith.divf %151, %152 : vector<18x1xf32>
    %154 = vector.broadcast %153 : vector<18x1xf32> to vector<18x32xf32>
    %155 = arith.subf %145, %154 : vector<18x32xf32>
    %156 = arith.mulf %155, %155 : vector<18x32xf32>
    %cst_82 = arith.constant dense<0.000000e+00> : vector<18xf32>
    %157 = vector.multi_reduction <add>, %156, %cst_82 [1] : vector<18x32xf32> to vector<18xf32>
    %158 = vector.shape_cast %157 : vector<18xf32> to vector<18x1xf32>
    %cst_83 = arith.constant 3.200000e+01 : f32
    %159 = vector.broadcast %cst_83 : f32 to vector<18x1xf32>
    %160 = arith.divf %158, %159 : vector<18x1xf32>
    %cst_84 = arith.constant 9.99999974E-6 : f32
    %161 = vector.broadcast %cst_84 : f32 to vector<18x1xf32>
    %162 = arith.addf %160, %161 : vector<18x1xf32>
    %163 = math.rsqrt %162 : vector<18x1xf32>
    %164 = vector.broadcast %163 : vector<18x1xf32> to vector<18x32xf32>
    %165 = arith.mulf %155, %164 : vector<18x32xf32>
    %166 = vector.broadcast %147 : vector<1x32xf32> to vector<18x32xf32>
    %167 = arith.mulf %165, %166 : vector<18x32xf32>
    %168 = vector.broadcast %149 : vector<1x32xf32> to vector<18x32xf32>
    %169 = arith.addf %167, %168 : vector<18x32xf32>
    %170 = arith.addf %169, %3 : vector<18x32xf32>
    %c1 = arith.constant 1 : index
    %c0_85 = arith.constant 0 : index
    %c0_86 = arith.constant 0 : index
    %171 = vector.load %arg4[%c1, %c0_85, %c0_86] : memref<2x32x64xbf16, #tpu.memory_space<vmem>>, vector<1x32x64xbf16>
    %172 = vector.shape_cast %171 : vector<1x32x64xbf16> to vector<32x64xbf16>
    %c1_87 = arith.constant 1 : index
    %c0_88 = arith.constant 0 : index
    %c0_89 = arith.constant 0 : index
    %173 = vector.load %arg5[%c1_87, %c0_88, %c0_89] : memref<2x1x64xf32, #tpu.memory_space<vmem>>, vector<1x1x64xf32>
    %174 = vector.shape_cast %173 : vector<1x1x64xf32> to vector<1x64xf32>
    %c1_90 = arith.constant 1 : index
    %c0_91 = arith.constant 0 : index
    %c0_92 = arith.constant 0 : index
    %175 = vector.load %arg6[%c1_90, %c0_91, %c0_92] : memref<2x32x32xbf16, #tpu.memory_space<vmem>>, vector<1x32x32xbf16>
    %176 = vector.shape_cast %175 : vector<1x32x32xbf16> to vector<32x32xbf16>
    %c1_93 = arith.constant 1 : index
    %c0_94 = arith.constant 0 : index
    %c0_95 = arith.constant 0 : index
    %177 = vector.load %arg7[%c1_93, %c0_94, %c0_95] : memref<2x1x32xf32, #tpu.memory_space<vmem>>, vector<1x1x32xf32>
    %178 = vector.shape_cast %177 : vector<1x1x32xf32> to vector<1x32xf32>
    %179 = arith.truncf %170 : vector<18x32xf32> to vector<18x32xbf16>
    %cst_96 = arith.constant dense<0.000000e+00> : vector<18x64xf32>
    %180 = tpu.matmul %179, %172, %cst_96 {dimension_numbers = #tpu.dot_dimension_numbers<[1], [0], [0], [1], [0, 0, 1, 1], [], []>} : vector<18x32xbf16>, vector<32x64xbf16>, vector<18x64xf32> -> vector<18x64xf32>
    %181 = vector.broadcast %174 : vector<1x64xf32> to vector<18x64xf32>
    %182 = arith.addf %180, %181 : vector<18x64xf32>
    %183 = vector.extract_strided_slice %182 {offsets = [0, 0], sizes = [18, 32], strides = [1, 1]} : vector<18x64xf32> to vector<18x32xf32>
    %184 = vector.extract_strided_slice %182 {offsets = [0, 32], sizes = [18, 32], strides = [1, 1]} : vector<18x64xf32> to vector<18x32xf32>
    %185 = arith.truncf %169 : vector<18x32xf32> to vector<18x32xbf16>
    %cst_97 = arith.constant dense<0.000000e+00> : vector<18x32xf32>
    %186 = tpu.matmul %185, %176, %cst_97 {dimension_numbers = #tpu.dot_dimension_numbers<[1], [0], [0], [1], [0, 0, 1, 1], [], []>} : vector<18x32xbf16>, vector<32x32xbf16>, vector<18x32xf32> -> vector<18x32xf32>
    %187 = vector.broadcast %178 : vector<1x32xf32> to vector<18x32xf32>
    %188 = arith.addf %186, %187 : vector<18x32xf32>
    %c1_98 = arith.constant 1 : index
    %c0_99 = arith.constant 0 : index
    %c0_100 = arith.constant 0 : index
    %189 = vector.load %arg8[%c1_98, %c0_99, %c0_100] : memref<2x32x32xbf16, #tpu.memory_space<vmem>>, vector<1x32x32xbf16>
    %190 = vector.shape_cast %189 : vector<1x32x32xbf16> to vector<32x32xbf16>
    %c1_101 = arith.constant 1 : index
    %c0_102 = arith.constant 0 : index
    %c0_103 = arith.constant 0 : index
    %191 = vector.load %arg9[%c1_101, %c0_102, %c0_103] : memref<2x1x32xf32, #tpu.memory_space<vmem>>, vector<1x1x32xf32>
    %192 = vector.shape_cast %191 : vector<1x1x32xf32> to vector<1x32xf32>
    %193 = vector.extract_strided_slice %183 {offsets = [0, 0], sizes = [18, 8], strides = [1, 1]} : vector<18x32xf32> to vector<18x8xf32>
    %194 = vector.extract_strided_slice %184 {offsets = [0, 0], sizes = [18, 8], strides = [1, 1]} : vector<18x32xf32> to vector<18x8xf32>
    %cst_104 = arith.constant dense<0.000000e+00> : vector<18x18xf32>
    %195 = tpu.matmul %193, %194, %cst_104 {dimension_numbers = #tpu.dot_dimension_numbers<[1], [1], [0], [0], [0, 0, 1, 0], [], []>} : vector<18x8xf32>, vector<18x8xf32>, vector<18x18xf32> -> vector<18x18xf32>
    %cst_105 = arith.constant 0.353553385 : f32
    %196 = vector.broadcast %cst_105 : f32 to vector<18x18xf32>
    %197 = arith.mulf %195, %196 : vector<18x18xf32>
    %cst_106 = arith.constant dense<0xFF800000> : vector<18xf32>
    %198 = vector.multi_reduction <maximumf>, %197, %cst_106 [1] : vector<18x18xf32> to vector<18xf32>
    %199 = vector.shape_cast %198 : vector<18xf32> to vector<18x1xf32>
    %200 = vector.broadcast %199 : vector<18x1xf32> to vector<18x18xf32>
    %201 = arith.subf %197, %200 : vector<18x18xf32>
    %202 = math.exp %201 : vector<18x18xf32>
    %cst_107 = arith.constant dense<0.000000e+00> : vector<18xf32>
    %203 = vector.multi_reduction <add>, %202, %cst_107 [1] : vector<18x18xf32> to vector<18xf32>
    %204 = vector.shape_cast %203 : vector<18xf32> to vector<18x1xf32>
    %205 = tpu.reciprocal %204 {approx = true} : vector<18x1xf32> -> vector<18x1xf32>
    %206 = vector.broadcast %205 : vector<18x1xf32> to vector<18x18xf32>
    %207 = arith.mulf %202, %206 : vector<18x18xf32>
    %208 = vector.extract_strided_slice %188 {offsets = [0, 0], sizes = [18, 8], strides = [1, 1]} : vector<18x32xf32> to vector<18x8xf32>
    %cst_108 = arith.constant dense<0.000000e+00> : vector<18x8xf32>
    %209 = tpu.matmul %207, %208, %cst_108 {dimension_numbers = #tpu.dot_dimension_numbers<[1], [0], [0], [1], [0, 0, 1, 1], [], []>} : vector<18x18xf32>, vector<18x8xf32>, vector<18x8xf32> -> vector<18x8xf32>
    %210 = vector.extract_strided_slice %183 {offsets = [0, 8], sizes = [18, 8], strides = [1, 1]} : vector<18x32xf32> to vector<18x8xf32>
    %211 = vector.extract_strided_slice %184 {offsets = [0, 8], sizes = [18, 8], strides = [1, 1]} : vector<18x32xf32> to vector<18x8xf32>
    %cst_109 = arith.constant dense<0.000000e+00> : vector<18x18xf32>
    %212 = tpu.matmul %210, %211, %cst_109 {dimension_numbers = #tpu.dot_dimension_numbers<[1], [1], [0], [0], [0, 0, 1, 0], [], []>} : vector<18x8xf32>, vector<18x8xf32>, vector<18x18xf32> -> vector<18x18xf32>
    %cst_110 = arith.constant 0.353553385 : f32
    %213 = vector.broadcast %cst_110 : f32 to vector<18x18xf32>
    %214 = arith.mulf %212, %213 : vector<18x18xf32>
    %cst_111 = arith.constant dense<0xFF800000> : vector<18xf32>
    %215 = vector.multi_reduction <maximumf>, %214, %cst_111 [1] : vector<18x18xf32> to vector<18xf32>
    %216 = vector.shape_cast %215 : vector<18xf32> to vector<18x1xf32>
    %217 = vector.broadcast %216 : vector<18x1xf32> to vector<18x18xf32>
    %218 = arith.subf %214, %217 : vector<18x18xf32>
    %219 = math.exp %218 : vector<18x18xf32>
    %cst_112 = arith.constant dense<0.000000e+00> : vector<18xf32>
    %220 = vector.multi_reduction <add>, %219, %cst_112 [1] : vector<18x18xf32> to vector<18xf32>
    %221 = vector.shape_cast %220 : vector<18xf32> to vector<18x1xf32>
    %222 = tpu.reciprocal %221 {approx = true} : vector<18x1xf32> -> vector<18x1xf32>
    %223 = vector.broadcast %222 : vector<18x1xf32> to vector<18x18xf32>
    %224 = arith.mulf %219, %223 : vector<18x18xf32>
    %225 = vector.extract_strided_slice %188 {offsets = [0, 8], sizes = [18, 8], strides = [1, 1]} : vector<18x32xf32> to vector<18x8xf32>
    %cst_113 = arith.constant dense<0.000000e+00> : vector<18x8xf32>
    %226 = tpu.matmul %224, %225, %cst_113 {dimension_numbers = #tpu.dot_dimension_numbers<[1], [0], [0], [1], [0, 0, 1, 1], [], []>} : vector<18x18xf32>, vector<18x8xf32>, vector<18x8xf32> -> vector<18x8xf32>
    %227 = vector.extract_strided_slice %183 {offsets = [0, 16], sizes = [18, 8], strides = [1, 1]} : vector<18x32xf32> to vector<18x8xf32>
    %228 = vector.extract_strided_slice %184 {offsets = [0, 16], sizes = [18, 8], strides = [1, 1]} : vector<18x32xf32> to vector<18x8xf32>
    %cst_114 = arith.constant dense<0.000000e+00> : vector<18x18xf32>
    %229 = tpu.matmul %227, %228, %cst_114 {dimension_numbers = #tpu.dot_dimension_numbers<[1], [1], [0], [0], [0, 0, 1, 0], [], []>} : vector<18x8xf32>, vector<18x8xf32>, vector<18x18xf32> -> vector<18x18xf32>
    %cst_115 = arith.constant 0.353553385 : f32
    %230 = vector.broadcast %cst_115 : f32 to vector<18x18xf32>
    %231 = arith.mulf %229, %230 : vector<18x18xf32>
    %cst_116 = arith.constant dense<0xFF800000> : vector<18xf32>
    %232 = vector.multi_reduction <maximumf>, %231, %cst_116 [1] : vector<18x18xf32> to vector<18xf32>
    %233 = vector.shape_cast %232 : vector<18xf32> to vector<18x1xf32>
    %234 = vector.broadcast %233 : vector<18x1xf32> to vector<18x18xf32>
    %235 = arith.subf %231, %234 : vector<18x18xf32>
    %236 = math.exp %235 : vector<18x18xf32>
    %cst_117 = arith.constant dense<0.000000e+00> : vector<18xf32>
    %237 = vector.multi_reduction <add>, %236, %cst_117 [1] : vector<18x18xf32> to vector<18xf32>
    %238 = vector.shape_cast %237 : vector<18xf32> to vector<18x1xf32>
    %239 = tpu.reciprocal %238 {approx = true} : vector<18x1xf32> -> vector<18x1xf32>
    %240 = vector.broadcast %239 : vector<18x1xf32> to vector<18x18xf32>
    %241 = arith.mulf %236, %240 : vector<18x18xf32>
    %242 = vector.extract_strided_slice %188 {offsets = [0, 16], sizes = [18, 8], strides = [1, 1]} : vector<18x32xf32> to vector<18x8xf32>
    %cst_118 = arith.constant dense<0.000000e+00> : vector<18x8xf32>
    %243 = tpu.matmul %241, %242, %cst_118 {dimension_numbers = #tpu.dot_dimension_numbers<[1], [0], [0], [1], [0, 0, 1, 1], [], []>} : vector<18x18xf32>, vector<18x8xf32>, vector<18x8xf32> -> vector<18x8xf32>
    %244 = vector.extract_strided_slice %183 {offsets = [0, 24], sizes = [18, 8], strides = [1, 1]} : vector<18x32xf32> to vector<18x8xf32>
    %245 = vector.extract_strided_slice %184 {offsets = [0, 24], sizes = [18, 8], strides = [1, 1]} : vector<18x32xf32> to vector<18x8xf32>
    %cst_119 = arith.constant dense<0.000000e+00> : vector<18x18xf32>
    %246 = tpu.matmul %244, %245, %cst_119 {dimension_numbers = #tpu.dot_dimension_numbers<[1], [1], [0], [0], [0, 0, 1, 0], [], []>} : vector<18x8xf32>, vector<18x8xf32>, vector<18x18xf32> -> vector<18x18xf32>
    %cst_120 = arith.constant 0.353553385 : f32
    %247 = vector.broadcast %cst_120 : f32 to vector<18x18xf32>
    %248 = arith.mulf %246, %247 : vector<18x18xf32>
    %cst_121 = arith.constant dense<0xFF800000> : vector<18xf32>
    %249 = vector.multi_reduction <maximumf>, %248, %cst_121 [1] : vector<18x18xf32> to vector<18xf32>
    %250 = vector.shape_cast %249 : vector<18xf32> to vector<18x1xf32>
    %251 = vector.broadcast %250 : vector<18x1xf32> to vector<18x18xf32>
    %252 = arith.subf %248, %251 : vector<18x18xf32>
    %253 = math.exp %252 : vector<18x18xf32>
    %cst_122 = arith.constant dense<0.000000e+00> : vector<18xf32>
    %254 = vector.multi_reduction <add>, %253, %cst_122 [1] : vector<18x18xf32> to vector<18xf32>
    %255 = vector.shape_cast %254 : vector<18xf32> to vector<18x1xf32>
    %256 = tpu.reciprocal %255 {approx = true} : vector<18x1xf32> -> vector<18x1xf32>
    %257 = vector.broadcast %256 : vector<18x1xf32> to vector<18x18xf32>
    %258 = arith.mulf %253, %257 : vector<18x18xf32>
    %259 = vector.extract_strided_slice %188 {offsets = [0, 24], sizes = [18, 8], strides = [1, 1]} : vector<18x32xf32> to vector<18x8xf32>
    %cst_123 = arith.constant dense<0.000000e+00> : vector<18x8xf32>
    %260 = tpu.matmul %258, %259, %cst_123 {dimension_numbers = #tpu.dot_dimension_numbers<[1], [0], [0], [1], [0, 0, 1, 1], [], []>} : vector<18x18xf32>, vector<18x8xf32>, vector<18x8xf32> -> vector<18x8xf32>
    %261 = tpu.concatenate %209, %226, %243, %260 in 1 : vector<18x8xf32>, vector<18x8xf32>, vector<18x8xf32>, vector<18x8xf32> -> vector<18x32xf32>
    %262 = arith.truncf %261 : vector<18x32xf32> to vector<18x32xbf16>
    %cst_124 = arith.constant dense<0.000000e+00> : vector<18x32xf32>
    %263 = tpu.matmul %262, %190, %cst_124 {dimension_numbers = #tpu.dot_dimension_numbers<[1], [0], [0], [1], [0, 0, 1, 1], [], []>} : vector<18x32xbf16>, vector<32x32xbf16>, vector<18x32xf32> -> vector<18x32xf32>
    %264 = vector.broadcast %192 : vector<1x32xf32> to vector<18x32xf32>
    %265 = arith.addf %263, %264 : vector<18x32xf32>
    %266 = arith.addf %169, %265 : vector<18x32xf32>
    %c1_125 = arith.constant 1 : index
    %c0_126 = arith.constant 0 : index
    %c0_127 = arith.constant 0 : index
    %267 = vector.load %arg10[%c1_125, %c0_126, %c0_127] : memref<2x1x32xf32, #tpu.memory_space<vmem>>, vector<1x1x32xf32>
    %268 = vector.shape_cast %267 : vector<1x1x32xf32> to vector<1x32xf32>
    %c1_128 = arith.constant 1 : index
    %c0_129 = arith.constant 0 : index
    %c0_130 = arith.constant 0 : index
    %269 = vector.load %arg11[%c1_128, %c0_129, %c0_130] : memref<2x1x32xf32, #tpu.memory_space<vmem>>, vector<1x1x32xf32>
    %270 = vector.shape_cast %269 : vector<1x1x32xf32> to vector<1x32xf32>
    %cst_131 = arith.constant dense<0.000000e+00> : vector<18xf32>
    %271 = vector.multi_reduction <add>, %266, %cst_131 [1] : vector<18x32xf32> to vector<18xf32>
    %272 = vector.shape_cast %271 : vector<18xf32> to vector<18x1xf32>
    %cst_132 = arith.constant 3.200000e+01 : f32
    %273 = vector.broadcast %cst_132 : f32 to vector<18x1xf32>
    %274 = arith.divf %272, %273 : vector<18x1xf32>
    %275 = vector.broadcast %274 : vector<18x1xf32> to vector<18x32xf32>
    %276 = arith.subf %266, %275 : vector<18x32xf32>
    %277 = arith.mulf %276, %276 : vector<18x32xf32>
    %cst_133 = arith.constant dense<0.000000e+00> : vector<18xf32>
    %278 = vector.multi_reduction <add>, %277, %cst_133 [1] : vector<18x32xf32> to vector<18xf32>
    %279 = vector.shape_cast %278 : vector<18xf32> to vector<18x1xf32>
    %cst_134 = arith.constant 3.200000e+01 : f32
    %280 = vector.broadcast %cst_134 : f32 to vector<18x1xf32>
    %281 = arith.divf %279, %280 : vector<18x1xf32>
    %cst_135 = arith.constant 9.99999974E-6 : f32
    %282 = vector.broadcast %cst_135 : f32 to vector<18x1xf32>
    %283 = arith.addf %281, %282 : vector<18x1xf32>
    %284 = math.rsqrt %283 : vector<18x1xf32>
    %285 = vector.broadcast %284 : vector<18x1xf32> to vector<18x32xf32>
    %286 = arith.mulf %276, %285 : vector<18x32xf32>
    %287 = vector.broadcast %268 : vector<1x32xf32> to vector<18x32xf32>
    %288 = arith.mulf %286, %287 : vector<18x32xf32>
    %289 = vector.broadcast %270 : vector<1x32xf32> to vector<18x32xf32>
    %290 = arith.addf %288, %289 : vector<18x32xf32>
    %c1_136 = arith.constant 1 : index
    %c0_137 = arith.constant 0 : index
    %c0_138 = arith.constant 0 : index
    %291 = vector.load %arg12[%c1_136, %c0_137, %c0_138] : memref<2x32x64xbf16, #tpu.memory_space<vmem>>, vector<1x32x64xbf16>
    %292 = vector.shape_cast %291 : vector<1x32x64xbf16> to vector<32x64xbf16>
    %c1_139 = arith.constant 1 : index
    %c0_140 = arith.constant 0 : index
    %c0_141 = arith.constant 0 : index
    %293 = vector.load %arg13[%c1_139, %c0_140, %c0_141] : memref<2x1x64xf32, #tpu.memory_space<vmem>>, vector<1x1x64xf32>
    %294 = vector.shape_cast %293 : vector<1x1x64xf32> to vector<1x64xf32>
    %c1_142 = arith.constant 1 : index
    %c0_143 = arith.constant 0 : index
    %c0_144 = arith.constant 0 : index
    %295 = vector.load %arg14[%c1_142, %c0_143, %c0_144] : memref<2x64x32xbf16, #tpu.memory_space<vmem>>, vector<1x64x32xbf16>
    %296 = vector.shape_cast %295 : vector<1x64x32xbf16> to vector<64x32xbf16>
    %c1_145 = arith.constant 1 : index
    %c0_146 = arith.constant 0 : index
    %c0_147 = arith.constant 0 : index
    %297 = vector.load %arg15[%c1_145, %c0_146, %c0_147] : memref<2x1x32xf32, #tpu.memory_space<vmem>>, vector<1x1x32xf32>
    %298 = vector.shape_cast %297 : vector<1x1x32xf32> to vector<1x32xf32>
    %299 = arith.truncf %290 : vector<18x32xf32> to vector<18x32xbf16>
    %cst_148 = arith.constant dense<0.000000e+00> : vector<18x64xf32>
    %300 = tpu.matmul %299, %292, %cst_148 {dimension_numbers = #tpu.dot_dimension_numbers<[1], [0], [0], [1], [0, 0, 1, 1], [], []>} : vector<18x32xbf16>, vector<32x64xbf16>, vector<18x64xf32> -> vector<18x64xf32>
    %301 = vector.broadcast %294 : vector<1x64xf32> to vector<18x64xf32>
    %302 = arith.addf %300, %301 : vector<18x64xf32>
    %cst_149 = arith.constant 0.000000e+00 : f32
    %303 = vector.broadcast %cst_149 : f32 to vector<18x64xf32>
    %304 = arith.maximumf %302, %303 : vector<18x64xf32>
    %305 = arith.truncf %304 : vector<18x64xf32> to vector<18x64xbf16>
    %cst_150 = arith.constant dense<0.000000e+00> : vector<18x32xf32>
    %306 = tpu.matmul %305, %296, %cst_150 {dimension_numbers = #tpu.dot_dimension_numbers<[1], [0], [0], [1], [0, 0, 1, 1], [], []>} : vector<18x64xbf16>, vector<64x32xbf16>, vector<18x32xf32> -> vector<18x32xf32>
    %307 = vector.broadcast %298 : vector<1x32xf32> to vector<18x32xf32>
    %308 = arith.addf %306, %307 : vector<18x32xf32>
    %309 = arith.addf %290, %308 : vector<18x32xf32>
    %c1_151 = arith.constant 1 : index
    %c0_152 = arith.constant 0 : index
    %c0_153 = arith.constant 0 : index
    %310 = vector.load %arg16[%c1_151, %c0_152, %c0_153] : memref<2x1x32xf32, #tpu.memory_space<vmem>>, vector<1x1x32xf32>
    %311 = vector.shape_cast %310 : vector<1x1x32xf32> to vector<1x32xf32>
    %c1_154 = arith.constant 1 : index
    %c0_155 = arith.constant 0 : index
    %c0_156 = arith.constant 0 : index
    %312 = vector.load %arg17[%c1_154, %c0_155, %c0_156] : memref<2x1x32xf32, #tpu.memory_space<vmem>>, vector<1x1x32xf32>
    %313 = vector.shape_cast %312 : vector<1x1x32xf32> to vector<1x32xf32>
    %cst_157 = arith.constant dense<0.000000e+00> : vector<18xf32>
    %314 = vector.multi_reduction <add>, %309, %cst_157 [1] : vector<18x32xf32> to vector<18xf32>
    %315 = vector.shape_cast %314 : vector<18xf32> to vector<18x1xf32>
    %cst_158 = arith.constant 3.200000e+01 : f32
    %316 = vector.broadcast %cst_158 : f32 to vector<18x1xf32>
    %317 = arith.divf %315, %316 : vector<18x1xf32>
    %318 = vector.broadcast %317 : vector<18x1xf32> to vector<18x32xf32>
    %319 = arith.subf %309, %318 : vector<18x32xf32>
    %320 = arith.mulf %319, %319 : vector<18x32xf32>
    %cst_159 = arith.constant dense<0.000000e+00> : vector<18xf32>
    %321 = vector.multi_reduction <add>, %320, %cst_159 [1] : vector<18x32xf32> to vector<18xf32>
    %322 = vector.shape_cast %321 : vector<18xf32> to vector<18x1xf32>
    %cst_160 = arith.constant 3.200000e+01 : f32
    %323 = vector.broadcast %cst_160 : f32 to vector<18x1xf32>
    %324 = arith.divf %322, %323 : vector<18x1xf32>
    %cst_161 = arith.constant 9.99999974E-6 : f32
    %325 = vector.broadcast %cst_161 : f32 to vector<18x1xf32>
    %326 = arith.addf %324, %325 : vector<18x1xf32>
    %327 = math.rsqrt %326 : vector<18x1xf32>
    %328 = vector.broadcast %327 : vector<18x1xf32> to vector<18x32xf32>
    %329 = arith.mulf %319, %328 : vector<18x32xf32>
    %330 = vector.broadcast %311 : vector<1x32xf32> to vector<18x32xf32>
    %331 = arith.mulf %329, %330 : vector<18x32xf32>
    %332 = vector.broadcast %313 : vector<1x32xf32> to vector<18x32xf32>
    %333 = arith.addf %331, %332 : vector<18x32xf32>
    %334 = arith.addf %333, %3 : vector<18x32xf32>
    %cst_162 = arith.constant 0.000000e+00 : f32
    %335 = vector.broadcast %cst_162 : f32 to vector<8x32xf32>
    %336 = arith.addf %335, %5 : vector<8x32xf32>
    %c0_163 = arith.constant 0 : index
    %c0_164 = arith.constant 0 : index
    %c0_165 = arith.constant 0 : index
    %337 = vector.load %arg18[%c0_163, %c0_164, %c0_165] : memref<2x32x64xbf16, #tpu.memory_space<vmem>>, vector<1x32x64xbf16>
    %338 = vector.shape_cast %337 : vector<1x32x64xbf16> to vector<32x64xbf16>
    %c0_166 = arith.constant 0 : index
    %c0_167 = arith.constant 0 : index
    %c0_168 = arith.constant 0 : index
    %339 = vector.load %arg19[%c0_166, %c0_167, %c0_168] : memref<2x1x64xf32, #tpu.memory_space<vmem>>, vector<1x1x64xf32>
    %340 = vector.shape_cast %339 : vector<1x1x64xf32> to vector<1x64xf32>
    %c0_169 = arith.constant 0 : index
    %c0_170 = arith.constant 0 : index
    %c0_171 = arith.constant 0 : index
    %341 = vector.load %arg20[%c0_169, %c0_170, %c0_171] : memref<2x32x32xbf16, #tpu.memory_space<vmem>>, vector<1x32x32xbf16>
    %342 = vector.shape_cast %341 : vector<1x32x32xbf16> to vector<32x32xbf16>
    %c0_172 = arith.constant 0 : index
    %c0_173 = arith.constant 0 : index
    %c0_174 = arith.constant 0 : index
    %343 = vector.load %arg21[%c0_172, %c0_173, %c0_174] : memref<2x1x32xf32, #tpu.memory_space<vmem>>, vector<1x1x32xf32>
    %344 = vector.shape_cast %343 : vector<1x1x32xf32> to vector<1x32xf32>
    %345 = arith.truncf %336 : vector<8x32xf32> to vector<8x32xbf16>
    %cst_175 = arith.constant dense<0.000000e+00> : vector<8x64xf32>
    %346 = tpu.matmul %345, %338, %cst_175 {dimension_numbers = #tpu.dot_dimension_numbers<[1], [0], [0], [1], [0, 0, 1, 1], [], []>} : vector<8x32xbf16>, vector<32x64xbf16>, vector<8x64xf32> -> vector<8x64xf32>
    %347 = vector.broadcast %340 : vector<1x64xf32> to vector<8x64xf32>
    %348 = arith.addf %346, %347 : vector<8x64xf32>
    %349 = vector.extract_strided_slice %348 {offsets = [0, 0], sizes = [8, 32], strides = [1, 1]} : vector<8x64xf32> to vector<8x32xf32>
    %350 = vector.extract_strided_slice %348 {offsets = [0, 32], sizes = [8, 32], strides = [1, 1]} : vector<8x64xf32> to vector<8x32xf32>
    %351 = arith.truncf %335 : vector<8x32xf32> to vector<8x32xbf16>
    %cst_176 = arith.constant dense<0.000000e+00> : vector<8x32xf32>
    %352 = tpu.matmul %351, %342, %cst_176 {dimension_numbers = #tpu.dot_dimension_numbers<[1], [0], [0], [1], [0, 0, 1, 1], [], []>} : vector<8x32xbf16>, vector<32x32xbf16>, vector<8x32xf32> -> vector<8x32xf32>
    %353 = vector.broadcast %344 : vector<1x32xf32> to vector<8x32xf32>
    %354 = arith.addf %352, %353 : vector<8x32xf32>
    %c0_177 = arith.constant 0 : index
    %c0_178 = arith.constant 0 : index
    %c0_179 = arith.constant 0 : index
    %355 = vector.load %arg22[%c0_177, %c0_178, %c0_179] : memref<2x32x32xbf16, #tpu.memory_space<vmem>>, vector<1x32x32xbf16>
    %356 = vector.shape_cast %355 : vector<1x32x32xbf16> to vector<32x32xbf16>
    %c0_180 = arith.constant 0 : index
    %c0_181 = arith.constant 0 : index
    %c0_182 = arith.constant 0 : index
    %357 = vector.load %arg23[%c0_180, %c0_181, %c0_182] : memref<2x1x32xf32, #tpu.memory_space<vmem>>, vector<1x1x32xf32>
    %358 = vector.shape_cast %357 : vector<1x1x32xf32> to vector<1x32xf32>
    %359 = vector.extract_strided_slice %349 {offsets = [0, 0], sizes = [8, 8], strides = [1, 1]} : vector<8x32xf32> to vector<8x8xf32>
    %360 = vector.extract_strided_slice %350 {offsets = [0, 0], sizes = [8, 8], strides = [1, 1]} : vector<8x32xf32> to vector<8x8xf32>
    %cst_183 = arith.constant dense<0.000000e+00> : vector<8x8xf32>
    %361 = tpu.matmul %359, %360, %cst_183 {dimension_numbers = #tpu.dot_dimension_numbers<[1], [1], [0], [0], [0, 0, 1, 0], [], []>} : vector<8x8xf32>, vector<8x8xf32>, vector<8x8xf32> -> vector<8x8xf32>
    %cst_184 = arith.constant 0.353553385 : f32
    %362 = vector.broadcast %cst_184 : f32 to vector<8x8xf32>
    %363 = arith.mulf %361, %362 : vector<8x8xf32>
    %cst_185 = arith.constant dense<0xFF800000> : vector<8xf32>
    %364 = vector.multi_reduction <maximumf>, %363, %cst_185 [1] : vector<8x8xf32> to vector<8xf32>
    %365 = vector.shape_cast %364 : vector<8xf32> to vector<8x1xf32>
    %366 = vector.broadcast %365 : vector<8x1xf32> to vector<8x8xf32>
    %367 = arith.subf %363, %366 : vector<8x8xf32>
    %368 = math.exp %367 : vector<8x8xf32>
    %cst_186 = arith.constant dense<0.000000e+00> : vector<8xf32>
    %369 = vector.multi_reduction <add>, %368, %cst_186 [1] : vector<8x8xf32> to vector<8xf32>
    %370 = vector.shape_cast %369 : vector<8xf32> to vector<8x1xf32>
    %371 = tpu.reciprocal %370 {approx = true} : vector<8x1xf32> -> vector<8x1xf32>
    %372 = vector.broadcast %371 : vector<8x1xf32> to vector<8x8xf32>
    %373 = arith.mulf %368, %372 : vector<8x8xf32>
    %374 = vector.extract_strided_slice %354 {offsets = [0, 0], sizes = [8, 8], strides = [1, 1]} : vector<8x32xf32> to vector<8x8xf32>
    %cst_187 = arith.constant dense<0.000000e+00> : vector<8x8xf32>
    %375 = tpu.matmul %373, %374, %cst_187 {dimension_numbers = #tpu.dot_dimension_numbers<[1], [0], [0], [1], [0, 0, 1, 1], [], []>} : vector<8x8xf32>, vector<8x8xf32>, vector<8x8xf32> -> vector<8x8xf32>
    %376 = vector.extract_strided_slice %349 {offsets = [0, 8], sizes = [8, 8], strides = [1, 1]} : vector<8x32xf32> to vector<8x8xf32>
    %377 = vector.extract_strided_slice %350 {offsets = [0, 8], sizes = [8, 8], strides = [1, 1]} : vector<8x32xf32> to vector<8x8xf32>
    %cst_188 = arith.constant dense<0.000000e+00> : vector<8x8xf32>
    %378 = tpu.matmul %376, %377, %cst_188 {dimension_numbers = #tpu.dot_dimension_numbers<[1], [1], [0], [0], [0, 0, 1, 0], [], []>} : vector<8x8xf32>, vector<8x8xf32>, vector<8x8xf32> -> vector<8x8xf32>
    %cst_189 = arith.constant 0.353553385 : f32
    %379 = vector.broadcast %cst_189 : f32 to vector<8x8xf32>
    %380 = arith.mulf %378, %379 : vector<8x8xf32>
    %cst_190 = arith.constant dense<0xFF800000> : vector<8xf32>
    %381 = vector.multi_reduction <maximumf>, %380, %cst_190 [1] : vector<8x8xf32> to vector<8xf32>
    %382 = vector.shape_cast %381 : vector<8xf32> to vector<8x1xf32>
    %383 = vector.broadcast %382 : vector<8x1xf32> to vector<8x8xf32>
    %384 = arith.subf %380, %383 : vector<8x8xf32>
    %385 = math.exp %384 : vector<8x8xf32>
    %cst_191 = arith.constant dense<0.000000e+00> : vector<8xf32>
    %386 = vector.multi_reduction <add>, %385, %cst_191 [1] : vector<8x8xf32> to vector<8xf32>
    %387 = vector.shape_cast %386 : vector<8xf32> to vector<8x1xf32>
    %388 = tpu.reciprocal %387 {approx = true} : vector<8x1xf32> -> vector<8x1xf32>
    %389 = vector.broadcast %388 : vector<8x1xf32> to vector<8x8xf32>
    %390 = arith.mulf %385, %389 : vector<8x8xf32>
    %391 = vector.extract_strided_slice %354 {offsets = [0, 8], sizes = [8, 8], strides = [1, 1]} : vector<8x32xf32> to vector<8x8xf32>
    %cst_192 = arith.constant dense<0.000000e+00> : vector<8x8xf32>
    %392 = tpu.matmul %390, %391, %cst_192 {dimension_numbers = #tpu.dot_dimension_numbers<[1], [0], [0], [1], [0, 0, 1, 1], [], []>} : vector<8x8xf32>, vector<8x8xf32>, vector<8x8xf32> -> vector<8x8xf32>
    %393 = vector.extract_strided_slice %349 {offsets = [0, 16], sizes = [8, 8], strides = [1, 1]} : vector<8x32xf32> to vector<8x8xf32>
    %394 = vector.extract_strided_slice %350 {offsets = [0, 16], sizes = [8, 8], strides = [1, 1]} : vector<8x32xf32> to vector<8x8xf32>
    %cst_193 = arith.constant dense<0.000000e+00> : vector<8x8xf32>
    %395 = tpu.matmul %393, %394, %cst_193 {dimension_numbers = #tpu.dot_dimension_numbers<[1], [1], [0], [0], [0, 0, 1, 0], [], []>} : vector<8x8xf32>, vector<8x8xf32>, vector<8x8xf32> -> vector<8x8xf32>
    %cst_194 = arith.constant 0.353553385 : f32
    %396 = vector.broadcast %cst_194 : f32 to vector<8x8xf32>
    %397 = arith.mulf %395, %396 : vector<8x8xf32>
    %cst_195 = arith.constant dense<0xFF800000> : vector<8xf32>
    %398 = vector.multi_reduction <maximumf>, %397, %cst_195 [1] : vector<8x8xf32> to vector<8xf32>
    %399 = vector.shape_cast %398 : vector<8xf32> to vector<8x1xf32>
    %400 = vector.broadcast %399 : vector<8x1xf32> to vector<8x8xf32>
    %401 = arith.subf %397, %400 : vector<8x8xf32>
    %402 = math.exp %401 : vector<8x8xf32>
    %cst_196 = arith.constant dense<0.000000e+00> : vector<8xf32>
    %403 = vector.multi_reduction <add>, %402, %cst_196 [1] : vector<8x8xf32> to vector<8xf32>
    %404 = vector.shape_cast %403 : vector<8xf32> to vector<8x1xf32>
    %405 = tpu.reciprocal %404 {approx = true} : vector<8x1xf32> -> vector<8x1xf32>
    %406 = vector.broadcast %405 : vector<8x1xf32> to vector<8x8xf32>
    %407 = arith.mulf %402, %406 : vector<8x8xf32>
    %408 = vector.extract_strided_slice %354 {offsets = [0, 16], sizes = [8, 8], strides = [1, 1]} : vector<8x32xf32> to vector<8x8xf32>
    %cst_197 = arith.constant dense<0.000000e+00> : vector<8x8xf32>
    %409 = tpu.matmul %407, %408, %cst_197 {dimension_numbers = #tpu.dot_dimension_numbers<[1], [0], [0], [1], [0, 0, 1, 1], [], []>} : vector<8x8xf32>, vector<8x8xf32>, vector<8x8xf32> -> vector<8x8xf32>
    %410 = vector.extract_strided_slice %349 {offsets = [0, 24], sizes = [8, 8], strides = [1, 1]} : vector<8x32xf32> to vector<8x8xf32>
    %411 = vector.extract_strided_slice %350 {offsets = [0, 24], sizes = [8, 8], strides = [1, 1]} : vector<8x32xf32> to vector<8x8xf32>
    %cst_198 = arith.constant dense<0.000000e+00> : vector<8x8xf32>
    %412 = tpu.matmul %410, %411, %cst_198 {dimension_numbers = #tpu.dot_dimension_numbers<[1], [1], [0], [0], [0, 0, 1, 0], [], []>} : vector<8x8xf32>, vector<8x8xf32>, vector<8x8xf32> -> vector<8x8xf32>
    %cst_199 = arith.constant 0.353553385 : f32
    %413 = vector.broadcast %cst_199 : f32 to vector<8x8xf32>
    %414 = arith.mulf %412, %413 : vector<8x8xf32>
    %cst_200 = arith.constant dense<0xFF800000> : vector<8xf32>
    %415 = vector.multi_reduction <maximumf>, %414, %cst_200 [1] : vector<8x8xf32> to vector<8xf32>
    %416 = vector.shape_cast %415 : vector<8xf32> to vector<8x1xf32>
    %417 = vector.broadcast %416 : vector<8x1xf32> to vector<8x8xf32>
    %418 = arith.subf %414, %417 : vector<8x8xf32>
    %419 = math.exp %418 : vector<8x8xf32>
    %cst_201 = arith.constant dense<0.000000e+00> : vector<8xf32>
    %420 = vector.multi_reduction <add>, %419, %cst_201 [1] : vector<8x8xf32> to vector<8xf32>
    %421 = vector.shape_cast %420 : vector<8xf32> to vector<8x1xf32>
    %422 = tpu.reciprocal %421 {approx = true} : vector<8x1xf32> -> vector<8x1xf32>
    %423 = vector.broadcast %422 : vector<8x1xf32> to vector<8x8xf32>
    %424 = arith.mulf %419, %423 : vector<8x8xf32>
    %425 = vector.extract_strided_slice %354 {offsets = [0, 24], sizes = [8, 8], strides = [1, 1]} : vector<8x32xf32> to vector<8x8xf32>
    %cst_202 = arith.constant dense<0.000000e+00> : vector<8x8xf32>
    %426 = tpu.matmul %424, %425, %cst_202 {dimension_numbers = #tpu.dot_dimension_numbers<[1], [0], [0], [1], [0, 0, 1, 1], [], []>} : vector<8x8xf32>, vector<8x8xf32>, vector<8x8xf32> -> vector<8x8xf32>
    %427 = tpu.concatenate %375, %392, %409, %426 in 1 : vector<8x8xf32>, vector<8x8xf32>, vector<8x8xf32>, vector<8x8xf32> -> vector<8x32xf32>
    %428 = arith.truncf %427 : vector<8x32xf32> to vector<8x32xbf16>
    %cst_203 = arith.constant dense<0.000000e+00> : vector<8x32xf32>
    %429 = tpu.matmul %428, %356, %cst_203 {dimension_numbers = #tpu.dot_dimension_numbers<[1], [0], [0], [1], [0, 0, 1, 1], [], []>} : vector<8x32xbf16>, vector<32x32xbf16>, vector<8x32xf32> -> vector<8x32xf32>
    %430 = vector.broadcast %358 : vector<1x32xf32> to vector<8x32xf32>
    %431 = arith.addf %429, %430 : vector<8x32xf32>
    %432 = arith.addf %335, %431 : vector<8x32xf32>
    %c0_204 = arith.constant 0 : index
    %c0_205 = arith.constant 0 : index
    %c0_206 = arith.constant 0 : index
    %433 = vector.load %arg32[%c0_204, %c0_205, %c0_206] : memref<2x1x32xf32, #tpu.memory_space<vmem>>, vector<1x1x32xf32>
    %434 = vector.shape_cast %433 : vector<1x1x32xf32> to vector<1x32xf32>
    %c0_207 = arith.constant 0 : index
    %c0_208 = arith.constant 0 : index
    %c0_209 = arith.constant 0 : index
    %435 = vector.load %arg33[%c0_207, %c0_208, %c0_209] : memref<2x1x32xf32, #tpu.memory_space<vmem>>, vector<1x1x32xf32>
    %436 = vector.shape_cast %435 : vector<1x1x32xf32> to vector<1x32xf32>
    %cst_210 = arith.constant dense<0.000000e+00> : vector<8xf32>
    %437 = vector.multi_reduction <add>, %432, %cst_210 [1] : vector<8x32xf32> to vector<8xf32>
    %438 = vector.shape_cast %437 : vector<8xf32> to vector<8x1xf32>
    %cst_211 = arith.constant 3.200000e+01 : f32
    %439 = vector.broadcast %cst_211 : f32 to vector<8x1xf32>
    %440 = arith.divf %438, %439 : vector<8x1xf32>
    %441 = vector.broadcast %440 : vector<8x1xf32> to vector<8x32xf32>
    %442 = arith.subf %432, %441 : vector<8x32xf32>
    %443 = arith.mulf %442, %442 : vector<8x32xf32>
    %cst_212 = arith.constant dense<0.000000e+00> : vector<8xf32>
    %444 = vector.multi_reduction <add>, %443, %cst_212 [1] : vector<8x32xf32> to vector<8xf32>
    %445 = vector.shape_cast %444 : vector<8xf32> to vector<8x1xf32>
    %cst_213 = arith.constant 3.200000e+01 : f32
    %446 = vector.broadcast %cst_213 : f32 to vector<8x1xf32>
    %447 = arith.divf %445, %446 : vector<8x1xf32>
    %cst_214 = arith.constant 9.99999974E-6 : f32
    %448 = vector.broadcast %cst_214 : f32 to vector<8x1xf32>
    %449 = arith.addf %447, %448 : vector<8x1xf32>
    %450 = math.rsqrt %449 : vector<8x1xf32>
    %451 = vector.broadcast %450 : vector<8x1xf32> to vector<8x32xf32>
    %452 = arith.mulf %442, %451 : vector<8x32xf32>
    %453 = vector.broadcast %434 : vector<1x32xf32> to vector<8x32xf32>
    %454 = arith.mulf %452, %453 : vector<8x32xf32>
    %455 = vector.broadcast %436 : vector<1x32xf32> to vector<8x32xf32>
    %456 = arith.addf %454, %455 : vector<8x32xf32>
    %457 = arith.addf %456, %5 : vector<8x32xf32>
    %c0_215 = arith.constant 0 : index
    %c0_216 = arith.constant 0 : index
    %c0_217 = arith.constant 0 : index
    %458 = vector.load %arg24[%c0_215, %c0_216, %c0_217] : memref<2x32x32xbf16, #tpu.memory_space<vmem>>, vector<1x32x32xbf16>
    %459 = vector.shape_cast %458 : vector<1x32x32xbf16> to vector<32x32xbf16>
    %c0_218 = arith.constant 0 : index
    %c0_219 = arith.constant 0 : index
    %c0_220 = arith.constant 0 : index
    %460 = vector.load %arg25[%c0_218, %c0_219, %c0_220] : memref<2x1x32xf32, #tpu.memory_space<vmem>>, vector<1x1x32xf32>
    %461 = vector.shape_cast %460 : vector<1x1x32xf32> to vector<1x32xf32>
    %462 = arith.truncf %457 : vector<8x32xf32> to vector<8x32xbf16>
    %cst_221 = arith.constant dense<0.000000e+00> : vector<8x32xf32>
    %463 = tpu.matmul %462, %459, %cst_221 {dimension_numbers = #tpu.dot_dimension_numbers<[1], [0], [0], [1], [0, 0, 1, 1], [], []>} : vector<8x32xbf16>, vector<32x32xbf16>, vector<8x32xf32> -> vector<8x32xf32>
    %464 = vector.broadcast %461 : vector<1x32xf32> to vector<8x32xf32>
    %465 = arith.addf %463, %464 : vector<8x32xf32>
    %c0_222 = arith.constant 0 : index
    %c0_223 = arith.constant 0 : index
    %c0_224 = arith.constant 0 : index
    %466 = vector.load %arg26[%c0_222, %c0_223, %c0_224] : memref<2x32x32xbf16, #tpu.memory_space<vmem>>, vector<1x32x32xbf16>
    %467 = vector.shape_cast %466 : vector<1x32x32xbf16> to vector<32x32xbf16>
    %c0_225 = arith.constant 0 : index
    %c0_226 = arith.constant 0 : index
    %c0_227 = arith.constant 0 : index
    %468 = vector.load %arg27[%c0_225, %c0_226, %c0_227] : memref<2x1x32xf32, #tpu.memory_space<vmem>>, vector<1x1x32xf32>
    %469 = vector.shape_cast %468 : vector<1x1x32xf32> to vector<1x32xf32>
    %470 = arith.truncf %334 : vector<18x32xf32> to vector<18x32xbf16>
    %cst_228 = arith.constant dense<0.000000e+00> : vector<18x32xf32>
    %471 = tpu.matmul %470, %467, %cst_228 {dimension_numbers = #tpu.dot_dimension_numbers<[1], [0], [0], [1], [0, 0, 1, 1], [], []>} : vector<18x32xbf16>, vector<32x32xbf16>, vector<18x32xf32> -> vector<18x32xf32>
    %472 = vector.broadcast %469 : vector<1x32xf32> to vector<18x32xf32>
    %473 = arith.addf %471, %472 : vector<18x32xf32>
    %c0_229 = arith.constant 0 : index
    %c0_230 = arith.constant 0 : index
    %c0_231 = arith.constant 0 : index
    %474 = vector.load %arg28[%c0_229, %c0_230, %c0_231] : memref<2x32x32xbf16, #tpu.memory_space<vmem>>, vector<1x32x32xbf16>
    %475 = vector.shape_cast %474 : vector<1x32x32xbf16> to vector<32x32xbf16>
    %c0_232 = arith.constant 0 : index
    %c0_233 = arith.constant 0 : index
    %c0_234 = arith.constant 0 : index
    %476 = vector.load %arg29[%c0_232, %c0_233, %c0_234] : memref<2x1x32xf32, #tpu.memory_space<vmem>>, vector<1x1x32xf32>
    %477 = vector.shape_cast %476 : vector<1x1x32xf32> to vector<1x32xf32>
    %478 = arith.truncf %333 : vector<18x32xf32> to vector<18x32xbf16>
    %cst_235 = arith.constant dense<0.000000e+00> : vector<18x32xf32>
    %479 = tpu.matmul %478, %475, %cst_235 {dimension_numbers = #tpu.dot_dimension_numbers<[1], [0], [0], [1], [0, 0, 1, 1], [], []>} : vector<18x32xbf16>, vector<32x32xbf16>, vector<18x32xf32> -> vector<18x32xf32>
    %480 = vector.broadcast %477 : vector<1x32xf32> to vector<18x32xf32>
    %481 = arith.addf %479, %480 : vector<18x32xf32>
    %c0_236 = arith.constant 0 : index
    %c0_237 = arith.constant 0 : index
    %c0_238 = arith.constant 0 : index
    %482 = vector.load %arg30[%c0_236, %c0_237, %c0_238] : memref<2x32x32xbf16, #tpu.memory_space<vmem>>, vector<1x32x32xbf16>
    %483 = vector.shape_cast %482 : vector<1x32x32xbf16> to vector<32x32xbf16>
    %c0_239 = arith.constant 0 : index
    %c0_240 = arith.constant 0 : index
    %c0_241 = arith.constant 0 : index
    %484 = vector.load %arg31[%c0_239, %c0_240, %c0_241] : memref<2x1x32xf32, #tpu.memory_space<vmem>>, vector<1x1x32xf32>
    %485 = vector.shape_cast %484 : vector<1x1x32xf32> to vector<1x32xf32>
    %486 = vector.extract_strided_slice %465 {offsets = [0, 0], sizes = [8, 8], strides = [1, 1]} : vector<8x32xf32> to vector<8x8xf32>
    %487 = vector.extract_strided_slice %473 {offsets = [0, 0], sizes = [18, 8], strides = [1, 1]} : vector<18x32xf32> to vector<18x8xf32>
    %cst_242 = arith.constant dense<0.000000e+00> : vector<8x18xf32>
    %488 = tpu.matmul %486, %487, %cst_242 {dimension_numbers = #tpu.dot_dimension_numbers<[1], [1], [0], [0], [0, 0, 1, 0], [], []>} : vector<8x8xf32>, vector<18x8xf32>, vector<8x18xf32> -> vector<8x18xf32>
    %cst_243 = arith.constant 0.353553385 : f32
    %489 = vector.broadcast %cst_243 : f32 to vector<8x18xf32>
    %490 = arith.mulf %488, %489 : vector<8x18xf32>
    %cst_244 = arith.constant dense<0xFF800000> : vector<8xf32>
    %491 = vector.multi_reduction <maximumf>, %490, %cst_244 [1] : vector<8x18xf32> to vector<8xf32>
    %492 = vector.shape_cast %491 : vector<8xf32> to vector<8x1xf32>
    %493 = vector.broadcast %492 : vector<8x1xf32> to vector<8x18xf32>
    %494 = arith.subf %490, %493 : vector<8x18xf32>
    %495 = math.exp %494 : vector<8x18xf32>
    %cst_245 = arith.constant dense<0.000000e+00> : vector<8xf32>
    %496 = vector.multi_reduction <add>, %495, %cst_245 [1] : vector<8x18xf32> to vector<8xf32>
    %497 = vector.shape_cast %496 : vector<8xf32> to vector<8x1xf32>
    %498 = tpu.reciprocal %497 {approx = true} : vector<8x1xf32> -> vector<8x1xf32>
    %499 = vector.broadcast %498 : vector<8x1xf32> to vector<8x18xf32>
    %500 = arith.mulf %495, %499 : vector<8x18xf32>
    %501 = vector.extract_strided_slice %481 {offsets = [0, 0], sizes = [18, 8], strides = [1, 1]} : vector<18x32xf32> to vector<18x8xf32>
    %cst_246 = arith.constant dense<0.000000e+00> : vector<8x8xf32>
    %502 = tpu.matmul %500, %501, %cst_246 {dimension_numbers = #tpu.dot_dimension_numbers<[1], [0], [0], [1], [0, 0, 1, 1], [], []>} : vector<8x18xf32>, vector<18x8xf32>, vector<8x8xf32> -> vector<8x8xf32>
    %503 = vector.extract_strided_slice %465 {offsets = [0, 8], sizes = [8, 8], strides = [1, 1]} : vector<8x32xf32> to vector<8x8xf32>
    %504 = vector.extract_strided_slice %473 {offsets = [0, 8], sizes = [18, 8], strides = [1, 1]} : vector<18x32xf32> to vector<18x8xf32>
    %cst_247 = arith.constant dense<0.000000e+00> : vector<8x18xf32>
    %505 = tpu.matmul %503, %504, %cst_247 {dimension_numbers = #tpu.dot_dimension_numbers<[1], [1], [0], [0], [0, 0, 1, 0], [], []>} : vector<8x8xf32>, vector<18x8xf32>, vector<8x18xf32> -> vector<8x18xf32>
    %cst_248 = arith.constant 0.353553385 : f32
    %506 = vector.broadcast %cst_248 : f32 to vector<8x18xf32>
    %507 = arith.mulf %505, %506 : vector<8x18xf32>
    %cst_249 = arith.constant dense<0xFF800000> : vector<8xf32>
    %508 = vector.multi_reduction <maximumf>, %507, %cst_249 [1] : vector<8x18xf32> to vector<8xf32>
    %509 = vector.shape_cast %508 : vector<8xf32> to vector<8x1xf32>
    %510 = vector.broadcast %509 : vector<8x1xf32> to vector<8x18xf32>
    %511 = arith.subf %507, %510 : vector<8x18xf32>
    %512 = math.exp %511 : vector<8x18xf32>
    %cst_250 = arith.constant dense<0.000000e+00> : vector<8xf32>
    %513 = vector.multi_reduction <add>, %512, %cst_250 [1] : vector<8x18xf32> to vector<8xf32>
    %514 = vector.shape_cast %513 : vector<8xf32> to vector<8x1xf32>
    %515 = tpu.reciprocal %514 {approx = true} : vector<8x1xf32> -> vector<8x1xf32>
    %516 = vector.broadcast %515 : vector<8x1xf32> to vector<8x18xf32>
    %517 = arith.mulf %512, %516 : vector<8x18xf32>
    %518 = vector.extract_strided_slice %481 {offsets = [0, 8], sizes = [18, 8], strides = [1, 1]} : vector<18x32xf32> to vector<18x8xf32>
    %cst_251 = arith.constant dense<0.000000e+00> : vector<8x8xf32>
    %519 = tpu.matmul %517, %518, %cst_251 {dimension_numbers = #tpu.dot_dimension_numbers<[1], [0], [0], [1], [0, 0, 1, 1], [], []>} : vector<8x18xf32>, vector<18x8xf32>, vector<8x8xf32> -> vector<8x8xf32>
    %520 = vector.extract_strided_slice %465 {offsets = [0, 16], sizes = [8, 8], strides = [1, 1]} : vector<8x32xf32> to vector<8x8xf32>
    %521 = vector.extract_strided_slice %473 {offsets = [0, 16], sizes = [18, 8], strides = [1, 1]} : vector<18x32xf32> to vector<18x8xf32>
    %cst_252 = arith.constant dense<0.000000e+00> : vector<8x18xf32>
    %522 = tpu.matmul %520, %521, %cst_252 {dimension_numbers = #tpu.dot_dimension_numbers<[1], [1], [0], [0], [0, 0, 1, 0], [], []>} : vector<8x8xf32>, vector<18x8xf32>, vector<8x18xf32> -> vector<8x18xf32>
    %cst_253 = arith.constant 0.353553385 : f32
    %523 = vector.broadcast %cst_253 : f32 to vector<8x18xf32>
    %524 = arith.mulf %522, %523 : vector<8x18xf32>
    %cst_254 = arith.constant dense<0xFF800000> : vector<8xf32>
    %525 = vector.multi_reduction <maximumf>, %524, %cst_254 [1] : vector<8x18xf32> to vector<8xf32>
    %526 = vector.shape_cast %525 : vector<8xf32> to vector<8x1xf32>
    %527 = vector.broadcast %526 : vector<8x1xf32> to vector<8x18xf32>
    %528 = arith.subf %524, %527 : vector<8x18xf32>
    %529 = math.exp %528 : vector<8x18xf32>
    %cst_255 = arith.constant dense<0.000000e+00> : vector<8xf32>
    %530 = vector.multi_reduction <add>, %529, %cst_255 [1] : vector<8x18xf32> to vector<8xf32>
    %531 = vector.shape_cast %530 : vector<8xf32> to vector<8x1xf32>
    %532 = tpu.reciprocal %531 {approx = true} : vector<8x1xf32> -> vector<8x1xf32>
    %533 = vector.broadcast %532 : vector<8x1xf32> to vector<8x18xf32>
    %534 = arith.mulf %529, %533 : vector<8x18xf32>
    %535 = vector.extract_strided_slice %481 {offsets = [0, 16], sizes = [18, 8], strides = [1, 1]} : vector<18x32xf32> to vector<18x8xf32>
    %cst_256 = arith.constant dense<0.000000e+00> : vector<8x8xf32>
    %536 = tpu.matmul %534, %535, %cst_256 {dimension_numbers = #tpu.dot_dimension_numbers<[1], [0], [0], [1], [0, 0, 1, 1], [], []>} : vector<8x18xf32>, vector<18x8xf32>, vector<8x8xf32> -> vector<8x8xf32>
    %537 = vector.extract_strided_slice %465 {offsets = [0, 24], sizes = [8, 8], strides = [1, 1]} : vector<8x32xf32> to vector<8x8xf32>
    %538 = vector.extract_strided_slice %473 {offsets = [0, 24], sizes = [18, 8], strides = [1, 1]} : vector<18x32xf32> to vector<18x8xf32>
    %cst_257 = arith.constant dense<0.000000e+00> : vector<8x18xf32>
    %539 = tpu.matmul %537, %538, %cst_257 {dimension_numbers = #tpu.dot_dimension_numbers<[1], [1], [0], [0], [0, 0, 1, 0], [], []>} : vector<8x8xf32>, vector<18x8xf32>, vector<8x18xf32> -> vector<8x18xf32>
    %cst_258 = arith.constant 0.353553385 : f32
    %540 = vector.broadcast %cst_258 : f32 to vector<8x18xf32>
    %541 = arith.mulf %539, %540 : vector<8x18xf32>
    %cst_259 = arith.constant dense<0xFF800000> : vector<8xf32>
    %542 = vector.multi_reduction <maximumf>, %541, %cst_259 [1] : vector<8x18xf32> to vector<8xf32>
    %543 = vector.shape_cast %542 : vector<8xf32> to vector<8x1xf32>
    %544 = vector.broadcast %543 : vector<8x1xf32> to vector<8x18xf32>
    %545 = arith.subf %541, %544 : vector<8x18xf32>
    %546 = math.exp %545 : vector<8x18xf32>
    %cst_260 = arith.constant dense<0.000000e+00> : vector<8xf32>
    %547 = vector.multi_reduction <add>, %546, %cst_260 [1] : vector<8x18xf32> to vector<8xf32>
    %548 = vector.shape_cast %547 : vector<8xf32> to vector<8x1xf32>
    %549 = tpu.reciprocal %548 {approx = true} : vector<8x1xf32> -> vector<8x1xf32>
    %550 = vector.broadcast %549 : vector<8x1xf32> to vector<8x18xf32>
    %551 = arith.mulf %546, %550 : vector<8x18xf32>
    %552 = vector.extract_strided_slice %481 {offsets = [0, 24], sizes = [18, 8], strides = [1, 1]} : vector<18x32xf32> to vector<18x8xf32>
    %cst_261 = arith.constant dense<0.000000e+00> : vector<8x8xf32>
    %553 = tpu.matmul %551, %552, %cst_261 {dimension_numbers = #tpu.dot_dimension_numbers<[1], [0], [0], [1], [0, 0, 1, 1], [], []>} : vector<8x18xf32>, vector<18x8xf32>, vector<8x8xf32> -> vector<8x8xf32>
    %554 = tpu.concatenate %502, %519, %536, %553 in 1 : vector<8x8xf32>, vector<8x8xf32>, vector<8x8xf32>, vector<8x8xf32> -> vector<8x32xf32>
    %555 = arith.truncf %554 : vector<8x32xf32> to vector<8x32xbf16>
    %cst_262 = arith.constant dense<0.000000e+00> : vector<8x32xf32>
    %556 = tpu.matmul %555, %483, %cst_262 {dimension_numbers = #tpu.dot_dimension_numbers<[1], [0], [0], [1], [0, 0, 1, 1], [], []>} : vector<8x32xbf16>, vector<32x32xbf16>, vector<8x32xf32> -> vector<8x32xf32>
    %557 = vector.broadcast %485 : vector<1x32xf32> to vector<8x32xf32>
    %558 = arith.addf %556, %557 : vector<8x32xf32>
    %559 = arith.addf %456, %558 : vector<8x32xf32>
    %c0_263 = arith.constant 0 : index
    %c0_264 = arith.constant 0 : index
    %c0_265 = arith.constant 0 : index
    %560 = vector.load %arg34[%c0_263, %c0_264, %c0_265] : memref<2x1x32xf32, #tpu.memory_space<vmem>>, vector<1x1x32xf32>
    %561 = vector.shape_cast %560 : vector<1x1x32xf32> to vector<1x32xf32>
    %c0_266 = arith.constant 0 : index
    %c0_267 = arith.constant 0 : index
    %c0_268 = arith.constant 0 : index
    %562 = vector.load %arg35[%c0_266, %c0_267, %c0_268] : memref<2x1x32xf32, #tpu.memory_space<vmem>>, vector<1x1x32xf32>
    %563 = vector.shape_cast %562 : vector<1x1x32xf32> to vector<1x32xf32>
    %cst_269 = arith.constant dense<0.000000e+00> : vector<8xf32>
    %564 = vector.multi_reduction <add>, %559, %cst_269 [1] : vector<8x32xf32> to vector<8xf32>
    %565 = vector.shape_cast %564 : vector<8xf32> to vector<8x1xf32>
    %cst_270 = arith.constant 3.200000e+01 : f32
    %566 = vector.broadcast %cst_270 : f32 to vector<8x1xf32>
    %567 = arith.divf %565, %566 : vector<8x1xf32>
    %568 = vector.broadcast %567 : vector<8x1xf32> to vector<8x32xf32>
    %569 = arith.subf %559, %568 : vector<8x32xf32>
    %570 = arith.mulf %569, %569 : vector<8x32xf32>
    %cst_271 = arith.constant dense<0.000000e+00> : vector<8xf32>
    %571 = vector.multi_reduction <add>, %570, %cst_271 [1] : vector<8x32xf32> to vector<8xf32>
    %572 = vector.shape_cast %571 : vector<8xf32> to vector<8x1xf32>
    %cst_272 = arith.constant 3.200000e+01 : f32
    %573 = vector.broadcast %cst_272 : f32 to vector<8x1xf32>
    %574 = arith.divf %572, %573 : vector<8x1xf32>
    %cst_273 = arith.constant 9.99999974E-6 : f32
    %575 = vector.broadcast %cst_273 : f32 to vector<8x1xf32>
    %576 = arith.addf %574, %575 : vector<8x1xf32>
    %577 = math.rsqrt %576 : vector<8x1xf32>
    %578 = vector.broadcast %577 : vector<8x1xf32> to vector<8x32xf32>
    %579 = arith.mulf %569, %578 : vector<8x32xf32>
    %580 = vector.broadcast %561 : vector<1x32xf32> to vector<8x32xf32>
    %581 = arith.mulf %579, %580 : vector<8x32xf32>
    %582 = vector.broadcast %563 : vector<1x32xf32> to vector<8x32xf32>
    %583 = arith.addf %581, %582 : vector<8x32xf32>
    %c0_274 = arith.constant 0 : index
    %c0_275 = arith.constant 0 : index
    %c0_276 = arith.constant 0 : index
    %584 = vector.load %arg38[%c0_274, %c0_275, %c0_276] : memref<2x32x64xbf16, #tpu.memory_space<vmem>>, vector<1x32x64xbf16>
    %585 = vector.shape_cast %584 : vector<1x32x64xbf16> to vector<32x64xbf16>
    %c0_277 = arith.constant 0 : index
    %c0_278 = arith.constant 0 : index
    %c0_279 = arith.constant 0 : index
    %586 = vector.load %arg39[%c0_277, %c0_278, %c0_279] : memref<2x1x64xf32, #tpu.memory_space<vmem>>, vector<1x1x64xf32>
    %587 = vector.shape_cast %586 : vector<1x1x64xf32> to vector<1x64xf32>
    %c0_280 = arith.constant 0 : index
    %c0_281 = arith.constant 0 : index
    %c0_282 = arith.constant 0 : index
    %588 = vector.load %arg40[%c0_280, %c0_281, %c0_282] : memref<2x64x32xbf16, #tpu.memory_space<vmem>>, vector<1x64x32xbf16>
    %589 = vector.shape_cast %588 : vector<1x64x32xbf16> to vector<64x32xbf16>
    %c0_283 = arith.constant 0 : index
    %c0_284 = arith.constant 0 : index
    %c0_285 = arith.constant 0 : index
    %590 = vector.load %arg41[%c0_283, %c0_284, %c0_285] : memref<2x1x32xf32, #tpu.memory_space<vmem>>, vector<1x1x32xf32>
    %591 = vector.shape_cast %590 : vector<1x1x32xf32> to vector<1x32xf32>
    %592 = arith.truncf %583 : vector<8x32xf32> to vector<8x32xbf16>
    %cst_286 = arith.constant dense<0.000000e+00> : vector<8x64xf32>
    %593 = tpu.matmul %592, %585, %cst_286 {dimension_numbers = #tpu.dot_dimension_numbers<[1], [0], [0], [1], [0, 0, 1, 1], [], []>} : vector<8x32xbf16>, vector<32x64xbf16>, vector<8x64xf32> -> vector<8x64xf32>
    %594 = vector.broadcast %587 : vector<1x64xf32> to vector<8x64xf32>
    %595 = arith.addf %593, %594 : vector<8x64xf32>
    %cst_287 = arith.constant 0.000000e+00 : f32
    %596 = vector.broadcast %cst_287 : f32 to vector<8x64xf32>
    %597 = arith.maximumf %595, %596 : vector<8x64xf32>
    %598 = arith.truncf %597 : vector<8x64xf32> to vector<8x64xbf16>
    %cst_288 = arith.constant dense<0.000000e+00> : vector<8x32xf32>
    %599 = tpu.matmul %598, %589, %cst_288 {dimension_numbers = #tpu.dot_dimension_numbers<[1], [0], [0], [1], [0, 0, 1, 1], [], []>} : vector<8x64xbf16>, vector<64x32xbf16>, vector<8x32xf32> -> vector<8x32xf32>
    %600 = vector.broadcast %591 : vector<1x32xf32> to vector<8x32xf32>
    %601 = arith.addf %599, %600 : vector<8x32xf32>
    %602 = arith.addf %583, %601 : vector<8x32xf32>
    %c0_289 = arith.constant 0 : index
    %c0_290 = arith.constant 0 : index
    %c0_291 = arith.constant 0 : index
    %603 = vector.load %arg36[%c0_289, %c0_290, %c0_291] : memref<2x1x32xf32, #tpu.memory_space<vmem>>, vector<1x1x32xf32>
    %604 = vector.shape_cast %603 : vector<1x1x32xf32> to vector<1x32xf32>
    %c0_292 = arith.constant 0 : index
    %c0_293 = arith.constant 0 : index
    %c0_294 = arith.constant 0 : index
    %605 = vector.load %arg37[%c0_292, %c0_293, %c0_294] : memref<2x1x32xf32, #tpu.memory_space<vmem>>, vector<1x1x32xf32>
    %606 = vector.shape_cast %605 : vector<1x1x32xf32> to vector<1x32xf32>
    %cst_295 = arith.constant dense<0.000000e+00> : vector<8xf32>
    %607 = vector.multi_reduction <add>, %602, %cst_295 [1] : vector<8x32xf32> to vector<8xf32>
    %608 = vector.shape_cast %607 : vector<8xf32> to vector<8x1xf32>
    %cst_296 = arith.constant 3.200000e+01 : f32
    %609 = vector.broadcast %cst_296 : f32 to vector<8x1xf32>
    %610 = arith.divf %608, %609 : vector<8x1xf32>
    %611 = vector.broadcast %610 : vector<8x1xf32> to vector<8x32xf32>
    %612 = arith.subf %602, %611 : vector<8x32xf32>
    %613 = arith.mulf %612, %612 : vector<8x32xf32>
    %cst_297 = arith.constant dense<0.000000e+00> : vector<8xf32>
    %614 = vector.multi_reduction <add>, %613, %cst_297 [1] : vector<8x32xf32> to vector<8xf32>
    %615 = vector.shape_cast %614 : vector<8xf32> to vector<8x1xf32>
    %cst_298 = arith.constant 3.200000e+01 : f32
    %616 = vector.broadcast %cst_298 : f32 to vector<8x1xf32>
    %617 = arith.divf %615, %616 : vector<8x1xf32>
    %cst_299 = arith.constant 9.99999974E-6 : f32
    %618 = vector.broadcast %cst_299 : f32 to vector<8x1xf32>
    %619 = arith.addf %617, %618 : vector<8x1xf32>
    %620 = math.rsqrt %619 : vector<8x1xf32>
    %621 = vector.broadcast %620 : vector<8x1xf32> to vector<8x32xf32>
    %622 = arith.mulf %612, %621 : vector<8x32xf32>
    %623 = vector.broadcast %604 : vector<1x32xf32> to vector<8x32xf32>
    %624 = arith.mulf %622, %623 : vector<8x32xf32>
    %625 = vector.broadcast %606 : vector<1x32xf32> to vector<8x32xf32>
    %626 = arith.addf %624, %625 : vector<8x32xf32>
    %627 = arith.addf %626, %5 : vector<8x32xf32>
    %c1_300 = arith.constant 1 : index
    %c0_301 = arith.constant 0 : index
    %c0_302 = arith.constant 0 : index
    %628 = vector.load %arg18[%c1_300, %c0_301, %c0_302] : memref<2x32x64xbf16, #tpu.memory_space<vmem>>, vector<1x32x64xbf16>
    %629 = vector.shape_cast %628 : vector<1x32x64xbf16> to vector<32x64xbf16>
    %c1_303 = arith.constant 1 : index
    %c0_304 = arith.constant 0 : index
    %c0_305 = arith.constant 0 : index
    %630 = vector.load %arg19[%c1_303, %c0_304, %c0_305] : memref<2x1x64xf32, #tpu.memory_space<vmem>>, vector<1x1x64xf32>
    %631 = vector.shape_cast %630 : vector<1x1x64xf32> to vector<1x64xf32>
    %c1_306 = arith.constant 1 : index
    %c0_307 = arith.constant 0 : index
    %c0_308 = arith.constant 0 : index
    %632 = vector.load %arg20[%c1_306, %c0_307, %c0_308] : memref<2x32x32xbf16, #tpu.memory_space<vmem>>, vector<1x32x32xbf16>
    %633 = vector.shape_cast %632 : vector<1x32x32xbf16> to vector<32x32xbf16>
    %c1_309 = arith.constant 1 : index
    %c0_310 = arith.constant 0 : index
    %c0_311 = arith.constant 0 : index
    %634 = vector.load %arg21[%c1_309, %c0_310, %c0_311] : memref<2x1x32xf32, #tpu.memory_space<vmem>>, vector<1x1x32xf32>
    %635 = vector.shape_cast %634 : vector<1x1x32xf32> to vector<1x32xf32>
    %636 = arith.truncf %627 : vector<8x32xf32> to vector<8x32xbf16>
    %cst_312 = arith.constant dense<0.000000e+00> : vector<8x64xf32>
    %637 = tpu.matmul %636, %629, %cst_312 {dimension_numbers = #tpu.dot_dimension_numbers<[1], [0], [0], [1], [0, 0, 1, 1], [], []>} : vector<8x32xbf16>, vector<32x64xbf16>, vector<8x64xf32> -> vector<8x64xf32>
    %638 = vector.broadcast %631 : vector<1x64xf32> to vector<8x64xf32>
    %639 = arith.addf %637, %638 : vector<8x64xf32>
    %640 = vector.extract_strided_slice %639 {offsets = [0, 0], sizes = [8, 32], strides = [1, 1]} : vector<8x64xf32> to vector<8x32xf32>
    %641 = vector.extract_strided_slice %639 {offsets = [0, 32], sizes = [8, 32], strides = [1, 1]} : vector<8x64xf32> to vector<8x32xf32>
    %642 = arith.truncf %626 : vector<8x32xf32> to vector<8x32xbf16>
    %cst_313 = arith.constant dense<0.000000e+00> : vector<8x32xf32>
    %643 = tpu.matmul %642, %633, %cst_313 {dimension_numbers = #tpu.dot_dimension_numbers<[1], [0], [0], [1], [0, 0, 1, 1], [], []>} : vector<8x32xbf16>, vector<32x32xbf16>, vector<8x32xf32> -> vector<8x32xf32>
    %644 = vector.broadcast %635 : vector<1x32xf32> to vector<8x32xf32>
    %645 = arith.addf %643, %644 : vector<8x32xf32>
    %c1_314 = arith.constant 1 : index
    %c0_315 = arith.constant 0 : index
    %c0_316 = arith.constant 0 : index
    %646 = vector.load %arg22[%c1_314, %c0_315, %c0_316] : memref<2x32x32xbf16, #tpu.memory_space<vmem>>, vector<1x32x32xbf16>
    %647 = vector.shape_cast %646 : vector<1x32x32xbf16> to vector<32x32xbf16>
    %c1_317 = arith.constant 1 : index
    %c0_318 = arith.constant 0 : index
    %c0_319 = arith.constant 0 : index
    %648 = vector.load %arg23[%c1_317, %c0_318, %c0_319] : memref<2x1x32xf32, #tpu.memory_space<vmem>>, vector<1x1x32xf32>
    %649 = vector.shape_cast %648 : vector<1x1x32xf32> to vector<1x32xf32>
    %650 = vector.extract_strided_slice %640 {offsets = [0, 0], sizes = [8, 8], strides = [1, 1]} : vector<8x32xf32> to vector<8x8xf32>
    %651 = vector.extract_strided_slice %641 {offsets = [0, 0], sizes = [8, 8], strides = [1, 1]} : vector<8x32xf32> to vector<8x8xf32>
    %cst_320 = arith.constant dense<0.000000e+00> : vector<8x8xf32>
    %652 = tpu.matmul %650, %651, %cst_320 {dimension_numbers = #tpu.dot_dimension_numbers<[1], [1], [0], [0], [0, 0, 1, 0], [], []>} : vector<8x8xf32>, vector<8x8xf32>, vector<8x8xf32> -> vector<8x8xf32>
    %cst_321 = arith.constant 0.353553385 : f32
    %653 = vector.broadcast %cst_321 : f32 to vector<8x8xf32>
    %654 = arith.mulf %652, %653 : vector<8x8xf32>
    %cst_322 = arith.constant dense<0xFF800000> : vector<8xf32>
    %655 = vector.multi_reduction <maximumf>, %654, %cst_322 [1] : vector<8x8xf32> to vector<8xf32>
    %656 = vector.shape_cast %655 : vector<8xf32> to vector<8x1xf32>
    %657 = vector.broadcast %656 : vector<8x1xf32> to vector<8x8xf32>
    %658 = arith.subf %654, %657 : vector<8x8xf32>
    %659 = math.exp %658 : vector<8x8xf32>
    %cst_323 = arith.constant dense<0.000000e+00> : vector<8xf32>
    %660 = vector.multi_reduction <add>, %659, %cst_323 [1] : vector<8x8xf32> to vector<8xf32>
    %661 = vector.shape_cast %660 : vector<8xf32> to vector<8x1xf32>
    %662 = tpu.reciprocal %661 {approx = true} : vector<8x1xf32> -> vector<8x1xf32>
    %663 = vector.broadcast %662 : vector<8x1xf32> to vector<8x8xf32>
    %664 = arith.mulf %659, %663 : vector<8x8xf32>
    %665 = vector.extract_strided_slice %645 {offsets = [0, 0], sizes = [8, 8], strides = [1, 1]} : vector<8x32xf32> to vector<8x8xf32>
    %cst_324 = arith.constant dense<0.000000e+00> : vector<8x8xf32>
    %666 = tpu.matmul %664, %665, %cst_324 {dimension_numbers = #tpu.dot_dimension_numbers<[1], [0], [0], [1], [0, 0, 1, 1], [], []>} : vector<8x8xf32>, vector<8x8xf32>, vector<8x8xf32> -> vector<8x8xf32>
    %667 = vector.extract_strided_slice %640 {offsets = [0, 8], sizes = [8, 8], strides = [1, 1]} : vector<8x32xf32> to vector<8x8xf32>
    %668 = vector.extract_strided_slice %641 {offsets = [0, 8], sizes = [8, 8], strides = [1, 1]} : vector<8x32xf32> to vector<8x8xf32>
    %cst_325 = arith.constant dense<0.000000e+00> : vector<8x8xf32>
    %669 = tpu.matmul %667, %668, %cst_325 {dimension_numbers = #tpu.dot_dimension_numbers<[1], [1], [0], [0], [0, 0, 1, 0], [], []>} : vector<8x8xf32>, vector<8x8xf32>, vector<8x8xf32> -> vector<8x8xf32>
    %cst_326 = arith.constant 0.353553385 : f32
    %670 = vector.broadcast %cst_326 : f32 to vector<8x8xf32>
    %671 = arith.mulf %669, %670 : vector<8x8xf32>
    %cst_327 = arith.constant dense<0xFF800000> : vector<8xf32>
    %672 = vector.multi_reduction <maximumf>, %671, %cst_327 [1] : vector<8x8xf32> to vector<8xf32>
    %673 = vector.shape_cast %672 : vector<8xf32> to vector<8x1xf32>
    %674 = vector.broadcast %673 : vector<8x1xf32> to vector<8x8xf32>
    %675 = arith.subf %671, %674 : vector<8x8xf32>
    %676 = math.exp %675 : vector<8x8xf32>
    %cst_328 = arith.constant dense<0.000000e+00> : vector<8xf32>
    %677 = vector.multi_reduction <add>, %676, %cst_328 [1] : vector<8x8xf32> to vector<8xf32>
    %678 = vector.shape_cast %677 : vector<8xf32> to vector<8x1xf32>
    %679 = tpu.reciprocal %678 {approx = true} : vector<8x1xf32> -> vector<8x1xf32>
    %680 = vector.broadcast %679 : vector<8x1xf32> to vector<8x8xf32>
    %681 = arith.mulf %676, %680 : vector<8x8xf32>
    %682 = vector.extract_strided_slice %645 {offsets = [0, 8], sizes = [8, 8], strides = [1, 1]} : vector<8x32xf32> to vector<8x8xf32>
    %cst_329 = arith.constant dense<0.000000e+00> : vector<8x8xf32>
    %683 = tpu.matmul %681, %682, %cst_329 {dimension_numbers = #tpu.dot_dimension_numbers<[1], [0], [0], [1], [0, 0, 1, 1], [], []>} : vector<8x8xf32>, vector<8x8xf32>, vector<8x8xf32> -> vector<8x8xf32>
    %684 = vector.extract_strided_slice %640 {offsets = [0, 16], sizes = [8, 8], strides = [1, 1]} : vector<8x32xf32> to vector<8x8xf32>
    %685 = vector.extract_strided_slice %641 {offsets = [0, 16], sizes = [8, 8], strides = [1, 1]} : vector<8x32xf32> to vector<8x8xf32>
    %cst_330 = arith.constant dense<0.000000e+00> : vector<8x8xf32>
    %686 = tpu.matmul %684, %685, %cst_330 {dimension_numbers = #tpu.dot_dimension_numbers<[1], [1], [0], [0], [0, 0, 1, 0], [], []>} : vector<8x8xf32>, vector<8x8xf32>, vector<8x8xf32> -> vector<8x8xf32>
    %cst_331 = arith.constant 0.353553385 : f32
    %687 = vector.broadcast %cst_331 : f32 to vector<8x8xf32>
    %688 = arith.mulf %686, %687 : vector<8x8xf32>
    %cst_332 = arith.constant dense<0xFF800000> : vector<8xf32>
    %689 = vector.multi_reduction <maximumf>, %688, %cst_332 [1] : vector<8x8xf32> to vector<8xf32>
    %690 = vector.shape_cast %689 : vector<8xf32> to vector<8x1xf32>
    %691 = vector.broadcast %690 : vector<8x1xf32> to vector<8x8xf32>
    %692 = arith.subf %688, %691 : vector<8x8xf32>
    %693 = math.exp %692 : vector<8x8xf32>
    %cst_333 = arith.constant dense<0.000000e+00> : vector<8xf32>
    %694 = vector.multi_reduction <add>, %693, %cst_333 [1] : vector<8x8xf32> to vector<8xf32>
    %695 = vector.shape_cast %694 : vector<8xf32> to vector<8x1xf32>
    %696 = tpu.reciprocal %695 {approx = true} : vector<8x1xf32> -> vector<8x1xf32>
    %697 = vector.broadcast %696 : vector<8x1xf32> to vector<8x8xf32>
    %698 = arith.mulf %693, %697 : vector<8x8xf32>
    %699 = vector.extract_strided_slice %645 {offsets = [0, 16], sizes = [8, 8], strides = [1, 1]} : vector<8x32xf32> to vector<8x8xf32>
    %cst_334 = arith.constant dense<0.000000e+00> : vector<8x8xf32>
    %700 = tpu.matmul %698, %699, %cst_334 {dimension_numbers = #tpu.dot_dimension_numbers<[1], [0], [0], [1], [0, 0, 1, 1], [], []>} : vector<8x8xf32>, vector<8x8xf32>, vector<8x8xf32> -> vector<8x8xf32>
    %701 = vector.extract_strided_slice %640 {offsets = [0, 24], sizes = [8, 8], strides = [1, 1]} : vector<8x32xf32> to vector<8x8xf32>
    %702 = vector.extract_strided_slice %641 {offsets = [0, 24], sizes = [8, 8], strides = [1, 1]} : vector<8x32xf32> to vector<8x8xf32>
    %cst_335 = arith.constant dense<0.000000e+00> : vector<8x8xf32>
    %703 = tpu.matmul %701, %702, %cst_335 {dimension_numbers = #tpu.dot_dimension_numbers<[1], [1], [0], [0], [0, 0, 1, 0], [], []>} : vector<8x8xf32>, vector<8x8xf32>, vector<8x8xf32> -> vector<8x8xf32>
    %cst_336 = arith.constant 0.353553385 : f32
    %704 = vector.broadcast %cst_336 : f32 to vector<8x8xf32>
    %705 = arith.mulf %703, %704 : vector<8x8xf32>
    %cst_337 = arith.constant dense<0xFF800000> : vector<8xf32>
    %706 = vector.multi_reduction <maximumf>, %705, %cst_337 [1] : vector<8x8xf32> to vector<8xf32>
    %707 = vector.shape_cast %706 : vector<8xf32> to vector<8x1xf32>
    %708 = vector.broadcast %707 : vector<8x1xf32> to vector<8x8xf32>
    %709 = arith.subf %705, %708 : vector<8x8xf32>
    %710 = math.exp %709 : vector<8x8xf32>
    %cst_338 = arith.constant dense<0.000000e+00> : vector<8xf32>
    %711 = vector.multi_reduction <add>, %710, %cst_338 [1] : vector<8x8xf32> to vector<8xf32>
    %712 = vector.shape_cast %711 : vector<8xf32> to vector<8x1xf32>
    %713 = tpu.reciprocal %712 {approx = true} : vector<8x1xf32> -> vector<8x1xf32>
    %714 = vector.broadcast %713 : vector<8x1xf32> to vector<8x8xf32>
    %715 = arith.mulf %710, %714 : vector<8x8xf32>
    %716 = vector.extract_strided_slice %645 {offsets = [0, 24], sizes = [8, 8], strides = [1, 1]} : vector<8x32xf32> to vector<8x8xf32>
    %cst_339 = arith.constant dense<0.000000e+00> : vector<8x8xf32>
    %717 = tpu.matmul %715, %716, %cst_339 {dimension_numbers = #tpu.dot_dimension_numbers<[1], [0], [0], [1], [0, 0, 1, 1], [], []>} : vector<8x8xf32>, vector<8x8xf32>, vector<8x8xf32> -> vector<8x8xf32>
    %718 = tpu.concatenate %666, %683, %700, %717 in 1 : vector<8x8xf32>, vector<8x8xf32>, vector<8x8xf32>, vector<8x8xf32> -> vector<8x32xf32>
    %719 = arith.truncf %718 : vector<8x32xf32> to vector<8x32xbf16>
    %cst_340 = arith.constant dense<0.000000e+00> : vector<8x32xf32>
    %720 = tpu.matmul %719, %647, %cst_340 {dimension_numbers = #tpu.dot_dimension_numbers<[1], [0], [0], [1], [0, 0, 1, 1], [], []>} : vector<8x32xbf16>, vector<32x32xbf16>, vector<8x32xf32> -> vector<8x32xf32>
    %721 = vector.broadcast %649 : vector<1x32xf32> to vector<8x32xf32>
    %722 = arith.addf %720, %721 : vector<8x32xf32>
    %723 = arith.addf %626, %722 : vector<8x32xf32>
    %c1_341 = arith.constant 1 : index
    %c0_342 = arith.constant 0 : index
    %c0_343 = arith.constant 0 : index
    %724 = vector.load %arg32[%c1_341, %c0_342, %c0_343] : memref<2x1x32xf32, #tpu.memory_space<vmem>>, vector<1x1x32xf32>
    %725 = vector.shape_cast %724 : vector<1x1x32xf32> to vector<1x32xf32>
    %c1_344 = arith.constant 1 : index
    %c0_345 = arith.constant 0 : index
    %c0_346 = arith.constant 0 : index
    %726 = vector.load %arg33[%c1_344, %c0_345, %c0_346] : memref<2x1x32xf32, #tpu.memory_space<vmem>>, vector<1x1x32xf32>
    %727 = vector.shape_cast %726 : vector<1x1x32xf32> to vector<1x32xf32>
    %cst_347 = arith.constant dense<0.000000e+00> : vector<8xf32>
    %728 = vector.multi_reduction <add>, %723, %cst_347 [1] : vector<8x32xf32> to vector<8xf32>
    %729 = vector.shape_cast %728 : vector<8xf32> to vector<8x1xf32>
    %cst_348 = arith.constant 3.200000e+01 : f32
    %730 = vector.broadcast %cst_348 : f32 to vector<8x1xf32>
    %731 = arith.divf %729, %730 : vector<8x1xf32>
    %732 = vector.broadcast %731 : vector<8x1xf32> to vector<8x32xf32>
    %733 = arith.subf %723, %732 : vector<8x32xf32>
    %734 = arith.mulf %733, %733 : vector<8x32xf32>
    %cst_349 = arith.constant dense<0.000000e+00> : vector<8xf32>
    %735 = vector.multi_reduction <add>, %734, %cst_349 [1] : vector<8x32xf32> to vector<8xf32>
    %736 = vector.shape_cast %735 : vector<8xf32> to vector<8x1xf32>
    %cst_350 = arith.constant 3.200000e+01 : f32
    %737 = vector.broadcast %cst_350 : f32 to vector<8x1xf32>
    %738 = arith.divf %736, %737 : vector<8x1xf32>
    %cst_351 = arith.constant 9.99999974E-6 : f32
    %739 = vector.broadcast %cst_351 : f32 to vector<8x1xf32>
    %740 = arith.addf %738, %739 : vector<8x1xf32>
    %741 = math.rsqrt %740 : vector<8x1xf32>
    %742 = vector.broadcast %741 : vector<8x1xf32> to vector<8x32xf32>
    %743 = arith.mulf %733, %742 : vector<8x32xf32>
    %744 = vector.broadcast %725 : vector<1x32xf32> to vector<8x32xf32>
    %745 = arith.mulf %743, %744 : vector<8x32xf32>
    %746 = vector.broadcast %727 : vector<1x32xf32> to vector<8x32xf32>
    %747 = arith.addf %745, %746 : vector<8x32xf32>
    %748 = arith.addf %747, %5 : vector<8x32xf32>
    %c1_352 = arith.constant 1 : index
    %c0_353 = arith.constant 0 : index
    %c0_354 = arith.constant 0 : index
    %749 = vector.load %arg24[%c1_352, %c0_353, %c0_354] : memref<2x32x32xbf16, #tpu.memory_space<vmem>>, vector<1x32x32xbf16>
    %750 = vector.shape_cast %749 : vector<1x32x32xbf16> to vector<32x32xbf16>
    %c1_355 = arith.constant 1 : index
    %c0_356 = arith.constant 0 : index
    %c0_357 = arith.constant 0 : index
    %751 = vector.load %arg25[%c1_355, %c0_356, %c0_357] : memref<2x1x32xf32, #tpu.memory_space<vmem>>, vector<1x1x32xf32>
    %752 = vector.shape_cast %751 : vector<1x1x32xf32> to vector<1x32xf32>
    %753 = arith.truncf %748 : vector<8x32xf32> to vector<8x32xbf16>
    %cst_358 = arith.constant dense<0.000000e+00> : vector<8x32xf32>
    %754 = tpu.matmul %753, %750, %cst_358 {dimension_numbers = #tpu.dot_dimension_numbers<[1], [0], [0], [1], [0, 0, 1, 1], [], []>} : vector<8x32xbf16>, vector<32x32xbf16>, vector<8x32xf32> -> vector<8x32xf32>
    %755 = vector.broadcast %752 : vector<1x32xf32> to vector<8x32xf32>
    %756 = arith.addf %754, %755 : vector<8x32xf32>
    %c1_359 = arith.constant 1 : index
    %c0_360 = arith.constant 0 : index
    %c0_361 = arith.constant 0 : index
    %757 = vector.load %arg26[%c1_359, %c0_360, %c0_361] : memref<2x32x32xbf16, #tpu.memory_space<vmem>>, vector<1x32x32xbf16>
    %758 = vector.shape_cast %757 : vector<1x32x32xbf16> to vector<32x32xbf16>
    %c1_362 = arith.constant 1 : index
    %c0_363 = arith.constant 0 : index
    %c0_364 = arith.constant 0 : index
    %759 = vector.load %arg27[%c1_362, %c0_363, %c0_364] : memref<2x1x32xf32, #tpu.memory_space<vmem>>, vector<1x1x32xf32>
    %760 = vector.shape_cast %759 : vector<1x1x32xf32> to vector<1x32xf32>
    %761 = arith.truncf %334 : vector<18x32xf32> to vector<18x32xbf16>
    %cst_365 = arith.constant dense<0.000000e+00> : vector<18x32xf32>
    %762 = tpu.matmul %761, %758, %cst_365 {dimension_numbers = #tpu.dot_dimension_numbers<[1], [0], [0], [1], [0, 0, 1, 1], [], []>} : vector<18x32xbf16>, vector<32x32xbf16>, vector<18x32xf32> -> vector<18x32xf32>
    %763 = vector.broadcast %760 : vector<1x32xf32> to vector<18x32xf32>
    %764 = arith.addf %762, %763 : vector<18x32xf32>
    %c1_366 = arith.constant 1 : index
    %c0_367 = arith.constant 0 : index
    %c0_368 = arith.constant 0 : index
    %765 = vector.load %arg28[%c1_366, %c0_367, %c0_368] : memref<2x32x32xbf16, #tpu.memory_space<vmem>>, vector<1x32x32xbf16>
    %766 = vector.shape_cast %765 : vector<1x32x32xbf16> to vector<32x32xbf16>
    %c1_369 = arith.constant 1 : index
    %c0_370 = arith.constant 0 : index
    %c0_371 = arith.constant 0 : index
    %767 = vector.load %arg29[%c1_369, %c0_370, %c0_371] : memref<2x1x32xf32, #tpu.memory_space<vmem>>, vector<1x1x32xf32>
    %768 = vector.shape_cast %767 : vector<1x1x32xf32> to vector<1x32xf32>
    %769 = arith.truncf %333 : vector<18x32xf32> to vector<18x32xbf16>
    %cst_372 = arith.constant dense<0.000000e+00> : vector<18x32xf32>
    %770 = tpu.matmul %769, %766, %cst_372 {dimension_numbers = #tpu.dot_dimension_numbers<[1], [0], [0], [1], [0, 0, 1, 1], [], []>} : vector<18x32xbf16>, vector<32x32xbf16>, vector<18x32xf32> -> vector<18x32xf32>
    %771 = vector.broadcast %768 : vector<1x32xf32> to vector<18x32xf32>
    %772 = arith.addf %770, %771 : vector<18x32xf32>
    %c1_373 = arith.constant 1 : index
    %c0_374 = arith.constant 0 : index
    %c0_375 = arith.constant 0 : index
    %773 = vector.load %arg30[%c1_373, %c0_374, %c0_375] : memref<2x32x32xbf16, #tpu.memory_space<vmem>>, vector<1x32x32xbf16>
    %774 = vector.shape_cast %773 : vector<1x32x32xbf16> to vector<32x32xbf16>
    %c1_376 = arith.constant 1 : index
    %c0_377 = arith.constant 0 : index
    %c0_378 = arith.constant 0 : index
    %775 = vector.load %arg31[%c1_376, %c0_377, %c0_378] : memref<2x1x32xf32, #tpu.memory_space<vmem>>, vector<1x1x32xf32>
    %776 = vector.shape_cast %775 : vector<1x1x32xf32> to vector<1x32xf32>
    %777 = vector.extract_strided_slice %756 {offsets = [0, 0], sizes = [8, 8], strides = [1, 1]} : vector<8x32xf32> to vector<8x8xf32>
    %778 = vector.extract_strided_slice %764 {offsets = [0, 0], sizes = [18, 8], strides = [1, 1]} : vector<18x32xf32> to vector<18x8xf32>
    %cst_379 = arith.constant dense<0.000000e+00> : vector<8x18xf32>
    %779 = tpu.matmul %777, %778, %cst_379 {dimension_numbers = #tpu.dot_dimension_numbers<[1], [1], [0], [0], [0, 0, 1, 0], [], []>} : vector<8x8xf32>, vector<18x8xf32>, vector<8x18xf32> -> vector<8x18xf32>
    %cst_380 = arith.constant 0.353553385 : f32
    %780 = vector.broadcast %cst_380 : f32 to vector<8x18xf32>
    %781 = arith.mulf %779, %780 : vector<8x18xf32>
    %cst_381 = arith.constant dense<0xFF800000> : vector<8xf32>
    %782 = vector.multi_reduction <maximumf>, %781, %cst_381 [1] : vector<8x18xf32> to vector<8xf32>
    %783 = vector.shape_cast %782 : vector<8xf32> to vector<8x1xf32>
    %784 = vector.broadcast %783 : vector<8x1xf32> to vector<8x18xf32>
    %785 = arith.subf %781, %784 : vector<8x18xf32>
    %786 = math.exp %785 : vector<8x18xf32>
    %cst_382 = arith.constant dense<0.000000e+00> : vector<8xf32>
    %787 = vector.multi_reduction <add>, %786, %cst_382 [1] : vector<8x18xf32> to vector<8xf32>
    %788 = vector.shape_cast %787 : vector<8xf32> to vector<8x1xf32>
    %789 = tpu.reciprocal %788 {approx = true} : vector<8x1xf32> -> vector<8x1xf32>
    %790 = vector.broadcast %789 : vector<8x1xf32> to vector<8x18xf32>
    %791 = arith.mulf %786, %790 : vector<8x18xf32>
    %792 = vector.extract_strided_slice %772 {offsets = [0, 0], sizes = [18, 8], strides = [1, 1]} : vector<18x32xf32> to vector<18x8xf32>
    %cst_383 = arith.constant dense<0.000000e+00> : vector<8x8xf32>
    %793 = tpu.matmul %791, %792, %cst_383 {dimension_numbers = #tpu.dot_dimension_numbers<[1], [0], [0], [1], [0, 0, 1, 1], [], []>} : vector<8x18xf32>, vector<18x8xf32>, vector<8x8xf32> -> vector<8x8xf32>
    %794 = vector.extract_strided_slice %756 {offsets = [0, 8], sizes = [8, 8], strides = [1, 1]} : vector<8x32xf32> to vector<8x8xf32>
    %795 = vector.extract_strided_slice %764 {offsets = [0, 8], sizes = [18, 8], strides = [1, 1]} : vector<18x32xf32> to vector<18x8xf32>
    %cst_384 = arith.constant dense<0.000000e+00> : vector<8x18xf32>
    %796 = tpu.matmul %794, %795, %cst_384 {dimension_numbers = #tpu.dot_dimension_numbers<[1], [1], [0], [0], [0, 0, 1, 0], [], []>} : vector<8x8xf32>, vector<18x8xf32>, vector<8x18xf32> -> vector<8x18xf32>
    %cst_385 = arith.constant 0.353553385 : f32
    %797 = vector.broadcast %cst_385 : f32 to vector<8x18xf32>
    %798 = arith.mulf %796, %797 : vector<8x18xf32>
    %cst_386 = arith.constant dense<0xFF800000> : vector<8xf32>
    %799 = vector.multi_reduction <maximumf>, %798, %cst_386 [1] : vector<8x18xf32> to vector<8xf32>
    %800 = vector.shape_cast %799 : vector<8xf32> to vector<8x1xf32>
    %801 = vector.broadcast %800 : vector<8x1xf32> to vector<8x18xf32>
    %802 = arith.subf %798, %801 : vector<8x18xf32>
    %803 = math.exp %802 : vector<8x18xf32>
    %cst_387 = arith.constant dense<0.000000e+00> : vector<8xf32>
    %804 = vector.multi_reduction <add>, %803, %cst_387 [1] : vector<8x18xf32> to vector<8xf32>
    %805 = vector.shape_cast %804 : vector<8xf32> to vector<8x1xf32>
    %806 = tpu.reciprocal %805 {approx = true} : vector<8x1xf32> -> vector<8x1xf32>
    %807 = vector.broadcast %806 : vector<8x1xf32> to vector<8x18xf32>
    %808 = arith.mulf %803, %807 : vector<8x18xf32>
    %809 = vector.extract_strided_slice %772 {offsets = [0, 8], sizes = [18, 8], strides = [1, 1]} : vector<18x32xf32> to vector<18x8xf32>
    %cst_388 = arith.constant dense<0.000000e+00> : vector<8x8xf32>
    %810 = tpu.matmul %808, %809, %cst_388 {dimension_numbers = #tpu.dot_dimension_numbers<[1], [0], [0], [1], [0, 0, 1, 1], [], []>} : vector<8x18xf32>, vector<18x8xf32>, vector<8x8xf32> -> vector<8x8xf32>
    %811 = vector.extract_strided_slice %756 {offsets = [0, 16], sizes = [8, 8], strides = [1, 1]} : vector<8x32xf32> to vector<8x8xf32>
    %812 = vector.extract_strided_slice %764 {offsets = [0, 16], sizes = [18, 8], strides = [1, 1]} : vector<18x32xf32> to vector<18x8xf32>
    %cst_389 = arith.constant dense<0.000000e+00> : vector<8x18xf32>
    %813 = tpu.matmul %811, %812, %cst_389 {dimension_numbers = #tpu.dot_dimension_numbers<[1], [1], [0], [0], [0, 0, 1, 0], [], []>} : vector<8x8xf32>, vector<18x8xf32>, vector<8x18xf32> -> vector<8x18xf32>
    %cst_390 = arith.constant 0.353553385 : f32
    %814 = vector.broadcast %cst_390 : f32 to vector<8x18xf32>
    %815 = arith.mulf %813, %814 : vector<8x18xf32>
    %cst_391 = arith.constant dense<0xFF800000> : vector<8xf32>
    %816 = vector.multi_reduction <maximumf>, %815, %cst_391 [1] : vector<8x18xf32> to vector<8xf32>
    %817 = vector.shape_cast %816 : vector<8xf32> to vector<8x1xf32>
    %818 = vector.broadcast %817 : vector<8x1xf32> to vector<8x18xf32>
    %819 = arith.subf %815, %818 : vector<8x18xf32>
    %820 = math.exp %819 : vector<8x18xf32>
    %cst_392 = arith.constant dense<0.000000e+00> : vector<8xf32>
    %821 = vector.multi_reduction <add>, %820, %cst_392 [1] : vector<8x18xf32> to vector<8xf32>
    %822 = vector.shape_cast %821 : vector<8xf32> to vector<8x1xf32>
    %823 = tpu.reciprocal %822 {approx = true} : vector<8x1xf32> -> vector<8x1xf32>
    %824 = vector.broadcast %823 : vector<8x1xf32> to vector<8x18xf32>
    %825 = arith.mulf %820, %824 : vector<8x18xf32>
    %826 = vector.extract_strided_slice %772 {offsets = [0, 16], sizes = [18, 8], strides = [1, 1]} : vector<18x32xf32> to vector<18x8xf32>
    %cst_393 = arith.constant dense<0.000000e+00> : vector<8x8xf32>
    %827 = tpu.matmul %825, %826, %cst_393 {dimension_numbers = #tpu.dot_dimension_numbers<[1], [0], [0], [1], [0, 0, 1, 1], [], []>} : vector<8x18xf32>, vector<18x8xf32>, vector<8x8xf32> -> vector<8x8xf32>
    %828 = vector.extract_strided_slice %756 {offsets = [0, 24], sizes = [8, 8], strides = [1, 1]} : vector<8x32xf32> to vector<8x8xf32>
    %829 = vector.extract_strided_slice %764 {offsets = [0, 24], sizes = [18, 8], strides = [1, 1]} : vector<18x32xf32> to vector<18x8xf32>
    %cst_394 = arith.constant dense<0.000000e+00> : vector<8x18xf32>
    %830 = tpu.matmul %828, %829, %cst_394 {dimension_numbers = #tpu.dot_dimension_numbers<[1], [1], [0], [0], [0, 0, 1, 0], [], []>} : vector<8x8xf32>, vector<18x8xf32>, vector<8x18xf32> -> vector<8x18xf32>
    %cst_395 = arith.constant 0.353553385 : f32
    %831 = vector.broadcast %cst_395 : f32 to vector<8x18xf32>
    %832 = arith.mulf %830, %831 : vector<8x18xf32>
    %cst_396 = arith.constant dense<0xFF800000> : vector<8xf32>
    %833 = vector.multi_reduction <maximumf>, %832, %cst_396 [1] : vector<8x18xf32> to vector<8xf32>
    %834 = vector.shape_cast %833 : vector<8xf32> to vector<8x1xf32>
    %835 = vector.broadcast %834 : vector<8x1xf32> to vector<8x18xf32>
    %836 = arith.subf %832, %835 : vector<8x18xf32>
    %837 = math.exp %836 : vector<8x18xf32>
    %cst_397 = arith.constant dense<0.000000e+00> : vector<8xf32>
    %838 = vector.multi_reduction <add>, %837, %cst_397 [1] : vector<8x18xf32> to vector<8xf32>
    %839 = vector.shape_cast %838 : vector<8xf32> to vector<8x1xf32>
    %840 = tpu.reciprocal %839 {approx = true} : vector<8x1xf32> -> vector<8x1xf32>
    %841 = vector.broadcast %840 : vector<8x1xf32> to vector<8x18xf32>
    %842 = arith.mulf %837, %841 : vector<8x18xf32>
    %843 = vector.extract_strided_slice %772 {offsets = [0, 24], sizes = [18, 8], strides = [1, 1]} : vector<18x32xf32> to vector<18x8xf32>
    %cst_398 = arith.constant dense<0.000000e+00> : vector<8x8xf32>
    %844 = tpu.matmul %842, %843, %cst_398 {dimension_numbers = #tpu.dot_dimension_numbers<[1], [0], [0], [1], [0, 0, 1, 1], [], []>} : vector<8x18xf32>, vector<18x8xf32>, vector<8x8xf32> -> vector<8x8xf32>
    %845 = tpu.concatenate %793, %810, %827, %844 in 1 : vector<8x8xf32>, vector<8x8xf32>, vector<8x8xf32>, vector<8x8xf32> -> vector<8x32xf32>
    %846 = arith.truncf %845 : vector<8x32xf32> to vector<8x32xbf16>
    %cst_399 = arith.constant dense<0.000000e+00> : vector<8x32xf32>
    %847 = tpu.matmul %846, %774, %cst_399 {dimension_numbers = #tpu.dot_dimension_numbers<[1], [0], [0], [1], [0, 0, 1, 1], [], []>} : vector<8x32xbf16>, vector<32x32xbf16>, vector<8x32xf32> -> vector<8x32xf32>
    %848 = vector.broadcast %776 : vector<1x32xf32> to vector<8x32xf32>
    %849 = arith.addf %847, %848 : vector<8x32xf32>
    %850 = arith.addf %747, %849 : vector<8x32xf32>
    %c1_400 = arith.constant 1 : index
    %c0_401 = arith.constant 0 : index
    %c0_402 = arith.constant 0 : index
    %851 = vector.load %arg34[%c1_400, %c0_401, %c0_402] : memref<2x1x32xf32, #tpu.memory_space<vmem>>, vector<1x1x32xf32>
    %852 = vector.shape_cast %851 : vector<1x1x32xf32> to vector<1x32xf32>
    %c1_403 = arith.constant 1 : index
    %c0_404 = arith.constant 0 : index
    %c0_405 = arith.constant 0 : index
    %853 = vector.load %arg35[%c1_403, %c0_404, %c0_405] : memref<2x1x32xf32, #tpu.memory_space<vmem>>, vector<1x1x32xf32>
    %854 = vector.shape_cast %853 : vector<1x1x32xf32> to vector<1x32xf32>
    %cst_406 = arith.constant dense<0.000000e+00> : vector<8xf32>
    %855 = vector.multi_reduction <add>, %850, %cst_406 [1] : vector<8x32xf32> to vector<8xf32>
    %856 = vector.shape_cast %855 : vector<8xf32> to vector<8x1xf32>
    %cst_407 = arith.constant 3.200000e+01 : f32
    %857 = vector.broadcast %cst_407 : f32 to vector<8x1xf32>
    %858 = arith.divf %856, %857 : vector<8x1xf32>
    %859 = vector.broadcast %858 : vector<8x1xf32> to vector<8x32xf32>
    %860 = arith.subf %850, %859 : vector<8x32xf32>
    %861 = arith.mulf %860, %860 : vector<8x32xf32>
    %cst_408 = arith.constant dense<0.000000e+00> : vector<8xf32>
    %862 = vector.multi_reduction <add>, %861, %cst_408 [1] : vector<8x32xf32> to vector<8xf32>
    %863 = vector.shape_cast %862 : vector<8xf32> to vector<8x1xf32>
    %cst_409 = arith.constant 3.200000e+01 : f32
    %864 = vector.broadcast %cst_409 : f32 to vector<8x1xf32>
    %865 = arith.divf %863, %864 : vector<8x1xf32>
    %cst_410 = arith.constant 9.99999974E-6 : f32
    %866 = vector.broadcast %cst_410 : f32 to vector<8x1xf32>
    %867 = arith.addf %865, %866 : vector<8x1xf32>
    %868 = math.rsqrt %867 : vector<8x1xf32>
    %869 = vector.broadcast %868 : vector<8x1xf32> to vector<8x32xf32>
    %870 = arith.mulf %860, %869 : vector<8x32xf32>
    %871 = vector.broadcast %852 : vector<1x32xf32> to vector<8x32xf32>
    %872 = arith.mulf %870, %871 : vector<8x32xf32>
    %873 = vector.broadcast %854 : vector<1x32xf32> to vector<8x32xf32>
    %874 = arith.addf %872, %873 : vector<8x32xf32>
    %c1_411 = arith.constant 1 : index
    %c0_412 = arith.constant 0 : index
    %c0_413 = arith.constant 0 : index
    %875 = vector.load %arg38[%c1_411, %c0_412, %c0_413] : memref<2x32x64xbf16, #tpu.memory_space<vmem>>, vector<1x32x64xbf16>
    %876 = vector.shape_cast %875 : vector<1x32x64xbf16> to vector<32x64xbf16>
    %c1_414 = arith.constant 1 : index
    %c0_415 = arith.constant 0 : index
    %c0_416 = arith.constant 0 : index
    %877 = vector.load %arg39[%c1_414, %c0_415, %c0_416] : memref<2x1x64xf32, #tpu.memory_space<vmem>>, vector<1x1x64xf32>
    %878 = vector.shape_cast %877 : vector<1x1x64xf32> to vector<1x64xf32>
    %c1_417 = arith.constant 1 : index
    %c0_418 = arith.constant 0 : index
    %c0_419 = arith.constant 0 : index
    %879 = vector.load %arg40[%c1_417, %c0_418, %c0_419] : memref<2x64x32xbf16, #tpu.memory_space<vmem>>, vector<1x64x32xbf16>
    %880 = vector.shape_cast %879 : vector<1x64x32xbf16> to vector<64x32xbf16>
    %c1_420 = arith.constant 1 : index
    %c0_421 = arith.constant 0 : index
    %c0_422 = arith.constant 0 : index
    %881 = vector.load %arg41[%c1_420, %c0_421, %c0_422] : memref<2x1x32xf32, #tpu.memory_space<vmem>>, vector<1x1x32xf32>
    %882 = vector.shape_cast %881 : vector<1x1x32xf32> to vector<1x32xf32>
    %883 = arith.truncf %874 : vector<8x32xf32> to vector<8x32xbf16>
    %cst_423 = arith.constant dense<0.000000e+00> : vector<8x64xf32>
    %884 = tpu.matmul %883, %876, %cst_423 {dimension_numbers = #tpu.dot_dimension_numbers<[1], [0], [0], [1], [0, 0, 1, 1], [], []>} : vector<8x32xbf16>, vector<32x64xbf16>, vector<8x64xf32> -> vector<8x64xf32>
    %885 = vector.broadcast %878 : vector<1x64xf32> to vector<8x64xf32>
    %886 = arith.addf %884, %885 : vector<8x64xf32>
    %cst_424 = arith.constant 0.000000e+00 : f32
    %887 = vector.broadcast %cst_424 : f32 to vector<8x64xf32>
    %888 = arith.maximumf %886, %887 : vector<8x64xf32>
    %889 = arith.truncf %888 : vector<8x64xf32> to vector<8x64xbf16>
    %cst_425 = arith.constant dense<0.000000e+00> : vector<8x32xf32>
    %890 = tpu.matmul %889, %880, %cst_425 {dimension_numbers = #tpu.dot_dimension_numbers<[1], [0], [0], [1], [0, 0, 1, 1], [], []>} : vector<8x64xbf16>, vector<64x32xbf16>, vector<8x32xf32> -> vector<8x32xf32>
    %891 = vector.broadcast %882 : vector<1x32xf32> to vector<8x32xf32>
    %892 = arith.addf %890, %891 : vector<8x32xf32>
    %893 = arith.addf %874, %892 : vector<8x32xf32>
    %c1_426 = arith.constant 1 : index
    %c0_427 = arith.constant 0 : index
    %c0_428 = arith.constant 0 : index
    %894 = vector.load %arg36[%c1_426, %c0_427, %c0_428] : memref<2x1x32xf32, #tpu.memory_space<vmem>>, vector<1x1x32xf32>
    %895 = vector.shape_cast %894 : vector<1x1x32xf32> to vector<1x32xf32>
    %c1_429 = arith.constant 1 : index
    %c0_430 = arith.constant 0 : index
    %c0_431 = arith.constant 0 : index
    %896 = vector.load %arg37[%c1_429, %c0_430, %c0_431] : memref<2x1x32xf32, #tpu.memory_space<vmem>>, vector<1x1x32xf32>
    %897 = vector.shape_cast %896 : vector<1x1x32xf32> to vector<1x32xf32>
    %cst_432 = arith.constant dense<0.000000e+00> : vector<8xf32>
    %898 = vector.multi_reduction <add>, %893, %cst_432 [1] : vector<8x32xf32> to vector<8xf32>
    %899 = vector.shape_cast %898 : vector<8xf32> to vector<8x1xf32>
    %cst_433 = arith.constant 3.200000e+01 : f32
    %900 = vector.broadcast %cst_433 : f32 to vector<8x1xf32>
    %901 = arith.divf %899, %900 : vector<8x1xf32>
    %902 = vector.broadcast %901 : vector<8x1xf32> to vector<8x32xf32>
    %903 = arith.subf %893, %902 : vector<8x32xf32>
    %904 = arith.mulf %903, %903 : vector<8x32xf32>
    %cst_434 = arith.constant dense<0.000000e+00> : vector<8xf32>
    %905 = vector.multi_reduction <add>, %904, %cst_434 [1] : vector<8x32xf32> to vector<8xf32>
    %906 = vector.shape_cast %905 : vector<8xf32> to vector<8x1xf32>
    %cst_435 = arith.constant 3.200000e+01 : f32
    %907 = vector.broadcast %cst_435 : f32 to vector<8x1xf32>
    %908 = arith.divf %906, %907 : vector<8x1xf32>
    %cst_436 = arith.constant 9.99999974E-6 : f32
    %909 = vector.broadcast %cst_436 : f32 to vector<8x1xf32>
    %910 = arith.addf %908, %909 : vector<8x1xf32>
    %911 = math.rsqrt %910 : vector<8x1xf32>
    %912 = vector.broadcast %911 : vector<8x1xf32> to vector<8x32xf32>
    %913 = arith.mulf %903, %912 : vector<8x32xf32>
    %914 = vector.broadcast %895 : vector<1x32xf32> to vector<8x32xf32>
    %915 = arith.mulf %913, %914 : vector<8x32xf32>
    %916 = vector.broadcast %897 : vector<1x32xf32> to vector<8x32xf32>
    %917 = arith.addf %915, %916 : vector<8x32xf32>
    %c0_437 = arith.constant 0 : index
    %c0_438 = arith.constant 0 : index
    %918 = vector.load %arg42[%c0_437, %c0_438] : memref<1x32xf32, #tpu.memory_space<vmem>>, vector<1x32xf32>
    %c0_439 = arith.constant 0 : index
    %c0_440 = arith.constant 0 : index
    %919 = vector.load %arg43[%c0_439, %c0_440] : memref<1x32xf32, #tpu.memory_space<vmem>>, vector<1x32xf32>
    %cst_441 = arith.constant dense<0.000000e+00> : vector<8xf32>
    %920 = vector.multi_reduction <add>, %917, %cst_441 [1] : vector<8x32xf32> to vector<8xf32>
    %921 = vector.shape_cast %920 : vector<8xf32> to vector<8x1xf32>
    %cst_442 = arith.constant 3.200000e+01 : f32
    %922 = vector.broadcast %cst_442 : f32 to vector<8x1xf32>
    %923 = arith.divf %921, %922 : vector<8x1xf32>
    %924 = vector.broadcast %923 : vector<8x1xf32> to vector<8x32xf32>
    %925 = arith.subf %917, %924 : vector<8x32xf32>
    %926 = arith.mulf %925, %925 : vector<8x32xf32>
    %cst_443 = arith.constant dense<0.000000e+00> : vector<8xf32>
    %927 = vector.multi_reduction <add>, %926, %cst_443 [1] : vector<8x32xf32> to vector<8xf32>
    %928 = vector.shape_cast %927 : vector<8xf32> to vector<8x1xf32>
    %cst_444 = arith.constant 3.200000e+01 : f32
    %929 = vector.broadcast %cst_444 : f32 to vector<8x1xf32>
    %930 = arith.divf %928, %929 : vector<8x1xf32>
    %cst_445 = arith.constant 9.99999974E-6 : f32
    %931 = vector.broadcast %cst_445 : f32 to vector<8x1xf32>
    %932 = arith.addf %930, %931 : vector<8x1xf32>
    %933 = math.rsqrt %932 : vector<8x1xf32>
    %934 = vector.broadcast %933 : vector<8x1xf32> to vector<8x32xf32>
    %935 = arith.mulf %925, %934 : vector<8x32xf32>
    %936 = vector.broadcast %918 : vector<1x32xf32> to vector<8x32xf32>
    %937 = arith.mulf %935, %936 : vector<8x32xf32>
    %938 = vector.broadcast %919 : vector<1x32xf32> to vector<8x32xf32>
    %939 = arith.addf %937, %938 : vector<8x32xf32>
    %c0_446 = arith.constant 0 : index
    %c0_447 = arith.constant 0 : index
    %c0_448 = arith.constant 0 : index
    %940 = vector.load %arg44[%c0_446, %c0_447, %c0_448] : memref<1x8x32xf32, #tpu.memory_space<vmem>>, vector<1x8x32xf32>
    %941 = vector.shape_cast %940 : vector<1x8x32xf32> to vector<8x32xf32>
    %942 = vector.shape_cast %939 : vector<8x32xf32> to vector<1x8x32xf32>
    tpu.vector_store %arg44[%c0_446, %c0_447, %c0_448], %942 {strides = array<i32>} : memref<1x8x32xf32, #tpu.memory_space<vmem>>, vector<1x8x32xf32>,
    return
  }
  func.func @transform_0(%arg0: i32) -> (i32, i32, i32) {
    %c0_i32 = arith.constant 0 : i32
    %c0_i32_0 = arith.constant 0 : i32
    %c0_i32_1 = arith.constant 0 : i32
    return %arg0, %c0_i32, %c0_i32_0 : i32, i32, i32
  }
  func.func @transform_1(%arg0: i32) -> (i32, i32, i32) {
    %c0_i32 = arith.constant 0 : i32
    %c0_i32_0 = arith.constant 0 : i32
    %c0_i32_1 = arith.constant 0 : i32
    %c0_i32_2 = arith.constant 0 : i32
    return %c0_i32, %c0_i32_0, %c0_i32_1 : i32, i32, i32
  }
  func.func @transform_2(%arg0: i32) -> (i32, i32, i32) {
    %c0_i32 = arith.constant 0 : i32
    %c0_i32_0 = arith.constant 0 : i32
    %c0_i32_1 = arith.constant 0 : i32
    %c0_i32_2 = arith.constant 0 : i32
    return %c0_i32, %c0_i32_0, %c0_i32_1 : i32, i32, i32
  }
  func.func @transform_3(%arg0: i32) -> (i32, i32, i32) {
    %c0_i32 = arith.constant 0 : i32
    %c0_i32_0 = arith.constant 0 : i32
    %c0_i32_1 = arith.constant 0 : i32
    %c0_i32_2 = arith.constant 0 : i32
    return %c0_i32, %c0_i32_0, %c0_i32_1 : i32, i32, i32
  }
  func.func @transform_4(%arg0: i32) -> (i32, i32, i32) {
    %c0_i32 = arith.constant 0 : i32
    %c0_i32_0 = arith.constant 0 : i32
    %c0_i32_1 = arith.constant 0 : i32
    %c0_i32_2 = arith.constant 0 : i32
    return %c0_i32, %c0_i32_0, %c0_i32_1 : i32, i32, i32
  }
  func.func @transform_5(%arg0: i32) -> (i32, i32, i32) {
    %c0_i32 = arith.constant 0 : i32
    %c0_i32_0 = arith.constant 0 : i32
    %c0_i32_1 = arith.constant 0 : i32
    %c0_i32_2 = arith.constant 0 : i32
    return %c0_i32, %c0_i32_0, %c0_i32_1 : i32, i32, i32
  }
  func.func @transform_6(%arg0: i32) -> (i32, i32, i32) {
    %c0_i32 = arith.constant 0 : i32
    %c0_i32_0 = arith.constant 0 : i32
    %c0_i32_1 = arith.constant 0 : i32
    %c0_i32_2 = arith.constant 0 : i32
    return %c0_i32, %c0_i32_0, %c0_i32_1 : i32, i32, i32
  }
  func.func @transform_7(%arg0: i32) -> (i32, i32, i32) {
    %c0_i32 = arith.constant 0 : i32
    %c0_i32_0 = arith.constant 0 : i32
    %c0_i32_1 = arith.constant 0 : i32
    %c0_i32_2 = arith.constant 0 : i32
    return %c0_i32, %c0_i32_0, %c0_i32_1 : i32, i32, i32
  }
  func.func @transform_8(%arg0: i32) -> (i32, i32, i32) {
    %c0_i32 = arith.constant 0 : i32
    %c0_i32_0 = arith.constant 0 : i32
    %c0_i32_1 = arith.constant 0 : i32
    %c0_i32_2 = arith.constant 0 : i32
    return %c0_i32, %c0_i32_0, %c0_i32_1 : i32, i32, i32
  }
  func.func @transform_9(%arg0: i32) -> (i32, i32, i32) {
    %c0_i32 = arith.constant 0 : i32
    %c0_i32_0 = arith.constant 0 : i32
    %c0_i32_1 = arith.constant 0 : i32
    %c0_i32_2 = arith.constant 0 : i32
    return %c0_i32, %c0_i32_0, %c0_i32_1 : i32, i32, i32
  }
  func.func @transform_10(%arg0: i32) -> (i32, i32, i32) {
    %c0_i32 = arith.constant 0 : i32
    %c0_i32_0 = arith.constant 0 : i32
    %c0_i32_1 = arith.constant 0 : i32
    %c0_i32_2 = arith.constant 0 : i32
    return %c0_i32, %c0_i32_0, %c0_i32_1 : i32, i32, i32
  }
  func.func @transform_11(%arg0: i32) -> (i32, i32, i32) {
    %c0_i32 = arith.constant 0 : i32
    %c0_i32_0 = arith.constant 0 : i32
    %c0_i32_1 = arith.constant 0 : i32
    %c0_i32_2 = arith.constant 0 : i32
    return %c0_i32, %c0_i32_0, %c0_i32_1 : i32, i32, i32
  }
  func.func @transform_12(%arg0: i32) -> (i32, i32, i32) {
    %c0_i32 = arith.constant 0 : i32
    %c0_i32_0 = arith.constant 0 : i32
    %c0_i32_1 = arith.constant 0 : i32
    %c0_i32_2 = arith.constant 0 : i32
    return %c0_i32, %c0_i32_0, %c0_i32_1 : i32, i32, i32
  }
  func.func @transform_13(%arg0: i32) -> (i32, i32, i32) {
    %c0_i32 = arith.constant 0 : i32
    %c0_i32_0 = arith.constant 0 : i32
    %c0_i32_1 = arith.constant 0 : i32
    %c0_i32_2 = arith.constant 0 : i32
    return %c0_i32, %c0_i32_0, %c0_i32_1 : i32, i32, i32
  }
  func.func @transform_14(%arg0: i32) -> (i32, i32, i32) {
    %c0_i32 = arith.constant 0 : i32
    %c0_i32_0 = arith.constant 0 : i32
    %c0_i32_1 = arith.constant 0 : i32
    %c0_i32_2 = arith.constant 0 : i32
    return %c0_i32, %c0_i32_0, %c0_i32_1 : i32, i32, i32
  }
  func.func @transform_15(%arg0: i32) -> (i32, i32, i32) {
    %c0_i32 = arith.constant 0 : i32
    %c0_i32_0 = arith.constant 0 : i32
    %c0_i32_1 = arith.constant 0 : i32
    %c0_i32_2 = arith.constant 0 : i32
    return %c0_i32, %c0_i32_0, %c0_i32_1 : i32, i32, i32
  }
  func.func @transform_16(%arg0: i32) -> (i32, i32, i32) {
    %c0_i32 = arith.constant 0 : i32
    %c0_i32_0 = arith.constant 0 : i32
    %c0_i32_1 = arith.constant 0 : i32
    %c0_i32_2 = arith.constant 0 : i32
    return %c0_i32, %c0_i32_0, %c0_i32_1 : i32, i32, i32
  }
  func.func @transform_17(%arg0: i32) -> (i32, i32, i32) {
    %c0_i32 = arith.constant 0 : i32
    %c0_i32_0 = arith.constant 0 : i32
    %c0_i32_1 = arith.constant 0 : i32
    %c0_i32_2 = arith.constant 0 : i32
    return %c0_i32, %c0_i32_0, %c0_i32_1 : i32, i32, i32
  }
  func.func @transform_18(%arg0: i32) -> (i32, i32, i32) {
    %c0_i32 = arith.constant 0 : i32
    %c0_i32_0 = arith.constant 0 : i32
    %c0_i32_1 = arith.constant 0 : i32
    %c0_i32_2 = arith.constant 0 : i32
    return %c0_i32, %c0_i32_0, %c0_i32_1 : i32, i32, i32
  }
  func.func @transform_19(%arg0: i32) -> (i32, i32, i32) {
    %c0_i32 = arith.constant 0 : i32
    %c0_i32_0 = arith.constant 0 : i32
    %c0_i32_1 = arith.constant 0 : i32
    %c0_i32_2 = arith.constant 0 : i32
    return %c0_i32, %c0_i32_0, %c0_i32_1 : i32, i32, i32
  }
  func.func @transform_20(%arg0: i32) -> (i32, i32, i32) {
    %c0_i32 = arith.constant 0 : i32
    %c0_i32_0 = arith.constant 0 : i32
    %c0_i32_1 = arith.constant 0 : i32
    %c0_i32_2 = arith.constant 0 : i32
    return %c0_i32, %c0_i32_0, %c0_i32_1 : i32, i32, i32
  }
  func.func @transform_21(%arg0: i32) -> (i32, i32, i32) {
    %c0_i32 = arith.constant 0 : i32
    %c0_i32_0 = arith.constant 0 : i32
    %c0_i32_1 = arith.constant 0 : i32
    %c0_i32_2 = arith.constant 0 : i32
    return %c0_i32, %c0_i32_0, %c0_i32_1 : i32, i32, i32
  }
  func.func @transform_22(%arg0: i32) -> (i32, i32, i32) {
    %c0_i32 = arith.constant 0 : i32
    %c0_i32_0 = arith.constant 0 : i32
    %c0_i32_1 = arith.constant 0 : i32
    %c0_i32_2 = arith.constant 0 : i32
    return %c0_i32, %c0_i32_0, %c0_i32_1 : i32, i32, i32
  }
  func.func @transform_23(%arg0: i32) -> (i32, i32, i32) {
    %c0_i32 = arith.constant 0 : i32
    %c0_i32_0 = arith.constant 0 : i32
    %c0_i32_1 = arith.constant 0 : i32
    %c0_i32_2 = arith.constant 0 : i32
    return %c0_i32, %c0_i32_0, %c0_i32_1 : i32, i32, i32
  }
  func.func @transform_24(%arg0: i32) -> (i32, i32, i32) {
    %c0_i32 = arith.constant 0 : i32
    %c0_i32_0 = arith.constant 0 : i32
    %c0_i32_1 = arith.constant 0 : i32
    %c0_i32_2 = arith.constant 0 : i32
    return %c0_i32, %c0_i32_0, %c0_i32_1 : i32, i32, i32
  }
  func.func @transform_25(%arg0: i32) -> (i32, i32, i32) {
    %c0_i32 = arith.constant 0 : i32
    %c0_i32_0 = arith.constant 0 : i32
    %c0_i32_1 = arith.constant 0 : i32
    %c0_i32_2 = arith.constant 0 : i32
    return %c0_i32, %c0_i32_0, %c0_i32_1 : i32, i32, i32
  }
  func.func @transform_26(%arg0: i32) -> (i32, i32, i32) {
    %c0_i32 = arith.constant 0 : i32
    %c0_i32_0 = arith.constant 0 : i32
    %c0_i32_1 = arith.constant 0 : i32
    %c0_i32_2 = arith.constant 0 : i32
    return %c0_i32, %c0_i32_0, %c0_i32_1 : i32, i32, i32
  }
  func.func @transform_27(%arg0: i32) -> (i32, i32, i32) {
    %c0_i32 = arith.constant 0 : i32
    %c0_i32_0 = arith.constant 0 : i32
    %c0_i32_1 = arith.constant 0 : i32
    %c0_i32_2 = arith.constant 0 : i32
    return %c0_i32, %c0_i32_0, %c0_i32_1 : i32, i32, i32
  }
  func.func @transform_28(%arg0: i32) -> (i32, i32, i32) {
    %c0_i32 = arith.constant 0 : i32
    %c0_i32_0 = arith.constant 0 : i32
    %c0_i32_1 = arith.constant 0 : i32
    %c0_i32_2 = arith.constant 0 : i32
    return %c0_i32, %c0_i32_0, %c0_i32_1 : i32, i32, i32
  }
  func.func @transform_29(%arg0: i32) -> (i32, i32, i32) {
    %c0_i32 = arith.constant 0 : i32
    %c0_i32_0 = arith.constant 0 : i32
    %c0_i32_1 = arith.constant 0 : i32
    %c0_i32_2 = arith.constant 0 : i32
    return %c0_i32, %c0_i32_0, %c0_i32_1 : i32, i32, i32
  }
  func.func @transform_30(%arg0: i32) -> (i32, i32, i32) {
    %c0_i32 = arith.constant 0 : i32
    %c0_i32_0 = arith.constant 0 : i32
    %c0_i32_1 = arith.constant 0 : i32
    %c0_i32_2 = arith.constant 0 : i32
    return %c0_i32, %c0_i32_0, %c0_i32_1 : i32, i32, i32
  }
  func.func @transform_31(%arg0: i32) -> (i32, i32, i32) {
    %c0_i32 = arith.constant 0 : i32
    %c0_i32_0 = arith.constant 0 : i32
    %c0_i32_1 = arith.constant 0 : i32
    %c0_i32_2 = arith.constant 0 : i32
    return %c0_i32, %c0_i32_0, %c0_i32_1 : i32, i32, i32
  }
  func.func @transform_32(%arg0: i32) -> (i32, i32, i32) {
    %c0_i32 = arith.constant 0 : i32
    %c0_i32_0 = arith.constant 0 : i32
    %c0_i32_1 = arith.constant 0 : i32
    %c0_i32_2 = arith.constant 0 : i32
    return %c0_i32, %c0_i32_0, %c0_i32_1 : i32, i32, i32
  }
  func.func @transform_33(%arg0: i32) -> (i32, i32, i32) {
    %c0_i32 = arith.constant 0 : i32
    %c0_i32_0 = arith.constant 0 : i32
    %c0_i32_1 = arith.constant 0 : i32
    %c0_i32_2 = arith.constant 0 : i32
    return %c0_i32, %c0_i32_0, %c0_i32_1 : i32, i32, i32
  }
  func.func @transform_34(%arg0: i32) -> (i32, i32, i32) {
    %c0_i32 = arith.constant 0 : i32
    %c0_i32_0 = arith.constant 0 : i32
    %c0_i32_1 = arith.constant 0 : i32
    %c0_i32_2 = arith.constant 0 : i32
    return %c0_i32, %c0_i32_0, %c0_i32_1 : i32, i32, i32
  }
  func.func @transform_35(%arg0: i32) -> (i32, i32, i32) {
    %c0_i32 = arith.constant 0 : i32
    %c0_i32_0 = arith.constant 0 : i32
    %c0_i32_1 = arith.constant 0 : i32
    %c0_i32_2 = arith.constant 0 : i32
    return %c0_i32, %c0_i32_0, %c0_i32_1 : i32, i32, i32
  }
  func.func @transform_36(%arg0: i32) -> (i32, i32, i32) {
    %c0_i32 = arith.constant 0 : i32
    %c0_i32_0 = arith.constant 0 : i32
    %c0_i32_1 = arith.constant 0 : i32
    %c0_i32_2 = arith.constant 0 : i32
    return %c0_i32, %c0_i32_0, %c0_i32_1 : i32, i32, i32
  }
  func.func @transform_37(%arg0: i32) -> (i32, i32, i32) {
    %c0_i32 = arith.constant 0 : i32
    %c0_i32_0 = arith.constant 0 : i32
    %c0_i32_1 = arith.constant 0 : i32
    %c0_i32_2 = arith.constant 0 : i32
    return %c0_i32, %c0_i32_0, %c0_i32_1 : i32, i32, i32
  }
  func.func @transform_38(%arg0: i32) -> (i32, i32, i32) {
    %c0_i32 = arith.constant 0 : i32
    %c0_i32_0 = arith.constant 0 : i32
    %c0_i32_1 = arith.constant 0 : i32
    %c0_i32_2 = arith.constant 0 : i32
    return %c0_i32, %c0_i32_0, %c0_i32_1 : i32, i32, i32
  }
  func.func @transform_39(%arg0: i32) -> (i32, i32, i32) {
    %c0_i32 = arith.constant 0 : i32
    %c0_i32_0 = arith.constant 0 : i32
    %c0_i32_1 = arith.constant 0 : i32
    %c0_i32_2 = arith.constant 0 : i32
    return %c0_i32, %c0_i32_0, %c0_i32_1 : i32, i32, i32
  }
  func.func @transform_40(%arg0: i32) -> (i32, i32, i32) {
    %c0_i32 = arith.constant 0 : i32
    %c0_i32_0 = arith.constant 0 : i32
    %c0_i32_1 = arith.constant 0 : i32
    %c0_i32_2 = arith.constant 0 : i32
    return %c0_i32, %c0_i32_0, %c0_i32_1 : i32, i32, i32
  }
  func.func @transform_41(%arg0: i32) -> (i32, i32) {
    %c0_i32 = arith.constant 0 : i32
    %c0_i32_0 = arith.constant 0 : i32
    %c0_i32_1 = arith.constant 0 : i32
    return %c0_i32, %c0_i32_0 : i32, i32
  }
  func.func @transform_42(%arg0: i32) -> (i32, i32) {
    %c0_i32 = arith.constant 0 : i32
    %c0_i32_0 = arith.constant 0 : i32
    %c0_i32_1 = arith.constant 0 : i32
    return %c0_i32, %c0_i32_0 : i32, i32
  }
  func.func @transform_43(%arg0: i32) -> (i32, i32, i32) {
    %c0_i32 = arith.constant 0 : i32
    %c0_i32_0 = arith.constant 0 : i32
    %c0_i32_1 = arith.constant 0 : i32
    return %arg0, %c0_i32, %c0_i32_0 : i32, i32, i32
  }
}

</mosaic_0001>

<bundles_post_ra>
// kernel: transformer_forward.1
= control target key start
LH: loop header
LB: loop body
LE: loop exit
PB: predicated region body
PF: predicated region fallthrough
CT: control target
= control target key end

     0   :  { %s12119_s6 = smov 1   ;;  %s12120_s10 = smov 2   ;;  %s14012_s0 = inlined_call_operand.smem [shape: u32[44], index: -1, kind: input, shape index: {}] }
   0x1   :  { %s12207_s5 = sld [smem:[%s14012_s0]]   ;;  %s12121_s14 = smov 3  }
   0x2   :  { %s12212_s9 = sld [smem:[%s14012_s0 + %s12119_s6]]   ;;  %s12122_s18 = smov 4  }
   0x3   :  { %s12217_s13 = sld [smem:[%s14012_s0 + %s12120_s10]]   ;;  %s12123_s22 = smov 5  }
   0x4   :  { %s12222_s17 = sld [smem:[%s14012_s0 + %s12121_s14]]   ;;  %s12124_s26 = smov 6  }
   0x5   :  { %s12227_s21 = sld [smem:[%s14012_s0 + %s12122_s18]]   ;;  %s12125_s30 = smov 7  }
   0x6   :  { %s12232_s25 = sld [smem:[%s14012_s0 + %s12123_s22]]   ;;  %s12126_s4 = smov 8  }
   0x7   :  { %14096 = sst [smem:[#allocation43_spill]] %s12207_s5  ;;  %s12127_s10 = smov 9  }
   0x8   :  { %14097 = sst [smem:[#allocation44_spill]] %s12212_s9  ;;  %s12128_s15 = smov 10  }
   0x9   :  { %14098 = sst [smem:[#allocation45_spill]] %s12217_s13  ;;  %s12129_s20 = smov 11  }
   0xa   :  { %14099 = sst [smem:[#allocation46_spill]] %s12222_s17  ;;  %s12131_s1 = smov 13  }
   0xb   :  { %14100 = sst [smem:[#allocation47_spill]] %s12227_s21  ;;  %s12132_s7 = smov 14  }
   0xc   :  { %14101 = sst [smem:[#allocation48_spill]] %s12232_s25  ;;  %s12134_s22 = smov 16  }
   0xd   :  { %s12237_s29 = sld [smem:[%s14012_s0 + %s12124_s26]]   ;;  %s12130_s26 = smov 12  }
   0xe   :  { %s12242_s3 = sld [smem:[%s14012_s0 + %s12125_s30]]   ;;  %s12135_s28 = smov 17  }
   0xf   :  { %s12247_s8 = sld [smem:[%s14012_s0 + %s12126_s4]]  }
  0x10   :  { %s12252_s14 = sld [smem:[%s14012_s0 + %s12127_s10]]  }
  0x11   :  { %s12257_s19 = sld [smem:[%s14012_s0 + %s12128_s15]]   ;;  %s12133_s15 = smov 15  }
  0x12   :  { %s12262_s24 = sld [smem:[%s14012_s0 + %s12129_s20]]  }
  0x13   :  { %14102 = sst [smem:[#allocation49_spill]] %s12237_s29 }
  0x14   :  { %14103 = sst [smem:[#allocation50_spill]] %s12242_s3 }
  0x15   :  { %14104 = sst [smem:[#allocation51_spill]] %s12247_s8 }
  0x16   :  { %14105 = sst [smem:[#allocation52_spill]] %s12252_s14 }
  0x17   :  { %14106 = sst [smem:[#allocation53_spill]] %s12257_s19 }
  0x18   :  { %14107 = sst [smem:[#allocation54_spill]] %s12262_s24 }
  0x19   :  { %s12267_s30 = sld [smem:[%s14012_s0 + %s12130_s26]]  }
  0x1a   :  { %s12272_s6 = sld [smem:[%s14012_s0 + %s12131_s1]]  }
  0x1b   :  { %s12277_s12 = sld [smem:[%s14012_s0 + %s12132_s7]]   ;;  %s12136_s7 = smov 18  }
  0x1c   :  { %s12282_s20 = sld [smem:[%s14012_s0 + %s12133_s15]]   ;;  %s12137_s15 = smov 19  }
  0x1d   :  { %s12287_s27 = sld [smem:[%s14012_s0 + %s12134_s22]]   ;;  %s12138_s22 = smov 20  }
  0x1e   :  { %s12292_s4 = sld [smem:[%s14012_s0 + %s12135_s28]]   ;;  %s12139_s28 = smov 21  }
  0x1f   :  { %14108 = sst [smem:[#allocation55_spill]] %s12267_s30 }
  0x20   :  { %14109 = sst [smem:[#allocation56_spill]] %s12272_s6 }
  0x21   :  { %14110 = sst [smem:[#allocation57_spill]] %s12277_s12 }
  0x22   :  { %14111 = sst [smem:[#allocation58_spill]] %s12282_s20 }
  0x23   :  { %14112 = sst [smem:[#allocation59_spill]] %s12287_s27 }
  0x24   :  { %14113 = sst [smem:[#allocation60_spill]] %s12292_s4 }
  0x25   :  { %s12297_s13 = sld [smem:[%s14012_s0 + %s12136_s7]]   ;;  %s12140_s7 = smov 22  }
  0x26   :  { %s12302_s20 = sld [smem:[%s14012_s0 + %s12137_s15]]   ;;  %s12141_s15 = smov 23  }
  0x27   :  { %s12307_s27 = sld [smem:[%s14012_s0 + %s12138_s22]]   ;;  %s12142_s22 = smov 24  }
  0x28   :  { %s12312_s4 = sld [smem:[%s14012_s0 + %s12139_s28]]   ;;  %s12143_s28 = smov 25  }
  0x29   :  { %s12317_s12 = sld [smem:[%s14012_s0 + %s12140_s7]]   ;;  %s12144_s7 = smov 26  }
  0x2a   :  { %s12327_s30 = sld [smem:[%s14012_s0 + %s12142_s22]]   ;;  %s12146_s22 = smov 28  }
  0x2b   :  { %14114 = sst [smem:[#allocation61_spill]] %s12297_s13 }
  0x2c   :  { %14115 = sst [smem:[#allocation62_spill]] %s12302_s20 }
  0x2d   :  { %14116 = sst [smem:[#allocation63_spill]] %s12307_s27 }
  0x2e   :  { %14117 = sst [smem:[#allocation64_spill]] %s12312_s4 }
  0x2f   :  { %14118 = sst [smem:[#allocation65_spill]] %s12317_s12 }
  0x30   :  { %s12322_s20 = sld [smem:[%s14012_s0 + %s12141_s15]]   ;;  %s12145_s15 = smov 27  }
  0x31   :  { %14120 = sst [smem:[#allocation67_spill]] %s12327_s30 }
  0x32   :  { %s12332_s4 = sld [smem:[%s14012_s0 + %s12143_s28]]   ;;  %s12147_s28 = smov 29  }
  0x33   :  { %s12337_s19 = sld [smem:[%s14012_s0 + %s12144_s7]]   ;;  %s12148_s7 = smov 30  }
  0x34   :  { %s12347_s14 = sld [smem:[%s14012_s0 + %s12146_s22]]   ;;  %s12150_s22 = smov 32  }
  0x35   :  { %s12352_s6 = sld [smem:[%s14012_s0 + %s12147_s28]]   ;;  %s12151_s28 = smov 33  }
  0x36   :  { %14119 = sst [smem:[#allocation66_spill]] %s12322_s20 }
  0x37   :  { %s12342_s20 = sld [smem:[%s14012_s0 + %s12145_s15]]   ;;  %s12149_s15 = smov 31  }
  0x38   :  { %14121 = sst [smem:[#allocation68_spill]] %s12332_s4 }
  0x39   :  { %14122 = sst [smem:[#allocation69_spill]] %s12337_s19 }
  0x3a   :  { %14124 = sst [smem:[#allocation71_spill]] %s12347_s14 }
  0x3b   :  { %14125 = sst [smem:[#allocation72_spill]] %s12352_s6 }
  0x3c   :  { %s12357_s24 = sld [smem:[%s14012_s0 + %s12148_s7]]   ;;  %s12152_s7 = smov 34  }
  0x3d   :  { %14123 = sst [smem:[#allocation70_spill]] %s12342_s20 }
  0x3e   :  { %s12362_s8 = sld [smem:[%s14012_s0 + %s12149_s15]]   ;;  %s12153_s15 = smov 35  }
  0x3f   :  { %s12367_s3 = sld [smem:[%s14012_s0 + %s12150_s22]]   ;;  %s12154_s22 = smov 36  }
  0x40   :  { %s12372_s29 = sld [smem:[%s14012_s0 + %s12151_s28]]   ;;  %s12155_s28 = smov 37  }
  0x41   :  { %s12377_s25 = sld [smem:[%s14012_s0 + %s12152_s7]]   ;;  %s12156_s7 = smov 38  }
  0x42   :  { %s12382_s21 = sld [smem:[%s14012_s0 + %s12153_s15]]   ;;  %s12157_s15 = smov 39  }
  0x43   :  { %s12387_s9 = sld [smem:[%s14012_s0 + %s12154_s22]]   ;;  %s12158_s22 = smov 40  }
  0x44   :  { %14126 = sst [smem:[#allocation73_spill]] %s12362_s8 }
  0x45   :  { %14127 = sst [smem:[#allocation74_spill]] %s12367_s3 }
  0x46   :  { %14128 = sst [smem:[#allocation75_spill]] %s12372_s29 }
  0x47   :  { %s12392_s17 = sld [smem:[%s14012_s0 + %s12155_s28]]   ;;  %s12159_s28 = smov 41  }
  0x48   :  { %14129 = sst [smem:[#allocation76_spill]] %s12382_s21 }
  0x49   :  { %14130 = sst [smem:[#allocation77_spill]] %s12387_s9 }
  0x4a   :  { %s12397_s5 = sld [smem:[%s14012_s0 + %s12156_s7]]   ;;  %s12160_s7 = smov 42  }
  0x4b   :  { %s12402_s21 = sld [smem:[%s14012_s0 + %s12157_s15]]   ;;  %s12161_s15 = smov 43  }
  0x4c   :  { %s12407_s29 = sld [smem:[%s14012_s0 + %s12158_s22]]  }
  0x4d   :  { %14131 = sst [smem:[#allocation78_spill]] %s12392_s17 }
  0x4e   :  { %s12412_s17 = sld [smem:[%s14012_s0 + %s12159_s28]]  }
  0x50   :  { %14132 = sst [smem:[#allocation79_spill]] %s12397_s5 }
  0x51   :  { %14133 = sst [smem:[#allocation80_spill]] %s12402_s21 }
  0x52   :  { %s12417_s5 = sld [smem:[%s14012_s0 + %s12160_s7]]  }
  0x53   :  { %s12422_s21 = sld [smem:[%s14012_s0 + %s12161_s15]]  }
  0x54   :  { %92 = vsyncpa [#allocation3], 0 }
  0x55   :  { %93 = vsyncpa [#allocation6], 0 }
  0x56   :  { %94 = vsyncpa [#allocation9], 0 }
  0x57   :  { %95 = vsyncpa [#allocation12], 0 }
  0x58   :  { %96 = vsyncpa [#allocation15], 0 }
  0x59   :  { %97 = vsyncpa [#allocation18], 0 }
  0x5a   :  { %98 = vsyncpa [#allocation21], 0 }
  0x5b   :  { %99 = vsyncpa [#allocation24], 0 }
  0x5c   :  { %100 = vsyncpa [#allocation27], 0 }
  0x5d   :  { %101 = vsyncpa [#allocation30], 0 }
  0x5e   :  { %102 = vsyncpa [#allocation4], 0 }
  0x5f   :  { %104 = vsyncpa [#allocation4 + $0x1], 0  ;;  %s12424_s22 = smov 0   ;;  %s12426_s23 = smov 0  }
  0x60   :  { %s12428_s26 = smov 0   ;;  %s12430_s0 = smov 0  }
  0x61   :  { %14134 = sst [smem:[#allocation81_spill]] %s12428_s26 }
  0x62 LB: > { %s14136_s20 = sld [smem:[#allocation70_spill]]  ;;  %s14137_s19 = sld [smem:[#allocation69_spill]]  ;;  %s12117_s0 = sphi %s12430_s0, %s14235_s0   ;;  %s12109_s23 = sphi %s12426_s23, %s14239_s23   ;;  %s12105_s22 = sphi %s12424_s22, %s14238_s22  }
  0x63   : > { %s14138_s14 = sld [smem:[#allocation71_spill]]  ;;  %s14139_s13 = sld [smem:[#allocation61_spill]] }
  0x64   : > { %s14140_s12 = sld [smem:[#allocation65_spill]]  ;;  %s14141_s9 = sld [smem:[#allocation77_spill]] }
  0x65   : > { %s14142_s8 = sld [smem:[#allocation73_spill]]  ;;  %s14143_s6 = sld [smem:[#allocation72_spill]] }
  0x66   : > { %s14144_s4 = sld [smem:[#allocation68_spill]]  ;;  %s14145_s3 = sld [smem:[#allocation74_spill]] }
  0x67   : > { %s14146_s30 = sld [smem:[#allocation67_spill]]  ;;  %s14147_s27 = sld [smem:[#allocation63_spill]] }
  0x68   : > { %s14148_s26 = sld [smem:[#allocation81_spill]]  ;;  %14151 = sst [smem:[#allocation83_spill]] %s12117_s0 }
  0x69   : > { %14149 = sst [smem:[#allocation81_spill]] %s12105_s22  ;;  %s12445_s28 = sadd.s32 4294967295, %s12117_s0  }
  0x6a   : > { %s9269_s1 = sadd.s32 4294967294, %s12117_s0   ;;  %s12449_s2 = sadd.s32 1, %s12117_s0  }
  0x6b   : > { %14152 = sst [smem:[#allocation84_spill]] %s12449_s2  ;;  %s1022_s10 = ssub.s32 %s12117_s0, %s12449_s2 }
  0x6c   : > { %p1023_p1 = scmp.eq.s32.totalorder %s1022_s10, 0  ;;  %p1036_p2 = scmp.eq.s32.totalorder %s12445_s28, 1 }
  0x6d   : > { %p1041_p3 = scmp.ne.s32.totalorder %s12109_s23, %s12105_s22  ;;  %p1042_p4 = scmp.eq.s32.totalorder %s9269_s1, 1 }
  0x6e   : > { %14150 = sst [smem:[#allocation82_spill]] %s14148_s26  ;;  %s1025_s7 = sadd.s32 1, %s14148_s26 }
  0x6f   : > { %p1035_p0 = scmp.ne.s32.totalorder %s14148_s26, %s12109_s23  ;;  %p12466_p6 = por %p1042_p4, %p1041_p3 }
  0x70   : > { %s12460_s11 = scalar_select %p1023_p1, %s14148_s26, %s1025_s7  }
  0x71   : > { %p12462_p5 = por %p1036_p2, %p1035_p0  ;;  %p9270_p7 = scmp.ge.s32.totalorder %s12117_s0, 1 }
  0x72   : > { %14153 = sst [smem:[#allocation85_spill]] %s12460_s11  ;;  %p1049_p8 = scmp.lt.s32.totalorder %s12117_s0, 3 }
  0x73   : > { %s14154_s15 = scalar_select %p12462_p5, 1, 0 }
  0x74   : > { %s14155_s16 = scalar_select %p12466_p6, 1, 0 }
  0x75   : > { %p14043_p9 = scmp.eq.s32.totalorder %s12445_s28, 0  ;;  %p12473_p10 = pnand %p9270_p7, %p1049_p8 }
  0x76   : > { %14156 = sst [smem:[#allocation86_spill]] %s14155_s16  ;;  %s12162_s1 = smov [#allocation5]  }
  0x77   : > { %s14157_s18 = scalar_select %p12473_p10, 1, 0 }
  0x78   : > { %p10872_p11 = pneg %p12473_p10  ;;  %s1128_s7 = sshll.u32 %s12162_s1, 4  ;;  %s12479_s7 = int_to_ptr.vmem [resolvable:$true] %s1128_s7 }
  0x79   : > { %s12163_s11 = smov [#allocation8]   ;;  %s12164_s2 = smov [#allocation11]  }
  0x7a   : > { %p12483_p12 = pnand %p14043_p9, %p10872_p11  ;;  %s1160_s26 = sshll.u32 %s12163_s11, 4  ;;  %s12487_s26 = int_to_ptr.vmem [resolvable:$true] %s1160_s26 }
  0x7b   : > { %s12489_s16 = sshll.u32 %s12164_s2, 4  ;;  %s11511_s22 = scalar_lea.hbm %s14147_s27, 32  ;;  %s1187_s16 = int_to_ptr.vmem [resolvable:$true] %s12489_s16 }
  0x7c   : > { %p11512_p13 = scmp.ne.s32.totalorder %s14147_s27, %s11511_s22  ;;  %p12495_p0 = pneg %p12483_p12 }
  0x7d   : > { %p11518_p3 = scmp.lt.u32.totalorder %s11511_s22, %s14147_s27 }
  0x7e   : > { %p11514_p1 = pnand %p12495_p0, %p11512_p13 }
  0x80   : > { %p11515_p2 = pneg %p11514_p1 }
  0x82   : > { %p11520_p4 = pnand %p11518_p3, %p11515_p2 }
  0x84   : > { %11523 = shalt.err (!%p11520_p4)
}
  0x85   : > { %s11524_s2 = scalar_lea.vmem %s12479_s7, 32  ;;  %p11532_p9 = scmp.lt.s32.totalorder %s12479_s7, %s12479_s7 }
  0x86   : > { %p11525_p7 = scmp.ne.s32.totalorder %s12479_s7, %s11524_s2  ;;  %p11533_p6 = scmp.lt.s32.totalorder %s11524_s2, %s11524_s2 }
  0x88   : > { %p11527_p8 = pnand %p11525_p7, %p12495_p0  ;;  %p11534_p5 = por %p11533_p6, %p11532_p9 }
  0x8a   : > { %p11528_p11 = pneg %p11527_p8 }
  0x8c   : > { %p11535_p10 = pnand %p11534_p5, %p11528_p11 }
  0x8e   : > { %11538 = shalt.err (!%p11535_p10)
}
  0x8f   : > { %s14049_s11 = smov 16   ;;  %s14051_s22 = smov 1  }
  0x90   : > { %10878 = dma.hbm_to_vmem [thread:$0]  (!%p12483_p12), %s14147_s27, 32, %s12479_s7, [#allocation6], %s14049_s11, %s14049_s11, %s14051_s22  }
  0x91   : > { %s11539_s0 = scalar_lea.hbm %s14146_s30, 32 }
  0x92   : > { %p11540_p13 = scmp.ne.s32.totalorder %s14146_s30, %s11539_s0  ;;  %p11546_p9 = scmp.lt.u32.totalorder %s11539_s0, %s14146_s30 }
  0x94   : > { %p11542_p6 = pnand %p11540_p13, %p12495_p0 }
  0x96   : > { %p11543_p5 = pneg %p11542_p6 }
  0x98   : > { %p11548_p10 = pnand %p11546_p9, %p11543_p5 }
  0x9a   : > { %11551 = shalt.err (!%p11548_p10)
}
  0x9b   : > { %s11552_s2 = scalar_lea.vmem %s12487_s26, 32  ;;  %p11560_p4 = scmp.lt.s32.totalorder %s12487_s26, %s12487_s26 }
  0x9c   : > { %p11553_p1 = scmp.ne.s32.totalorder %s12487_s26, %s11552_s2  ;;  %p11561_p7 = scmp.lt.s32.totalorder %s11552_s2, %s11552_s2 }
  0x9e   : > { %p11555_p2 = pnand %p11553_p1, %p12495_p0  ;;  %p11562_p8 = por %p11561_p7, %p11560_p4 }
  0xa0   : > { %p11556_p3 = pneg %p11555_p2 }
  0xa2   : > { %p11563_p11 = pnand %p11562_p8, %p11556_p3 }
  0xa4   : > { %11566 = shalt.err (!%p11563_p11)
}
  0xa5   : > { %10884 = dma.hbm_to_vmem [thread:$0]  (!%p12483_p12), %s14146_s30, 32, %s12487_s26, [#allocation9], %s14049_s11, %s14049_s11, %s14051_s22  }
  0xa6   : > { %s11567_s0 = scalar_lea.hbm %s14137_s19, 32 }
  0xa7   : > { %p11568_p13 = scmp.ne.s32.totalorder %s14137_s19, %s11567_s0  ;;  %p11574_p9 = scmp.lt.u32.totalorder %s11567_s0, %s14137_s19 }
  0xa9   : > { %p11570_p6 = pnand %p11568_p13, %p12495_p0 }
  0xab   : > { %p11571_p5 = pneg %p11570_p6 }
  0xad   : > { %p11576_p10 = pnand %p11574_p9, %p11571_p5 }
  0xaf   : > { %11579 = shalt.err (!%p11576_p10)
}
  0xb0   : > { %s11580_s7 = scalar_lea.vmem %s1187_s16, 32  ;;  %p11588_p4 = scmp.lt.s32.totalorder %s1187_s16, %s1187_s16 }
  0xb1   : > { %p11581_p1 = scmp.ne.s32.totalorder %s1187_s16, %s11580_s7  ;;  %p11589_p7 = scmp.lt.s32.totalorder %s11580_s7, %s11580_s7 }
  0xb3   : > { %p11583_p2 = pnand %p11581_p1, %p12495_p0  ;;  %p11590_p8 = por %p11589_p7, %p11588_p4 }
  0xb5   : > { %p11584_p3 = pneg %p11583_p2 }
  0xb7   : > { %p11591_p11 = pnand %p11590_p8, %p11584_p3 }
  0xb9   : > { %11594 = shalt.err (!%p11591_p11)
}
  0xba   : > { %10890 = dma.hbm_to_vmem [thread:$0]  (!%p12483_p12), %s14137_s19, 32, %s1187_s16, [#allocation12], %s14049_s11, %s14049_s11, %s14051_s22  }
  0xbb   : > { %s12167_s26 = smov [#allocation14]   ;;  %s12168_s0 = smov [#allocation17]  }
  0xbc   : > { %s1212_s2 = sshll.u32 %s12167_s26, 4  ;;  %s1238_s27 = sshll.u32 %s12168_s0, 4  ;;  %s1213_s2 = int_to_ptr.vmem [resolvable:$true] %s1212_s2  ;;  %s1239_s27 = int_to_ptr.vmem [resolvable:$true] %s1238_s27 }
  0xbd   : > { %s11595_s7 = scalar_lea.hbm %s14138_s14, 32 }
  0xbe   : > { %p11596_p13 = scmp.ne.s32.totalorder %s14138_s14, %s11595_s7  ;;  %p11602_p9 = scmp.lt.u32.totalorder %s11595_s7, %s14138_s14 }
  0xc0   : > { %p11598_p6 = pnand %p11596_p13, %p12495_p0 }
  0xc2   : > { %p11599_p5 = pneg %p11598_p6 }
  0xc4   : > { %p11604_p10 = pnand %p11602_p9, %p11599_p5 }
  0xc6   : > { %11607 = shalt.err (!%p11604_p10)
}
  0xc7   : > { %s11608_s30 = scalar_lea.vmem %s1213_s2, 32  ;;  %p11616_p4 = scmp.lt.s32.totalorder %s1213_s2, %s1213_s2 }
  0xc8   : > { %p11609_p1 = scmp.ne.s32.totalorder %s1213_s2, %s11608_s30  ;;  %p11617_p7 = scmp.lt.s32.totalorder %s11608_s30, %s11608_s30 }
  0xca   : > { %p11611_p2 = pnand %p11609_p1, %p12495_p0  ;;  %p11618_p8 = por %p11617_p7, %p11616_p4 }
  0xcc   : > { %p11612_p3 = pneg %p11611_p2 }
  0xce   : > { %p11619_p11 = pnand %p11618_p8, %p11612_p3 }
  0xd0   : > { %11622 = shalt.err (!%p11619_p11)
}
  0xd1   : > { %10896 = dma.hbm_to_vmem [thread:$0]  (!%p12483_p12), %s14138_s14, 32, %s1213_s2, [#allocation15], %s14049_s11, %s14049_s11, %s14051_s22  }
  0xd2   : > { %s11623_s16 = scalar_lea.hbm %s12357_s24, 32 }
  0xd3   : > { %p11624_p13 = scmp.ne.s32.totalorder %s12357_s24, %s11623_s16  ;;  %p11630_p9 = scmp.lt.u32.totalorder %s11623_s16, %s12357_s24 }
  0xd5   : > { %p11626_p6 = pnand %p11624_p13, %p12495_p0 }
  0xd7   : > { %p11627_p5 = pneg %p11626_p6 }
  0xd9   : > { %p11632_p10 = pnand %p11630_p9, %p11627_p5 }
  0xdb   : > { %11635 = shalt.err (!%p11632_p10)
}
  0xdc   : > { %s11636_s30 = scalar_lea.vmem %s1239_s27, 32  ;;  %p11644_p4 = scmp.lt.s32.totalorder %s1239_s27, %s1239_s27 }
  0xdd   : > { %p11637_p1 = scmp.ne.s32.totalorder %s1239_s27, %s11636_s30  ;;  %p11645_p7 = scmp.lt.s32.totalorder %s11636_s30, %s11636_s30 }
  0xdf   : > { %p11639_p2 = pnand %p11637_p1, %p12495_p0  ;;  %p11646_p8 = por %p11645_p7, %p11644_p4 }
  0xe1   : > { %p11640_p3 = pneg %p11639_p2 }
  0xe3   : > { %p11647_p11 = pnand %p11646_p8, %p11640_p3 }
  0xe5   : > { %11650 = shalt.err (!%p11647_p11)
}
  0xe6   : > { %10902 = dma.hbm_to_vmem [thread:$0]  (!%p12483_p12), %s12357_s24, 32, %s1239_s27, [#allocation18], %s14049_s11, %s14049_s11, %s14051_s22  }
  0xe7   : > { %s12169_s26 = smov [#allocation20]   ;;  %s12170_s0 = smov [#allocation23]  }
  0xe8   : > { %s1264_s2 = sshll.u32 %s12169_s26, 4  ;;  %s1290_s7 = sshll.u32 %s12170_s0, 4  ;;  %s1265_s2 = int_to_ptr.vmem [resolvable:$true] %s1264_s2  ;;  %s1291_s7 = int_to_ptr.vmem [resolvable:$true] %s1290_s7 }
  0xe9   : > { %s11651_s16 = scalar_lea.hbm %s14145_s3, 32 }
  0xea   : > { %p11652_p13 = scmp.ne.s32.totalorder %s14145_s3, %s11651_s16  ;;  %p11658_p9 = scmp.lt.u32.totalorder %s11651_s16, %s14145_s3 }
  0xec   : > { %p11654_p6 = pnand %p11652_p13, %p12495_p0 }
  0xee   : > { %p11655_p5 = pneg %p11654_p6 }
  0xf0   : > { %p11660_p10 = pnand %p11658_p9, %p11655_p5 }
  0xf2   : > { %11663 = shalt.err (!%p11660_p10)
}
  0xf3   : > { %s11664_s30 = scalar_lea.vmem %s1265_s2, 32  ;;  %p11672_p4 = scmp.lt.s32.totalorder %s1265_s2, %s1265_s2 }
  0xf4   : > { %p11665_p1 = scmp.ne.s32.totalorder %s1265_s2, %s11664_s30  ;;  %p11673_p7 = scmp.lt.s32.totalorder %s11664_s30, %s11664_s30 }
  0xf6   : > { %p11667_p2 = pnand %p11665_p1, %p12495_p0  ;;  %p11674_p8 = por %p11673_p7, %p11672_p4 }
  0xf8   : > { %p11668_p3 = pneg %p11667_p2 }
  0xfa   : > { %p11675_p11 = pnand %p11674_p8, %p11668_p3 }
  0xfc   : > { %11678 = shalt.err (!%p11675_p11)
}
  0xfd   : > { %10908 = dma.hbm_to_vmem [thread:$0]  (!%p12483_p12), %s14145_s3, 32, %s1265_s2, [#allocation21], %s14049_s11, %s14049_s11, %s14051_s22  }
  0xfe   : > { %s11679_s27 = scalar_lea.hbm %s12377_s25, 32 }
  0xff   : > { %p11680_p13 = scmp.ne.s32.totalorder %s12377_s25, %s11679_s27  ;;  %p11686_p9 = scmp.lt.u32.totalorder %s11679_s27, %s12377_s25 }
 0x101   : > { %p11682_p6 = pnand %p11680_p13, %p12495_p0 }
 0x103   : > { %p11683_p5 = pneg %p11682_p6 }
 0x105   : > { %p11688_p10 = pnand %p11686_p9, %p11683_p5 }
 0x107   : > { %11691 = shalt.err (!%p11688_p10)
}
 0x108   : > { %s11692_s26 = scalar_lea.vmem %s1291_s7, 32  ;;  %p11700_p4 = scmp.lt.s32.totalorder %s1291_s7, %s1291_s7 }
 0x109   : > { %p11693_p1 = scmp.ne.s32.totalorder %s1291_s7, %s11692_s26  ;;  %p11701_p7 = scmp.lt.s32.totalorder %s11692_s26, %s11692_s26 }
 0x10b   : > { %p11695_p2 = pnand %p11693_p1, %p12495_p0  ;;  %p11702_p8 = por %p11701_p7, %p11700_p4 }
 0x10d   : > { %p11696_p3 = pneg %p11695_p2 }
 0x10f   : > { %p11703_p11 = pnand %p11702_p8, %p11696_p3 }
 0x111   : > { %11706 = shalt.err (!%p11703_p11)
}
 0x112   : > { %10914 = dma.hbm_to_vmem [thread:$0]  (!%p12483_p12), %s12377_s25, 32, %s1291_s7, [#allocation24], %s14049_s11, %s14049_s11, %s14051_s22  }
 0x113   : > { %s12171_s2 = smov [#allocation26]   ;;  %s12172_s16 = smov [#allocation2]  }
 0x114   : > { %s1316_s0 = sshll.u32 %s12171_s2, 4  ;;  %s1112_s30 = sshll.u32 %s12172_s16, 4  ;;  %s1317_s0 = int_to_ptr.vmem [resolvable:$true] %s1316_s0  ;;  %s1113_s30 = int_to_ptr.vmem [resolvable:$true] %s1112_s30 }
 0x115   : > { %s11707_s27 = scalar_lea.hbm %s14141_s9, 32 }
 0x116   : > { %p11708_p13 = scmp.ne.s32.totalorder %s14141_s9, %s11707_s27  ;;  %p11714_p9 = scmp.lt.u32.totalorder %s11707_s27, %s14141_s9 }
 0x118   : > { %p11710_p6 = pnand %p11708_p13, %p12495_p0 }
 0x11a   : > { %p11711_p5 = pneg %p11710_p6 }
 0x11c   : > { %p11716_p10 = pnand %p11714_p9, %p11711_p5 }
 0x11e   : > { %11719 = shalt.err (!%p11716_p10)
}
 0x11f   : > { %s11720_s26 = scalar_lea.vmem %s1317_s0, 32  ;;  %p11728_p4 = scmp.lt.s32.totalorder %s1317_s0, %s1317_s0 }
 0x120   : > { %p11721_p1 = scmp.ne.s32.totalorder %s1317_s0, %s11720_s26  ;;  %p11729_p7 = scmp.lt.s32.totalorder %s11720_s26, %s11720_s26 }
 0x122   : > { %p11723_p2 = pnand %p11721_p1, %p12495_p0  ;;  %p11730_p8 = por %p11729_p7, %p11728_p4 }
 0x124   : > { %p11724_p3 = pneg %p11723_p2 }
 0x126   : > { %p11731_p11 = pnand %p11730_p8, %p11724_p3 }
 0x128   : > { %11734 = shalt.err (!%p11731_p11)
}
 0x129   : > { %10920 = dma.hbm_to_vmem [thread:$0]  (!%p12483_p12), %s14141_s9, 32, %s1317_s0, [#allocation27], %s14049_s11, %s14049_s11, %s14051_s22  }
 0x12a   : > { %s11735_s7 = scalar_lea.hbm %s14139_s13, 32 }
 0x12b   : > { %p11736_p13 = scmp.ne.s32.totalorder %s14139_s13, %s11735_s7  ;;  %p11742_p9 = scmp.lt.u32.totalorder %s11735_s7, %s14139_s13 }
 0x12d   : > { %p11738_p6 = pnand %p11736_p13, %p12495_p0 }
 0x12f   : > { %p11739_p5 = pneg %p11738_p6 }
 0x131   : > { %p11744_p10 = pnand %p11742_p9, %p11739_p5 }
 0x133   : > { %11747 = shalt.err (!%p11744_p10)
}
 0x134   : > { %s11748_s2 = scalar_lea.vmem %s1113_s30, 32  ;;  %p11756_p4 = scmp.lt.s32.totalorder %s1113_s30, %s1113_s30 }
 0x135   : > { %p11749_p1 = scmp.ne.s32.totalorder %s1113_s30, %s11748_s2  ;;  %p11757_p7 = scmp.lt.s32.totalorder %s11748_s2, %s11748_s2 }
 0x137   : > { %p11751_p2 = pnand %p11749_p1, %p12495_p0  ;;  %p11758_p8 = por %p11757_p7, %p11756_p4 }
 0x139   : > { %p11752_p3 = pneg %p11751_p2 }
 0x13b   : > { %p11759_p11 = pnand %p11758_p8, %p11752_p3 }
 0x13d   : > { %11762 = shalt.err (!%p11759_p11)
}
 0x13e   : > { %10875 = dma.hbm_to_vmem [thread:$0]  (!%p12483_p12), %s14139_s13, 32, %s1113_s30, [#allocation3], %s14049_s11, %s14049_s11, %s14051_s22  }
 0x13f   : > { %s12173_s0 = smov [#allocation7]   ;;  %s12174_s27 = smov [#allocation10]  }
 0x140   : > { %s1144_s16 = sshll.u32 %s12173_s0, 4  ;;  %s1173_s26 = sshll.u32 %s12174_s27, 4  ;;  %s1145_s16 = int_to_ptr.vmem [resolvable:$true] %s1144_s16  ;;  %s1174_s26 = int_to_ptr.vmem [resolvable:$true] %s1173_s26 }
 0x141   : > { %s11763_s7 = scalar_lea.hbm %s14140_s12, 32 }
 0x142   : > { %p11764_p13 = scmp.ne.s32.totalorder %s14140_s12, %s11763_s7  ;;  %p11770_p9 = scmp.lt.u32.totalorder %s11763_s7, %s14140_s12 }
 0x144   : > { %p11766_p6 = pnand %p11764_p13, %p12495_p0 }
 0x146   : > { %p11767_p5 = pneg %p11766_p6 }
 0x148   : > { %p11772_p10 = pnand %p11770_p9, %p11767_p5 }
 0x14a   : > { %11775 = shalt.err (!%p11772_p10)
}
 0x14b   : > { %s11776_s2 = scalar_lea.vmem %s1145_s16, 32  ;;  %p11784_p4 = scmp.lt.s32.totalorder %s1145_s16, %s1145_s16 }
 0x14c   : > { %p11777_p1 = scmp.ne.s32.totalorder %s1145_s16, %s11776_s2  ;;  %p11785_p7 = scmp.lt.s32.totalorder %s11776_s2, %s11776_s2 }
 0x14e   : > { %p11779_p2 = pnand %p11777_p1, %p12495_p0  ;;  %p11786_p8 = por %p11785_p7, %p11784_p4 }
 0x150   : > { %p11780_p3 = pneg %p11779_p2 }
 0x152   : > { %p11787_p11 = pnand %p11786_p8, %p11780_p3 }
 0x154   : > { %11790 = shalt.err (!%p11787_p11)
}
 0x155   : > { %10881 = dma.hbm_to_vmem [thread:$0]  (!%p12483_p12), %s14140_s12, 32, %s1145_s16, [#allocation6], %s14049_s11, %s14049_s11, %s14051_s22  }
 0x156   : > { %s11791_s30 = scalar_lea.hbm %s14144_s4, 512 }
 0x157   : > { %p11792_p13 = scmp.ne.s32.totalorder %s14144_s4, %s11791_s30  ;;  %p11798_p9 = scmp.lt.u32.totalorder %s11791_s30, %s14144_s4 }
 0x159   : > { %p11794_p6 = pnand %p11792_p13, %p12495_p0 }
 0x15b   : > { %p11795_p5 = pneg %p11794_p6 }
 0x15d   : > { %p11800_p10 = pnand %p11798_p9, %p11795_p5 }
 0x15f   : > { %11803 = shalt.err (!%p11800_p10)
}
 0x160   : > { %s11804_s0 = scalar_lea.vmem %s1174_s26, 512  ;;  %p11812_p4 = scmp.lt.s32.totalorder %s1174_s26, %s1174_s26 }
 0x161   : > { %p11805_p1 = scmp.ne.s32.totalorder %s1174_s26, %s11804_s0  ;;  %p11813_p7 = scmp.lt.s32.totalorder %s11804_s0, %s11804_s0 }
 0x163   : > { %p11807_p2 = pnand %p11805_p1, %p12495_p0  ;;  %p11814_p8 = por %p11813_p7, %p11812_p4 }
 0x165   : > { %p11808_p3 = pneg %p11807_p2 }
 0x167   : > { %p11815_p11 = pnand %p11814_p8, %p11808_p3 }
 0x169   : > { %11818 = shalt.err (!%p11815_p11)
}
 0x16a   : > { %s12175_s16 = smov 64   ;;  %s12176_s27 = smov 4  }
 0x16b   : > { %10887 = dma.hbm_to_vmem [thread:$0]  (!%p12483_p12), %s14144_s4, 512, %s1174_s26, [#allocation9], %s12175_s16, %s12175_s16, %s12176_s27  }
 0x16c   : > { %s12177_s7 = smov [#allocation13]   ;;  %s12178_s30 = smov [#allocation16]  }
 0x16d   : > { %s1199_s2 = sshll.u32 %s12177_s7, 4  ;;  %s1225_s0 = sshll.u32 %s12178_s30, 4  ;;  %s1200_s2 = int_to_ptr.vmem [resolvable:$true] %s1199_s2  ;;  %s1226_s0 = int_to_ptr.vmem [resolvable:$true] %s1225_s0 }
 0x16e   : > { %s11819_s11 = scalar_lea.hbm %s14136_s20, 512 }
 0x16f   : > { %p11820_p13 = scmp.ne.s32.totalorder %s14136_s20, %s11819_s11  ;;  %p11826_p9 = scmp.lt.u32.totalorder %s11819_s11, %s14136_s20 }
 0x171   : > { %p11822_p6 = pnand %p11820_p13, %p12495_p0 }
 0x173   : > { %p11823_p5 = pneg %p11822_p6 }
 0x175   : > { %p11828_p10 = pnand %p11826_p9, %p11823_p5 }
 0x177   : > { %11831 = shalt.err (!%p11828_p10)
}
 0x178   : > { %s11832_s22 = scalar_lea.vmem %s1200_s2, 512  ;;  %p11840_p4 = scmp.lt.s32.totalorder %s1200_s2, %s1200_s2 }
 0x179   : > { %p11833_p1 = scmp.ne.s32.totalorder %s1200_s2, %s11832_s22  ;;  %p11841_p7 = scmp.lt.s32.totalorder %s11832_s22, %s11832_s22 }
 0x17b   : > { %p11835_p2 = pnand %p11833_p1, %p12495_p0  ;;  %p11842_p8 = por %p11841_p7, %p11840_p4 }
 0x17d   : > { %p11836_p3 = pneg %p11835_p2 }
 0x17f   : > { %p11843_p11 = pnand %p11842_p8, %p11836_p3 }
 0x181   : > { %11846 = shalt.err (!%p11843_p11)
}
 0x182   : > { %10893 = dma.hbm_to_vmem [thread:$0]  (!%p12483_p12), %s14136_s20, 512, %s1200_s2, [#allocation12], %s12175_s16, %s12175_s16, %s12176_s27  }
 0x183   : > { %s11847_s11 = scalar_lea.hbm %s14143_s6, 512 }
 0x184   : > { %p11848_p13 = scmp.ne.s32.totalorder %s14143_s6, %s11847_s11  ;;  %p11854_p9 = scmp.lt.u32.totalorder %s11847_s11, %s14143_s6 }
 0x186   : > { %p11850_p6 = pnand %p11848_p13, %p12495_p0 }
 0x188   : > { %p11851_p5 = pneg %p11850_p6 }
 0x18a   : > { %p11856_p10 = pnand %p11854_p9, %p11851_p5 }
 0x18c   : > { %11859 = shalt.err (!%p11856_p10)
}
 0x18d   : > { %s11860_s22 = scalar_lea.vmem %s1226_s0, 512  ;;  %p11868_p4 = scmp.lt.s32.totalorder %s1226_s0, %s1226_s0 }
 0x18e   : > { %p11861_p1 = scmp.ne.s32.totalorder %s1226_s0, %s11860_s22  ;;  %p11869_p7 = scmp.lt.s32.totalorder %s11860_s22, %s11860_s22 }
 0x190   : > { %p11863_p2 = pnand %p11861_p1, %p12495_p0  ;;  %p11870_p8 = por %p11869_p7, %p11868_p4 }
 0x192   : > { %p11864_p3 = pneg %p11863_p2 }
 0x194   : > { %p11871_p11 = pnand %p11870_p8, %p11864_p3 }
 0x196   : > { %11874 = shalt.err (!%p11871_p11)
}
 0x197   : > { %10899 = dma.hbm_to_vmem [thread:$0]  (!%p12483_p12), %s14143_s6, 512, %s1226_s0, [#allocation15], %s12175_s16, %s12175_s16, %s12176_s27  }
 0x198   : > { %s12179_s26 = smov [#allocation19]   ;;  %s12180_s2 = smov [#allocation22]  }
 0x199   : > { %s1251_s7 = sshll.u32 %s12179_s26, 4  ;;  %s1277_s30 = sshll.u32 %s12180_s2, 4  ;;  %s1252_s7 = int_to_ptr.vmem [resolvable:$true] %s1251_s7  ;;  %s1278_s30 = int_to_ptr.vmem [resolvable:$true] %s1277_s30 }
 0x19a   : > { %s11875_s11 = scalar_lea.hbm %s14142_s8, 32 }
 0x19b   : > { %p11876_p13 = scmp.ne.s32.totalorder %s14142_s8, %s11875_s11  ;;  %p11882_p9 = scmp.lt.u32.totalorder %s11875_s11, %s14142_s8 }
 0x19d   : > { %p11878_p6 = pnand %p11876_p13, %p12495_p0 }
 0x19f   : > { %p11879_p5 = pneg %p11878_p6 }
 0x1a1   : > { %p11884_p10 = pnand %p11882_p9, %p11879_p5 }
 0x1a3   : > { %11887 = shalt.err (!%p11884_p10)
}
 0x1a4   : > { %s11888_s22 = scalar_lea.vmem %s1252_s7, 32  ;;  %p11896_p4 = scmp.lt.s32.totalorder %s1252_s7, %s1252_s7 }
 0x1a5   : > { %p11889_p1 = scmp.ne.s32.totalorder %s1252_s7, %s11888_s22  ;;  %p11897_p7 = scmp.lt.s32.totalorder %s11888_s22, %s11888_s22 }
 0x1a7   : > { %p11891_p2 = pnand %p11889_p1, %p12495_p0  ;;  %p11898_p8 = por %p11897_p7, %p11896_p4 }
 0x1a9   : > { %p11892_p3 = pneg %p11891_p2 }
 0x1ab   : > { %p11899_p11 = pnand %p11898_p8, %p11892_p3 }
 0x1ad   : > { %11902 = shalt.err (!%p11899_p11)
}
 0x1ae   : > { %s14160_s16 = smov 1   ;;  %s14161_s27 = smov 16  }
 0x1af   : > { %s14162_s0 = sld [smem:[#allocation75_spill]] }
 0x1b0   : > { %10905 = dma.hbm_to_vmem [thread:$0]  (!%p12483_p12), %s14142_s8, 32, %s1252_s7, [#allocation18], %s14161_s27, %s14161_s27, %s14160_s16  }
 0x1b5   : > { %s14163_s2 = smov %s14162_s0  ;;  %s11903_s26 = scalar_lea.hbm %s14162_s0, 32 }
 0x1b6   : > { %p11904_p13 = scmp.ne.s32.totalorder %s14163_s2, %s11903_s26  ;;  %p11910_p9 = scmp.lt.u32.totalorder %s11903_s26, %s14163_s2 }
 0x1b8   : > { %p11906_p6 = pnand %p11904_p13, %p12495_p0 }
 0x1ba   : > { %p11907_p5 = pneg %p11906_p6 }
 0x1bc   : > { %p11912_p10 = pnand %p11910_p9, %p11907_p5 }
 0x1be   : > { %11915 = shalt.err (!%p11912_p10)
}
 0x1bf   : > { %s11916_s11 = scalar_lea.vmem %s1278_s30, 32  ;;  %p11924_p4 = scmp.lt.s32.totalorder %s1278_s30, %s1278_s30 }
 0x1c0   : > { %p11917_p1 = scmp.ne.s32.totalorder %s1278_s30, %s11916_s11  ;;  %p11925_p7 = scmp.lt.s32.totalorder %s11916_s11, %s11916_s11 }
 0x1c2   : > { %p11919_p2 = pnand %p11917_p1, %p12495_p0  ;;  %p11926_p8 = por %p11925_p7, %p11924_p4 }
 0x1c4   : > { %p11920_p3 = pneg %p11919_p2 }
 0x1c6   : > { %p11927_p11 = pnand %p11926_p8, %p11920_p3 }
 0x1c8   : > { %11930 = shalt.err (!%p11927_p11)
}
 0x1c9   : > { %s14164_s7 = sld [smem:[#allocation76_spill]]  ;;  %s12181_s22 = smov [#allocation25]  }
 0x1ca   : > { %10911 = dma.hbm_to_vmem [thread:$0]  (!%p12483_p12), %s14163_s2, 32, %s1278_s30, [#allocation21], %s14161_s27, %s14161_s27, %s14160_s16  }
 0x1cb   : > { %s1303_s0 = sshll.u32 %s12181_s22, 4  ;;  %s12182_s26 = smov [#allocation28]   ;;  %s1304_s0 = int_to_ptr.vmem [resolvable:$true] %s1303_s0 }
 0x1cc   : > { %s1332_s3 = sshll.u32 %s12182_s26, 4  ;;  %s1333_s3 = int_to_ptr.vmem [resolvable:$true] %s1332_s3 }
 0x1cf   : > { %s11931_s11 = scalar_lea.hbm %s14164_s7, 32 }
 0x1d0   : > { %p11932_p13 = scmp.ne.s32.totalorder %s14164_s7, %s11931_s11  ;;  %p11938_p9 = scmp.lt.u32.totalorder %s11931_s11, %s14164_s7 }
 0x1d2   : > { %p11934_p6 = pnand %p11932_p13, %p12495_p0 }
 0x1d4   : > { %p11935_p5 = pneg %p11934_p6 }
 0x1d6   : > { %p11940_p10 = pnand %p11938_p9, %p11935_p5 }
 0x1d8   : > { %11943 = shalt.err (!%p11940_p10)
}
 0x1d9   : > { %s11944_s4 = scalar_lea.vmem %s1304_s0, 32  ;;  %p11952_p4 = scmp.lt.s32.totalorder %s1304_s0, %s1304_s0 }
 0x1da   : > { %p11945_p1 = scmp.ne.s32.totalorder %s1304_s0, %s11944_s4  ;;  %p11953_p7 = scmp.lt.s32.totalorder %s11944_s4, %s11944_s4 }
 0x1dc   : > { %p11947_p2 = pnand %p11945_p1, %p12495_p0  ;;  %p11954_p8 = por %p11953_p7, %p11952_p4 }
 0x1de   : > { %p11948_p3 = pneg %p11947_p2 }
 0x1e0   : > { %p11955_p11 = pnand %p11954_p8, %p11948_p3 }
 0x1e2   : > { %11958 = shalt.err (!%p11955_p11)
}
 0x1e3   : > { %s14165_s30 = sld [smem:[#allocation79_spill]] }
 0x1e4   : > { %10917 = dma.hbm_to_vmem [thread:$0]  (!%p12483_p12), %s14164_s7, 32, %s1304_s0, [#allocation24], %s14161_s27, %s14161_s27, %s14160_s16  }
 0x1e9   : > { %s11959_s22 = scalar_lea.hbm %s14165_s30, 32 }
 0x1ea   : > { %p11960_p13 = scmp.ne.s32.totalorder %s14165_s30, %s11959_s22  ;;  %p11966_p9 = scmp.lt.u32.totalorder %s11959_s22, %s14165_s30 }
 0x1ec   : > { %p11962_p6 = pnand %p11960_p13, %p12495_p0 }
 0x1ee   : > { %p11963_p5 = pneg %p11962_p6 }
 0x1f0   : > { %p11968_p10 = pnand %p11966_p9, %p11963_p5 }
 0x1f2   : > { %11971 = shalt.err (!%p11968_p10)
}
 0x1f3   : > { %s11972_s4 = scalar_lea.vmem %s1333_s3, 32  ;;  %p11980_p4 = scmp.lt.s32.totalorder %s1333_s3, %s1333_s3 }
 0x1f4   : > { %p11973_p1 = scmp.ne.s32.totalorder %s1333_s3, %s11972_s4  ;;  %p11981_p7 = scmp.lt.s32.totalorder %s11972_s4, %s11972_s4 }
 0x1f6   : > { %p11975_p2 = pnand %p11973_p1, %p12495_p0  ;;  %p11982_p8 = por %p11981_p7, %p11980_p4 }
 0x1f8   : > { %p11976_p3 = pneg %p11975_p2 }
 0x1fa   : > { %p11983_p11 = pnand %p11982_p8, %p11976_p3 }
 0x1fc   : > { %11986 = shalt.err (!%p11983_p11)
}
 0x1fd   : > { %10923 = dma.hbm_to_vmem [thread:$0]  (!%p12483_p12), %s14165_s30, 32, %s1333_s3, [#allocation27], %s14161_s27, %s14161_s27, %s14160_s16  }
 0x1fe   : > { %s12183_s0 = smov [#allocation29]   ;;  %s11987_s11 = scalar_lea.hbm %s12407_s29, 32 }
 0x1ff   : > { %s1348_s26 = sshll.u32 %s12183_s0, 4  ;;  %p11988_p13 = scmp.ne.s32.totalorder %s12407_s29, %s11987_s11  ;;  %s1349_s26 = int_to_ptr.vmem [resolvable:$true] %s1348_s26 }
 0x200   : > { %p11994_p9 = scmp.lt.u32.totalorder %s11987_s11, %s12407_s29 }
 0x201   : > { %p11990_p6 = pnand %p11988_p13, %p12495_p0 }
 0x203   : > { %p11991_p5 = pneg %p11990_p6 }
 0x205   : > { %p11996_p10 = pnand %p11994_p9, %p11991_p5 }
 0x207   : > { %11999 = shalt.err (!%p11996_p10)
}
 0x208   : > { %s12000_s22 = scalar_lea.vmem %s1349_s26, 32  ;;  %p12008_p4 = scmp.lt.s32.totalorder %s1349_s26, %s1349_s26 }
 0x209   : > { %p12001_p1 = scmp.ne.s32.totalorder %s1349_s26, %s12000_s22  ;;  %p12009_p7 = scmp.lt.s32.totalorder %s12000_s22, %s12000_s22 }
 0x20b   : > { %p12003_p2 = pnand %p12001_p1, %p12495_p0  ;;  %p12010_p8 = por %p12009_p7, %p12008_p4 }
 0x20d   : > { %p12004_p3 = pneg %p12003_p2 }
 0x20f   : > { %p12011_p11 = pnand %p12010_p8, %p12004_p3 }
 0x211   : > { %12014 = shalt.err (!%p12011_p11)
}
 0x212   : > { %10926 = dma.hbm_to_vmem [thread:$0]  (!%p12483_p12), %s12407_s29, 32, %s1349_s26, [#allocation30], %s14161_s27, %s14161_s27, %s14160_s16  }
 0x213   : > { %p14166_p13 = scmp.ne.s32.totalorder %s14157_s18, 0 }
 0x214   : > { %p14167_p6 = scmp.eq.s32.totalorder (!%p14166_p13), %s12445_s28, 0 }
 0x215   : > { %1378 = sbr.rel (%p14166_p13) target bundleno = 17377 (0x43e1), region = 192 }
 0x21c   : > { %12060 = dma.done.wait (%p14167_p6), [#allocation3], 32   ;;  %p14168_p0 = pmov %p14167_p6 }
 0x21e   : > { %12062 = vsyncadd (%p14168_p0), [#allocation3], 4294967264  ;;  %p14169_p5 = pmov %p14168_p0 }
 0x21f   : > { %p14170_p9 = pmov %p14168_p0 }
 0x220   : > { %12064 = dma.done.wait (%p14169_p5), [#allocation6], 64  }
 0x221   : > { %12066 = vsyncadd (%p14170_p9), [#allocation6], 4294967232  ;;  %p14171_p10 = pmov %p14168_p0 }
 0x222   : > { %p14172_p12 = pmov %p14168_p0 }
 0x223   : > { %12068 = dma.done.wait (%p14171_p10), [#allocation9], 544  }
 0x224   : > { %12070 = vsyncadd (%p14172_p12), [#allocation9], 4294966752  ;;  %p14173_p1 = pmov %p14168_p0 }
 0x225   : > { %p14174_p2 = pmov %p14168_p0 }
 0x226   : > { %12072 = dma.done.wait (%p14173_p1), [#allocation12], 544  }
 0x227   : > { %12074 = vsyncadd (%p14174_p2), [#allocation12], 4294966752  ;;  %p14175_p3 = pmov %p14168_p0 }
 0x228   : > { %p14176_p4 = pmov %p14168_p0 }
 0x229   : > { %12076 = dma.done.wait (%p14175_p3), [#allocation15], 544  }
 0x22a   : > { %12078 = vsyncadd (%p14176_p4), [#allocation15], 4294966752  ;;  %p14177_p7 = pmov %p14168_p0 }
 0x22b   : > { %p14178_p8 = pmov %p14168_p0 }
 0x22c   : > { %12080 = dma.done.wait (%p14177_p7), [#allocation18], 64  }
 0x22d   : > { %12082 = vsyncadd (%p14178_p8), [#allocation18], 4294967232  ;;  %p14179_p11 = pmov %p14168_p0 }
 0x22e   : > { %p14180_p13 = pmov %p14168_p0 }
 0x22f   : > { %12084 = dma.done.wait (%p14179_p11), [#allocation21], 64  }
 0x230   : > { %12086 = vsyncadd (%p14180_p13), [#allocation21], 4294967232  ;;  %p14181_p6 = pmov %p14168_p0 }
 0x232   : > { %12088 = dma.done.wait (%p14181_p6), [#allocation24], 64  }
 0x233   : > { %12090 = vsyncadd (%p14168_p0), [#allocation24], 4294967232  ;;  %p14182_p5 = pmov %p14168_p0 }
 0x234   : > { %p14183_p9 = pmov %p14168_p0 }
 0x235   : > { %12092 = dma.done.wait (%p14182_p5), [#allocation27], 64  }
 0x236   : > { %12094 = vsyncadd (%p14183_p9), [#allocation27], 4294967232  ;;  %p14184_p10 = pmov %p14168_p0 }
 0x237   : > { %p14185_p12 = pmov %p14168_p0 }
 0x238   : > { %12096 = dma.done.wait (%p14184_p10), [#allocation30], 32  }
 0x239   : > { %12098 = vsyncadd (%p14185_p12), [#allocation30], 4294967264  ;;  %s14186_s3 = sld [smem:[#allocation43_spill]]  ;;  %s14187_s18 = sld [smem:[#allocation46_spill]]  ;;  %vm1596_vm0 = vcmask 261120   ;;  %v12184_v13 = vmov 0.0|0.0  }
 0x23a   : > { %s14188_s10 = sld [smem:[#allocation44_spill]]  ;;  %p1550_p1 = scmp.lt.s32.totalorder %s12445_s28, 1  ;;  %vm12186_vm1 = vmmov 0   ;;  %v12187_v22 = vmov 0.0   ;;  %vm1739_vm2 = vcmask 64512   ;;  %vm1835_vm4 = vcmask 146432  }
 0x23b   : > { %s14189_s4 = sld [smem:[#allocation47_spill]]  ;;  %s14055_s0 = smov 96   ;;  %vm12819_vm3 = vmpackc.low %vm1739_vm2, %vm1739_vm2  ;;  %vm1842_vm5 = vcmask 140288   ;;  %vm1879_vm6 = vcmask 1041408   ;;  %vm2721_vm7 = vcmask 130048   ;;  %vm2725_vm8 = vcmask 195584  }
 0x23c   : > { %s1551_s1 = scalar_select %p1550_p1, %s12445_s28, 1  ;;  %vm2814_vm9 = vcmask 254976   ;;  %vm2990_vm10 = vcmask 523264  }
 0x23d   : > { %s14190_s26 = sld [smem:[#allocation48_spill]]  ;;  %s14194_s22 = sld [smem:[#allocation49_spill]] }
 0x23e   : > { %s10797_s16 = smul.u32 24, %s1551_s1  ;;  %s14070_s1 = smov 88  }
 0x23f   : > { %v11239_v0 = vld [vmem:[%s14187_s18] sm:$0xff]   ;;  %v11240_v1 = vld [vmem:[%s14187_s18 + $0x8] sm:$0xff]   ;;  %s14058_s2 = smov 104   ;;  %s14204_s6 = sld [smem:[#allocation53_spill]] }
 0x240   : > { %s12787_s27 = scalar_lea.vmem %s14186_s3, %s10797_s16  ;;  %9981 = vmatprep.subr.bf16.mxu0 %v11239_v0  ;;  %v1559_v4 = vld [vmem:[%s14188_s10] sm:$0xff]  ;;  %v1560_v5 = vld [vmem:[%s14188_s10 + $0x8] sm:$0xff]  ;;  %v1561_v8 = vld [vmem:[%s14188_s10 + $0x10] sm:$0x3]  ;;  %s14068_s16 = smov 120  }
 0x241   : > { %v1556_v2 = vld [vmem:[%s12787_s27] sm:$0xff]  ;;  %v1557_v3 = vld [vmem:[%s12787_s27 + $0x8] sm:$0xff]  ;;  %9982 = vmatpush3.bf16.msra.mxu0 %v11239_v0  ;;  %v1558_v7 = vld [vmem:[%s12787_s27 + $0x10] sm:$0x3]  ;;  %s14218_s13 = smov 112   ;;  %s14219_s14 = smov 104  }
 0x242   : > { %v1563_v6 = vadd.f32 %v1559_v4, %v1556_v2  ;;  %9983 = vmatprep.subr.bf16.mxu0 %v11240_v1  ;;  %v1564_v9 = vadd.f32 %v1560_v5, %v1557_v3  ;;  %v1565_v10 = vadd.f32 %v1561_v8, %v1558_v7  ;;  %v9311_v15 = vld [vmem:[%s14189_s4] ss:$0 sm:$0xff]  ;;  %v1651_v32 = vpack.c.bf16 %v1557_v3, %v1556_v2  ;;  %s14221_s19 = smov 16   ;;  %s14222_s20 = smov 24  }
 0x243   : > { %s14191_s11 = smov %s14190_s26  ;;  %v11241_v30 = vld [vmem:[%s14190_s26] sm:$0xff]   ;;  %v1652_v33 = vpack.c.bf16 %v1558_v7, %v1558_v7  ;;  %s14195_s3 = smov %s14194_s22 }
 0x244   : > { %v1576_v11 = vpack.c.bf16 %v1564_v9, %v1563_v6  ;;  %v1577_v12 = vpack.c.bf16 %v1565_v10, %v1565_v10  ;;  %v11242_v31 = vld [vmem:[%s14191_s11 + $0x8] sm:$0xff]   ;;  %9989 = vmatprep.subr.bf16.mxu1 %v11241_v30  ;;  %9993 = vmatprep.mubr.msk.bf16.mxu1 %vm1596_vm0, %v1651_v32  ;;  %s14074_s26 = smov 80   ;;  %v9316_v46 = vld [vmem:[%s14194_s22] ss:$0 sm:$0xff]  ;;  %s14062_s22 = smov 72  }
 0x245   : > { %9984 = vmatpush3.bf16.msra.mxu0 %v11240_v1  ;;  %9990 = vmatpush3.bf16.msra.mxu1 %v11241_v30  ;;  %p14230_p3 = scmp.ne.s32.totalorder %s14154_s15, 0 }
 0x246   : > { %9985 = vmatprep.mubr.msk.bf16.mxu0 %vm1596_vm0, %v1576_v11  ;;  %10685 = vmatprep.subr.bf16.mxu0 %v12184_v13 }
 0x247   : > { %9991 = vmatprep.subr.bf16.mxu1 %v11242_v31 }
 0x248   : > { %9986 = vmatmul.mubr.msk.bf16.vlgmr.msra.gmra.mrb[0].mxu0 %vm1596_vm0, %v1577_v12 }
 0x249   : > { %10003 = vmatprep.mubr.msk.f32.mxu0 %vm12186_vm1, %v12187_v22  ;;  %9992 = vmatpush3.bf16.msra.mxu1 %v11242_v31 }
 0x24a   : > { %10689 = vmatprep.subr.bf16.mxu1 %v12184_v13 }
 0x24c   : > { %9994 = vmatmul.mubr.msk.bf16.vlgmr.msra.gmra.mrb[0].mxu1 %vm1596_vm0, %v1652_v33 }
 0x24d   : > { %10018 = vmatprep.mubr.msk.f32.mxu1 %vm12186_vm1, %v12187_v22 }
 0x31b   : > { %v9987_v14 = vpop.f32.mrb[0].mxu0 }
 0x31c   : > { %v1637_v16 = vpop.f32.mrb[1].mxu0  ;;  %v12813_v23 = vadd.f32 %v9987_v14, %v9311_v15 }
 0x31d   : > { %v9988_v17 = vpop.f32.mrb[2].mxu0  ;;  %v12801_v19 = vadd.f32 %v9311_v15, %v1637_v16 }
 0x31e   : > { %v1640_v18 = vpop.f32.mrb[3].mxu0 }
 0x31f   : > { %v12803_v20 = vadd.f32 %v9311_v15, %v1640_v18  ;;  %v9995_v47 = vpop.f32.mrb[0].mxu1 }
 0x320   : > { %v1711_v48 = vpop.f32.mrb[1].mxu1  ;;  %v12869_v59 = vadd.f32 %v9995_v47, %v9316_v46 }
 0x321   : > { %v12807_v21 = vpack.i.bf16 %v12803_v20, %v12801_v19  ;;  %v1712_v50 = vadd.f32 %v9316_v46, %v1711_v48  ;;  %v9996_v51 = vpop.f32.mrb[2].mxu1 }
 0x322   : > { %v1714_v53 = vpop.f32.mrb[3].mxu1 }
 0x323   : > { %11080 = vrot.lane.b32.xlu0 %v12807_v21, %s14055_s0  ;;  %v1715_v54 = vadd.f32 %v9316_v46, %v1714_v53 }
 0x325   : > { %v10690_v57 = vpack.c.bf16 %v1715_v54, %v1712_v50  ;;  %v12878_v6 = vpack.i.bf16 %v1715_v54, %v1712_v50 }
 0x327   : > { %1737 = vrot.lane.b32.xlu0 %v12813_v23, %s14055_s0  ;;  %s14060_s0 = smov 112   ;;  %10691 = vmatpush3.bf16.msra.mxu1 %v10690_v57 }
 0x328   : > { %10016 = vmatprep.subr.mxu1 %v12187_v22 }
 0x32b   : > { %10017 = vmatpush3.msk.msra.mxu1 %vm1879_vm6, %v12869_v59 }
 0x32c   : > { %10692 = vmatprep.subr.bf16.mxu1 %v12184_v13 }
 0x395   : > { %v11081_v24 = vpop.permute.xlu0 %11080 }
 0x396   : > { %v11083_v25 = vunpack.i.h.bf16 %v11081_v24  ;;  %v11082_v26 = vunpack.i.l.bf16 %v11081_v24 }
 0x398   : > { %v10686_v28 = vpack.c.bf16 %v11083_v25, %v11082_v26 }
 0x399   : > { %v1738_v29 = vpop.permute.xlu0 %1737 }
 0x39a   : > { %10688 = vmatpush3.bf16.xpose.msk.msra.mxu0 %vm12819_vm3, %v10686_v28 }
 0x39b   : > { %10001 = vmatprep.subr.mxu0 %v12187_v22 }
 0x3a2   : > { %10002 = vmatpush3.xpose.msk.msra.mxu0 %vm1739_vm2, %v1738_v29 }
 0x3a3   : > { %10696 = vmatprep.subr.bf16.mxu0 %v12184_v13 }
 0x3a5   : > { %10004 = vmatmul.mubr.msk.f32.vlgmr.msra.gmra.mrb[4].mxu0 %vm1739_vm2, %v12801_v19 }
 0x3a6   : > { %10006 = vmatprep.mubr.msk.f32.mxu0 %vm12186_vm1, %v12187_v22 }
 0x3a9   : > { %10007 = vmatmul.mubr.msk.f32.gmra.mrb[6].mxu0 %vm1739_vm2, %v12803_v20 }
 0x3aa   : > { %10009 = vmatprep.mubr.msk.f32.mxu0 %vm12186_vm1, %v12187_v22 }
 0x3ad   : > { %10010 = vmatmul.mubr.msk.f32.gmra.mrb[8].mxu0 %vm1739_vm2, %v12813_v23 }
 0x3ae   : > { %10048 = vmatprep.mubr.msk.f32.mxu0 %vm12186_vm1, %v12187_v22 }
 0x478   : > { %v1818_v34 = vpop.f32.mrb[4].mxu0 }
 0x479   : > { %v1832_v35 = vmul.f32 0.35355338, %v1818_v34  ;;  %v10005_v36 = vpop.f32.mrb[5].mxu0 }
 0x47b   : > { %v1836_v37 = vsel %vm1835_vm4, %v1832_v35, -inf }
 0x47c   : > { %1837 = vmax.xlane.f32.xlu1 %v1836_v37  ;;  %v1823_v38 = vpop.f32.mrb[6].mxu0 }
 0x47d   : > { %v1833_v39 = vmul.f32 0.35355338, %v1823_v38  ;;  %v10008_v40 = vpop.f32.mrb[7].mxu0 }
 0x47f   : > { %v1839_v41 = vsel %vm1835_vm4, %v1833_v39, -inf }
 0x480   : > { %1840 = vmax.xlane.f32.xlu1 %v1839_v41  ;;  %v1828_v42 = vpop.f32.mrb[8].mxu0 }
 0x481   : > { %v1834_v43 = vmul.f32 0.35355338, %v1828_v42  ;;  %v10011_v44 = vpop.f32.mrb[9].mxu0 }
 0x483   : > { %v1843_v45 = vsel %vm1842_vm5, %v1834_v43, -inf }
 0x484   : > { %1844 = vmax.xlane.f32.xlu0 %v1843_v45 }
 0x491   : > { %11085 = vrot.lane.b32.xlu1 %v12807_v21, %s14070_s1 }
 0x495   : > { %1973 = vrot.lane.b32.xlu1 %v12813_v23, %s14070_s1 }
 0x499   : > { %1963 = vrot.lane.b32.xlu1 %v12801_v19, %s14068_s16 }
 0x49a   : > { %11090 = vrot.lane.b32.xlu0 %v12807_v21, %s14074_s26 }
 0x49d   : > { %1965 = vrot.lane.b32.xlu1 %v12803_v20, %s14068_s16 }
 0x49e   : > { %2204 = vrot.lane.b32.xlu0 %v12801_v19, %s14060_s0 }
 0x4a2   : > { %2208 = vrot.lane.b32.xlu0 %v12813_v23, %s14060_s0 }
 0x4a6   : > { %2443 = vrot.lane.b32.xlu0 %v12801_v19, %s14058_s2 }
 0x4aa   : > { %2447 = vrot.lane.b32.xlu0 %v12813_v23, %s14058_s2 }
 0x509   : > { %v1838_v49 = vpop.xlane.xlu1 %1837 }
 0x50a   : > { %v1846_v52 = vsub.f32 %v1832_v35, %v1838_v49 }
 0x50c   : > { %v1849_v55 = vmul.f32 1.442695, %v1846_v52 }
 0x50d   : > { %v1841_v56 = vpop.xlane.xlu1 %1840 }
 0x50e   : > { %11303 = vpow2.f32 %v1849_v55  ;;  %v1847_v58 = vsub.f32 %v1833_v39, %v1841_v56 }
 0x510   : > { %v1851_v60 = vmul.f32 1.442695, %v1847_v58 }
 0x511   : > { %v1845_v61 = vpop.xlane.xlu0 %1844  ;;  %v11086_v7 = vpop.permute.xlu1 %11085 }
 0x512   : > { %11305 = vpow2.f32 %v1851_v60  ;;  %v1848_v62 = vsub.f32 %v1834_v43, %v1845_v61  ;;  %v11088_v15 = vunpack.i.h.bf16 %v11086_v7  ;;  %v11087_v16 = vunpack.i.l.bf16 %v11086_v7 }
 0x514   : > { %v1853_v63 = vmul.f32 1.442695, %v1848_v62  ;;  %v10693_v19 = vpack.c.bf16 %v11088_v15, %v11087_v16 }
 0x515   : > { %v1974_v8 = vpop.permute.xlu1 %1973 }
 0x516   : > { %11307 = vpow2.f32 %v1853_v63 }
 0x518   : > { %v11304_v0 = vpop.eup %11303 }
 0x519   : > { %v1855_v1 = vsel %vm1835_vm4, %v11304_v0, 0.0  ;;  %v1964_v9 = vpop.permute.xlu1 %1963 }
 0x51a   : > { %1856 = vadd.xlane.f32.xlu1 %v1855_v1 }
 0x51c   : > { %v11306_v2 = vpop.eup %11305 }
 0x51d   : > { %v1858_v3 = vsel %vm1835_vm4, %v11306_v2, 0.0  ;;  %v1966_v10 = vpop.permute.xlu1 %1965 }
 0x51e   : > { %1859 = vadd.xlane.f32.xlu1 %v1858_v3 }
 0x520   : > { %v11308_v4 = vpop.eup %11307 }
 0x521   : > { %v1861_v5 = vsel %vm1842_vm5, %v11308_v4, 0.0 }
 0x522   : > { %1862 = vadd.xlane.f32.xlu1 %v1861_v5 }
 0x533   : > { %1967 = vrot.lane.b32.xlu1 %v12813_v23, %s14068_s16 }
 0x537   : > { %2214 = vrot.lane.b32.xlu1 %v12813_v23, %s14074_s26 }
 0x53b   : > { %11095 = vrot.lane.b32.xlu1 %v12807_v21, %s14062_s22 }
 0x53f   : > { %2206 = vrot.lane.b32.xlu1 %v12803_v20, %s14060_s0 }
 0x543   : > { %2453 = vrot.lane.b32.xlu1 %v12813_v23, %s14062_s22  ;;  %v11091_v23 = vpop.permute.xlu0 %11090  ;;  %s14066_s22 = smov 16  }
 0x544   : > { %v11093_v28 = vunpack.i.h.bf16 %v11091_v23  ;;  %v11092_v29 = vunpack.i.l.bf16 %v11091_v23 }
 0x546   : > { %v10700_v31 = vpack.c.bf16 %v11093_v28, %v11092_v29 }
 0x547   : > { %2445 = vrot.lane.b32.xlu1 %v12803_v20, %s14058_s2  ;;  %v2205_v35 = vpop.permute.xlu0 %2204 }
 0x54b   : > { %v2209_v38 = vpop.permute.xlu0 %2208 }
 0x54f   : > { %v2444_v40 = vpop.permute.xlu0 %2443 }
 0x553   : > { %v2448_v42 = vpop.permute.xlu0 %2447 }
 0x5a7   : > { %v1857_v11 = vpop.xlane.xlu1 %1856 }
 0x5a8   : > { %11309 = vrcp.f32 %v1857_v11 }
 0x5ab   : > { %v1860_v12 = vpop.xlane.xlu1 %1859 }
 0x5ac   : > { %11311 = vrcp.f32 %v1860_v12 }
 0x5af   : > { %v1863_v14 = vpop.xlane.xlu1 %1862 }
 0x5b0   : > { %11313 = vrcp.f32 %v1863_v14 }
 0x5b2   : > { %v11310_v17 = vpop.eup %11309 }
 0x5b3   : > { %v1867_v18 = vmul.f32 %v11310_v17, %v11304_v0  ;;  %v1968_v24 = vpop.permute.xlu1 %1967 }
 0x5b5   : > { %10019 = vmatmul.mubr.msk.f32.vlgmr.msra.gmra.mrb[4].mxu1 %vm1835_vm4, %v1867_v18 }
 0x5b6   : > { %v11312_v21 = vpop.eup %11311  ;;  %10695 = vmatpush3.bf16.xpose.msk.msra.mxu1 %vm12819_vm3, %v10693_v19  ;;  %10021 = vmatprep.mubr.msk.f32.mxu1 %vm12186_vm1, %v12187_v22 }
 0x5b7   : > { %v1868_v20 = vmul.f32 %v11312_v21, %v11306_v2  ;;  %10031 = vmatprep.subr.mxu1 %v12187_v22  ;;  %v2215_v30 = vpop.permute.xlu1 %2214 }
 0x5b9   : > { %10022 = vmatmul.mubr.msk.f32.gmra.mrb[6].mxu1 %vm1835_vm4, %v1868_v20 }
 0x5ba   : > { %v11314_v25 = vpop.eup %11313  ;;  %10024 = vmatprep.mubr.msk.f32.mxu1 %vm12186_vm1, %v12187_v22 }
 0x5bb   : > { %v1869_v26 = vmul.f32 %v11314_v25, %v11308_v4  ;;  %v11096_v32 = vpop.permute.xlu1 %11095 }
 0x5bc   : > { %v11098_v33 = vunpack.i.h.bf16 %v11096_v32  ;;  %v11097_v34 = vunpack.i.l.bf16 %v11096_v32 }
 0x5bd   : > { %10025 = vmatmul.mubr.msk.f32.gmra.mrb[8].mxu1 %vm1835_vm4, %v1869_v26 }
 0x5be   : > { %10032 = vmatpush3.xpose.msk.msra.mxu1 %vm1739_vm2, %v1974_v8  ;;  %10033 = vmatprep.mubr.msk.f32.mxu1 %vm12186_vm1, %v12187_v22  ;;  %v10707_v36 = vpack.c.bf16 %v11098_v33, %v11097_v34 }
 0x5bf   : > { %10699 = vmatprep.subr.bf16.mxu1 %v12184_v13  ;;  %v2207_v37 = vpop.permute.xlu1 %2206 }
 0x5c1   : > { %10034 = vmatmul.mubr.msk.f32.vlgmr.msra.gmra.mrb[10].mxu1 %vm1739_vm2, %v1964_v9 }
 0x5c2   : > { %10702 = vmatpush3.bf16.xpose.msk.msra.mxu1 %vm12819_vm3, %v10700_v31  ;;  %10036 = vmatprep.mubr.msk.f32.mxu1 %vm12186_vm1, %v12187_v22 }
 0x5c3   : > { %10061 = vmatprep.subr.mxu1 %v12187_v22  ;;  %v2454_v39 = vpop.permute.xlu1 %2453 }
 0x5c5   : > { %10037 = vmatmul.mubr.msk.f32.gmra.mrb[12].mxu1 %vm1739_vm2, %v1966_v10 }
 0x5c6   : > { %10039 = vmatprep.mubr.msk.f32.mxu1 %vm12186_vm1, %v12187_v22 }
 0x5c7   : > { %v2446_v41 = vpop.permute.xlu1 %2445 }
 0x5c9   : > { %10040 = vmatmul.mubr.msk.f32.gmra.mrb[14].mxu1 %vm1739_vm2, %v1968_v24 }
 0x5ca   : > { %10062 = vmatpush3.xpose.msk.msra.mxu1 %vm1739_vm2, %v2215_v30  ;;  %10063 = vmatprep.mubr.msk.f32.mxu1 %vm12186_vm1, %v12187_v22 }
 0x5cb   : > { %10706 = vmatprep.subr.bf16.mxu1 %v12184_v13 }
 0x5cd   : > { %10064 = vmatmul.mubr.msk.f32.vlgmr.msra.gmra.mrb[16].mxu1 %vm1739_vm2, %v2205_v35 }
 0x5ce   : > { %10709 = vmatpush3.bf16.xpose.msk.msra.mxu1 %vm12819_vm3, %v10707_v36  ;;  %10066 = vmatprep.mubr.msk.f32.mxu1 %vm12186_vm1, %v12187_v22 }
 0x5cf   : > { %10091 = vmatprep.subr.mxu1 %v12187_v22 }
 0x5d1   : > { %10067 = vmatmul.mubr.msk.f32.gmra.mrb[18].mxu1 %vm1739_vm2, %v2207_v37 }
 0x5d2   : > { %10069 = vmatprep.mubr.msk.f32.mxu1 %vm12186_vm1, %v12187_v22 }
 0x5d5   : > { %10070 = vmatmul.mubr.msk.f32.gmra.mrb[20].mxu1 %vm1739_vm2, %v2209_v38 }
 0x5d6   : > { %10092 = vmatpush3.xpose.msk.msra.mxu1 %vm1739_vm2, %v2454_v39  ;;  %10093 = vmatprep.mubr.msk.f32.mxu1 %vm12186_vm1, %v12187_v22 }
 0x5d9   : > { %10094 = vmatmul.mubr.msk.f32.vlgmr.msra.gmra.mrb[22].mxu1 %vm1739_vm2, %v2444_v40 }
 0x5da   : > { %10096 = vmatprep.mubr.msk.f32.mxu1 %vm12186_vm1, %v12187_v22 }
 0x5dd   : > { %10097 = vmatmul.mubr.msk.f32.gmra.mrb[24].mxu1 %vm1739_vm2, %v2446_v41 }
 0x5de   : > { %10099 = vmatprep.mubr.msk.f32.mxu1 %vm12186_vm1, %v12187_v22 }
 0x5e1   : > { %10100 = vmatmul.mubr.msk.f32.gmra.mrb[26].mxu1 %vm1739_vm2, %v2448_v42 }
 0x688   : > { %v12940_v43 = vpop.f32.mrb[4].mxu1 }
 0x689   : > { %v10020_v44 = vpop.f32.mrb[5].mxu1 }
 0x68c   : > { %v12942_v45 = vpop.f32.mrb[6].mxu1 }
 0x68d   : > { %v10023_v46 = vpop.f32.mrb[7].mxu1 }
 0x690   : > { %v12944_v47 = vpop.f32.mrb[8].mxu1 }
 0x691   : > { %v10026_v48 = vpop.f32.mrb[9].mxu1 }
 0x694   : > { %v2053_v49 = vpop.f32.mrb[10].mxu1 }
 0x695   : > { %v2067_v50 = vmul.f32 0.35355338, %v2053_v49  ;;  %v10035_v51 = vpop.f32.mrb[11].mxu1 }
 0x697   : > { %v2070_v52 = vsel %vm1835_vm4, %v2067_v50, -inf }
 0x698   : > { %2071 = vmax.xlane.f32.xlu1 %v2070_v52  ;;  %v2058_v53 = vpop.f32.mrb[12].mxu1 }
 0x699   : > { %v2068_v54 = vmul.f32 0.35355338, %v2058_v53  ;;  %v10038_v55 = vpop.f32.mrb[13].mxu1 }
 0x69b   : > { %v2073_v56 = vsel %vm1835_vm4, %v2068_v54, -inf }
 0x69c   : > { %2074 = vmax.xlane.f32.xlu0 %v2073_v56  ;;  %v2063_v57 = vpop.f32.mrb[14].mxu1 }
 0x69d   : > { %v2069_v58 = vmul.f32 0.35355338, %v2063_v57  ;;  %v10041_v60 = vpop.f32.mrb[15].mxu1 }
 0x69f   : > { %v2076_v61 = vsel %vm1842_vm5, %v2069_v58, -inf }
 0x6a0   : > { %2077 = vmax.xlane.f32.xlu0 %v2076_v61  ;;  %v2294_v62 = vpop.f32.mrb[16].mxu1 }
 0x6a1   : > { %v2308_v63 = vmul.f32 0.35355338, %v2294_v62  ;;  %v10065_v0 = vpop.f32.mrb[17].mxu1 }
 0x6a3   : > { %v2311_v1 = vsel %vm1835_vm4, %v2308_v63, -inf }
 0x6a4   : > { %2312 = vmax.xlane.f32.xlu1 %v2311_v1  ;;  %v2299_v2 = vpop.f32.mrb[18].mxu1 }
 0x6a5   : > { %v2309_v3 = vmul.f32 0.35355338, %v2299_v2  ;;  %v10068_v4 = vpop.f32.mrb[19].mxu1 }
 0x6a7   : > { %v2314_v5 = vsel %vm1835_vm4, %v2309_v3, -inf }
 0x6a8   : > { %2315 = vmax.xlane.f32.xlu0 %v2314_v5  ;;  %v2304_v7 = vpop.f32.mrb[20].mxu1 }
 0x6a9   : > { %v2310_v8 = vmul.f32 0.35355338, %v2304_v7  ;;  %v10071_v9 = vpop.f32.mrb[21].mxu1 }
 0x6ab   : > { %v2317_v10 = vsel %vm1842_vm5, %v2310_v8, -inf }
 0x6ac   : > { %2318 = vmax.xlane.f32.xlu1 %v2317_v10  ;;  %v2533_v11 = vpop.f32.mrb[22].mxu1 }
 0x6ad   : > { %v2547_v12 = vmul.f32 0.35355338, %v2533_v11  ;;  %v10095_v14 = vpop.f32.mrb[23].mxu1 }
 0x6af   : > { %v2550_v15 = vsel %vm1835_vm4, %v2547_v12, -inf }
 0x6b0   : > { %2551 = vmax.xlane.f32.xlu0 %v2550_v15  ;;  %v2538_v16 = vpop.f32.mrb[24].mxu1 }
 0x6b1   : > { %v12953_v17 = vmul.f32 0.35355338, %v2538_v16  ;;  %v10098_v18 = vpop.f32.mrb[25].mxu1 }
 0x6b3   : > { %v2553_v19 = vsel %vm1835_vm4, %v12953_v17, -inf }
 0x6b4   : > { %2554 = vmax.xlane.f32.xlu1 %v2553_v19  ;;  %v2543_v21 = vpop.f32.mrb[26].mxu1 }
 0x6b5   : > { %v2549_v20 = vmul.f32 0.35355338, %v2543_v21  ;;  %v10101_v23 = vpop.f32.mrb[27].mxu1 }
 0x6b7   : > { %v2556_v24 = vsel %vm1842_vm5, %v2549_v20, -inf }
 0x6b8   : > { %2557 = vmax.xlane.f32.xlu0 %v2556_v24 }
 0x6c5   : > { %2109 = vrot.lane.b32.xlu1 %v12869_v59, %s14068_s16 }
 0x6c9   : > { %11105 = vrot.lane.b32.xlu1 %v12878_v6, %s14060_s0 }
 0x6ce   : > { %11100 = vrot.lane.b32.xlu0 %v12878_v6, %s14068_s16 }
 0x725   : > { %v2072_v25 = vpop.xlane.xlu1 %2071 }
 0x726   : > { %v2079_v26 = vsub.f32 %v2067_v50, %v2072_v25 }
 0x728   : > { %v2082_v28 = vmul.f32 1.442695, %v2079_v26 }
 0x729   : > { %v2075_v29 = vpop.xlane.xlu0 %2074 }
 0x72a   : > { %11315 = vpow2.f32 %v2082_v28  ;;  %v2080_v30 = vsub.f32 %v2068_v54, %v2075_v29 }
 0x72c   : > { %v2084_v31 = vmul.f32 1.442695, %v2080_v30 }
 0x72d   : > { %v2078_v32 = vpop.xlane.xlu0 %2077 }
 0x72e   : > { %11317 = vpow2.f32 %v2084_v31  ;;  %v2081_v33 = vsub.f32 %v2069_v58, %v2078_v32 }
 0x730   : > { %v2086_v34 = vmul.f32 1.442695, %v2081_v33 }
 0x731   : > { %v2313_v35 = vpop.xlane.xlu1 %2312 }
 0x732   : > { %11319 = vpow2.f32 %v2086_v34  ;;  %v2320_v36 = vsub.f32 %v2308_v63, %v2313_v35 }
 0x734   : > { %v12964_v37 = vpop.eup %11315  ;;  %v2323_v38 = vmul.f32 1.442695, %v2320_v36 }
 0x735   : > { %v2316_v39 = vpop.xlane.xlu0 %2315  ;;  %v2088_v40 = vsel %vm1835_vm4, %v12964_v37, 0.0 }
 0x736   : > { %11321 = vpow2.f32 %v2323_v38  ;;  %v2321_v41 = vsub.f32 %v2309_v3, %v2316_v39  ;;  %2089 = vadd.xlane.f32.xlu1 %v2088_v40 }
 0x738   : > { %v12968_v42 = vpop.eup %11317  ;;  %v2325_v44 = vmul.f32 1.442695, %v2321_v41 }
 0x739   : > { %v2319_v46 = vpop.xlane.xlu1 %2318  ;;  %v2091_v48 = vsel %vm1835_vm4, %v12968_v42, 0.0 }
 0x73a   : > { %11323 = vpow2.f32 %v2325_v44  ;;  %v2322_v49 = vsub.f32 %v2310_v8, %v2319_v46  ;;  %2092 = vadd.xlane.f32.xlu0 %v2091_v48 }
 0x73c   : > { %v12972_v50 = vpop.eup %11319  ;;  %v2327_v51 = vmul.f32 1.442695, %v2322_v49 }
 0x73d   : > { %v2552_v52 = vpop.xlane.xlu0 %2551  ;;  %v2094_v53 = vsel %vm1842_vm5, %v12972_v50, 0.0 }
 0x73e   : > { %11325 = vpow2.f32 %v2327_v51  ;;  %v2559_v54 = vsub.f32 %v2547_v12, %v2552_v52  ;;  %2095 = vadd.xlane.f32.xlu1 %v2094_v53 }
 0x740   : > { %v12976_v55 = vpop.eup %11321  ;;  %v2562_v56 = vmul.f32 1.442695, %v2559_v54 }
 0x741   : > { %v2329_v57 = vsel %vm1835_vm4, %v12976_v55, 0.0  ;;  %v2555_v7 = vpop.xlane.xlu1 %2554 }
 0x742   : > { %11327 = vpow2.f32 %v2562_v56  ;;  %2330 = vadd.xlane.f32.xlu0 %v2329_v57  ;;  %v2560_v14 = vsub.f32 %v12953_v17, %v2555_v7 }
 0x744   : > { %v12980_v58 = vpop.eup %11323  ;;  %v2564_v15 = vmul.f32 1.442695, %v2560_v14 }
 0x745   : > { %v2558_v60 = vpop.xlane.xlu0 %2557  ;;  %v2332_v61 = vsel %vm1835_vm4, %v12980_v58, 0.0  ;;  %v2110_v10 = vpop.permute.xlu1 %2109 }
 0x746   : > { %v2561_v62 = vsub.f32 %v2549_v20, %v2558_v60  ;;  %2333 = vadd.xlane.f32.xlu1 %v2332_v61 }
 0x748   : > { %v12984_v63 = vpop.eup %11325  ;;  %v2566_v0 = vmul.f32 1.442695, %v2561_v62 }
 0x749   : > { %v11101_v1 = vpop.permute.xlu0 %11100  ;;  %v2335_v2 = vsel %vm1842_vm5, %v12984_v63, 0.0  ;;  %v11106_v19 = vpop.permute.xlu1 %11105 }
 0x74a   : > { %11329 = vpow2.f32 %v2566_v0  ;;  %v11103_v3 = vunpack.i.h.bf16 %v11101_v1  ;;  %2336 = vadd.xlane.f32.xlu1 %v2335_v2  ;;  %v11102_v4 = vunpack.i.l.bf16 %v11101_v1  ;;  %v11108_v23 = vunpack.i.h.bf16 %v11106_v19 }
 0x74b   : > { %11331 = vpow2.f32 %v2564_v15  ;;  %v11107_v24 = vunpack.i.l.bf16 %v11106_v19 }
 0x74c   : > { %v12988_v5 = vpop.eup %11327  ;;  %v10697_v8 = vpack.c.bf16 %v11103_v3, %v11102_v4 }
 0x74d   : > { %v2568_v9 = vsel %vm1835_vm4, %v12988_v5, 0.0  ;;  %v10704_v28 = vpack.c.bf16 %v11108_v23, %v11107_v24 }
 0x74e   : > { %2569 = vadd.xlane.f32.xlu1 %v2568_v9  ;;  %10698 = vmatpush3.bf16.msra.mxu0 %v10697_v8 }
 0x74f   : > { %10046 = vmatprep.subr.mxu0 %v12187_v22 }
 0x752   : > { %10047 = vmatpush3.msk.msra.mxu0 %vm1879_vm6, %v2110_v10 }
 0x753   : > { %10703 = vmatprep.subr.bf16.mxu0 %v12184_v13 }
 0x754   : > { %v12994_v11 = vpop.eup %11329 }
 0x755   : > { %v2574_v12 = vsel %vm1842_vm5, %v12994_v11, 0.0  ;;  %v13004_v16 = vpop.eup %11331 }
 0x756   : > { %2575 = vadd.xlane.f32.xlu1 %v2574_v12  ;;  %v2571_v18 = vsel %vm1835_vm4, %v13004_v16, 0.0 }
 0x758   : > { %2348 = vrot.lane.b32.xlu0 %v12869_v59, %s14060_s0  ;;  %s14064_s0 = smov 8  }
 0x767   : > { %11110 = vrot.lane.b32.xlu1 %v12878_v6, %s14058_s2 }
 0x777   : > { %2572 = vadd.xlane.f32.xlu0 %v2571_v18 }
 0x78d   : > { %2587 = vrot.lane.b32.xlu0 %v12869_v59, %s14058_s2  ;;  %s14196_s2 = sld [smem:[#allocation50_spill]] }
 0x793   : > { %v11243_v1 = vld [vmem:[%s14196_s2] sm:$0xff]  }
 0x794   : > { %10117 = vmatprep.subr.bf16.mxu1 %v11243_v1 }
 0x795   : > { %10118 = vmatpush3.bf16.msra.mxu1 %v11243_v1 }
 0x7c3   : > { %v2090_v21 = vpop.xlane.xlu1 %2089 }
 0x7c4   : > { %11333 = vrcp.f32 %v2090_v21 }
 0x7c7   : > { %v2093_v20 = vpop.xlane.xlu0 %2092 }
 0x7c8   : > { %11335 = vrcp.f32 %v2093_v20 }
 0x7cb   : > { %v2096_v17 = vpop.xlane.xlu1 %2095 }
 0x7cc   : > { %11337 = vrcp.f32 %v2096_v17 }
 0x7ce   : > { %v11334_v6 = vpop.eup %11333 }
 0x7cf   : > { %v2100_v25 = vmul.f32 %v11334_v6, %v12964_v37  ;;  %v2331_v26 = vpop.xlane.xlu0 %2330 }
 0x7d0   : > { %11339 = vrcp.f32 %v2331_v26 }
 0x7d1   : > { %10049 = vmatmul.mubr.msk.f32.vlgmr.msra.gmra.mrb[10].mxu0 %vm1835_vm4, %v2100_v25 }
 0x7d2   : > { %v11336_v29 = vpop.eup %11335  ;;  %10705 = vmatpush3.bf16.msra.mxu0 %v10704_v28  ;;  %10051 = vmatprep.mubr.msk.f32.mxu0 %vm12186_vm1, %v12187_v22 }
 0x7d3   : > { %v2334_v59 = vpop.xlane.xlu1 %2333  ;;  %v2349_v30 = vpop.permute.xlu0 %2348  ;;  %10076 = vmatprep.subr.mxu0 %v12187_v22  ;;  %v2101_v31 = vmul.f32 %v11336_v29, %v12968_v42 }
 0x7d4   : > { %11341 = vrcp.f32 %v2334_v59 }
 0x7d5   : > { %10052 = vmatmul.mubr.msk.f32.gmra.mrb[12].mxu0 %vm1835_vm4, %v2101_v31 }
 0x7d6   : > { %v11338_v32 = vpop.eup %11337  ;;  %10077 = vmatpush3.msk.msra.mxu0 %vm1879_vm6, %v2349_v30  ;;  %10054 = vmatprep.mubr.msk.f32.mxu0 %vm12186_vm1, %v12187_v22 }
 0x7d7   : > { %v2337_v33 = vpop.xlane.xlu1 %2336  ;;  %v2102_v34 = vmul.f32 %v11338_v32, %v12972_v50  ;;  %10710 = vmatprep.subr.bf16.mxu0 %v12184_v13 }
 0x7d8   : > { %11343 = vrcp.f32 %v2337_v33 }
 0x7d9   : > { %10055 = vmatmul.mubr.msk.f32.gmra.mrb[14].mxu0 %vm1835_vm4, %v2102_v34 }
 0x7da   : > { %v11340_v35 = vpop.eup %11339  ;;  %10078 = vmatprep.mubr.msk.f32.mxu0 %vm12186_vm1, %v12187_v22 }
 0x7db   : > { %v2341_v36 = vmul.f32 %v11340_v35, %v12976_v55  ;;  %v2570_v38 = vpop.xlane.xlu1 %2569 }
 0x7dc   : > { %11345 = vrcp.f32 %v2570_v38 }
 0x7dd   : > { %10079 = vmatmul.mubr.msk.f32.vlgmr.msra.gmra.mrb[16].mxu0 %vm1835_vm4, %v2341_v36 }
 0x7de   : > { %v11342_v37 = vpop.eup %11341  ;;  %10081 = vmatprep.mubr.msk.f32.mxu0 %vm12186_vm1, %v12187_v22 }
 0x7df   : > { %v2342_v39 = vmul.f32 %v11342_v37, %v12980_v58 }
 0x7e1   : > { %10082 = vmatmul.mubr.msk.f32.gmra.mrb[18].mxu0 %vm1835_vm4, %v2342_v39 }
 0x7e2   : > { %v11344_v40 = vpop.eup %11343  ;;  %10084 = vmatprep.mubr.msk.f32.mxu0 %vm12186_vm1, %v12187_v22 }
 0x7e3   : > { %v2576_v41 = vpop.xlane.xlu1 %2575  ;;  %v2343_v42 = vmul.f32 %v11344_v40, %v12984_v63 }
 0x7e5   : > { %10085 = vmatmul.mubr.msk.f32.gmra.mrb[20].mxu0 %vm1835_vm4, %v2343_v42 }
 0x7e6   : > { %10108 = vmatprep.mubr.msk.f32.mxu0 %vm12186_vm1, %v12187_v22  ;;  %v11346_v51 = vpop.eup %11345 }
 0x7e7   : > { %v11111_v44 = vpop.permute.xlu1 %11110  ;;  %v2580_v52 = vmul.f32 %v11346_v51, %v12988_v5  ;;  %v11501_v51 = vld [vmem:[%s12787_s27] sm:$0xff] }
 0x7e8   : > { %v11113_v46 = vunpack.i.h.bf16 %v11111_v44  ;;  %v11112_v48 = vunpack.i.l.bf16 %v11111_v44 }
 0x7ea   : > { %v10711_v49 = vpack.c.bf16 %v11113_v46, %v11112_v48 }
 0x7ec   : > { %10712 = vmatpush3.bf16.msra.mxu0 %v10711_v49 }
 0x7ed   : > { %10106 = vmatprep.subr.mxu0 %v12187_v22 }
 0x804   : > { %v2573_v50 = vpop.xlane.xlu0 %2572 }
 0x805   : > { %11347 = vrcp.f32 %v2573_v50 }
 0x806   : > { %11349 = vrcp.f32 %v2576_v41 }
 0x808   : > { %v2588_v53 = vpop.permute.xlu0 %2587 }
 0x809   : > { %10107 = vmatpush3.msk.msra.mxu0 %vm1879_vm6, %v2588_v53 }
 0x80a   : > { %10109 = vmatmul.mubr.msk.f32.vlgmr.msra.gmra.mrb[22].mxu0 %vm1835_vm4, %v2580_v52 }
 0x80b   : > { %10111 = vmatprep.mubr.msk.f32.mxu0 %vm12186_vm1, %v12187_v22 }
 0x80f   : > { %v11348_v54 = vpop.eup %11347 }
 0x810   : > { %v2581_v55 = vmul.f32 %v11348_v54, %v13004_v16  ;;  %v11350_v56 = vpop.eup %11349  ;;  %v11502_v54 = vld [vmem:[%s12787_s27 + $0x8] sm:$0xff] }
 0x811   : > { %v2582_v57 = vmul.f32 %v11350_v56, %v12994_v11  ;;  %v11244_v11 = vld [vmem:[%s14196_s2 + $0x8] sm:$0xff]  }
 0x812   : > { %10112 = vmatmul.mubr.msk.f32.gmra.mrb[24].mxu0 %vm1835_vm4, %v2581_v55  ;;  %10119 = vmatprep.subr.bf16.mxu1 %v11244_v11 }
 0x813   : > { %10114 = vmatprep.mubr.msk.f32.mxu0 %vm12186_vm1, %v12187_v22  ;;  %10120 = vmatpush3.bf16.msra.mxu1 %v11244_v11 }
 0x816   : > { %10115 = vmatmul.mubr.msk.f32.gmra.mrb[26].mxu0 %vm1835_vm4, %v2582_v57  ;;  %v11503_v57 = vld [vmem:[%s12787_s27 + $0x10] sm:$0x3]  ;;  %s14203_s27 = sld [smem:[#allocation52_spill]] }
 0x8a4   : > { %v2190_v58 = vpop.f32.mrb[10].mxu0 }
 0x8a5   : > { %v10050_v60 = vpop.f32.mrb[11].mxu0 }
 0x8a8   : > { %v2195_v61 = vpop.f32.mrb[12].mxu0 }
 0x8a9   : > { %v11114_v62 = vpack.i.bf16 %v2195_v61, %v2190_v58  ;;  %v10053_v63 = vpop.f32.mrb[13].mxu0 }
 0x8ab   : > { %11115 = vrot.lane.b32.xlu0 %v11114_v62, %s14064_s0 }
 0x8ac   : > { %v2200_v0 = vpop.f32.mrb[14].mxu0 }
 0x8ad   : > { %v10056_v2 = vpop.f32.mrb[15].mxu0 }
 0x8af   : > { %2689 = vrot.lane.b32.xlu0 %v2200_v0, %s14064_s0  ;;  %s14072_s0 = smov 24  }
 0x8b0   : > { %v2429_v3 = vpop.f32.mrb[16].mxu0 }
 0x8b1   : > { %v10080_v4 = vpop.f32.mrb[17].mxu0 }
 0x8b4   : > { %v2434_v5 = vpop.f32.mrb[18].mxu0 }
 0x8b5   : > { %v11119_v7 = vpack.i.bf16 %v2434_v5, %v2429_v3  ;;  %v10083_v8 = vpop.f32.mrb[19].mxu0 }
 0x8b7   : > { %11120 = vrot.lane.b32.xlu1 %v11119_v7, %s14066_s22 }
 0x8b8   : > { %v2439_v9 = vpop.f32.mrb[20].mxu0 }
 0x8b9   : > { %2701 = vrot.lane.b32.xlu0 %v2439_v9, %s14066_s22  ;;  %v10086_v10 = vpop.f32.mrb[21].mxu0  ;;  %s14197_s22 = sld [smem:[#allocation51_spill]] }
 0x8bf   : > { %s14198_s16 = smov %s14197_s22 }
 0x8dd   : > { %v2668_v12 = vpop.f32.mrb[22].mxu0 }
 0x8de   : > { %v10110_v14 = vpop.f32.mrb[23].mxu0 }
 0x8e5   : > { %v2673_v15 = vpop.f32.mrb[24].mxu0 }
 0x8e6   : > { %v11124_v16 = vpack.i.bf16 %v2673_v15, %v2668_v12  ;;  %v10113_v18 = vpop.f32.mrb[25].mxu0 }
 0x8e8   : > { %11125 = vrot.lane.b32.xlu1 %v11124_v16, %s14072_s0 }
 0x8e9   : > { %v2678_v19 = vpop.f32.mrb[26].mxu0 }
 0x8ea   : > { %2713 = vrot.lane.b32.xlu0 %v2678_v19, %s14072_s0  ;;  %v10116_v21 = vpop.f32.mrb[27].mxu0  ;;  %s14201_s0 = sld [smem:[#allocation56_spill]] }
 0x8f0   : > { %s14202_s26 = smov %s14201_s0  ;;  %v11247_v16 = vld [vmem:[%s14201_s0] sm:$0xff]   ;;  %s14205_s0 = sld [smem:[#allocation55_spill]] }
 0x8f1   : > { %v11248_v18 = vld [vmem:[%s14202_s26 + $0x8] sm:$0xff]   ;;  %10133 = vmatprep.subr.bf16.mxu1 %v11247_v16 }
 0x8f6   : > { %s14206_s7 = smov %s14205_s0 }
 0x91d   : > { %v11116_v20 = vpop.permute.xlu0 %11115 }
 0x91e   : > { %v11118_v24 = vunpack.i.h.bf16 %v11116_v20  ;;  %v11117_v6 = vunpack.i.l.bf16 %v11116_v20 }
 0x920   : > { %v2719_v29 = vsel %vm1739_vm2, %v12942_v45, %v11118_v24  ;;  %v2718_v30 = vsel %vm1739_vm2, %v12940_v43, %v11117_v6 }
 0x921   : > { %v2690_v17 = vpop.permute.xlu0 %2689 }
 0x922   : > { %v2720_v31 = vsel %vm1739_vm2, %v12944_v47, %v2690_v17  ;;  %v9361_v47 = vld [vmem:[%s14197_s22] ss:$0 sm:$0xff]  ;;  %s14199_s22 = sld [smem:[#allocation54_spill]] }
 0x928   : > { %s14200_s1 = smov %s14199_s22  ;;  %v11245_v14 = vld [vmem:[%s14199_s22] sm:$0xff]   ;;  %s14207_s22 = sld [smem:[#allocation57_spill]] }
 0x929   : > { %v11121_v23 = vpop.permute.xlu1 %11120  ;;  %v11246_v15 = vld [vmem:[%s14200_s1 + $0x8] sm:$0xff]   ;;  %10125 = vmatprep.subr.bf16.mxu0 %v11245_v14 }
 0x92a   : > { %v11123_v25 = vunpack.i.h.bf16 %v11121_v23  ;;  %v11122_v26 = vunpack.i.l.bf16 %v11121_v23  ;;  %10126 = vmatpush3.bf16.msra.mxu0 %v11245_v14 }
 0x92b   : > { %v2702_v28 = vpop.permute.xlu0 %2701  ;;  %10127 = vmatprep.subr.bf16.mxu0 %v11246_v15 }
 0x92c   : > { %v2723_v34 = vsel %vm2721_vm7, %v2719_v29, %v11123_v25  ;;  %v2722_v35 = vsel %vm2721_vm7, %v2718_v30, %v11122_v26  ;;  %v2724_v36 = vsel %vm2721_vm7, %v2720_v31, %v2702_v28  ;;  %v9366_v29 = vld [vmem:[%s14203_s27] ss:$0 sm:$0xff] }
 0x92e   : > { %10128 = vmatpush3.bf16.msra.mxu0 %v11246_v15  ;;  %s14208_s8 = smov %s14207_s22 }
 0x95a   : > { %v11126_v59 = vpop.permute.xlu1 %11125 }
 0x95b   : > { %v11128_v32 = vunpack.i.h.bf16 %v11126_v59  ;;  %v11127_v33 = vunpack.i.l.bf16 %v11126_v59 }
 0x95c   : > { %v2714_v37 = vpop.permute.xlu0 %2713 }
 0x95d   : > { %v2727_v45 = vsel %vm2725_vm8, %v2723_v34, %v11128_v32  ;;  %v2726_v38 = vsel %vm2725_vm8, %v2722_v35, %v11127_v33  ;;  %v2728_v39 = vsel %vm2725_vm8, %v2724_v36, %v2714_v37  ;;  %v9367_v33 = vld [vmem:[%s14204_s6] ss:$0 sm:$0xff] }
 0x95e   : > { %v2730_v43 = vpack.c.bf16 %v2728_v39, %v2728_v39  ;;  %v2729_v40 = vpack.c.bf16 %v2727_v45, %v2726_v38 }
 0x960   : > { %10121 = vmatprep.mubr.msk.bf16.mxu1 %vm1596_vm0, %v2729_v40 }
 0x961   : > { %10122 = vmatmul.mubr.msk.bf16.vlgmr.msra.gmra.mrb[28].mxu1 %vm1596_vm0, %v2730_v43 }
 0x962   : > { %10134 = vmatpush3.bf16.msra.mxu1 %v11247_v16 }
 0x963   : > { %10135 = vmatprep.subr.bf16.mxu1 %v11248_v18 }
 0x966   : > { %10136 = vmatpush3.bf16.msra.mxu1 %v11248_v18 }
 0xa34   : > { %v10123_v41 = vpop.f32.mrb[28].mxu1 }
 0xa35   : > { %v2789_v42 = vpop.f32.mrb[29].mxu1  ;;  %v2798_v49 = vadd.f32 %v10123_v41, %v9361_v47  ;;  %v11250_v41 = vld [vmem:[%s14202_s26 + $0x18] sm:$0xff]  }
 0xa36   : > { %v2790_v44 = vadd.f32 %v9361_v47, %v2789_v42  ;;  %v10124_v46 = vpop.f32.mrb[30].mxu1  ;;  %v9368_v42 = vld [vmem:[%s14205_s0] ss:$0 sm:$0xff]  ;;  %s14209_s0 = sld [smem:[#allocation58_spill]] }
 0xa37   : > { %v2792_v48 = vpop.f32.mrb[31].mxu1  ;;  %v2805_v58 = vadd.f32 %v11503_v57, %v2798_v49 }
 0xa38   : > { %v2793_v50 = vadd.f32 %v9361_v47, %v2792_v48  ;;  %v2803_v52 = vadd.f32 %v11501_v51, %v2790_v44  ;;  %v11249_v47 = vld [vmem:[%s14202_s26 + $0x10] sm:$0xff]  }
 0xa39   : > { %v2815_v60 = vsel %vm2814_vm9, %v2805_v58, 0.0  ;;  %10137 = vmatprep.subr.bf16.mxu1 %v11249_v47 }
 0xa3a   : > { %v2808_v53 = vsel %vm1596_vm0, %v2803_v52, 0.0  ;;  %v2804_v55 = vadd.f32 %v11502_v54, %v2793_v50  ;;  %10138 = vmatpush3.bf16.msra.mxu1 %v11249_v47 }
 0xa3b   : > { %2809 = vadd.xlane.f32.xlu1 %v2808_v53  ;;  %10139 = vmatprep.subr.bf16.mxu1 %v11250_v41 }
 0xa3c   : > { %v2811_v56 = vsel %vm1596_vm0, %v2804_v55, 0.0  ;;  %s14210_s9 = smov %s14209_s0 }
 0xa3d   : > { %2812 = vadd.xlane.f32.xlu0 %v2811_v56 }
 0xa3e   : > { %10140 = vmatpush3.bf16.msra.mxu1 %v11250_v41 }
 0xa3f   : > { %10713 = vmatprep.subr.bf16.mxu1 %v12184_v13 }
 0xa41   : > { %2816 = vadd.xlane.f32.xlu0 %v2815_v60 }
 0xac8   : > { %v2810_v61 = vpop.xlane.xlu1 %2809 }
 0xac9   : > { %v2819_v62 = vmul.f32 0.03125, %v2810_v61 }
 0xaca   : > { %v2813_v63 = vpop.xlane.xlu0 %2812 }
 0xacb   : > { %v2822_v0 = vsub.f32 %v2803_v52, %v2819_v62  ;;  %v2820_v1 = vmul.f32 0.03125, %v2813_v63 }
 0xacd   : > { %v2823_v2 = vsub.f32 %v2804_v55, %v2820_v1  ;;  %v2825_v3 = vmul.f32 %v2822_v0, %v2822_v0 }
 0xace   : > { %v2817_v4 = vpop.xlane.xlu0 %2816 }
 0xacf   : > { %v2821_v5 = vmul.f32 0.03125, %v2817_v4  ;;  %v2828_v7 = vsel %vm1596_vm0, %v2825_v3, 0.0  ;;  %v2826_v8 = vmul.f32 %v2823_v2, %v2823_v2 }
 0xad0   : > { %2829 = vadd.xlane.f32.xlu1 %v2828_v7 }
 0xad1   : > { %v2824_v9 = vsub.f32 %v2805_v58, %v2821_v5  ;;  %v2831_v10 = vsel %vm1596_vm0, %v2826_v8, 0.0  ;;  %v9373_v58 = vld [vmem:[%s14207_s22] ss:$0 sm:$0xff]  ;;  %s14211_s22 = sld [smem:[#allocation59_spill]] }
 0xad2   : > { %2832 = vadd.xlane.f32.xlu0 %v2831_v10 }
 0xad3   : > { %v2827_v11 = vmul.f32 %v2824_v9, %v2824_v9 }
 0xad5   : > { %v2834_v12 = vsel %vm2814_vm9, %v2827_v11, 0.0 }
 0xad6   : > { %2835 = vadd.xlane.f32.xlu1 %v2834_v12 }
 0xad7   : > { %s14212_s12 = smov %s14211_s22 }
 0xb5d   : > { %v2830_v19 = vpop.xlane.xlu1 %2829 }
 0xb5e   : > { %v2837_v21 = vmul.f32 0.03125, %v2830_v19 }
 0xb5f   : > { %v2833_v20 = vpop.xlane.xlu0 %2832 }
 0xb60   : > { %v2840_v17 = vadd.f32 1e-05, %v2837_v21  ;;  %v2838_v23 = vmul.f32 0.03125, %v2833_v20 }
 0xb62   : > { %11351 = vrsqrt.f32 %v2840_v17  ;;  %v2841_v24 = vadd.f32 1e-05, %v2838_v23 }
 0xb63   : > { %v2836_v6 = vpop.xlane.xlu1 %2835 }
 0xb64   : > { %11353 = vrsqrt.f32 %v2841_v24  ;;  %v2839_v25 = vmul.f32 0.03125, %v2836_v6 }
 0xb66   : > { %v2842_v26 = vadd.f32 1e-05, %v2839_v25 }
 0xb68   : > { %11355 = vrsqrt.f32 %v2842_v26  ;;  %v11251_v26 = vld [vmem:[%s14187_s18 + $0x10] sm:$0xff]  }
 0xb69   : > { %10145 = vmatprep.subr.bf16.mxu0 %v11251_v26 }
 0xb6c   : > { %v11352_v28 = vpop.eup %11351 }
 0xb6d   : > { %v2846_v59 = vmul.f32 %v11352_v28, %v2822_v0  ;;  %v11252_v28 = vld [vmem:[%s14187_s18 + $0x18] sm:$0xff]   ;;  %s14220_s18 = smov 8  }
 0xb6e   : > { %v11354_v30 = vpop.eup %11353 }
 0xb6f   : > { %v2847_v31 = vmul.f32 %v11354_v30, %v2823_v2  ;;  %v2855_v32 = vmul.f32 %v9366_v29, %v2846_v59 }
 0xb71   : > { %v2856_v34 = vmul.f32 %v9366_v29, %v2847_v31  ;;  %v2864_v37 = vadd.f32 %v9367_v33, %v2855_v32 }
 0xb72   : > { %v11356_v35 = vpop.eup %11355 }
 0xb73   : > { %v2848_v36 = vmul.f32 %v11356_v35, %v2824_v9  ;;  %v2865_v45 = vadd.f32 %v9367_v33, %v2856_v34 }
 0xb75   : > { %v2857_v38 = vmul.f32 %v9366_v29, %v2848_v36  ;;  %v2881_v39 = vpack.c.bf16 %v2865_v45, %v2864_v37  ;;  %v11253_v29 = vld [vmem:[%s14191_s11 + $0x10] sm:$0xff]  }
 0xb77   : > { %v2866_v43 = vadd.f32 %v9367_v33, %v2857_v38  ;;  %10129 = vmatprep.mubr.msk.bf16.mxu0 %vm1596_vm0, %v2881_v39  ;;  %v9380_v38 = vld [vmem:[%s14209_s0] ss:$0 sm:$0xff]  ;;  %s14213_s0 = smov 96  }
 0xb79   : > { %v2882_v40 = vpack.c.bf16 %v2866_v43, %v2866_v43 }
 0xb7b   : > { %10130 = vmatmul.mubr.msk.bf16.vlgmr.msra.gmra.mrb[28].mxu0 %vm1596_vm0, %v2882_v40  ;;  %v9381_v40 = vld [vmem:[%s14211_s22] ss:$0 sm:$0xff]  ;;  %s14214_s22 = smov 88  }
 0xb7c   : > { %10146 = vmatpush3.bf16.msra.mxu0 %v11251_v26 }
 0xb7d   : > { %10147 = vmatprep.subr.bf16.mxu0 %v11252_v28 }
 0xb80   : > { %10148 = vmatpush3.bf16.msra.mxu0 %v11252_v28 }
 0xb81   : > { %10153 = vmatprep.subr.bf16.mxu0 %v11253_v29 }
 0xc4e   : > { %v10131_v44 = vpop.f32.mrb[28].mxu0 }
 0xc4f   : > { %v2950_v46 = vadd.f32 %v10131_v44, %v9368_v42  ;;  %v2941_v48 = vpop.f32.mrb[29].mxu0 }
 0xc50   : > { %v2942_v49 = vadd.f32 %v9368_v42, %v2941_v48  ;;  %v10132_v50 = vpop.f32.mrb[30].mxu0 }
 0xc51   : > { %v2944_v51 = vpop.f32.mrb[31].mxu0  ;;  %v2957_v53 = vmax.f32 %v2950_v46, 0.0 }
 0xc52   : > { %v2945_v52 = vadd.f32 %v9368_v42, %v2944_v51  ;;  %v2955_v54 = vmax.f32 %v2942_v49, 0.0  ;;  %v11504_v51 = vld [vmem:[%s14188_s10] sm:$0xff] }
 0xc53   : > { %v2959_v57 = vpack.c.bf16 %v2957_v53, %v2957_v53  ;;  %v11505_v53 = vld [vmem:[%s14188_s10 + $0x8] sm:$0xff] }
 0xc54   : > { %v2956_v55 = vmax.f32 %v2945_v52, 0.0 }
 0xc56   : > { %v2958_v56 = vpack.c.bf16 %v2956_v55, %v2955_v54 }
 0xc58   : > { %10141 = vmatprep.mubr.msk.bf16.mxu1 %vm2990_vm10, %v2958_v56 }
 0xc59   : > { %10142 = vmatmul.mubr.msk.bf16.vlgmr.msra.gmra.mrb[32].mxu1 %vm2990_vm10, %v2959_v57  ;;  %v11506_v57 = vld [vmem:[%s14188_s10 + $0x10] sm:$0x3] }
 0xc5a   : > { %10167 = vmatprep.mubr.msk.f32.mxu1 %vm12186_vm1, %v12187_v22 }
 0xd2c   : > { %v10143_v60 = vpop.f32.mrb[32].mxu1 }
 0xd2d   : > { %v3031_v61 = vpop.f32.mrb[33].mxu1  ;;  %v3040_v62 = vadd.f32 %v10143_v60, %v9373_v58 }
 0xd2e   : > { %v3032_v63 = vadd.f32 %v9373_v58, %v3031_v61  ;;  %v10144_v0 = vpop.f32.mrb[34].mxu1  ;;  %v11254_v61 = vld [vmem:[%s14191_s11 + $0x18] sm:$0xff]   ;;  %s14217_s11 = smov 72  }
 0xd2f   : > { %v3034_v1 = vpop.f32.mrb[35].mxu1  ;;  %v3047_v7 = vadd.f32 %v3040_v62, %v2866_v43  ;;  %v9392_v0 = vld [vmem:[%s14189_s4 + $0x1] ss:$0 sm:$0xff]  ;;  %s14216_s4 = smov 120  }
 0xd30   : > { %v3035_v2 = vadd.f32 %v9373_v58, %v3034_v1  ;;  %v3045_v3 = vadd.f32 %v3032_v63, %v2864_v37 }
 0xd31   : > { %v3056_v9 = vsel %vm2814_vm9, %v3047_v7, 0.0 }
 0xd32   : > { %v3050_v4 = vsel %vm1596_vm0, %v3045_v3, 0.0  ;;  %v3046_v5 = vadd.f32 %v3035_v2, %v2865_v45 }
 0xd33   : > { %3051 = vadd.xlane.f32.xlu0 %v3050_v4 }
 0xd34   : > { %v3053_v8 = vsel %vm1596_vm0, %v3046_v5, 0.0 }
 0xd35   : > { %3054 = vadd.xlane.f32.xlu1 %v3053_v8 }
 0xd37   : > { %3057 = vadd.xlane.f32.xlu0 %v3056_v9 }
 0xdc0   : > { %v3052_v10 = vpop.xlane.xlu0 %3051 }
 0xdc1   : > { %v3059_v11 = vmul.f32 0.03125, %v3052_v10 }
 0xdc2   : > { %v3055_v12 = vpop.xlane.xlu1 %3054 }
 0xdc3   : > { %v3062_v14 = vsub.f32 %v3045_v3, %v3059_v11  ;;  %v3060_v15 = vmul.f32 0.03125, %v3055_v12  ;;  %v9397_v11 = vld [vmem:[%s14195_s3 + $0x1] ss:$0 sm:$0xff]  ;;  %s14215_s3 = smov 80  }
 0xdc4   : > { %v3058_v16 = vpop.xlane.xlu0 %3057 }
 0xdc5   : > { %v3063_v18 = vsub.f32 %v3046_v5, %v3060_v15  ;;  %v3061_v19 = vmul.f32 0.03125, %v3058_v16  ;;  %v3065_v21 = vmul.f32 %v3062_v14, %v3062_v14 }
 0xdc7   : > { %v3064_v20 = vsub.f32 %v3047_v7, %v3061_v19  ;;  %v3068_v17 = vsel %vm1596_vm0, %v3065_v21, 0.0  ;;  %v3066_v23 = vmul.f32 %v3063_v18, %v3063_v18 }
 0xdc8   : > { %3069 = vadd.xlane.f32.xlu1 %v3068_v17 }
 0xdc9   : > { %v3071_v24 = vsel %vm1596_vm0, %v3066_v23, 0.0  ;;  %v3067_v6 = vmul.f32 %v3064_v20, %v3064_v20 }
 0xdca   : > { %3072 = vadd.xlane.f32.xlu0 %v3071_v24 }
 0xdcb   : > { %v3074_v25 = vsel %vm2814_vm9, %v3067_v6, 0.0 }
 0xdcc   : > { %3075 = vadd.xlane.f32.xlu1 %v3074_v25 }
 0xe55   : > { %v3070_v59 = vpop.xlane.xlu1 %3069 }
 0xe56   : > { %v3077_v30 = vmul.f32 0.03125, %v3070_v59 }
 0xe57   : > { %v3073_v31 = vpop.xlane.xlu0 %3072 }
 0xe58   : > { %v3080_v32 = vadd.f32 1e-05, %v3077_v30  ;;  %v3078_v33 = vmul.f32 0.03125, %v3073_v31 }
 0xe59   : > { %v3076_v34 = vpop.xlane.xlu1 %3075 }
 0xe5a   : > { %11357 = vrsqrt.f32 %v3080_v32  ;;  %v3081_v35 = vadd.f32 1e-05, %v3078_v33  ;;  %v3079_v36 = vmul.f32 0.03125, %v3076_v34 }
 0xe5c   : > { %11359 = vrsqrt.f32 %v3081_v35  ;;  %v3082_v37 = vadd.f32 1e-05, %v3079_v36 }
 0xe5e   : > { %11361 = vrsqrt.f32 %v3082_v37 }
 0xe64   : > { %v11358_v45 = vpop.eup %11357 }
 0xe65   : > { %v3086_v39 = vmul.f32 %v11358_v45, %v3062_v14 }
 0xe66   : > { %v11360_v43 = vpop.eup %11359 }
 0xe67   : > { %v3095_v47 = vmul.f32 %v9380_v38, %v3086_v39  ;;  %v3087_v41 = vmul.f32 %v11360_v43, %v3063_v18 }
 0xe68   : > { %v11362_v42 = vpop.eup %11361 }
 0xe69   : > { %v3096_v44 = vmul.f32 %v9380_v38, %v3087_v41  ;;  %v3088_v46 = vmul.f32 %v11362_v42, %v3064_v20  ;;  %v13109_v48 = vadd.f32 %v9381_v40, %v3095_v47 }
 0xe6b   : > { %v3097_v49 = vmul.f32 %v9380_v38, %v3088_v46  ;;  %v13111_v50 = vadd.f32 %v9381_v40, %v3096_v44  ;;  %v3107_v52 = vadd.f32 %v11504_v51, %v13109_v48 }
 0xe6d   : > { %v3108_v54 = vadd.f32 %v11505_v53, %v13111_v50  ;;  %v13117_v55 = vadd.f32 %v9381_v40, %v3097_v49  ;;  %v3198_v62 = vpack.c.bf16 %v13111_v50, %v13109_v48 }
 0xe6f   : > { %v3124_v56 = vpack.c.bf16 %v3108_v54, %v3107_v52  ;;  %v3109_v58 = vadd.f32 %v11506_v57, %v13117_v55  ;;  %v3199_v63 = vpack.c.bf16 %v13117_v55, %v13117_v55 }
 0xe71   : > { %10149 = vmatprep.mubr.msk.bf16.mxu0 %vm1596_vm0, %v3124_v56  ;;  %v3125_v60 = vpack.c.bf16 %v3109_v58, %v3109_v58 }
 0xe73   : > { %10150 = vmatmul.mubr.msk.bf16.vlgmr.msra.gmra.mrb[32].mxu0 %vm1596_vm0, %v3125_v60 }
 0xe74   : > { %10154 = vmatpush3.bf16.msra.mxu0 %v11253_v29  ;;  %10157 = vmatprep.mubr.msk.bf16.mxu0 %vm1596_vm0, %v3198_v62 }
 0xe75   : > { %10155 = vmatprep.subr.bf16.mxu0 %v11254_v61 }
 0xe78   : > { %10156 = vmatpush3.bf16.msra.mxu0 %v11254_v61 }
 0xe79   : > { %10717 = vmatprep.subr.bf16.mxu0 %v12184_v13 }
 0xe7b   : > { %10158 = vmatmul.mubr.msk.bf16.vlgmr.msra.gmra.mrb[36].mxu0 %vm1596_vm0, %v3199_v63 }
 0xe7c   : > { %10182 = vmatprep.mubr.msk.f32.mxu0 %vm12186_vm1, %v12187_v22 }
 0xf46   : > { %v10151_v1 = vpop.f32.mrb[32].mxu0 }
 0xf47   : > { %v13134_v2 = vadd.f32 %v10151_v1, %v9392_v0  ;;  %v3184_v3 = vpop.f32.mrb[33].mxu0 }
 0xf48   : > { %v10152_v4 = vpop.f32.mrb[34].mxu0  ;;  %v13138_v7 = vadd.f32 %v9392_v0, %v3184_v3 }
 0xf49   : > { %3286 = vrot.lane.b32.xlu1 %v13134_v2, %s14213_s0  ;;  %v3187_v5 = vpop.f32.mrb[35].mxu0 }
 0xf4a   : > { %v13140_v8 = vadd.f32 %v9392_v0, %v3187_v5 }
 0xf4c   : > { %v13144_v9 = vpack.i.bf16 %v13140_v8, %v13138_v7 }
 0xf4e   : > { %v10159_v10 = vpop.f32.mrb[36].mxu0  ;;  %11130 = vrot.lane.b32.xlu0 %v13144_v9, %s14213_s0 }
 0xf4f   : > { %v3258_v12 = vpop.f32.mrb[37].mxu0  ;;  %v13152_v20 = vadd.f32 %v10159_v10, %v9397_v11 }
 0xf50   : > { %v10160_v14 = vpop.f32.mrb[38].mxu0  ;;  %v3259_v16 = vadd.f32 %v9397_v11, %v3258_v12 }
 0xf51   : > { %v3261_v15 = vpop.f32.mrb[39].mxu0 }
 0xf52   : > { %v3262_v18 = vadd.f32 %v9397_v11, %v3261_v15 }
 0xf54   : > { %v10718_v19 = vpack.c.bf16 %v3262_v18, %v3259_v16  ;;  %v13149_v21 = vpack.i.bf16 %v3262_v18, %v3259_v16 }
 0xf56   : > { %10719 = vmatpush3.bf16.msra.mxu0 %v10718_v19 }
 0xf57   : > { %10180 = vmatprep.subr.mxu0 %v12187_v22 }
 0xf5a   : > { %10181 = vmatpush3.msk.msra.mxu0 %vm1879_vm6, %v13152_v20 }
 0xf5b   : > { %10720 = vmatprep.subr.bf16.mxu0 %v12184_v13 }
 0xfbb   : > { %v3287_v25 = vpop.permute.xlu1 %3286 }
 0xfc0   : > { %v11131_v17 = vpop.permute.xlu0 %11130 }
 0xfc1   : > { %v11133_v23 = vunpack.i.h.bf16 %v11131_v17  ;;  %v11132_v24 = vunpack.i.l.bf16 %v11131_v17 }
 0xfc3   : > { %v10714_v6 = vpack.c.bf16 %v11133_v23, %v11132_v24 }
 0xfc5   : > { %10716 = vmatpush3.bf16.xpose.msk.msra.mxu1 %vm12819_vm3, %v10714_v6 }
 0xfc6   : > { %10165 = vmatprep.subr.mxu1 %v12187_v22 }
 0xfcd   : > { %10166 = vmatpush3.xpose.msk.msra.mxu1 %vm1739_vm2, %v3287_v25 }
 0xfce   : > { %10724 = vmatprep.subr.bf16.mxu1 %v12184_v13 }
 0xfd0   : > { %10168 = vmatmul.mubr.msk.f32.vlgmr.msra.gmra.mrb[36].mxu1 %vm1739_vm2, %v13138_v7 }
 0xfd1   : > { %10170 = vmatprep.mubr.msk.f32.mxu1 %vm12186_vm1, %v12187_v22 }
 0xfd4   : > { %10171 = vmatmul.mubr.msk.f32.gmra.mrb[38].mxu1 %vm1739_vm2, %v13140_v8 }
 0xfd5   : > { %10173 = vmatprep.mubr.msk.f32.mxu1 %vm12186_vm1, %v12187_v22 }
 0xfd8   : > { %10174 = vmatmul.mubr.msk.f32.gmra.mrb[40].mxu1 %vm1739_vm2, %v13134_v2 }
 0xfd9   : > { %10212 = vmatprep.mubr.msk.f32.mxu1 %vm12186_vm1, %v12187_v22 }
0x10a3   : > { %v3366_v26 = vpop.f32.mrb[36].mxu1 }
0x10a4   : > { %v3380_v28 = vmul.f32 0.35355338, %v3366_v26  ;;  %v10169_v29 = vpop.f32.mrb[37].mxu1 }
0x10a6   : > { %v3383_v59 = vsel %vm1835_vm4, %v3380_v28, -inf }
0x10a7   : > { %3384 = vmax.xlane.f32.xlu1 %v3383_v59  ;;  %v3371_v30 = vpop.f32.mrb[38].mxu1 }
0x10a8   : > { %v3381_v31 = vmul.f32 0.35355338, %v3371_v30  ;;  %v10172_v32 = vpop.f32.mrb[39].mxu1 }
0x10aa   : > { %v3386_v33 = vsel %vm1835_vm4, %v3381_v31, -inf }
0x10ab   : > { %3387 = vmax.xlane.f32.xlu0 %v3386_v33  ;;  %v3376_v34 = vpop.f32.mrb[40].mxu1 }
0x10ac   : > { %v3382_v35 = vmul.f32 0.35355338, %v3376_v34  ;;  %v10175_v36 = vpop.f32.mrb[41].mxu1 }
0x10ae   : > { %v3389_v37 = vsel %vm1842_vm5, %v3382_v35, -inf }
0x10af   : > { %3390 = vmax.xlane.f32.xlu0 %v3389_v37 }
0x1134   : > { %v3385_v45 = vpop.xlane.xlu1 %3384 }
0x1135   : > { %v3392_v38 = vsub.f32 %v3380_v28, %v3385_v45 }
0x1137   : > { %v3395_v39 = vmul.f32 1.442695, %v3392_v38 }
0x1138   : > { %v3388_v43 = vpop.xlane.xlu0 %3387 }
0x1139   : > { %11363 = vpow2.f32 %v3395_v39  ;;  %v3393_v40 = vsub.f32 %v3381_v31, %v3388_v43 }
0x113b   : > { %v3397_v47 = vmul.f32 1.442695, %v3393_v40 }
0x113c   : > { %v3391_v49 = vpop.xlane.xlu0 %3390 }
0x113d   : > { %11365 = vpow2.f32 %v3397_v47  ;;  %v3394_v51 = vsub.f32 %v3382_v35, %v3391_v49 }
0x113f   : > { %v3399_v52 = vmul.f32 1.442695, %v3394_v51 }
0x1141   : > { %11367 = vpow2.f32 %v3399_v52 }
0x1143   : > { %v11364_v41 = vpop.eup %11363 }
0x1144   : > { %v3401_v42 = vsel %vm1835_vm4, %v11364_v41, 0.0 }
0x1145   : > { %3402 = vadd.xlane.f32.xlu1 %v3401_v42 }
0x1147   : > { %v11366_v44 = vpop.eup %11365 }
0x1148   : > { %v3404_v46 = vsel %vm1835_vm4, %v11366_v44, 0.0 }
0x1149   : > { %3405 = vadd.xlane.f32.xlu0 %v3404_v46 }
0x114b   : > { %v11368_v53 = vpop.eup %11367 }
0x114c   : > { %v3407_v54 = vsel %vm1842_vm5, %v11368_v53, 0.0 }
0x1156   : > { %3518 = vrot.lane.b32.xlu1 %v13134_v2, %s14214_s22 }
0x115a   : > { %11140 = vrot.lane.b32.xlu1 %v13144_v9, %s14215_s3 }
0x115f   : > { %11135 = vrot.lane.b32.xlu0 %v13144_v9, %s14214_s22 }
0x1163   : > { %3508 = vrot.lane.b32.xlu0 %v13138_v7, %s14216_s4 }
0x1167   : > { %3512 = vrot.lane.b32.xlu0 %v13134_v2, %s14216_s4 }
0x116b   : > { %11145 = vrot.lane.b32.xlu0 %v13144_v9, %s14217_s11 }
0x116f   : > { %3751 = vrot.lane.b32.xlu0 %v13140_v8, %s14218_s13 }
0x1173   : > { %3998 = vrot.lane.b32.xlu0 %v13134_v2, %s14217_s11 }
0x1177   : > { %3990 = vrot.lane.b32.xlu0 %v13140_v8, %s14219_s14 }
0x117e   : > { %3408 = vadd.xlane.f32.xlu1 %v3407_v54 }
0x118f   : > { %3510 = vrot.lane.b32.xlu1 %v13140_v8, %s14216_s4 }
0x1193   : > { %3759 = vrot.lane.b32.xlu1 %v13134_v2, %s14215_s3 }
0x1197   : > { %3749 = vrot.lane.b32.xlu1 %v13138_v7, %s14218_s13 }
0x119b   : > { %3753 = vrot.lane.b32.xlu1 %v13134_v2, %s14218_s13 }
0x119f   : > { %3988 = vrot.lane.b32.xlu1 %v13138_v7, %s14219_s14 }
0x11a3   : > { %3992 = vrot.lane.b32.xlu1 %v13134_v2, %s14219_s14 }
0x11d2   : > { %v3403_v56 = vpop.xlane.xlu1 %3402 }
0x11d3   : > { %11369 = vrcp.f32 %v3403_v56 }
0x11d6   : > { %v3406_v57 = vpop.xlane.xlu0 %3405  ;;  %v3519_v3 = vpop.permute.xlu1 %3518 }
0x11d7   : > { %11371 = vrcp.f32 %v3406_v57 }
0x11da   : > { %v11136_v58 = vpop.permute.xlu0 %11135  ;;  %v11141_v4 = vpop.permute.xlu1 %11140 }
0x11db   : > { %v11138_v60 = vunpack.i.h.bf16 %v11136_v58  ;;  %v11137_v61 = vunpack.i.l.bf16 %v11136_v58  ;;  %v11143_v10 = vunpack.i.h.bf16 %v11141_v4  ;;  %v11142_v11 = vunpack.i.l.bf16 %v11141_v4 }
0x11dd   : > { %v11370_v62 = vpop.eup %11369  ;;  %v10721_v63 = vpack.c.bf16 %v11138_v60, %v11137_v61  ;;  %v10728_v14 = vpack.c.bf16 %v11143_v10, %v11142_v11 }
0x11de   : > { %v3413_v0 = vmul.f32 %v11370_v62, %v11364_v41  ;;  %v3509_v7 = vpop.permute.xlu0 %3508 }
0x11e0   : > { %10183 = vmatmul.mubr.msk.f32.vlgmr.msra.gmra.mrb[40].mxu0 %vm1835_vm4, %v3413_v0 }
0x11e1   : > { %v11372_v1 = vpop.eup %11371  ;;  %10723 = vmatpush3.bf16.xpose.msk.msra.mxu0 %vm12819_vm3, %v10721_v63  ;;  %10185 = vmatprep.mubr.msk.f32.mxu0 %vm12186_vm1, %v12187_v22 }
0x11e2   : > { %v3414_v2 = vmul.f32 %v11372_v1, %v11366_v44  ;;  %10195 = vmatprep.subr.mxu0 %v12187_v22  ;;  %v3513_v12 = vpop.permute.xlu0 %3512 }
0x11e4   : > { %10186 = vmatmul.mubr.msk.f32.gmra.mrb[42].mxu0 %vm1835_vm4, %v3414_v2 }
0x11e5   : > { %10188 = vmatprep.mubr.msk.f32.mxu0 %vm12186_vm1, %v12187_v22 }
0x11e6   : > { %v11146_v16 = vpop.permute.xlu0 %11145 }
0x11e7   : > { %v11148_v19 = vunpack.i.h.bf16 %v11146_v16  ;;  %v11147_v17 = vunpack.i.l.bf16 %v11146_v16 }
0x11e9   : > { %10196 = vmatpush3.xpose.msk.msra.mxu0 %vm1739_vm2, %v3519_v3  ;;  %v10735_v23 = vpack.c.bf16 %v11148_v19, %v11147_v17 }
0x11ea   : > { %10727 = vmatprep.subr.bf16.mxu0 %v12184_v13  ;;  %v3752_v6 = vpop.permute.xlu0 %3751 }
0x11ee   : > { %v3999_v26 = vpop.permute.xlu0 %3998 }
0x11f2   : > { %v3991_v29 = vpop.permute.xlu0 %3990 }
0x120b   : > { %v3409_v5 = vpop.xlane.xlu1 %3408 }
0x120c   : > { %11373 = vrcp.f32 %v3409_v5 }
0x120f   : > { %v3511_v15 = vpop.permute.xlu1 %3510 }
0x1213   : > { %v3760_v18 = vpop.permute.xlu1 %3759 }
0x1216   : > { %v11374_v8 = vpop.eup %11373 }
0x1217   : > { %v3415_v9 = vmul.f32 %v11374_v8, %v11368_v53  ;;  %v3750_v24 = vpop.permute.xlu1 %3749 }
0x1219   : > { %10189 = vmatmul.mubr.msk.f32.gmra.mrb[44].mxu0 %vm1835_vm4, %v3415_v9 }
0x121a   : > { %10197 = vmatprep.mubr.msk.f32.mxu0 %vm12186_vm1, %v12187_v22 }
0x121b   : > { %v3754_v25 = vpop.permute.xlu1 %3753 }
0x121d   : > { %10198 = vmatmul.mubr.msk.f32.vlgmr.msra.gmra.mrb[46].mxu0 %vm1739_vm2, %v3509_v7 }
0x121e   : > { %10730 = vmatpush3.bf16.xpose.msk.msra.mxu0 %vm12819_vm3, %v10728_v14  ;;  %10200 = vmatprep.mubr.msk.f32.mxu0 %vm12186_vm1, %v12187_v22 }
0x121f   : > { %10225 = vmatprep.subr.mxu0 %v12187_v22  ;;  %v3989_v28 = vpop.permute.xlu1 %3988 }
0x1221   : > { %10201 = vmatmul.mubr.msk.f32.gmra.mrb[48].mxu0 %vm1739_vm2, %v3511_v15 }
0x1222   : > { %10203 = vmatprep.mubr.msk.f32.mxu0 %vm12186_vm1, %v12187_v22 }
0x1223   : > { %v3993_v59 = vpop.permute.xlu1 %3992 }
0x1225   : > { %10204 = vmatmul.mubr.msk.f32.gmra.mrb[50].mxu0 %vm1739_vm2, %v3513_v12 }
0x1226   : > { %10226 = vmatpush3.xpose.msk.msra.mxu0 %vm1739_vm2, %v3760_v18  ;;  %10227 = vmatprep.mubr.msk.f32.mxu0 %vm12186_vm1, %v12187_v22 }
0x1227   : > { %10734 = vmatprep.subr.bf16.mxu0 %v12184_v13 }
0x1229   : > { %10228 = vmatmul.mubr.msk.f32.vlgmr.msra.gmra.mrb[52].mxu0 %vm1739_vm2, %v3750_v24 }
0x122a   : > { %10737 = vmatpush3.bf16.xpose.msk.msra.mxu0 %vm12819_vm3, %v10735_v23  ;;  %10230 = vmatprep.mubr.msk.f32.mxu0 %vm12186_vm1, %v12187_v22 }
0x122b   : > { %10255 = vmatprep.subr.mxu0 %v12187_v22 }
0x122d   : > { %10231 = vmatmul.mubr.msk.f32.gmra.mrb[54].mxu0 %vm1739_vm2, %v3752_v6 }
0x122e   : > { %10233 = vmatprep.mubr.msk.f32.mxu0 %vm12186_vm1, %v12187_v22 }
0x1231   : > { %10234 = vmatmul.mubr.msk.f32.gmra.mrb[56].mxu0 %vm1739_vm2, %v3754_v25 }
0x1232   : > { %10256 = vmatpush3.xpose.msk.msra.mxu0 %vm1739_vm2, %v3999_v26  ;;  %10257 = vmatprep.mubr.msk.f32.mxu0 %vm12186_vm1, %v12187_v22 }
0x1235   : > { %10258 = vmatmul.mubr.msk.f32.vlgmr.msra.gmra.mrb[58].mxu0 %vm1739_vm2, %v3989_v28 }
0x1236   : > { %10260 = vmatprep.mubr.msk.f32.mxu0 %vm12186_vm1, %v12187_v22 }
0x1239   : > { %10261 = vmatmul.mubr.msk.f32.gmra.mrb[60].mxu0 %vm1739_vm2, %v3991_v29 }
0x123a   : > { %10263 = vmatprep.mubr.msk.f32.mxu0 %vm12186_vm1, %v12187_v22 }
0x123d   : > { %10264 = vmatmul.mubr.msk.f32.gmra.mrb[62].mxu0 %vm1739_vm2, %v3993_v59 }
0x12b3   : > { %v13258_v30 = vpop.f32.mrb[40].mxu0 }
0x12b4   : > { %v10184_v31 = vpop.f32.mrb[41].mxu0 }
0x12b7   : > { %v13260_v32 = vpop.f32.mrb[42].mxu0 }
0x12b8   : > { %v10187_v33 = vpop.f32.mrb[43].mxu0 }
0x12ec   : > { %v13262_v34 = vpop.f32.mrb[44].mxu0 }
0x12ed   : > { %v10190_v35 = vpop.f32.mrb[45].mxu0 }
0x12f0   : > { %v3598_v36 = vpop.f32.mrb[46].mxu0 }
0x12f1   : > { %v3612_v37 = vmul.f32 0.35355338, %v3598_v36  ;;  %v10199_v45 = vpop.f32.mrb[47].mxu0 }
0x12f3   : > { %v3615_v38 = vsel %vm1835_vm4, %v3612_v37, -inf }
0x12f4   : > { %3616 = vmax.xlane.f32.xlu0 %v3615_v38  ;;  %v3603_v39 = vpop.f32.mrb[48].mxu0 }
0x12f5   : > { %v3613_v43 = vmul.f32 0.35355338, %v3603_v39  ;;  %v10202_v40 = vpop.f32.mrb[49].mxu0 }
0x12f7   : > { %v3618_v47 = vsel %vm1835_vm4, %v3613_v43, -inf }
0x12f8   : > { %3619 = vmax.xlane.f32.xlu1 %v3618_v47  ;;  %v3608_v41 = vpop.f32.mrb[50].mxu0 }
0x12f9   : > { %v3614_v42 = vmul.f32 0.35355338, %v3608_v41  ;;  %v10205_v44 = vpop.f32.mrb[51].mxu0 }
0x12fb   : > { %v3621_v46 = vsel %vm1842_vm5, %v3614_v42, -inf }
0x12fc   : > { %3622 = vmax.xlane.f32.xlu0 %v3621_v46  ;;  %v3839_v49 = vpop.f32.mrb[52].mxu0 }
0x12fd   : > { %v13267_v51 = vmul.f32 0.35355338, %v3839_v49  ;;  %v10229_v52 = vpop.f32.mrb[53].mxu0 }
0x12ff   : > { %v3856_v53 = vsel %vm1835_vm4, %v13267_v51, -inf }
0x1300   : > { %3857 = vmax.xlane.f32.xlu0 %v3856_v53  ;;  %v3844_v54 = vpop.f32.mrb[54].mxu0 }
0x1301   : > { %v3854_v56 = vmul.f32 0.35355338, %v3844_v54  ;;  %v10232_v57 = vpop.f32.mrb[55].mxu0 }
0x1303   : > { %v3859_v58 = vsel %vm1835_vm4, %v3854_v56, -inf }
0x1304   : > { %3860 = vmax.xlane.f32.xlu1 %v3859_v58  ;;  %v3849_v60 = vpop.f32.mrb[56].mxu0 }
0x1305   : > { %v3855_v61 = vmul.f32 0.35355338, %v3849_v60  ;;  %v10235_v62 = vpop.f32.mrb[57].mxu0 }
0x1307   : > { %v3862_v63 = vsel %vm1842_vm5, %v3855_v61, -inf }
0x1308   : > { %3863 = vmax.xlane.f32.xlu0 %v3862_v63  ;;  %v4078_v0 = vpop.f32.mrb[58].mxu0 }
0x1309   : > { %v4092_v1 = vmul.f32 0.35355338, %v4078_v0  ;;  %v10259_v2 = vpop.f32.mrb[59].mxu0 }
0x130b   : > { %v4095_v3 = vsel %vm1835_vm4, %v4092_v1, -inf }
0x130c   : > { %4096 = vmax.xlane.f32.xlu1 %v4095_v3  ;;  %v4083_v4 = vpop.f32.mrb[60].mxu0 }
0x130d   : > { %v13274_v5 = vmul.f32 0.35355338, %v4083_v4  ;;  %v10262_v7 = vpop.f32.mrb[61].mxu0 }
0x130f   : > { %v4098_v8 = vsel %vm1835_vm4, %v13274_v5, -inf }
0x1310   : > { %4099 = vmax.xlane.f32.xlu0 %v4098_v8  ;;  %v4088_v9 = vpop.f32.mrb[62].mxu0 }
0x1311   : > { %v4094_v10 = vmul.f32 0.35355338, %v4088_v9  ;;  %v10265_v11 = vpop.f32.mrb[63].mxu0 }
0x1313   : > { %v4101_v12 = vsel %vm1842_vm5, %v4094_v10, -inf }
0x1314   : > { %4102 = vmax.xlane.f32.xlu1 %v4101_v12 }
0x1325   : > { %11150 = vrot.lane.b32.xlu1 %v13149_v21, %s14216_s4 }
0x1326   : > { %3654 = vrot.lane.b32.xlu0 %v13152_v20, %s14216_s4 }
0x132a   : > { %11155 = vrot.lane.b32.xlu0 %v13149_v21, %s14218_s13 }
0x1381   : > { %v3617_v14 = vpop.xlane.xlu0 %3616 }
0x1382   : > { %v3624_v15 = vsub.f32 %v3612_v37, %v3617_v14 }
0x1384   : > { %v3627_v16 = vmul.f32 1.442695, %v3624_v15 }
0x1385   : > { %v3620_v18 = vpop.xlane.xlu1 %3619 }
0x1386   : > { %11375 = vpow2.f32 %v3627_v16  ;;  %v3625_v19 = vsub.f32 %v3613_v43, %v3620_v18 }
0x1388   : > { %v3629_v17 = vmul.f32 1.442695, %v3625_v19 }
0x1389   : > { %v3623_v23 = vpop.xlane.xlu0 %3622 }
0x138a   : > { %11377 = vpow2.f32 %v3629_v17  ;;  %v3626_v24 = vsub.f32 %v3614_v42, %v3623_v23 }
0x138c   : > { %v3631_v6 = vmul.f32 1.442695, %v3626_v24 }
0x138d   : > { %v3858_v26 = vpop.xlane.xlu0 %3857 }
0x138e   : > { %11379 = vpow2.f32 %v3631_v6  ;;  %v3865_v2 = vsub.f32 %v13267_v51, %v3858_v26 }
0x1390   : > { %v13285_v25 = vpop.eup %11375  ;;  %v3868_v3 = vmul.f32 1.442695, %v3865_v2 }
0x1391   : > { %v3861_v28 = vpop.xlane.xlu1 %3860  ;;  %v3633_v29 = vsel %vm1835_vm4, %v13285_v25, 0.0 }
0x1392   : > { %v3866_v59 = vsub.f32 %v3854_v56, %v3861_v28  ;;  %3634 = vadd.xlane.f32.xlu0 %v3633_v29 }
0x1394   : > { %v13289_v31 = vpop.eup %11377  ;;  %v3870_v33 = vmul.f32 1.442695, %v3866_v59 }
0x1395   : > { %v3864_v35 = vpop.xlane.xlu0 %3863  ;;  %v3636_v36 = vsel %vm1835_vm4, %v13289_v31, 0.0 }
0x1396   : > { %11381 = vpow2.f32 %v3870_v33  ;;  %v3867_v37 = vsub.f32 %v3855_v61, %v3864_v35  ;;  %3637 = vadd.xlane.f32.xlu1 %v3636_v36 }
0x1398   : > { %v13293_v45 = vpop.eup %11379  ;;  %v3872_v38 = vmul.f32 1.442695, %v3867_v37 }
0x1399   : > { %v4097_v39 = vpop.xlane.xlu1 %4096  ;;  %v3639_v43 = vsel %vm1842_vm5, %v13293_v45, 0.0 }
0x139a   : > { %11383 = vpow2.f32 %v3872_v38  ;;  %v4104_v40 = vsub.f32 %v4092_v1, %v4097_v39  ;;  %3640 = vadd.xlane.f32.xlu0 %v3639_v43 }
0x139c   : > { %v4107_v47 = vmul.f32 1.442695, %v4104_v40 }
0x139d   : > { %v4100_v60 = vpop.xlane.xlu0 %4099 }
0x139e   : > { %11385 = vpow2.f32 %v4107_v47  ;;  %v4105_v4 = vsub.f32 %v13274_v5, %v4100_v60 }
0x13a0   : > { %v13297_v41 = vpop.eup %11381  ;;  %v4109_v7 = vmul.f32 1.442695, %v4105_v4 }
0x13a1   : > { %v4103_v42 = vpop.xlane.xlu1 %4102  ;;  %v3877_v44 = vsel %vm1835_vm4, %v13297_v41, 0.0  ;;  %v3655_v63 = vpop.permute.xlu0 %3654 }
0x13a2   : > { %v4106_v46 = vsub.f32 %v4094_v10, %v4103_v42  ;;  %3878 = vadd.xlane.f32.xlu0 %v3877_v44 }
0x13a4   : > { %v13301_v49 = vpop.eup %11383  ;;  %v4111_v52 = vmul.f32 1.442695, %v4106_v46 }
0x13a5   : > { %v11151_v53 = vpop.permute.xlu1 %11150  ;;  %v3880_v54 = vsel %vm1842_vm5, %v13301_v49, 0.0  ;;  %v11156_v51 = vpop.permute.xlu0 %11155 }
0x13a6   : > { %11387 = vpow2.f32 %v4111_v52  ;;  %v11153_v56 = vunpack.i.h.bf16 %v11151_v53  ;;  %3881 = vadd.xlane.f32.xlu0 %v3880_v54  ;;  %v11152_v57 = vunpack.i.l.bf16 %v11151_v53  ;;  %v11158_v15 = vunpack.i.h.bf16 %v11156_v51 }
0x13a7   : > { %3893 = vrot.lane.b32.xlu1 %v13152_v20, %s14218_s13  ;;  %11389 = vpow2.f32 %v3868_v3 }
0x13a8   : > { %v13307_v58 = vpop.eup %11385  ;;  %v10725_v61 = vpack.c.bf16 %v11153_v56, %v11152_v57  ;;  %11391 = vpow2.f32 %v4109_v7  ;;  %v11256_v7 = vld [vmem:[%s14196_s2 + $0x18] sm:$0xff]  }
0x13a9   : > { %v4113_v62 = vsel %vm1835_vm4, %v13307_v58, 0.0 }
0x13aa   : > { %4114 = vadd.xlane.f32.xlu0 %v4113_v62  ;;  %10726 = vmatpush3.bf16.msra.mxu1 %v10725_v61 }
0x13ab   : > { %10210 = vmatprep.subr.mxu1 %v12187_v22 }
0x13ae   : > { %10211 = vmatpush3.msk.msra.mxu1 %vm1879_vm6, %v3655_v63  ;;  %v11255_v63 = vld [vmem:[%s14196_s2 + $0x10] sm:$0xff]   ;;  %s14224_s2 = sld [smem:[#allocation45_spill]] }
0x13af   : > { %10731 = vmatprep.subr.bf16.mxu1 %v12184_v13  ;;  %10281 = vmatprep.subr.bf16.mxu0 %v11255_v63 }
0x13b0   : > { %v13313_v0 = vpop.eup %11387  ;;  %10282 = vmatpush3.bf16.msra.mxu0 %v11255_v63 }
0x13b1   : > { %v4119_v1 = vsel %vm1842_vm5, %v13313_v0, 0.0  ;;  %v11390_v8 = vpop.eup %11389  ;;  %10283 = vmatprep.subr.bf16.mxu0 %v11256_v7 }
0x13b2   : > { %4120 = vadd.xlane.f32.xlu0 %v4119_v1  ;;  %v3874_v9 = vsel %vm1835_vm4, %v11390_v8, 0.0  ;;  %v13323_v10 = vpop.eup %11391 }
0x13b3   : > { %v4116_v11 = vsel %vm1835_vm4, %v13323_v10, 0.0 }
0x13b4   : > { %10284 = vmatpush3.bf16.msra.mxu0 %v11256_v7 }
0x13c8   : > { %11160 = vrot.lane.b32.xlu0 %v13149_v21, %s14219_s14  ;;  %v11157_v21 = vunpack.i.l.bf16 %v11156_v51 }
0x13ca   : > { %v10732_v19 = vpack.c.bf16 %v11158_v15, %v11157_v21 }
0x13cb   : > { %3875 = vadd.xlane.f32.xlu1 %v3874_v9 }
0x13cf   : > { %4117 = vadd.xlane.f32.xlu1 %v4116_v11 }
0x13e0   : > { %4132 = vrot.lane.b32.xlu1 %v13152_v20, %s14219_s14 }
0x141f   : > { %v3635_v5 = vpop.xlane.xlu0 %3634 }
0x1420   : > { %11393 = vrcp.f32 %v3635_v5 }
0x1423   : > { %v3638_v12 = vpop.xlane.xlu1 %3637 }
0x1424   : > { %11395 = vrcp.f32 %v3638_v12 }
0x1427   : > { %v3641_v14 = vpop.xlane.xlu0 %3640  ;;  %v3894_v23 = vpop.permute.xlu1 %3893 }
0x1428   : > { %11397 = vrcp.f32 %v3641_v14 }
0x142a   : > { %v11394_v16 = vpop.eup %11393 }
0x142b   : > { %v3645_v18 = vmul.f32 %v11394_v16, %v13285_v25 }
0x142d   : > { %10213 = vmatmul.mubr.msk.f32.vlgmr.msra.gmra.mrb[42].mxu1 %vm1835_vm4, %v3645_v18 }
0x142e   : > { %v11396_v17 = vpop.eup %11395  ;;  %10733 = vmatpush3.bf16.msra.mxu1 %v10732_v19  ;;  %10215 = vmatprep.mubr.msk.f32.mxu1 %vm12186_vm1, %v12187_v22 }
0x142f   : > { %10240 = vmatprep.subr.mxu1 %v12187_v22  ;;  %v3646_v20 = vmul.f32 %v11396_v17, %v13289_v31  ;;  %v3879_v25 = vpop.xlane.xlu0 %3878 }
0x1431   : > { %10216 = vmatmul.mubr.msk.f32.gmra.mrb[44].mxu1 %vm1835_vm4, %v3646_v20 }
0x1432   : > { %v11398_v24 = vpop.eup %11397  ;;  %10241 = vmatpush3.msk.msra.mxu1 %vm1879_vm6, %v3894_v23  ;;  %10218 = vmatprep.mubr.msk.f32.mxu1 %vm12186_vm1, %v12187_v22 }
0x1433   : > { %v3647_v6 = vmul.f32 %v11398_v24, %v13293_v45  ;;  %10738 = vmatprep.subr.bf16.mxu1 %v12184_v13  ;;  %v3882_v26 = vpop.xlane.xlu0 %3881 }
0x1435   : > { %10219 = vmatmul.mubr.msk.f32.gmra.mrb[46].mxu1 %vm1835_vm4, %v3647_v6 }
0x1436   : > { %10242 = vmatprep.mubr.msk.f32.mxu1 %vm12186_vm1, %v12187_v22 }
0x1437   : > { %v4115_v28 = vpop.xlane.xlu0 %4114 }
0x143f   : > { %v4121_v29 = vpop.xlane.xlu0 %4120 }
0x1443   : > { %v11161_v31 = vpop.permute.xlu0 %11160 }
0x1444   : > { %v11163_v33 = vunpack.i.h.bf16 %v11161_v31  ;;  %v11162_v35 = vunpack.i.l.bf16 %v11161_v31 }
0x1446   : > { %v10739_v39 = vpack.c.bf16 %v11163_v33, %v11162_v35 }
0x1458   : > { %v3876_v59 = vpop.xlane.xlu1 %3875 }
0x1459   : > { %11399 = vrcp.f32 %v3876_v59 }
0x145a   : > { %11401 = vrcp.f32 %v3879_v25 }
0x145b   : > { %11403 = vrcp.f32 %v3882_v26 }
0x145c   : > { %11405 = vrcp.f32 %v4115_v28  ;;  %v4118_v45 = vpop.xlane.xlu1 %4117 }
0x145d   : > { %11407 = vrcp.f32 %v4118_v45 }
0x145e   : > { %11409 = vrcp.f32 %v4121_v29 }
0x1460   : > { %v4133_v47 = vpop.permute.xlu1 %4132 }
0x1463   : > { %v11400_v36 = vpop.eup %11399 }
0x1464   : > { %v3886_v37 = vmul.f32 %v11400_v36, %v11390_v8  ;;  %v11402_v38 = vpop.eup %11401 }
0x1465   : > { %v3887_v43 = vmul.f32 %v11402_v38, %v13297_v41  ;;  %v11404_v40 = vpop.eup %11403 }
0x1466   : > { %10243 = vmatmul.mubr.msk.f32.vlgmr.msra.gmra.mrb[48].mxu1 %vm1835_vm4, %v3886_v37  ;;  %v3888_v42 = vmul.f32 %v11404_v40, %v13301_v49  ;;  %v11406_v44 = vpop.eup %11405 }
0x1467   : > { %10740 = vmatpush3.bf16.msra.mxu1 %v10739_v39  ;;  %10245 = vmatprep.mubr.msk.f32.mxu1 %vm12186_vm1, %v12187_v22  ;;  %v4125_v41 = vmul.f32 %v11406_v44, %v13307_v58  ;;  %v11408_v46 = vpop.eup %11407 }
0x1468   : > { %10270 = vmatprep.subr.mxu1 %v12187_v22  ;;  %v4126_v52 = vmul.f32 %v11408_v46, %v13323_v10  ;;  %v11410_v53 = vpop.eup %11409 }
0x1469   : > { %v4127_v49 = vmul.f32 %v11410_v53, %v13313_v0 }
0x146a   : > { %10246 = vmatmul.mubr.msk.f32.gmra.mrb[50].mxu1 %vm1835_vm4, %v3887_v43 }
0x146b   : > { %10271 = vmatpush3.msk.msra.mxu1 %vm1879_vm6, %v4133_v47  ;;  %10248 = vmatprep.mubr.msk.f32.mxu1 %vm12186_vm1, %v12187_v22 }
0x146e   : > { %10249 = vmatmul.mubr.msk.f32.gmra.mrb[52].mxu1 %vm1835_vm4, %v3888_v42 }
0x146f   : > { %10272 = vmatprep.mubr.msk.f32.mxu1 %vm12186_vm1, %v12187_v22 }
0x1472   : > { %10273 = vmatmul.mubr.msk.f32.vlgmr.msra.gmra.mrb[54].mxu1 %vm1835_vm4, %v4125_v41 }
0x1473   : > { %10275 = vmatprep.mubr.msk.f32.mxu1 %vm12186_vm1, %v12187_v22 }
0x1476   : > { %10276 = vmatmul.mubr.msk.f32.gmra.mrb[56].mxu1 %vm1835_vm4, %v4126_v52 }
0x1477   : > { %10278 = vmatprep.mubr.msk.f32.mxu1 %vm12186_vm1, %v12187_v22 }
0x147a   : > { %10279 = vmatmul.mubr.msk.f32.gmra.mrb[58].mxu1 %vm1835_vm4, %v4127_v49 }
0x1500   : > { %v3735_v54 = vpop.f32.mrb[42].mxu1 }
0x1501   : > { %v10214_v56 = vpop.f32.mrb[43].mxu1 }
0x1504   : > { %v3740_v57 = vpop.f32.mrb[44].mxu1 }
0x1505   : > { %v11164_v58 = vpack.i.bf16 %v3740_v57, %v3735_v54  ;;  %v10217_v60 = vpop.f32.mrb[45].mxu1 }
0x1507   : > { %11165 = vrot.lane.b32.xlu1 %v11164_v58, %s14220_s18 }
0x1508   : > { %v3745_v61 = vpop.f32.mrb[46].mxu1 }
0x1509   : > { %v10220_v62 = vpop.f32.mrb[47].mxu1 }
0x150b   : > { %4234 = vrot.lane.b32.xlu1 %v3745_v61, %s14220_s18 }
0x1539   : > { %v3974_v1 = vpop.f32.mrb[48].mxu1 }
0x153a   : > { %v10244_v2 = vpop.f32.mrb[49].mxu1 }
0x153d   : > { %v3979_v0 = vpop.f32.mrb[50].mxu1 }
0x153e   : > { %v11169_v3 = vpack.i.bf16 %v3979_v0, %v3974_v1  ;;  %v10247_v4 = vpop.f32.mrb[51].mxu1 }
0x1540   : > { %11170 = vrot.lane.b32.xlu1 %v11169_v3, %s14221_s19 }
0x1541   : > { %v3984_v8 = vpop.f32.mrb[52].mxu1 }
0x1542   : > { %v10250_v9 = vpop.f32.mrb[53].mxu1 }
0x1543   : > { %v11258_v9 = vld [vmem:[%s14200_s1 + $0x18] sm:$0xff]  }
0x1544   : > { %4246 = vrot.lane.b32.xlu1 %v3984_v8, %s14221_s19  ;;  %v11257_v8 = vld [vmem:[%s14200_s1 + $0x10] sm:$0xff]   ;;  %s14223_s1 = sld [smem:[#allocation60_spill]] }
0x1545   : > { %v4213_v10 = vpop.f32.mrb[54].mxu1  ;;  %10289 = vmatprep.subr.bf16.mxu1 %v11257_v8 }
0x1546   : > { %v10274_v11 = vpop.f32.mrb[55].mxu1  ;;  %10290 = vmatpush3.bf16.msra.mxu1 %v11257_v8 }
0x1547   : > { %10291 = vmatprep.subr.bf16.mxu1 %v11258_v9  ;;  %v11262_v11 = vld [vmem:[%s14202_s26 + $0x28] sm:$0xff]  }
0x1549   : > { %v4218_v51 = vpop.f32.mrb[56].mxu1 }
0x154a   : > { %v11174_v5 = vpack.i.bf16 %v4218_v51, %v4213_v10  ;;  %v10277_v12 = vpop.f32.mrb[57].mxu1  ;;  %10292 = vmatpush3.bf16.msra.mxu1 %v11258_v9  ;;  %v11261_v10 = vld [vmem:[%s14202_s26 + $0x20] sm:$0xff]  }
0x154b   : > { %10309 = vmatprep.subr.bf16.mxu1 %v12187_v22  ;;  %10297 = vmatprep.subr.bf16.mxu0 %v11261_v10 }
0x154c   : > { %11175 = vrot.lane.b32.xlu0 %v11174_v5, %s14222_s20 }
0x154d   : > { %v4223_v14 = vpop.f32.mrb[58].mxu1 }
0x154e   : > { %4258 = vrot.lane.b32.xlu1 %v4223_v14, %s14222_s20  ;;  %v10280_v15 = vpop.f32.mrb[59].mxu1 }
0x1579   : > { %v11166_v21 = vpop.permute.xlu1 %11165 }
0x157a   : > { %v11168_v19 = vunpack.i.h.bf16 %v11166_v21  ;;  %v11167_v17 = vunpack.i.l.bf16 %v11166_v21 }
0x157c   : > { %v4264_v6 = vsel %vm1739_vm2, %v13260_v32, %v11168_v19  ;;  %v4263_v26 = vsel %vm1739_vm2, %v13258_v30, %v11167_v17 }
0x157d   : > { %v4235_v16 = vpop.permute.xlu1 %4234 }
0x157e   : > { %v4265_v28 = vsel %vm1739_vm2, %v13262_v34, %v4235_v16  ;;  %v9447_v34 = vld [vmem:[%s14198_s16 + $0x1] ss:$0 sm:$0xff] }
0x15b2   : > { %v11171_v18 = vpop.permute.xlu1 %11170 }
0x15b3   : > { %v11173_v20 = vunpack.i.h.bf16 %v11171_v18  ;;  %v11172_v23 = vunpack.i.l.bf16 %v11171_v18 }
0x15b5   : > { %v4267_v31 = vsel %vm2721_vm7, %v4264_v6, %v11173_v20  ;;  %v4266_v33 = vsel %vm2721_vm7, %v4263_v26, %v11172_v23  ;;  %v9454_v20 = vld [vmem:[%s14203_s27 + $0x1] ss:$0 sm:$0xff] }
0x15b6   : > { %v4247_v24 = vpop.permute.xlu1 %4246 }
0x15b7   : > { %v4268_v35 = vsel %vm2721_vm7, %v4265_v28, %v4247_v24  ;;  %v9455_v28 = vld [vmem:[%s14204_s6 + $0x1] ss:$0 sm:$0xff]  ;;  %s14225_s6 = sld [smem:[#allocation62_spill]] }
0x15be   : > { %v11176_v25 = vpop.permute.xlu0 %11175 }
0x15bf   : > { %v11178_v29 = vunpack.i.h.bf16 %v11176_v25  ;;  %v11177_v59 = vunpack.i.l.bf16 %v11176_v25 }
0x15c0   : > { %v4259_v36 = vpop.permute.xlu1 %4258 }
0x15c1   : > { %v4270_v37 = vsel %vm2725_vm8, %v4267_v31, %v11178_v29  ;;  %v4269_v32 = vsel %vm2725_vm8, %v4266_v33, %v11177_v59  ;;  %v4271_v45 = vsel %vm2725_vm8, %v4268_v35, %v4259_v36 }
0x15c2   : > { %v4273_v38 = vpack.c.bf16 %v4271_v45, %v4271_v45  ;;  %v4272_v30 = vpack.c.bf16 %v4270_v37, %v4269_v32  ;;  %v11259_v32 = vld [vmem:[%s14223_s1] sm:$0xff]  }
0x15c4   : > { %10285 = vmatprep.mubr.msk.bf16.mxu0 %vm1596_vm0, %v4272_v30  ;;  %v13423_v30 = vld [vmem:[%s14224_s2] sm:$0xff] }
0x15c5   : > { %10286 = vmatmul.mubr.msk.bf16.vlgmr.msra.gmra.mrb[64].mxu0 %vm1596_vm0, %v4273_v38  ;;  %v11260_v38 = vld [vmem:[%s14223_s1 + $0x8] sm:$0xff]  }
0x15c6   : > { %10298 = vmatpush3.bf16.msra.mxu0 %v11261_v10 }
0x15c7   : > { %10299 = vmatprep.subr.bf16.mxu0 %v11262_v11 }
0x15ca   : > { %10300 = vmatpush3.bf16.msra.mxu0 %v11262_v11 }
0x1698   : > { %v10287_v39 = vpop.f32.mrb[64].mxu0 }
0x1699   : > { %v4332_v43 = vpop.f32.mrb[65].mxu0  ;;  %v4341_v40 = vadd.f32 %v10287_v39, %v9447_v34  ;;  %v11263_v39 = vld [vmem:[%s14202_s26 + $0x30] sm:$0xff]  }
0x169a   : > { %v4333_v47 = vadd.f32 %v9447_v34, %v4332_v43  ;;  %v10288_v42 = vpop.f32.mrb[66].mxu0  ;;  %10301 = vmatprep.subr.bf16.mxu0 %v11263_v39  ;;  %v11264_v43 = vld [vmem:[%s14202_s26 + $0x38] sm:$0xff]  }
0x169b   : > { %v4335_v44 = vpop.f32.mrb[67].mxu0  ;;  %v4348_v52 = vadd.f32 %v4341_v40, %v13117_v55  ;;  %10302 = vmatpush3.bf16.msra.mxu0 %v11263_v39  ;;  %v9470_v40 = vld [vmem:[%s14206_s7 + $0x1] ss:$0 sm:$0xff]  ;;  %s14226_s7 = sld [smem:[#allocation64_spill]] }
0x169c   : > { %v4346_v41 = vadd.f32 %v4333_v47, %v13109_v48  ;;  %v4336_v46 = vadd.f32 %v9447_v34, %v4335_v44  ;;  %v4669_v34 = vpack.c.bf16 %v13423_v30, %v13423_v30  ;;  %10303 = vmatprep.subr.bf16.mxu0 %v11264_v43 }
0x169d   : > { %v4359_v56 = vsel %vm2814_vm9, %v4348_v52, 0.0 }
0x169e   : > { %v4347_v53 = vadd.f32 %v4336_v46, %v13111_v50  ;;  %v4353_v49 = vsel %vm1596_vm0, %v4346_v41, 0.0 }
0x169f   : > { %4354 = vadd.xlane.f32.xlu0 %v4353_v49  ;;  %10304 = vmatpush3.bf16.msra.mxu0 %v11264_v43 }
0x16a0   : > { %v4356_v54 = vsel %vm1596_vm0, %v4347_v53, 0.0  ;;  %10325 = vmatprep.subr.mxu0 %v12187_v22 }
0x16a1   : > { %4357 = vadd.xlane.f32.xlu1 %v4356_v54 }
0x16a3   : > { %4360 = vadd.xlane.f32.xlu0 %v4359_v56 }
0x172c   : > { %v4355_v57 = vpop.xlane.xlu0 %4354 }
0x172d   : > { %v4362_v58 = vmul.f32 0.03125, %v4355_v57  ;;  %v9486_v57 = vld [vmem:[#allocation2] ss:$0 sm:$0xff] }
0x172e   : > { %v4358_v60 = vpop.xlane.xlu1 %4357 }
0x172f   : > { %v4365_v61 = vsub.f32 %v4346_v41, %v4362_v58  ;;  %v4363_v48 = vmul.f32 0.03125, %v4358_v60 }
0x1730   : > { %v4361_v62 = vpop.xlane.xlu0 %4360 }
0x1731   : > { %v4366_v55 = vsub.f32 %v4347_v53, %v4363_v48  ;;  %v4364_v63 = vmul.f32 0.03125, %v4361_v62  ;;  %v4368_v50 = vmul.f32 %v4365_v61, %v4365_v61 }
0x1733   : > { %v4367_v1 = vsub.f32 %v4348_v52, %v4364_v63  ;;  %v4371_v2 = vsel %vm1596_vm0, %v4368_v50, 0.0  ;;  %v4369_v0 = vmul.f32 %v4366_v55, %v4366_v55  ;;  %v11265_v50 = vld [vmem:[%s14225_s6] sm:$0xff]  }
0x1734   : > { %4372 = vadd.xlane.f32.xlu0 %v4371_v2  ;;  %v12197_v2 = vmov 0  }
0x1735   : > { %v4374_v3 = vsel %vm1596_vm0, %v4369_v0, 0.0  ;;  %v4370_v4 = vmul.f32 %v4367_v1, %v4367_v1 }
0x1736   : > { %4375 = vadd.xlane.f32.xlu1 %v4374_v3 }
0x1737   : > { %v4377_v7 = vsel %vm2814_vm9, %v4370_v4, 0.0 }
0x1738   : > { %4378 = vadd.xlane.f32.xlu0 %v4377_v7 }
0x17c1   : > { %v4373_v51 = vpop.xlane.xlu0 %4372 }
0x17c2   : > { %v4380_v5 = vmul.f32 0.03125, %v4373_v51 }
0x17c3   : > { %v4376_v12 = vpop.xlane.xlu1 %4375 }
0x17c4   : > { %v4383_v14 = vadd.f32 1e-05, %v4380_v5  ;;  %v4381_v15 = vmul.f32 0.03125, %v4376_v12 }
0x17c5   : > { %v4379_v21 = vpop.xlane.xlu0 %4378 }
0x17c6   : > { %11411 = vrsqrt.f32 %v4383_v14  ;;  %v4384_v16 = vadd.f32 1e-05, %v4381_v15  ;;  %v4382_v18 = vmul.f32 0.03125, %v4379_v21 }
0x17c8   : > { %11413 = vrsqrt.f32 %v4384_v16  ;;  %v4385_v19 = vadd.f32 1e-05, %v4382_v18 }
0x17ca   : > { %11415 = vrsqrt.f32 %v4385_v19 }
0x17d0   : > { %v11412_v17 = vpop.eup %11411 }
0x17d1   : > { %v4389_v23 = vmul.f32 %v11412_v17, %v4365_v61 }
0x17d2   : > { %v11414_v24 = vpop.eup %11413 }
0x17d3   : > { %v4390_v6 = vmul.f32 %v11414_v24, %v4366_v55  ;;  %v4398_v25 = vmul.f32 %v9454_v20, %v4389_v23 }
0x17d4   : > { %v11416_v26 = vpop.eup %11415 }
0x17d5   : > { %v4391_v29 = vmul.f32 %v11416_v26, %v4367_v1  ;;  %v4399_v59 = vmul.f32 %v9454_v20, %v4390_v6  ;;  %v13406_v33 = vadd.f32 %v9455_v28, %v4398_v25  ;;  %v11266_v1 = vld [vmem:[%s14225_s6 + $0x8] sm:$0xff]  }
0x17d7   : > { %v4400_v31 = vmul.f32 %v9454_v20, %v4391_v29  ;;  %v13408_v35 = vadd.f32 %v9455_v28, %v4399_v59 }
0x17d9   : > { %v13410_v36 = vadd.f32 %v9455_v28, %v4400_v31  ;;  %v4428_v37 = vpack.c.bf16 %v13408_v35, %v13406_v33  ;;  %v9490_v31 = vld [vmem:[#allocation5] ss:$0 sm:$0xff] }
0x17db   : > { %v4429_v45 = vpack.c.bf16 %v13410_v36, %v13410_v36  ;;  %10293 = vmatprep.mubr.msk.bf16.mxu1 %vm1596_vm0, %v4428_v37 }
0x17dd   : > { %10294 = vmatmul.mubr.msk.bf16.vlgmr.msra.gmra.mrb[60].mxu1 %vm1596_vm0, %v4429_v45 }
0x17de   : > { %10310 = vmatpush3.bf16.msra.mxu1 %v11259_v32  ;;  %10313 = vmatprep.mubr.msk.bf16.mxu1 %vm12186_vm1, %v12187_v22 }
0x17df   : > { %10311 = vmatprep.subr.bf16.mxu1 %v12187_v22 }
0x17e2   : > { %10312 = vmatpush3.bf16.msra.mxu1 %v11260_v38 }
0x17e3   : > { %10317 = vmatprep.subr.bf16.mxu1 %v12187_v22 }
0x17e5   : > { %10314 = vmatmul.mubr.msk.bf16.vlgmr.msra.gmra.mrb[64].mxu1 %vm1596_vm0, %v4669_v34 }
0x17e6   : > { %10321 = vmatprep.mubr.msk.bf16.mxu1 %vm12186_vm1, %v12187_v22  ;;  %10318 = vmatpush3.bf16.msra.mxu1 %v11265_v50 }
0x17e7   : > { %10319 = vmatprep.subr.bf16.mxu1 %v12187_v22 }
0x17ea   : > { %10320 = vmatpush3.bf16.msra.mxu1 %v11266_v1 }
0x17eb   : > { %10330 = vmatprep.subr.mxu1 %v12187_v22 }
0x17ed   : > { %10322 = vmatmul.mubr.bf16.vlgmr.msra.gmra.mrb[68].mxu1 %v12197_v2 }
0x17ee   : > { %10332 = vmatprep.mubr.msk.f32.mxu1 %vm12186_vm1, %v12187_v22 }
0x18b0   : > { %v10295_v47 = vpop.f32.mrb[60].mxu1 }
0x18b1   : > { %v4488_v42 = vpop.f32.mrb[61].mxu1  ;;  %v4497_v44 = vadd.f32 %v10295_v47, %v9470_v40 }
0x18b2   : > { %v4489_v41 = vadd.f32 %v9470_v40, %v4488_v42  ;;  %v10296_v46 = vpop.f32.mrb[62].mxu1 }
0x18b3   : > { %v4491_v52 = vpop.f32.mrb[63].mxu1  ;;  %v4504_v49 = vmax.f32 %v4497_v44, 0.0 }
0x18b4   : > { %v4492_v53 = vadd.f32 %v9470_v40, %v4491_v52  ;;  %v4502_v54 = vmax.f32 %v4489_v41, 0.0 }
0x18b5   : > { %v4506_v62 = vpack.c.bf16 %v4504_v49, %v4504_v49 }
0x18b6   : > { %v4503_v56 = vmax.f32 %v4492_v53, 0.0 }
0x18b8   : > { %v4505_v58 = vpack.c.bf16 %v4503_v56, %v4502_v54  ;;  %v4725_v60 = vpop.f32.mrb[64].mxu1 }
0x18b9   : > { %v4726_v61 = vadd.f32 %v9486_v57, %v4725_v60  ;;  %v10315_v48 = vpop.f32.mrb[65].mxu1 }
0x18ba   : > { %10305 = vmatprep.mubr.msk.bf16.mxu0 %vm2990_vm10, %v4505_v58  ;;  %v4728_v55 = vpop.f32.mrb[66].mxu1 }
0x18bb   : > { %4961 = vrot.lane.b32.xlu0 %v4726_v61, %s14214_s22  ;;  %4798 = vrot.lane.b32.xlu1 %v4726_v61, %s14213_s0  ;;  %v10316_v63 = vpop.f32.mrb[67].mxu1 }
0x18bc   : > { %10306 = vmatmul.mubr.msk.bf16.vlgmr.msra.gmra.mrb[68].mxu0 %vm2990_vm10, %v4506_v62 }
0x18bd   : > { %10327 = vmatprep.mubr.msk.f32.mxu0 %vm12186_vm1, %v12187_v22 }
0x18bf   : > { %5126 = vrot.lane.b32.xlu0 %v4726_v61, %s14218_s13  ;;  %4959 = vrot.lane.b32.xlu1 %v4726_v61, %s14216_s4 }
0x18c0   : > { %v4786_v37 = vpop.f32.mrb[68].mxu1 }
0x18c1   : > { %v4787_v32 = vadd.f32 %v9490_v31, %v4786_v37  ;;  %v10323_v45 = vpop.f32.mrb[69].mxu1 }
0x18c2   : > { %v4789_v38 = vpop.f32.mrb[70].mxu1 }
0x18c3   : > { %5292 = vrot.lane.b32.xlu0 %v4726_v61, %s14219_s14  ;;  %5128 = vrot.lane.b32.xlu1 %v4726_v61, %s14215_s3  ;;  %v10324_v34 = vpop.f32.mrb[71].mxu1 }
0x18c4   : > { %10331 = vmatpush3.msra.mxu1 %v4787_v32 }
0x18c5   : > { %10340 = vmatprep.subr.mxu1 %v12187_v22 }
0x18c7   : > { %5294 = vrot.lane.b32.xlu1 %v4726_v61, %s14217_s11 }
0x192d   : > { %v4799_v0 = vpop.permute.xlu1 %4798  ;;  %v4962_v3 = vpop.permute.xlu0 %4961 }
0x192e   : > { %10326 = vmatpush3.xpose.msk.msra.mxu0 %vm1739_vm2, %v4799_v0 }
0x192f   : > { %10335 = vmatprep.subr.mxu0 %v12187_v22 }
0x1931   : > { %v4960_v4 = vpop.permute.xlu1 %4959  ;;  %10328 = vmatmul.mubr.msk.f32.vlgmr.msra.gmra.mrb[72].mxu0 %vm1739_vm2, %v4726_v61  ;;  %v5127_v8 = vpop.permute.xlu0 %5126 }
0x1932   : > { %10336 = vmatpush3.xpose.msk.msra.mxu0 %vm1739_vm2, %v4962_v3  ;;  %10337 = vmatprep.mubr.msk.f32.mxu0 %vm12186_vm1, %v12187_v22 }
0x1933   : > { %10345 = vmatprep.subr.mxu0 %v12187_v22 }
0x1935   : > { %v5129_v7 = vpop.permute.xlu1 %5128  ;;  %10338 = vmatmul.mubr.msk.f32.vlgmr.msra.gmra.mrb[74].mxu0 %vm1739_vm2, %v4960_v4  ;;  %v5293_v10 = vpop.permute.xlu0 %5292 }
0x1936   : > { %10346 = vmatpush3.xpose.msk.msra.mxu0 %vm1739_vm2, %v5129_v7  ;;  %10347 = vmatprep.mubr.msk.f32.mxu0 %vm12186_vm1, %v12187_v22 }
0x1937   : > { %10355 = vmatprep.subr.mxu0 %v12187_v22 }
0x1939   : > { %v5295_v9 = vpop.permute.xlu1 %5294  ;;  %10348 = vmatmul.mubr.msk.f32.vlgmr.msra.gmra.mrb[76].mxu0 %vm1739_vm2, %v5127_v8 }
0x193a   : > { %10356 = vmatpush3.xpose.msk.msra.mxu0 %vm1739_vm2, %v5295_v9  ;;  %10357 = vmatprep.mubr.msk.f32.mxu0 %vm12186_vm1, %v12187_v22 }
0x193b   : > { %10365 = vmatprep.subr.bf16.mxu0 %v12187_v22 }
0x193d   : > { %10358 = vmatmul.mubr.msk.f32.vlgmr.msra.gmra.mrb[78].mxu0 %vm1739_vm2, %v5293_v10 }
0x193e   : > { %10369 = vmatprep.mubr.msk.bf16.mxu0 %vm12186_vm1, %v12187_v22 }
0x198f   : > { %v13473_v11 = vpop.f32.mrb[68].mxu0 }
0x1990   : > { %v13475_v51 = vpop.f32.mrb[69].mxu0 }
0x1991   : > { %v10308_v5 = vpop.f32.mrb[70].mxu0 }
0x1992   : > { %v13477_v12 = vpop.f32.mrb[71].mxu0 }
0x1a04   : > { %v4870_v14 = vpop.f32.mrb[72].mxu0 }
0x1a05   : > { %v4874_v15 = vmul.f32 0.35355338, %v4870_v14  ;;  %v10329_v21 = vpop.f32.mrb[73].mxu0 }
0x1a07   : > { %v4875_v16 = vsel %vm1739_vm2, %v4874_v15, -inf }
0x1a08   : > { %4876 = vmax.xlane.f32.xlu1 %v4875_v16  ;;  %v5033_v18 = vpop.f32.mrb[74].mxu0  ;;  %v11267_v16 = vld [vmem:[%s14226_s7] sm:$0xff]  }
0x1a09   : > { %v5037_v19 = vmul.f32 0.35355338, %v5033_v18  ;;  %v10339_v17 = vpop.f32.mrb[75].mxu0  ;;  %10366 = vmatpush3.bf16.msra.mxu0 %v11267_v16 }
0x1a0a   : > { %10367 = vmatprep.subr.bf16.mxu0 %v12187_v22 }
0x1a0b   : > { %v5038_v20 = vsel %vm1739_vm2, %v5037_v19, -inf }
0x1a0c   : > { %5039 = vmax.xlane.f32.xlu0 %v5038_v20  ;;  %v5200_v23 = vpop.f32.mrb[76].mxu0 }
0x1a0d   : > { %v5204_v24 = vmul.f32 0.35355338, %v5200_v23  ;;  %v10349_v6 = vpop.f32.mrb[77].mxu0 }
0x1a0e   : > { %v9475_v6 = vld [vmem:[%s14208_s8 + $0x1] ss:$0 sm:$0xff]  ;;  %s14227_s8 = sld [smem:[#allocation66_spill]] }
0x1a0f   : > { %v5205_v25 = vsel %vm1739_vm2, %v5204_v24, -inf  ;;  %v4581_v37 = vadd.f32 %v9475_v6, %v13477_v12 }
0x1a10   : > { %5206 = vmax.xlane.f32.xlu0 %v5205_v25  ;;  %v5366_v26 = vpop.f32.mrb[78].mxu0  ;;  %v4578_v25 = vadd.f32 %v9475_v6, %v13475_v51 }
0x1a11   : > { %v5370_v28 = vmul.f32 0.35355338, %v5366_v26  ;;  %v10359_v29 = vpop.f32.mrb[79].mxu0  ;;  %v4592_v45 = vadd.f32 %v4581_v37, %v13408_v35 }
0x1a12   : > { %v4591_v26 = vadd.f32 %v4578_v25, %v13406_v33  ;;  %v11268_v29 = vld [vmem:[%s14226_s7 + $0x8] sm:$0xff]  }
0x1a13   : > { %v5371_v59 = vsel %vm1739_vm2, %v5370_v28, -inf  ;;  %10368 = vmatpush3.bf16.msra.mxu0 %v11268_v29  ;;  %v4601_v51 = vsel %vm1596_vm0, %v4592_v45, 0.0 }
0x1a14   : > { %5372 = vmax.xlane.f32.xlu1 %v5371_v59 }
0x1a95   : > { %v4877_v39 = vpop.xlane.xlu1 %4876 }
0x1a96   : > { %v4878_v43 = vsub.f32 %v4874_v15, %v4877_v39 }
0x1a98   : > { %v4879_v40 = vmul.f32 1.442695, %v4878_v43 }
0x1a99   : > { %v5040_v47 = vpop.xlane.xlu0 %5039 }
0x1a9a   : > { %11417 = vpow2.f32 %v4879_v40  ;;  %v5041_v42 = vsub.f32 %v5037_v19, %v5040_v47 }
0x1a9c   : > { %v5042_v44 = vmul.f32 1.442695, %v5041_v42 }
0x1a9d   : > { %v5207_v41 = vpop.xlane.xlu0 %5206 }
0x1a9e   : > { %11419 = vpow2.f32 %v5042_v44  ;;  %v5208_v46 = vsub.f32 %v5204_v24, %v5207_v41 }
0x1aa0   : > { %v5209_v52 = vmul.f32 1.442695, %v5208_v46 }
0x1aa1   : > { %v5373_v60 = vpop.xlane.xlu1 %5372 }
0x1aa2   : > { %11421 = vpow2.f32 %v5209_v52  ;;  %v5374_v61 = vsub.f32 %v5370_v28, %v5373_v60  ;;  %v4598_v28 = vsel %vm1596_vm0, %v4591_v26, 0.0 }
0x1aa4   : > { %v11418_v53 = vpop.eup %11417  ;;  %v5375_v48 = vmul.f32 1.442695, %v5374_v61 }
0x1aa5   : > { %v4881_v49 = vsel %vm1739_vm2, %v11418_v53, 0.0 }
0x1aa6   : > { %4882 = vadd.xlane.f32.xlu0 %v4881_v49  ;;  %11423 = vpow2.f32 %v5375_v48 }
0x1aa8   : > { %v11420_v54 = vpop.eup %11419 }
0x1aa9   : > { %v5044_v56 = vsel %vm1739_vm2, %v11420_v54, 0.0 }
0x1aaa   : > { %5045 = vadd.xlane.f32.xlu1 %v5044_v56 }
0x1aac   : > { %v11422_v57 = vpop.eup %11421 }
0x1aad   : > { %v5211_v58 = vsel %vm1739_vm2, %v11422_v57, 0.0 }
0x1aae   : > { %5212 = vadd.xlane.f32.xlu0 %v5211_v58  ;;  %v9505_v58 = vld [vmem:[#allocation7] ss:$0 sm:$0xff] }
0x1ab0   : > { %v11424_v62 = vpop.eup %11423 }
0x1ab1   : > { %v5377_v55 = vsel %vm1739_vm2, %v11424_v62, 0.0 }
0x1abb   : > { %5216 = vrot.lane.b32.xlu1 %v4787_v32, %s14218_s13 }
0x1ac4   : > { %5050 = vrot.lane.b32.xlu0 %v4787_v32, %s14216_s4 }
0x1adf   : > { %5378 = vadd.xlane.f32.xlu1 %v5377_v55 }
0x1af0   : > { %5382 = vrot.lane.b32.xlu1 %v4787_v32, %s14219_s14  ;;  %v4586_v32 = vadd.f32 %v13473_v11, %v9475_v6 }
0x1af2   : > { %v4593_v38 = vadd.f32 %v4586_v32, %v13410_v36 }
0x1af4   : > { %v4604_v33 = vsel %vm2814_vm9, %v4593_v38, 0.0 }
0x1b33   : > { %v4883_v63 = vpop.xlane.xlu0 %4882 }
0x1b34   : > { %11425 = vrcp.f32 %v4883_v63 }
0x1b37   : > { %v5046_v50 = vpop.xlane.xlu1 %5045 }
0x1b38   : > { %11427 = vrcp.f32 %v5046_v50 }
0x1b3b   : > { %v5213_v1 = vpop.xlane.xlu0 %5212  ;;  %v5217_v8 = vpop.permute.xlu1 %5216 }
0x1b3c   : > { %11429 = vrcp.f32 %v5213_v1 }
0x1b3e   : > { %v11426_v2 = vpop.eup %11425 }
0x1b3f   : > { %v5051_v0 = vpop.permute.xlu0 %5050  ;;  %v4885_v3 = vmul.f32 %v11426_v2, %v11418_v53 }
0x1b41   : > { %10333 = vmatmul.mubr.msk.f32.vlgmr.msra.gmra.mrb[72].mxu1 %vm1739_vm2, %v4885_v3  ;;  %v11270_v3 = vld [vmem:[#allocation10 + $0x8] sm:$0xff]  }
0x1b42   : > { %v11428_v4 = vpop.eup %11427  ;;  %10341 = vmatpush3.msra.mxu1 %v5051_v0  ;;  %10342 = vmatprep.mubr.msk.f32.mxu1 %vm12186_vm1, %v12187_v22  ;;  %v11269_v0 = vld [vmem:[#allocation10] sm:$0xff]  }
0x1b43   : > { %10350 = vmatprep.subr.mxu1 %v12187_v22  ;;  %v5048_v7 = vmul.f32 %v11428_v4, %v11420_v54  ;;  %10381 = vmatprep.subr.bf16.mxu0 %v11269_v0 }
0x1b45   : > { %10343 = vmatmul.mubr.msk.f32.vlgmr.msra.gmra.mrb[74].mxu1 %vm1739_vm2, %v5048_v7 }
0x1b46   : > { %v11430_v9 = vpop.eup %11429  ;;  %10351 = vmatpush3.msra.mxu1 %v5217_v8  ;;  %10352 = vmatprep.mubr.msk.f32.mxu1 %vm12186_vm1, %v12187_v22 }
0x1b47   : > { %v5215_v10 = vmul.f32 %v11430_v9, %v11422_v57  ;;  %10360 = vmatprep.subr.mxu1 %v12187_v22 }
0x1b49   : > { %10353 = vmatmul.mubr.msk.f32.vlgmr.msra.gmra.mrb[76].mxu1 %vm1739_vm2, %v5215_v10 }
0x1b4a   : > { %10362 = vmatprep.mubr.msk.f32.mxu1 %vm12186_vm1, %v12187_v22 }
0x1b6c   : > { %v5379_v5 = vpop.xlane.xlu1 %5378 }
0x1b6d   : > { %11431 = vrcp.f32 %v5379_v5 }
0x1b70   : > { %v5383_v14 = vpop.permute.xlu1 %5382 }
0x1b71   : > { %10361 = vmatpush3.msra.mxu1 %v5383_v14 }
0x1b72   : > { %10373 = vmatprep.subr.bf16.mxu1 %v12187_v22 }
0x1b77   : > { %v11432_v15 = vpop.eup %11431 }
0x1b78   : > { %v5381_v21 = vmul.f32 %v11432_v15, %v11424_v62 }
0x1b7a   : > { %10363 = vmatmul.mubr.msk.f32.vlgmr.msra.gmra.mrb[78].mxu1 %vm1739_vm2, %v5381_v21 }
0x1b7b   : > { %10377 = vmatprep.mubr.msk.bf16.mxu1 %vm12186_vm1, %v12187_v22 }
0x1c14   : > { %v4955_v18 = vpop.f32.mrb[72].mxu1 }
0x1c15   : > { %v10334_v19 = vpop.f32.mrb[73].mxu1 }
0x1c18   : > { %v5122_v17 = vpop.f32.mrb[74].mxu1 }
0x1c19   : > { %5459 = vrot.lane.b32.xlu0 %v5122_v17, %s14220_s18  ;;  %v10344_v20 = vpop.f32.mrb[75].mxu1 }
0x1c1c   : > { %v5288_v23 = vpop.f32.mrb[76].mxu1 }
0x1c1d   : > { %5463 = vrot.lane.b32.xlu1 %v5288_v23, %s14221_s19  ;;  %v10354_v24 = vpop.f32.mrb[77].mxu1 }
0x1c41   : > { %4599 = vadd.xlane.f32.xlu1 %v4598_v28 }
0x1c4d   : > { %v5454_v59 = vpop.f32.mrb[78].mxu1 }
0x1c4e   : > { %5467 = vrot.lane.b32.xlu0 %v5454_v59, %s14222_s20  ;;  %v10364_v31 = vpop.f32.mrb[79].mxu1 }
0x1c4f   : > { %v9485_v31 = vld [vmem:[%s14212_s12 + $0x1] ss:$0 sm:$0xff] }
0x1c6d   : > { %4602 = vadd.xlane.f32.xlu0 %v4601_v51 }
0x1c71   : > { %4605 = vadd.xlane.f32.xlu0 %v4604_v33  ;;  %v11507_v33 = vld [vmem:[%s14188_s10 + $0x10] sm:$0x3] }
0x1c8b   : > { %v5460_v34 = vpop.permute.xlu0 %5459 }
0x1c8c   : > { %v5470_v43 = vsel %vm1739_vm2, %v4955_v18, %v5460_v34 }
0x1c8f   : > { %v5464_v39 = vpop.permute.xlu1 %5463 }
0x1c90   : > { %v5471_v40 = vsel %vm2721_vm7, %v5470_v43, %v5464_v39  ;;  %v11508_v39 = vld [vmem:[%s14188_s10] sm:$0xff] }
0x1cc0   : > { %v5468_v47 = vpop.permute.xlu0 %5467 }
0x1cc1   : > { %v5472_v12 = vsel %vm2725_vm8, %v5471_v40, %v5468_v47  ;;  %v11509_v40 = vld [vmem:[%s14188_s10 + $0x8] sm:$0xff]  ;;  %s14229_s10 = sld [smem:[#allocation80_spill]] }
0x1cc2   : > { %v5473_v11 = vpack.c.bf16 %v5472_v12, %v5472_v12 }
0x1cc4   : > { %10370 = vmatmul.mubr.msk.bf16.vlgmr.msra.gmra.mrb[80].mxu0 %vm1596_vm0, %v5473_v11 }
0x1cc5   : > { %10382 = vmatpush3.bf16.msra.mxu0 %v11269_v0 }
0x1cc6   : > { %10383 = vmatprep.subr.bf16.mxu0 %v11270_v3 }
0x1cc9   : > { %10384 = vmatpush3.bf16.msra.mxu0 %v11270_v3 }
0x1cca   : > { %10741 = vmatprep.subr.bf16.mxu0 %v12184_v13 }
0x1cce   : > { %v4600_v35 = vpop.xlane.xlu1 %4599 }
0x1ccf   : > { %v4607_v36 = vmul.f32 0.03125, %v4600_v35  ;;  %v11271_v35 = vld [vmem:[%s14227_s8] sm:$0xff]  }
0x1cd0   : > { %10374 = vmatpush3.bf16.msra.mxu1 %v11271_v35 }
0x1cd1   : > { %v4610_v42 = vsub.f32 %v4591_v26, %v4607_v36  ;;  %v9484_v26 = vld [vmem:[%s14210_s9 + $0x1] ss:$0 sm:$0xff]  ;;  %v11272_v36 = vld [vmem:[%s14227_s8 + $0x8] sm:$0xff]   ;;  %10375 = vmatprep.subr.bf16.mxu1 %v12187_v22  ;;  %s14228_s9 = sld [smem:[#allocation78_spill]] }
0x1cd3   : > { %v4613_v44 = vmul.f32 %v4610_v42, %v4610_v42 }
0x1cd4   : > { %10376 = vmatpush3.bf16.msra.mxu1 %v11272_v36 }
0x1cd5   : > { %v4616_v41 = vsel %vm1596_vm0, %v4613_v44, 0.0 }
0x1cd6   : > { %4617 = vadd.xlane.f32.xlu0 %v4616_v41 }
0x1cfa   : > { %v4603_v46 = vpop.xlane.xlu0 %4602 }
0x1cfb   : > { %v4608_v57 = vmul.f32 0.03125, %v4603_v46 }
0x1cfd   : > { %v4611_v60 = vsub.f32 %v4592_v45, %v4608_v57 }
0x1cfe   : > { %v4606_v52 = vpop.xlane.xlu0 %4605 }
0x1cff   : > { %v4609_v53 = vmul.f32 0.03125, %v4606_v52  ;;  %v4614_v1 = vmul.f32 %v4611_v60, %v4611_v60 }
0x1d01   : > { %v4612_v49 = vsub.f32 %v4593_v38, %v4609_v53  ;;  %v4619_v2 = vsel %vm1596_vm0, %v4614_v1, 0.0  ;;  %v9509_v53 = vld [vmem:[#allocation19] ss:$0 sm:$0xff] }
0x1d03   : > { %v4615_v54 = vmul.f32 %v4612_v49, %v4612_v49 }
0x1d05   : > { %v4622_v56 = vsel %vm2814_vm9, %v4615_v54, 0.0  ;;  %v9510_v54 = vld [vmem:[#allocation20] ss:$0 sm:$0xff] }
0x1d06   : > { %4623 = vadd.xlane.f32.xlu0 %v4622_v56 }
0x1d63   : > { %v4618_v4 = vpop.xlane.xlu0 %4617 }
0x1d64   : > { %v4625_v9 = vmul.f32 0.03125, %v4618_v4 }
0x1d66   : > { %v4628_v5 = vadd.f32 1e-05, %v4625_v9 }
0x1d93   : > { %v4624_v7 = vpop.xlane.xlu0 %4623 }
0x1d94   : > { %v4627_v8 = vmul.f32 0.03125, %v4624_v7 }
0x1d96   : > { %v4630_v10 = vadd.f32 1e-05, %v4627_v8  ;;  %v9511_v8 = vld [vmem:[#allocation8] ss:$0 sm:$0xff] }
0x1d97   : > { %v5529_v61 = vpop.f32.mrb[80].mxu0 }
0x1d98   : > { %v5530_v48 = vadd.f32 %v9505_v58, %v5529_v61  ;;  %v10371_v62 = vpop.f32.mrb[81].mxu0  ;;  %11433 = vrsqrt.f32 %v4630_v10  ;;  %v11274_v61 = vld [vmem:[#allocation13 + $0x8] sm:$0xff]  }
0x1d99   : > { %v5532_v55 = vpop.f32.mrb[82].mxu0  ;;  %11435 = vrsqrt.f32 %v4628_v5 }
0x1d9a   : > { %v10372_v63 = vpop.f32.mrb[83].mxu0  ;;  %v5538_v50 = vsel %vm1596_vm0, %v5530_v48, 0.0 }
0x1d9b   : > { %5539 = vadd.xlane.f32.xlu1 %v5538_v50 }
0x1d9f   : > { %4620 = vadd.xlane.f32.xlu1 %v4619_v2 }
0x1da2   : > { %v11434_v23 = vpop.eup %11433 }
0x1da3   : > { %v11436_v24 = vpop.eup %11435  ;;  %v4636_v6 = vmul.f32 %v11434_v23, %v4612_v49 }
0x1da4   : > { %v4634_v25 = vmul.f32 %v11436_v24, %v4610_v42  ;;  %v11273_v42 = vld [vmem:[#allocation13] sm:$0xff]  }
0x1da5   : > { %v4645_v28 = vmul.f32 %v9484_v26, %v4636_v6  ;;  %10389 = vmatprep.subr.bf16.mxu1 %v11273_v42 }
0x1da6   : > { %v4643_v29 = vmul.f32 %v9484_v26, %v4634_v25 }
0x1da7   : > { %v4654_v32 = vadd.f32 %v9485_v31, %v4645_v28 }
0x1da8   : > { %v4652_v38 = vadd.f32 %v9485_v31, %v4643_v29 }
0x1da9   : > { %v4657_v34 = vadd.f32 %v11507_v33, %v4654_v32  ;;  %v13559_v62 = vpack.c.bf16 %v4654_v32, %v4654_v32 }
0x1daa   : > { %v4655_v43 = vadd.f32 %v11508_v39, %v4652_v38 }
0x1dab   : > { %v13539_v11 = vpack.c.bf16 %v4657_v34, %v4657_v34 }
0x1e28   : > { %v5540_v14 = vpop.xlane.xlu1 %5539 }
0x1e29   : > { %v5541_v15 = vmul.f32 0.03125, %v5540_v14 }
0x1e2b   : > { %v5542_v21 = vsub.f32 %v5530_v48, %v5541_v15 }
0x1e2c   : > { %v4621_v16 = vpop.xlane.xlu1 %4620 }
0x1e2d   : > { %v4626_v18 = vmul.f32 0.03125, %v4621_v16  ;;  %v5543_v19 = vmul.f32 %v5542_v21, %v5542_v21  ;;  %v9520_v16 = vld [vmem:[#allocation14] ss:$0 sm:$0xff] }
0x1e2f   : > { %v4629_v17 = vadd.f32 1e-05, %v4626_v18  ;;  %v5544_v20 = vsel %vm1596_vm0, %v5543_v19, 0.0 }
0x1e30   : > { %5545 = vadd.xlane.f32.xlu1 %v5544_v20 }
0x1e31   : > { %11437 = vrsqrt.f32 %v4629_v17 }
0x1e3b   : > { %v11438_v59 = vpop.eup %11437 }
0x1e3c   : > { %v4635_v37 = vmul.f32 %v11438_v59, %v4611_v60 }
0x1e3e   : > { %v4644_v45 = vmul.f32 %v9484_v26, %v4635_v37 }
0x1e40   : > { %v4653_v51 = vadd.f32 %v9485_v31, %v4644_v45 }
0x1e42   : > { %v4656_v47 = vadd.f32 %v11509_v40, %v4653_v51  ;;  %v13554_v48 = vpack.c.bf16 %v4653_v51, %v4652_v38 }
0x1e44   : > { %v13537_v12 = vpack.c.bf16 %v4656_v47, %v4655_v43 }
0x1e46   : > { %10385 = vmatprep.mubr.msk.bf16.mxu0 %vm1596_vm0, %v13537_v12 }
0x1e47   : > { %10386 = vmatmul.mubr.msk.bf16.vlgmr.msra.gmra.mrb[84].mxu0 %vm1596_vm0, %v13539_v11 }
0x1e48   : > { %10403 = vmatprep.mubr.msk.f32.mxu0 %vm12186_vm1, %v12187_v22 }
0x1ebd   : > { %v5546_v44 = vpop.xlane.xlu1 %5545 }
0x1ebe   : > { %v5547_v41 = vmul.f32 0.03125, %v5546_v44 }
0x1ec0   : > { %v5548_v46 = vadd.f32 1e-05, %v5547_v41 }
0x1ec2   : > { %11439 = vrsqrt.f32 %v5548_v46 }
0x1ecc   : > { %v11440_v52 = vpop.eup %11439 }
0x1ecd   : > { %v5550_v49 = vmul.f32 %v11440_v52, %v5542_v21 }
0x1ecf   : > { %v5557_v56 = vmul.f32 %v9509_v53, %v5550_v49 }
0x1ed1   : > { %v13550_v57 = vadd.f32 %v9510_v54, %v5557_v56 }
0x1ed3   : > { %v5565_v58 = vadd.f32 %v13550_v57, %v13423_v30  ;;  %v9515_v30 = vld [vmem:[#allocation11] ss:$0 sm:$0xff] }
0x1ed5   : > { %v5571_v60 = vpack.c.bf16 %v5565_v58, %v5565_v58 }
0x1ed7   : > { %10378 = vmatmul.mubr.msk.bf16.vlgmr.msra.gmra.mrb[80].mxu1 %vm1596_vm0, %v5571_v60 }
0x1ed8   : > { %10390 = vmatpush3.bf16.msra.mxu1 %v11273_v42  ;;  %10393 = vmatprep.mubr.msk.bf16.mxu1 %vm1596_vm0, %v13554_v48 }
0x1ed9   : > { %10391 = vmatprep.subr.bf16.mxu1 %v11274_v61 }
0x1edc   : > { %10392 = vmatpush3.bf16.msra.mxu1 %v11274_v61 }
0x1edd   : > { %10745 = vmatprep.subr.bf16.mxu1 %v12184_v13 }
0x1edf   : > { %10394 = vmatmul.mubr.msk.bf16.vlgmr.msra.gmra.mrb[84].mxu1 %vm1596_vm0, %v13559_v62 }
0x1ee0   : > { %10412 = vmatprep.mubr.msk.f32.mxu1 %vm12186_vm1, %v12187_v22 }
0x1f1a   : > { %v10387_v55 = vpop.f32.mrb[84].mxu0 }
0x1f1b   : > { %v13566_v63 = vadd.f32 %v10387_v55, %v9515_v30  ;;  %v5698_v50 = vpop.f32.mrb[85].mxu0 }
0x1f1c   : > { %v10388_v1 = vpop.f32.mrb[86].mxu0  ;;  %v5699_v0 = vadd.f32 %v9515_v30, %v5698_v50 }
0x1f1d   : > { %5972 = vrot.lane.b32.xlu1 %v13566_v63, %s14216_s4  ;;  %v5701_v2 = vpop.f32.mrb[87].mxu0 }
0x1f1e   : > { %v5702_v3 = vadd.f32 %v9515_v30, %v5701_v2 }
0x1f20   : > { %v10742_v4 = vpack.c.bf16 %v5702_v3, %v5699_v0  ;;  %v13570_v7 = vpack.i.bf16 %v5702_v3, %v5699_v0 }
0x1f22   : > { %10744 = vmatpush3.bf16.xpose.msk.msra.mxu0 %vm12819_vm3, %v10742_v4 }
0x1f23   : > { %10401 = vmatprep.subr.mxu0 %v12187_v22 }
0x1f2a   : > { %10402 = vmatpush3.xpose.msk.msra.mxu0 %vm1739_vm2, %v13566_v63 }
0x1f2b   : > { %10755 = vmatprep.subr.bf16.mxu0 %v12184_v13 }
0x1f8f   : > { %v5973_v51 = vpop.permute.xlu1 %5972 }
0x1faa   : > { %v5627_v9 = vpop.f32.mrb[80].mxu1 }
0x1fab   : > { %v13578_v10 = vadd.f32 %v9511_v8, %v5627_v9  ;;  %v10379_v5 = vpop.f32.mrb[81].mxu1 }
0x1fac   : > { %v5630_v14 = vpop.f32.mrb[82].mxu1 }
0x1fad   : > { %v10380_v15 = vpop.f32.mrb[83].mxu1  ;;  %10404 = vmatmul.mubr.msk.f32.vlgmr.msra.gmra.mrb[88].mxu0 %vm1739_vm2, %v13578_v10 }
0x1fae   : > { %10439 = vmatprep.mubr.msk.f32.mxu0 %vm12186_vm1, %v12187_v22 }
0x1fb2   : > { %v10395_v21 = vpop.f32.mrb[84].mxu1 }
0x1fb3   : > { %v5777_v18 = vpop.f32.mrb[85].mxu1  ;;  %v13587_v25 = vadd.f32 %v10395_v21, %v9520_v16 }
0x1fb4   : > { %v10396_v19 = vpop.f32.mrb[86].mxu1  ;;  %v5778_v20 = vadd.f32 %v9520_v16, %v5777_v18 }
0x1fb5   : > { %v5780_v17 = vpop.f32.mrb[87].mxu1 }
0x1fb6   : > { %v5781_v23 = vadd.f32 %v9520_v16, %v5780_v17 }
0x1fb8   : > { %v10746_v24 = vpack.c.bf16 %v5781_v23, %v5778_v20  ;;  %v13584_v6 = vpack.i.bf16 %v5781_v23, %v5778_v20 }
0x1fba   : > { %10747 = vmatpush3.bf16.msra.mxu1 %v10746_v24 }
0x1fbb   : > { %10410 = vmatprep.subr.mxu1 %v12187_v22 }
0x1fbe   : > { %10411 = vmatpush3.msk.msra.mxu1 %vm1879_vm6, %v13587_v25 }
0x1fbf   : > { %10748 = vmatprep.subr.bf16.mxu1 %v12184_v13 }
0x2080   : > { %v5874_v26 = vpop.f32.mrb[88].mxu0 }
0x2081   : > { %v5878_v28 = vmul.f32 0.35355338, %v5874_v26  ;;  %v10405_v29 = vpop.f32.mrb[89].mxu0 }
0x2083   : > { %v5879_v59 = vsel %vm1835_vm4, %v5878_v28, -inf }
0x2084   : > { %5880 = vmax.xlane.f32.xlu0 %v5879_v59 }
0x209a   : > { %11180 = vrot.lane.b32.xlu0 %v13570_v7, %s14216_s4 }
0x209e   : > { %5966 = vrot.lane.b32.xlu0 %v13578_v10, %s14216_s4 }
0x20a2   : > { %6149 = vrot.lane.b32.xlu0 %v13578_v10, %s14218_s13 }
0x2111   : > { %v5881_v31 = vpop.xlane.xlu0 %5880 }
0x2112   : > { %v5882_v37 = vsub.f32 %v5878_v28, %v5881_v31 }
0x2114   : > { %v5883_v32 = vmul.f32 1.442695, %v5882_v37 }
0x2115   : > { %v11181_v40 = vpop.permute.xlu0 %11180 }
0x2116   : > { %11441 = vpow2.f32 %v5883_v32  ;;  %v11183_v35 = vunpack.i.h.bf16 %v11181_v40  ;;  %v11182_v36 = vunpack.i.l.bf16 %v11181_v40 }
0x2118   : > { %v10749_v41 = vpack.c.bf16 %v11183_v35, %v11182_v36 }
0x2119   : > { %v5967_v46 = vpop.permute.xlu0 %5966 }
0x211d   : > { %v6150_v53 = vpop.permute.xlu0 %6149 }
0x2120   : > { %v11442_v45 = vpop.eup %11441 }
0x2121   : > { %v5885_v38 = vsel %vm1835_vm4, %v11442_v45, 0.0 }
0x2122   : > { %5886 = vadd.xlane.f32.xlu1 %v5885_v38 }
0x2133   : > { %11185 = vrot.lane.b32.xlu1 %v13570_v7, %s14218_s13 }
0x2137   : > { %6155 = vrot.lane.b32.xlu1 %v13566_v63, %s14218_s13 }
0x21af   : > { %v5887_v33 = vpop.xlane.xlu1 %5886 }
0x21b0   : > { %11443 = vrcp.f32 %v5887_v33 }
0x21b3   : > { %v11186_v34 = vpop.permute.xlu1 %11185 }
0x21b4   : > { %v11188_v39 = vunpack.i.h.bf16 %v11186_v34  ;;  %v11187_v43 = vunpack.i.l.bf16 %v11186_v34 }
0x21b6   : > { %v10756_v47 = vpack.c.bf16 %v11188_v39, %v11187_v43 }
0x21b7   : > { %v6156_v52 = vpop.permute.xlu1 %6155 }
0x21b8   : > { %10758 = vmatpush3.bf16.xpose.msk.msra.mxu0 %vm12819_vm3, %v10756_v47 }
0x21b9   : > { %10437 = vmatprep.subr.mxu0 %v12187_v22 }
0x21ba   : > { %v11444_v42 = vpop.eup %11443 }
0x21bb   : > { %v5889_v44 = vmul.f32 %v11444_v42, %v11442_v45 }
0x21bd   : > { %10413 = vmatmul.mubr.msk.f32.vlgmr.msra.gmra.mrb[88].mxu1 %vm1835_vm4, %v5889_v44 }
0x21be   : > { %10751 = vmatpush3.bf16.xpose.msk.msra.mxu1 %vm12819_vm3, %v10749_v41  ;;  %10421 = vmatprep.mubr.msk.f32.mxu1 %vm12186_vm1, %v12187_v22 }
0x21bf   : > { %10419 = vmatprep.subr.mxu1 %v12187_v22 }
0x21c0   : > { %10438 = vmatpush3.xpose.msk.msra.mxu0 %vm1739_vm2, %v6156_v52 }
0x21c1   : > { %10766 = vmatprep.subr.bf16.mxu0 %v12184_v13 }
0x21c3   : > { %10440 = vmatmul.mubr.msk.f32.vlgmr.msra.gmra.mrb[90].mxu0 %vm1739_vm2, %v6150_v53 }
0x21c4   : > { %10466 = vmatprep.mubr.msk.f32.mxu0 %vm12186_vm1, %v12187_v22 }
0x21c6   : > { %10420 = vmatpush3.xpose.msk.msra.mxu1 %vm1739_vm2, %v5973_v51 }
0x21c7   : > { %10752 = vmatprep.subr.bf16.mxu1 %v12184_v13 }
0x21c9   : > { %10422 = vmatmul.mubr.msk.f32.vlgmr.msra.gmra.mrb[90].mxu1 %vm1739_vm2, %v5967_v46 }
0x21ca   : > { %10430 = vmatprep.mubr.msk.f32.mxu1 %vm12186_vm1, %v12187_v22 }
0x2290   : > { %v13623_v49 = vpop.f32.mrb[88].mxu1 }
0x2291   : > { %v10414_v54 = vpop.f32.mrb[89].mxu1 }
0x2296   : > { %v6231_v56 = vpop.f32.mrb[90].mxu0 }
0x2297   : > { %v6235_v58 = vmul.f32 0.35355338, %v6231_v56  ;;  %v10441_v60 = vpop.f32.mrb[91].mxu0 }
0x2299   : > { %v6236_v61 = vsel %vm1835_vm4, %v6235_v58, -inf }
0x229a   : > { %6237 = vmax.xlane.f32.xlu0 %v6236_v61 }
0x229c   : > { %v6048_v30 = vpop.f32.mrb[90].mxu1 }
0x229d   : > { %v6052_v55 = vmul.f32 0.35355338, %v6048_v30  ;;  %v10423_v50 = vpop.f32.mrb[91].mxu1 }
0x229f   : > { %v6053_v1 = vsel %vm1835_vm4, %v6052_v55, -inf }
0x22a0   : > { %6054 = vmax.xlane.f32.xlu1 %v6053_v1  ;;  %v11275_v1 = vld [vmem:[#allocation16] sm:$0xff]  }
0x22b0   : > { %11190 = vrot.lane.b32.xlu0 %v13584_v6, %s14216_s4 }
0x2327   : > { %v6238_v2 = vpop.xlane.xlu0 %6237 }
0x2328   : > { %v6239_v0 = vsub.f32 %v6235_v58, %v6238_v2 }
0x232a   : > { %v6240_v3 = vmul.f32 1.442695, %v6239_v0 }
0x232b   : > { %v11191_v4 = vpop.permute.xlu0 %11190 }
0x232c   : > { %11445 = vpow2.f32 %v6240_v3  ;;  %v11193_v8 = vunpack.i.h.bf16 %v11191_v4  ;;  %v11192_v9 = vunpack.i.l.bf16 %v11191_v4 }
0x232d   : > { %v6055_v5 = vpop.xlane.xlu1 %6054 }
0x232e   : > { %v10753_v14 = vpack.c.bf16 %v11193_v8, %v11192_v9  ;;  %v6056_v15 = vsub.f32 %v6052_v55, %v6055_v5 }
0x2330   : > { %v6057_v21 = vmul.f32 1.442695, %v6056_v15  ;;  %10754 = vmatpush3.bf16.msra.mxu1 %v10753_v14 }
0x2331   : > { %10428 = vmatprep.subr.mxu1 %v12187_v22 }
0x2332   : > { %11447 = vpow2.f32 %v6057_v21  ;;  %v9549_v21 = vld [vmem:[#allocation17] ss:$0 sm:$0xff] }
0x2336   : > { %v11446_v16 = vpop.eup %11445 }
0x2337   : > { %v6242_v18 = vsel %vm1835_vm4, %v11446_v16, 0.0 }
0x2338   : > { %6243 = vadd.xlane.f32.xlu1 %v6242_v18 }
0x233c   : > { %v11448_v19 = vpop.eup %11447 }
0x233d   : > { %v6059_v17 = vsel %vm1835_vm4, %v11448_v19, 0.0 }
0x233e   : > { %6060 = vadd.xlane.f32.xlu0 %v6059_v17 }
0x2349   : > { %6070 = vrot.lane.b32.xlu1 %v13587_v25, %s14216_s4 }
0x234d   : > { %11195 = vrot.lane.b32.xlu1 %v13584_v6, %s14218_s13 }
0x2351   : > { %11200 = vrot.lane.b32.xlu1 %v13570_v7, %s14219_s14 }
0x2354   : > { %6251 = vrot.lane.b32.xlu0 %v13587_v25, %s14218_s13 }
0x2355   : > { %6330 = vrot.lane.b32.xlu1 %v13578_v10, %s14219_s14 }
0x2358   : > { %6336 = vrot.lane.b32.xlu0 %v13566_v63, %s14219_s14 }
0x23c5   : > { %v6244_v20 = vpop.xlane.xlu1 %6243 }
0x23c9   : > { %v6071_v23 = vpop.permute.xlu1 %6070 }
0x23ca   : > { %10429 = vmatpush3.msk.msra.mxu1 %vm1879_vm6, %v6071_v23 }
0x23cb   : > { %v6061_v24 = vpop.xlane.xlu0 %6060  ;;  %10759 = vmatprep.subr.bf16.mxu1 %v12184_v13 }
0x23cc   : > { %11449 = vrcp.f32 %v6061_v24 }
0x23cd   : > { %11451 = vrcp.f32 %v6244_v20  ;;  %v11196_v26 = vpop.permute.xlu1 %11195 }
0x23ce   : > { %v11198_v7 = vunpack.i.h.bf16 %v11196_v26  ;;  %v11197_v28 = vunpack.i.l.bf16 %v11196_v26 }
0x23cf   : > { %v6252_v32 = vpop.permute.xlu0 %6251 }
0x23d0   : > { %v10760_v31 = vpack.c.bf16 %v11198_v7, %v11197_v28 }
0x23d1   : > { %v11201_v63 = vpop.permute.xlu1 %11200 }
0x23d2   : > { %v11203_v45 = vunpack.i.h.bf16 %v11201_v63  ;;  %v11202_v38 = vunpack.i.l.bf16 %v11201_v63 }
0x23d3   : > { %v6337_v33 = vpop.permute.xlu0 %6336 }
0x23d4   : > { %v10763_v51 = vpack.c.bf16 %v11203_v45, %v11202_v38  ;;  %v9553_v38 = vld [vmem:[#allocation22] ss:$0 sm:$0xff] }
0x23d5   : > { %v6331_v34 = vpop.permute.xlu1 %6330 }
0x23d6   : > { %v11450_v29 = vpop.eup %11449 }
0x23d7   : > { %v6063_v59 = vmul.f32 %v11450_v29, %v11448_v19  ;;  %v11452_v10 = vpop.eup %11451 }
0x23d8   : > { %v6246_v37 = vmul.f32 %v11452_v10, %v11446_v16  ;;  %v11280_v10 = vld [vmem:[%s14229_s10 + $0x8] sm:$0xff]  }
0x23d9   : > { %10431 = vmatmul.mubr.msk.f32.vlgmr.msra.gmra.mrb[92].mxu1 %vm1835_vm4, %v6063_v59  ;;  %v11277_v59 = vld [vmem:[%s14228_s9] sm:$0xff]  }
0x23da   : > { %10761 = vmatpush3.bf16.msra.mxu1 %v10760_v31  ;;  %10448 = vmatprep.mubr.msk.f32.mxu1 %vm12186_vm1, %v12187_v22  ;;  %v11278_v31 = vld [vmem:[%s14228_s9 + $0x8] sm:$0xff]  }
0x23db   : > { %10446 = vmatprep.subr.mxu1 %v12187_v22 }
0x23de   : > { %10447 = vmatpush3.msk.msra.mxu1 %vm1879_vm6, %v6252_v32 }
0x23df   : > { %10449 = vmatmul.mubr.msk.f32.vlgmr.msra.gmra.mrb[94].mxu1 %vm1835_vm4, %v6246_v37  ;;  %10762 = vmatprep.subr.bf16.mxu1 %v12184_v13 }
0x23e0   : > { %10457 = vmatprep.mubr.msk.f32.mxu1 %vm12186_vm1, %v12187_v22 }
0x23e5   : > { %10765 = vmatpush3.bf16.xpose.msk.msra.mxu1 %vm12819_vm3, %v10763_v51 }
0x23e6   : > { %10455 = vmatprep.subr.mxu1 %v12187_v22 }
0x23ed   : > { %10456 = vmatpush3.xpose.msk.msra.mxu1 %vm1739_vm2, %v6337_v33  ;;  %v9554_v33 = vld [vmem:[#allocation23] ss:$0 sm:$0xff] }
0x23ee   : > { %10477 = vmatprep.subr.bf16.mxu1 %v12187_v22 }
0x23f0   : > { %10458 = vmatmul.mubr.msk.f32.vlgmr.msra.gmra.mrb[96].mxu1 %vm1739_vm2, %v6331_v34 }
0x23f1   : > { %10481 = vmatprep.mubr.msk.bf16.mxu1 %vm12186_vm1, %v12187_v22  ;;  %10478 = vmatpush3.bf16.msra.mxu1 %v11277_v59 }
0x23f2   : > { %10479 = vmatprep.subr.bf16.mxu1 %v12187_v22 }
0x23f5   : > { %10480 = vmatpush3.bf16.msra.mxu1 %v11278_v31 }
0x23f6   : > { %10497 = vmatprep.subr.bf16.mxu1 %v12187_v22 }
0x24ac   : > { %v6145_v39 = vpop.f32.mrb[92].mxu1 }
0x24ad   : > { %v10432_v43 = vpop.f32.mrb[93].mxu1 }
0x24b2   : > { %v6326_v40 = vpop.f32.mrb[94].mxu1 }
0x24b3   : > { %v10450_v47 = vpop.f32.mrb[95].mxu1 }
0x24b4   : > { %v11282_v47 = vld [vmem:[%s14229_s10 + $0x18] sm:$0xff]  }
0x24c3   : > { %v6412_v35 = vpop.f32.mrb[96].mxu1 }
0x24c4   : > { %v6416_v36 = vmul.f32 0.35355338, %v6412_v35  ;;  %v10459_v42 = vpop.f32.mrb[97].mxu1  ;;  %v9555_v35 = vld [vmem:[#allocation28] ss:$0 sm:$0xff] }
0x24c6   : > { %v6417_v44 = vsel %vm1835_vm4, %v6416_v36, -inf }
0x24c7   : > { %6418 = vmax.xlane.f32.xlu0 %v6417_v44 }
0x24dd   : > { %11205 = vrot.lane.b32.xlu0 %v13584_v6, %s14219_s14 }
0x24e1   : > { %6512 = vrot.lane.b32.xlu0 %v6145_v39, %s14220_s18 }
0x2554   : > { %v6419_v41 = vpop.xlane.xlu0 %6418 }
0x2555   : > { %v6420_v46 = vsub.f32 %v6416_v36, %v6419_v41 }
0x2557   : > { %v6421_v52 = vmul.f32 1.442695, %v6420_v46 }
0x2558   : > { %v11206_v53 = vpop.permute.xlu0 %11205 }
0x2559   : > { %11453 = vpow2.f32 %v6421_v52  ;;  %v11208_v54 = vunpack.i.h.bf16 %v11206_v53  ;;  %v11207_v56 = vunpack.i.l.bf16 %v11206_v53 }
0x255b   : > { %v10767_v58 = vpack.c.bf16 %v11208_v54, %v11207_v56  ;;  %v9559_v54 = vld [vmem:[#allocation29] ss:$0 sm:$0xff] }
0x255c   : > { %v6513_v3 = vpop.permute.xlu0 %6512 }
0x255d   : > { %10768 = vmatpush3.bf16.msra.mxu0 %v10767_v58  ;;  %v6523_v8 = vsel %vm1739_vm2, %v13623_v49, %v6513_v3  ;;  %v11283_v3 = vld [vmem:[%s14223_s1 + $0x10] sm:$0xff]  }
0x255e   : > { %10464 = vmatprep.subr.mxu0 %v12187_v22 }
0x2563   : > { %v11454_v60 = vpop.eup %11453 }
0x2564   : > { %v6423_v61 = vsel %vm1835_vm4, %v11454_v60, 0.0 }
0x2565   : > { %6424 = vadd.xlane.f32.xlu1 %v6423_v61 }
0x2576   : > { %6432 = vrot.lane.b32.xlu1 %v13587_v25, %s14219_s14  ;;  %v11276_v25 = vld [vmem:[#allocation16 + $0x8] sm:$0xff]  }
0x257a   : > { %6516 = vrot.lane.b32.xlu1 %v6326_v40, %s14221_s19  ;;  %v11281_v40 = vld [vmem:[%s14229_s10 + $0x10] sm:$0xff]  }
0x25f2   : > { %v6425_v6 = vpop.xlane.xlu1 %6424 }
0x25f3   : > { %11455 = vrcp.f32 %v6425_v6 }
0x25f6   : > { %v6433_v30 = vpop.permute.xlu1 %6432 }
0x25f7   : > { %10465 = vmatpush3.msk.msra.mxu0 %vm1879_vm6, %v6433_v30 }
0x25f8   : > { %10469 = vmatprep.subr.bf16.mxu0 %v12187_v22 }
0x25fa   : > { %v6517_v4 = vpop.permute.xlu1 %6516 }
0x25fb   : > { %v6524_v9 = vsel %vm2721_vm7, %v6523_v8, %v6517_v4  ;;  %v11284_v4 = vld [vmem:[%s14223_s1 + $0x18] sm:$0xff]  }
0x25fd   : > { %v11456_v55 = vpop.eup %11455 }
0x25fe   : > { %v6427_v50 = vmul.f32 %v11456_v55, %v11454_v60 }
0x2600   : > { %10467 = vmatmul.mubr.msk.f32.vlgmr.msra.gmra.mrb[92].mxu0 %vm1835_vm4, %v6427_v50 }
0x2601   : > { %10473 = vmatprep.mubr.msk.bf16.mxu0 %vm12186_vm1, %v12187_v22  ;;  %10470 = vmatpush3.bf16.msra.mxu0 %v11275_v1 }
0x2602   : > { %10471 = vmatprep.subr.bf16.mxu0 %v12187_v22 }
0x2605   : > { %10472 = vmatpush3.bf16.msra.mxu0 %v11276_v25 }
0x2606   : > { %10485 = vmatprep.subr.bf16.mxu0 %v12187_v22 }
0x26d3   : > { %v6507_v2 = vpop.f32.mrb[92].mxu0 }
0x26d4   : > { %6520 = vrot.lane.b32.xlu0 %v6507_v2, %s14222_s20  ;;  %v10468_v0 = vpop.f32.mrb[93].mxu0 }
0x2746   : > { %v6521_v5 = vpop.permute.xlu0 %6520 }
0x2747   : > { %v6525_v14 = vsel %vm2725_vm8, %v6524_v9, %v6521_v5 }
0x2748   : > { %v6526_v15 = vpack.c.bf16 %v6525_v14, %v6525_v14 }
0x274a   : > { %10474 = vmatmul.mubr.msk.bf16.vlgmr.msra.gmra.mrb[96].mxu0 %vm1596_vm0, %v6526_v15  ;;  %v9565_v15 = vld [vmem:[#allocation25] ss:$0 sm:$0xff] }
0x274b   : > { %10493 = vmatprep.mubr.msk.bf16.mxu0 %vm12186_vm1, %v12187_v22 }
0x281d   : > { %v6582_v16 = vpop.f32.mrb[96].mxu0 }
0x281e   : > { %v6583_v18 = vadd.f32 %v9549_v21, %v6582_v16  ;;  %v10475_v19 = vpop.f32.mrb[97].mxu0  ;;  %v9566_v16 = vld [vmem:[#allocation26] ss:$0 sm:$0xff] }
0x281f   : > { %v6585_v17 = vpop.f32.mrb[98].mxu0 }
0x2820   : > { %v6588_v49 = vadd.f32 %v6583_v18, %v13550_v57  ;;  %v10476_v20 = vpop.f32.mrb[99].mxu0  ;;  %v11279_v57 = vld [vmem:[%s14229_s10] sm:$0xff]  }
0x2821   : > { %10486 = vmatpush3.bf16.msra.mxu0 %v11279_v57  ;;  %v13717_v17 = vld [vmem:[%s14224_s2] sm:$0xff]  ;;  %v11285_v20 = vld [vmem:[%s14225_s6 + $0x10] sm:$0xff]  }
0x2822   : > { %v6591_v23 = vsel %vm1596_vm0, %v6588_v49, 0.0  ;;  %10487 = vmatprep.subr.bf16.mxu0 %v12187_v22 }
0x2823   : > { %6592 = vadd.xlane.f32.xlu1 %v6591_v23 }
0x2825   : > { %10488 = vmatpush3.bf16.msra.mxu0 %v11280_v10  ;;  %v9579_v10 = vld [vmem:[#allocation5 + $0x1] ss:$0 sm:$0xff] }
0x2826   : > { %10489 = vmatprep.subr.bf16.mxu0 %v12187_v22 }
0x2829   : > { %10490 = vmatpush3.bf16.msra.mxu0 %v11281_v40 }
0x282a   : > { %10491 = vmatprep.subr.bf16.mxu0 %v12187_v22 }
0x282d   : > { %10492 = vmatpush3.bf16.msra.mxu0 %v11282_v47 }
0x282e   : > { %10513 = vmatprep.subr.mxu0 %v12187_v22 }
0x28b0   : > { %v6593_v24 = vpop.xlane.xlu1 %6592 }
0x28b1   : > { %v6594_v26 = vmul.f32 0.03125, %v6593_v24  ;;  %v11286_v24 = vld [vmem:[%s14225_s6 + $0x18] sm:$0xff]  }
0x28b3   : > { %v6595_v7 = vsub.f32 %v6588_v49, %v6594_v26 }
0x28b5   : > { %v6596_v28 = vmul.f32 %v6595_v7, %v6595_v7 }
0x28b7   : > { %v6597_v29 = vsel %vm1596_vm0, %v6596_v28, 0.0 }
0x28b8   : > { %6598 = vadd.xlane.f32.xlu0 %v6597_v29 }
0x2945   : > { %v6599_v63 = vpop.xlane.xlu0 %6598 }
0x2946   : > { %v6600_v37 = vmul.f32 0.03125, %v6599_v63 }
0x2948   : > { %v6601_v32 = vadd.f32 1e-05, %v6600_v37 }
0x294a   : > { %11457 = vrsqrt.f32 %v6601_v32 }
0x2954   : > { %v11458_v45 = vpop.eup %11457 }
0x2955   : > { %v6603_v51 = vmul.f32 %v11458_v45, %v6595_v7  ;;  %v9575_v7 = vld [vmem:[#allocation2 + $0x1] ss:$0 sm:$0xff] }
0x2957   : > { %v6610_v34 = vmul.f32 %v9553_v38, %v6603_v51 }
0x2959   : > { %v6617_v39 = vadd.f32 %v9554_v33, %v6610_v34 }
0x295b   : > { %v6632_v43 = vpack.c.bf16 %v6617_v39, %v6617_v39 }
0x295d   : > { %10482 = vmatmul.mubr.msk.bf16.vlgmr.msra.gmra.mrb[100].mxu1 %vm1596_vm0, %v6632_v43 }
0x295e   : > { %10501 = vmatprep.mubr.msk.bf16.mxu1 %vm12186_vm1, %v12187_v22  ;;  %10498 = vmatpush3.bf16.msra.mxu1 %v11283_v3 }
0x295f   : > { %10499 = vmatprep.subr.bf16.mxu1 %v12187_v22 }
0x2962   : > { %10500 = vmatpush3.bf16.msra.mxu1 %v11284_v4 }
0x2963   : > { %10505 = vmatprep.subr.bf16.mxu1 %v12187_v22 }
0x2a30   : > { %v6688_v36 = vpop.f32.mrb[100].mxu1 }
0x2a31   : > { %v6689_v42 = vadd.f32 %v9555_v35, %v6688_v36  ;;  %v10483_v44 = vpop.f32.mrb[101].mxu1 }
0x2a32   : > { %v6691_v41 = vpop.f32.mrb[102].mxu1 }
0x2a33   : > { %v6694_v46 = vmax.f32 %v6689_v42, 0.0  ;;  %v10484_v52 = vpop.f32.mrb[103].mxu1 }
0x2a35   : > { %v6695_v53 = vpack.c.bf16 %v6694_v46, %v6694_v46 }
0x2a37   : > { %10494 = vmatmul.mubr.msk.bf16.vlgmr.msra.gmra.mrb[100].mxu0 %vm2990_vm10, %v6695_v53 }
0x2a38   : > { %10515 = vmatprep.mubr.msk.f32.mxu0 %vm12186_vm1, %v12187_v22 }
0x2b0a   : > { %v6763_v56 = vpop.f32.mrb[100].mxu0 }
0x2b0b   : > { %v6764_v58 = vadd.f32 %v9559_v54, %v6763_v56  ;;  %v10495_v60 = vpop.f32.mrb[101].mxu0 }
0x2b0c   : > { %v6766_v61 = vpop.f32.mrb[102].mxu0 }
0x2b0d   : > { %v6769_v6 = vadd.f32 %v6764_v58, %v6617_v39  ;;  %v10496_v30 = vpop.f32.mrb[103].mxu0 }
0x2b0f   : > { %v6772_v55 = vsel %vm1596_vm0, %v6769_v6, 0.0 }
0x2b10   : > { %6773 = vadd.xlane.f32.xlu0 %v6772_v55 }
0x2b9d   : > { %v6774_v50 = vpop.xlane.xlu0 %6773 }
0x2b9e   : > { %v6775_v1 = vmul.f32 0.03125, %v6774_v50 }
0x2ba0   : > { %v6776_v25 = vsub.f32 %v6769_v6, %v6775_v1 }
0x2ba2   : > { %v6777_v2 = vmul.f32 %v6776_v25, %v6776_v25 }
0x2ba4   : > { %v6778_v0 = vsel %vm1596_vm0, %v6777_v2, 0.0 }
0x2ba5   : > { %6779 = vadd.xlane.f32.xlu1 %v6778_v0 }
0x2c32   : > { %v6780_v8 = vpop.xlane.xlu1 %6779 }
0x2c33   : > { %v6781_v9 = vmul.f32 0.03125, %v6780_v8 }
0x2c35   : > { %v6782_v5 = vadd.f32 1e-05, %v6781_v9 }
0x2c37   : > { %11459 = vrsqrt.f32 %v6782_v5 }
0x2c41   : > { %v11460_v14 = vpop.eup %11459 }
0x2c42   : > { %v6784_v21 = vmul.f32 %v11460_v14, %v6776_v25 }
0x2c44   : > { %v6791_v18 = vmul.f32 %v9565_v15, %v6784_v21 }
0x2c46   : > { %v13714_v19 = vadd.f32 %v9566_v16, %v6791_v18 }
0x2c48   : > { %v6799_v49 = vadd.f32 %v13717_v17, %v13714_v19  ;;  %v6876_v26 = vpack.c.bf16 %v13714_v19, %v13714_v19 }
0x2c4a   : > { %v6814_v23 = vpack.c.bf16 %v6799_v49, %v6799_v49 }
0x2c4c   : > { %10502 = vmatmul.mubr.msk.bf16.vlgmr.msra.gmra.mrb[104].mxu1 %vm1596_vm0, %v6814_v23 }
0x2c4d   : > { %10506 = vmatpush3.bf16.msra.mxu1 %v11285_v20  ;;  %10509 = vmatprep.mubr.msk.bf16.mxu1 %vm12186_vm1, %v12187_v22 }
0x2c4e   : > { %10507 = vmatprep.subr.bf16.mxu1 %v12187_v22 }
0x2c51   : > { %10508 = vmatpush3.bf16.msra.mxu1 %v11286_v24 }
0x2c52   : > { %10518 = vmatprep.subr.mxu1 %v12187_v22 }
0x2c54   : > { %10510 = vmatmul.mubr.msk.bf16.vlgmr.msra.gmra.mrb[108].mxu1 %vm1596_vm0, %v6876_v26 }
0x2c55   : > { %10520 = vmatprep.mubr.msk.f32.mxu1 %vm12186_vm1, %v12187_v22 }
0x2d1f   : > { %v6870_v28 = vpop.f32.mrb[104].mxu1 }
0x2d20   : > { %v6871_v29 = vadd.f32 %v9575_v7, %v6870_v28  ;;  %v10503_v59 = vpop.f32.mrb[105].mxu1 }
0x2d21   : > { %v6873_v31 = vpop.f32.mrb[106].mxu1 }
0x2d22   : > { %7109 = vrot.lane.b32.xlu1 %v6871_v29, %s14214_s22  ;;  %6946 = vrot.lane.b32.xlu0 %v6871_v29, %s14213_s0  ;;  %v10504_v57 = vpop.f32.mrb[107].mxu1 }
0x2d26   : > { %7107 = vrot.lane.b32.xlu1 %v6871_v29, %s14216_s4  ;;  %7276 = vrot.lane.b32.xlu0 %v6871_v29, %s14215_s3 }
0x2d27   : > { %v6932_v63 = vpop.f32.mrb[108].mxu1 }
0x2d28   : > { %v13737_v37 = vadd.f32 %v9579_v10, %v6932_v63  ;;  %v10511_v32 = vpop.f32.mrb[109].mxu1 }
0x2d29   : > { %v6935_v45 = vpop.f32.mrb[110].mxu1 }
0x2d2a   : > { %7274 = vrot.lane.b32.xlu1 %v6871_v29, %s14218_s13  ;;  %7442 = vrot.lane.b32.xlu0 %v6871_v29, %s14217_s11  ;;  %v10512_v38 = vpop.f32.mrb[111].mxu1 }
0x2d2b   : > { %10519 = vmatpush3.msra.mxu1 %v13737_v37 }
0x2d2c   : > { %10528 = vmatprep.subr.mxu1 %v12187_v22 }
0x2d2e   : > { %7440 = vrot.lane.b32.xlu1 %v6871_v29, %s14219_s14 }
0x2d94   : > { %v7110_v51 = vpop.permute.xlu1 %7109  ;;  %v6947_v33 = vpop.permute.xlu0 %6946 }
0x2d95   : > { %10514 = vmatpush3.xpose.msk.msra.mxu0 %vm1739_vm2, %v6947_v33 }
0x2d96   : > { %10523 = vmatprep.subr.mxu0 %v12187_v22 }
0x2d98   : > { %v7108_v34 = vpop.permute.xlu1 %7107  ;;  %10516 = vmatmul.mubr.msk.f32.vlgmr.msra.gmra.mrb[94].mxu0 %vm1739_vm2, %v6871_v29  ;;  %v7277_v39 = vpop.permute.xlu0 %7276 }
0x2d99   : > { %10524 = vmatpush3.xpose.msk.msra.mxu0 %vm1739_vm2, %v7110_v51  ;;  %10525 = vmatprep.mubr.msk.f32.mxu0 %vm12186_vm1, %v12187_v22 }
0x2d9a   : > { %10533 = vmatprep.subr.mxu0 %v12187_v22 }
0x2d9c   : > { %10526 = vmatmul.mubr.msk.f32.vlgmr.msra.gmra.mrb[104].mxu0 %vm1739_vm2, %v7108_v34  ;;  %v7275_v43 = vpop.permute.xlu1 %7274  ;;  %v7443_v40 = vpop.permute.xlu0 %7442 }
0x2d9d   : > { %10534 = vmatpush3.xpose.msk.msra.mxu0 %vm1739_vm2, %v7277_v39  ;;  %10535 = vmatprep.mubr.msk.f32.mxu0 %vm12186_vm1, %v12187_v22  ;;  %v11287_v39 = vld [vmem:[%s14226_s7 + $0x10] sm:$0xff]  }
0x2d9e   : > { %10543 = vmatprep.subr.mxu0 %v12187_v22 }
0x2da0   : > { %10536 = vmatmul.mubr.msk.f32.vlgmr.msra.gmra.mrb[106].mxu0 %vm1739_vm2, %v7275_v43  ;;  %v7441_v47 = vpop.permute.xlu1 %7440  ;;  %v11288_v43 = vld [vmem:[%s14226_s7 + $0x18] sm:$0xff]  }
0x2da1   : > { %10544 = vmatpush3.xpose.msk.msra.mxu0 %vm1739_vm2, %v7443_v40  ;;  %10545 = vmatprep.mubr.msk.f32.mxu0 %vm12186_vm1, %v12187_v22 }
0x2da2   : > { %10553 = vmatprep.subr.bf16.mxu0 %v12187_v22 }
0x2da4   : > { %10546 = vmatmul.mubr.msk.f32.vlgmr.msra.gmra.mrb[108].mxu0 %vm1739_vm2, %v7441_v47 }
0x2da5   : > { %10557 = vmatprep.mubr.msk.bf16.mxu0 %vm12186_vm1, %v12187_v22  ;;  %10554 = vmatpush3.bf16.msra.mxu0 %v11287_v39 }
0x2da6   : > { %10555 = vmatprep.subr.bf16.mxu0 %v12187_v22 }
0x2da9   : > { %10556 = vmatpush3.bf16.msra.mxu0 %v11288_v43 }
0x2e6b   : > { %v7018_v35 = vpop.f32.mrb[94].mxu0 }
0x2e6c   : > { %v7022_v36 = vmul.f32 0.35355338, %v7018_v35  ;;  %v10517_v42 = vpop.f32.mrb[95].mxu0  ;;  %v11289_v35 = vld [vmem:[#allocation10 + $0x10] sm:$0xff]  }
0x2e6d   : > { %10569 = vmatprep.subr.bf16.mxu0 %v11289_v35 }
0x2e6e   : > { %v7023_v44 = vsel %vm1739_vm2, %v7022_v36, -inf }
0x2e6f   : > { %7024 = vmax.xlane.f32.xlu0 %v7023_v44  ;;  %v7181_v41 = vpop.f32.mrb[104].mxu0 }
0x2e70   : > { %v7185_v46 = vmul.f32 0.35355338, %v7181_v41  ;;  %v10527_v52 = vpop.f32.mrb[105].mxu0 }
0x2e72   : > { %v7186_v53 = vsel %vm1739_vm2, %v7185_v46, -inf }
0x2e73   : > { %7187 = vmax.xlane.f32.xlu1 %v7186_v53  ;;  %v7348_v54 = vpop.f32.mrb[106].mxu0 }
0x2e74   : > { %v7352_v56 = vmul.f32 0.35355338, %v7348_v54  ;;  %v10537_v58 = vpop.f32.mrb[107].mxu0 }
0x2e76   : > { %v7353_v60 = vsel %vm1739_vm2, %v7352_v56, -inf }
0x2e77   : > { %7354 = vmax.xlane.f32.xlu0 %v7353_v60  ;;  %v7514_v61 = vpop.f32.mrb[108].mxu0 }
0x2e78   : > { %v7518_v6 = vmul.f32 0.35355338, %v7514_v61  ;;  %v10547_v30 = vpop.f32.mrb[109].mxu0 }
0x2e79   : > { %v11290_v30 = vld [vmem:[#allocation10 + $0x18] sm:$0xff]  }
0x2e7a   : > { %v7519_v55 = vsel %vm1739_vm2, %v7518_v6, -inf }
0x2e7b   : > { %7520 = vmax.xlane.f32.xlu0 %v7519_v55  ;;  %v9599_v55 = vld [vmem:[#allocation7 + $0x1] ss:$0 sm:$0xff] }
0x2e84   : > { %7198 = vrot.lane.b32.xlu1 %v13737_v37, %s14216_s4 }
0x2efc   : > { %v7025_v50 = vpop.xlane.xlu0 %7024 }
0x2efd   : > { %v7026_v1 = vsub.f32 %v7022_v36, %v7025_v50 }
0x2eff   : > { %v7027_v25 = vmul.f32 1.442695, %v7026_v1 }
0x2f00   : > { %v7188_v2 = vpop.xlane.xlu1 %7187 }
0x2f01   : > { %11461 = vpow2.f32 %v7027_v25  ;;  %v7189_v0 = vsub.f32 %v7185_v46, %v7188_v2 }
0x2f03   : > { %v7190_v3 = vmul.f32 1.442695, %v7189_v0 }
0x2f04   : > { %v7355_v4 = vpop.xlane.xlu0 %7354  ;;  %v7199_v7 = vpop.permute.xlu1 %7198 }
0x2f05   : > { %11463 = vpow2.f32 %v7190_v3  ;;  %v7356_v8 = vsub.f32 %v7352_v56, %v7355_v4 }
0x2f07   : > { %v7357_v9 = vmul.f32 1.442695, %v7356_v8  ;;  %v9613_v8 = vld [vmem:[#allocation11 + $0x1] ss:$0 sm:$0xff] }
0x2f08   : > { %v7521_v5 = vpop.xlane.xlu0 %7520 }
0x2f09   : > { %11465 = vpow2.f32 %v7357_v9  ;;  %v7522_v14 = vsub.f32 %v7518_v6, %v7521_v5 }
0x2f0b   : > { %v11462_v15 = vpop.eup %11461  ;;  %v7523_v21 = vmul.f32 1.442695, %v7522_v14 }
0x2f0c   : > { %v7029_v16 = vsel %vm1739_vm2, %v11462_v15, 0.0 }
0x2f0d   : > { %11467 = vpow2.f32 %v7523_v21  ;;  %7030 = vadd.xlane.f32.xlu1 %v7029_v16 }
0x2f0f   : > { %v11464_v18 = vpop.eup %11463 }
0x2f10   : > { %v7192_v49 = vsel %vm1739_vm2, %v11464_v18, 0.0 }
0x2f11   : > { %7193 = vadd.xlane.f32.xlu0 %v7192_v49 }
0x2f13   : > { %v11466_v20 = vpop.eup %11465 }
0x2f14   : > { %v7359_v23 = vsel %vm1739_vm2, %v11466_v20, 0.0 }
0x2f15   : > { %7360 = vadd.xlane.f32.xlu1 %v7359_v23 }
0x2f17   : > { %v11468_v24 = vpop.eup %11467 }
0x2f18   : > { %v7525_v26 = vsel %vm1739_vm2, %v11468_v24, 0.0 }
0x2f19   : > { %7526 = vadd.xlane.f32.xlu0 %v7525_v26  ;;  %v11291_v26 = vld [vmem:[%s14227_s8 + $0x10] sm:$0xff]  }
0x2f26   : > { %7530 = vrot.lane.b32.xlu1 %v13737_v37, %s14219_s14 }
0x2f2f   : > { %7364 = vrot.lane.b32.xlu0 %v13737_v37, %s14218_s13 }
0x2f9a   : > { %v7031_v28 = vpop.xlane.xlu1 %7030 }
0x2f9b   : > { %11469 = vrcp.f32 %v7031_v28  ;;  %v11293_v28 = vld [vmem:[#allocation13 + $0x10] sm:$0xff]  }
0x2f9e   : > { %v7194_v29 = vpop.xlane.xlu0 %7193 }
0x2f9f   : > { %11471 = vrcp.f32 %v7194_v29 }
0x2fa2   : > { %v7361_v59 = vpop.xlane.xlu1 %7360 }
0x2fa3   : > { %11473 = vrcp.f32 %v7361_v59 }
0x2fa5   : > { %v11470_v31 = vpop.eup %11469 }
0x2fa6   : > { %v7033_v57 = vmul.f32 %v11470_v31, %v11462_v15  ;;  %v7527_v10 = vpop.xlane.xlu0 %7526  ;;  %v7531_v51 = vpop.permute.xlu1 %7530 }
0x2fa7   : > { %11475 = vrcp.f32 %v7527_v10  ;;  %v9603_v10 = vld [vmem:[#allocation19 + $0x1] ss:$0 sm:$0xff] }
0x2fa8   : > { %10521 = vmatmul.mubr.msk.f32.vlgmr.msra.gmra.mrb[98].mxu1 %vm1739_vm2, %v7033_v57 }
0x2fa9   : > { %v11472_v63 = vpop.eup %11471  ;;  %10529 = vmatpush3.msra.mxu1 %v7199_v7  ;;  %10530 = vmatprep.mubr.msk.f32.mxu1 %vm12186_vm1, %v12187_v22  ;;  %v11292_v7 = vld [vmem:[%s14227_s8 + $0x18] sm:$0xff]  }
0x2faa   : > { %v7196_v32 = vmul.f32 %v11472_v63, %v11464_v18  ;;  %v7365_v37 = vpop.permute.xlu0 %7364  ;;  %10538 = vmatprep.subr.mxu1 %v12187_v22 }
0x2fac   : > { %10531 = vmatmul.mubr.msk.f32.vlgmr.msra.gmra.mrb[112].mxu1 %vm1739_vm2, %v7196_v32  ;;  %v9604_v32 = vld [vmem:[#allocation20 + $0x1] ss:$0 sm:$0xff] }
0x2fad   : > { %v11474_v45 = vpop.eup %11473  ;;  %10539 = vmatpush3.msra.mxu1 %v7365_v37  ;;  %10540 = vmatprep.mubr.msk.f32.mxu1 %vm12186_vm1, %v12187_v22 }
0x2fae   : > { %v7363_v38 = vmul.f32 %v11474_v45, %v11466_v20  ;;  %10548 = vmatprep.subr.mxu1 %v12187_v22 }
0x2fb0   : > { %10541 = vmatmul.mubr.msk.f32.vlgmr.msra.gmra.mrb[114].mxu1 %vm1739_vm2, %v7363_v38 }
0x2fb1   : > { %v11476_v33 = vpop.eup %11475  ;;  %10549 = vmatpush3.msra.mxu1 %v7531_v51  ;;  %10550 = vmatprep.mubr.msk.f32.mxu1 %vm12186_vm1, %v12187_v22 }
0x2fb2   : > { %v7529_v34 = vmul.f32 %v11476_v33, %v11468_v24  ;;  %10561 = vmatprep.subr.bf16.mxu1 %v12187_v22  ;;  %v11294_v33 = vld [vmem:[#allocation13 + $0x18] sm:$0xff]  }
0x2fb4   : > { %10551 = vmatmul.mubr.msk.f32.vlgmr.msra.gmra.mrb[116].mxu1 %vm1739_vm2, %v7529_v34  ;;  %v9609_v34 = vld [vmem:[#allocation8 + $0x1] ss:$0 sm:$0xff] }
0x2fb5   : > { %10565 = vmatprep.mubr.msk.bf16.mxu1 %vm12186_vm1, %v12187_v22  ;;  %10562 = vmatpush3.bf16.msra.mxu1 %v11291_v26 }
0x2fb6   : > { %10563 = vmatprep.subr.bf16.mxu1 %v12187_v22 }
0x2fb9   : > { %10564 = vmatpush3.bf16.msra.mxu1 %v11292_v7 }
0x2fba   : > { %10577 = vmatprep.subr.bf16.mxu1 %v11293_v28 }
0x307b   : > { %v7103_v40 = vpop.f32.mrb[98].mxu1 }
0x307c   : > { %v10522_v47 = vpop.f32.mrb[99].mxu1 }
0x307f   : > { %v7270_v36 = vpop.f32.mrb[112].mxu1 }
0x3080   : > { %7607 = vrot.lane.b32.xlu1 %v7270_v36, %s14220_s18  ;;  %v10532_v42 = vpop.f32.mrb[113].mxu1 }
0x3083   : > { %v7436_v44 = vpop.f32.mrb[114].mxu1 }
0x3084   : > { %7611 = vrot.lane.b32.xlu0 %v7436_v44, %s14221_s19  ;;  %v10542_v41 = vpop.f32.mrb[115].mxu1 }
0x3087   : > { %v7602_v46 = vpop.f32.mrb[116].mxu1 }
0x3088   : > { %7615 = vrot.lane.b32.xlu1 %v7602_v46, %s14222_s20  ;;  %v10552_v52 = vpop.f32.mrb[117].mxu1 }
0x30f2   : > { %v7608_v53 = vpop.permute.xlu1 %7607 }
0x30f3   : > { %v7618_v56 = vsel %vm1739_vm2, %v7103_v40, %v7608_v53 }
0x30f6   : > { %v7612_v54 = vpop.permute.xlu0 %7611 }
0x30f7   : > { %v7619_v58 = vsel %vm2721_vm7, %v7618_v56, %v7612_v54 }
0x30fa   : > { %v7616_v60 = vpop.permute.xlu1 %7615 }
0x30fb   : > { %v7620_v61 = vsel %vm2725_vm8, %v7619_v58, %v7616_v60 }
0x30fc   : > { %v7621_v6 = vpack.c.bf16 %v7620_v61, %v7620_v61 }
0x30fe   : > { %10558 = vmatmul.mubr.msk.bf16.vlgmr.msra.gmra.mrb[112].mxu0 %vm1596_vm0, %v7621_v6 }
0x30ff   : > { %10570 = vmatpush3.bf16.msra.mxu0 %v11289_v35  ;;  %10573 = vmatprep.mubr.msk.bf16.mxu0 %vm1596_vm0, %v13537_v12 }
0x3100   : > { %10571 = vmatprep.subr.bf16.mxu0 %v11290_v30 }
0x3103   : > { %10572 = vmatpush3.bf16.msra.mxu0 %v11290_v30 }
0x3104   : > { %10769 = vmatprep.subr.bf16.mxu0 %v12184_v13 }
0x3106   : > { %10574 = vmatmul.mubr.msk.bf16.vlgmr.msra.gmra.mrb[116].mxu0 %vm1596_vm0, %v13539_v11 }
0x3107   : > { %10591 = vmatprep.mubr.msk.f32.mxu0 %vm12186_vm1, %v12187_v22 }
0x31d1   : > { %v7677_v50 = vpop.f32.mrb[112].mxu0 }
0x31d2   : > { %v7678_v1 = vadd.f32 %v9599_v55, %v7677_v50  ;;  %v10559_v25 = vpop.f32.mrb[113].mxu0 }
0x31d3   : > { %v7680_v2 = vpop.f32.mrb[114].mxu0 }
0x31d4   : > { %v7683_v0 = vadd.f32 %v7678_v1, %v13714_v19  ;;  %v10560_v3 = vpop.f32.mrb[115].mxu0 }
0x31d6   : > { %v7688_v12 = vsel %vm1596_vm0, %v7683_v0, 0.0 }
0x31d7   : > { %7689 = vadd.xlane.f32.xlu0 %v7688_v12 }
0x31d9   : > { %v10575_v4 = vpop.f32.mrb[116].mxu0 }
0x31da   : > { %v7844_v9 = vpop.f32.mrb[117].mxu0  ;;  %v13817_v19 = vadd.f32 %v10575_v4, %v9613_v8 }
0x31db   : > { %v10576_v5 = vpop.f32.mrb[118].mxu0  ;;  %v7845_v11 = vadd.f32 %v9613_v8, %v7844_v9 }
0x31dc   : > { %v7847_v14 = vpop.f32.mrb[119].mxu0 }
0x31dd   : > { %v7848_v15 = vadd.f32 %v9613_v8, %v7847_v14 }
0x31df   : > { %v10770_v21 = vpack.c.bf16 %v7848_v15, %v7845_v11  ;;  %v13812_v16 = vpack.i.bf16 %v7848_v15, %v7845_v11 }
0x31e1   : > { %10772 = vmatpush3.bf16.xpose.msk.msra.mxu0 %vm12819_vm3, %v10770_v21 }
0x31e2   : > { %10589 = vmatprep.subr.mxu0 %v12187_v22 }
0x31e9   : > { %10590 = vmatpush3.xpose.msk.msra.mxu0 %vm1739_vm2, %v13817_v19 }
0x31ea   : > { %10780 = vmatprep.subr.bf16.mxu0 %v12184_v13 }
0x3264   : > { %v7690_v18 = vpop.xlane.xlu0 %7689 }
0x3265   : > { %v7691_v49 = vmul.f32 0.03125, %v7690_v18 }
0x3267   : > { %v7692_v20 = vsub.f32 %v7683_v0, %v7691_v49 }
0x3269   : > { %v7693_v23 = vmul.f32 %v7692_v20, %v7692_v20 }
0x326b   : > { %v7694_v24 = vsel %vm1596_vm0, %v7693_v23, 0.0 }
0x326c   : > { %7695 = vadd.xlane.f32.xlu1 %v7694_v24 }
0x327d   : > { %11210 = vrot.lane.b32.xlu1 %v13812_v16, %s14216_s4 }
0x32f9   : > { %v7696_v29 = vpop.xlane.xlu1 %7695 }
0x32fa   : > { %v7697_v59 = vmul.f32 0.03125, %v7696_v29 }
0x32fc   : > { %v7698_v31 = vadd.f32 1e-05, %v7697_v59 }
0x32fd   : > { %v11211_v25 = vpop.permute.xlu1 %11210 }
0x32fe   : > { %11477 = vrsqrt.f32 %v7698_v31  ;;  %v11213_v2 = vunpack.i.h.bf16 %v11211_v25  ;;  %v11212_v0 = vunpack.i.l.bf16 %v11211_v25 }
0x3300   : > { %v10777_v4 = vpack.c.bf16 %v11213_v2, %v11212_v0 }
0x3308   : > { %v11478_v57 = vpop.eup %11477 }
0x3309   : > { %v7700_v63 = vmul.f32 %v11478_v57, %v7692_v20 }
0x330b   : > { %v7707_v37 = vmul.f32 %v9603_v10, %v7700_v63 }
0x330d   : > { %v13828_v45 = vadd.f32 %v9604_v32, %v7707_v37 }
0x330f   : > { %v7715_v38 = vadd.f32 %v13717_v17, %v13828_v45 }
0x3311   : > { %v7723_v51 = vpack.c.bf16 %v7715_v38, %v7715_v38 }
0x3313   : > { %10566 = vmatmul.mubr.msk.bf16.vlgmr.msra.gmra.mrb[120].mxu1 %vm1596_vm0, %v7723_v51 }
0x3314   : > { %10578 = vmatpush3.bf16.msra.mxu1 %v11293_v28  ;;  %10581 = vmatprep.mubr.msk.bf16.mxu1 %vm1596_vm0, %v13554_v48 }
0x3315   : > { %10579 = vmatprep.subr.bf16.mxu1 %v11294_v33 }
0x3318   : > { %10580 = vmatpush3.bf16.msra.mxu1 %v11294_v33 }
0x3319   : > { %10773 = vmatprep.subr.bf16.mxu1 %v12184_v13 }
0x331b   : > { %10582 = vmatmul.mubr.msk.bf16.vlgmr.msra.gmra.mrb[124].mxu1 %vm1596_vm0, %v13559_v62  ;;  %v9618_v62 = vld [vmem:[#allocation14 + $0x1] ss:$0 sm:$0xff] }
0x331c   : > { %10600 = vmatprep.mubr.msk.f32.mxu1 %vm12186_vm1, %v12187_v22 }
0x33e6   : > { %v7779_v17 = vpop.f32.mrb[120].mxu1 }
0x33e7   : > { %v13840_v39 = vadd.f32 %v9609_v34, %v7779_v17  ;;  %v10567_v43 = vpop.f32.mrb[121].mxu1 }
0x33e8   : > { %v7782_v40 = vpop.f32.mrb[122].mxu1 }
0x33e9   : > { %v10568_v47 = vpop.f32.mrb[123].mxu1  ;;  %8108 = vrot.lane.b32.xlu1 %v13840_v39, %s14216_s4  ;;  %10592 = vmatmul.mubr.msk.f32.vlgmr.msra.gmra.mrb[110].mxu0 %vm1739_vm2, %v13840_v39 }
0x33ea   : > { %10618 = vmatprep.mubr.msk.f32.mxu0 %vm12186_vm1, %v12187_v22 }
0x33ee   : > { %v10583_v48 = vpop.f32.mrb[124].mxu1 }
0x33ef   : > { %v7917_v35 = vpop.f32.mrb[125].mxu1  ;;  %v13851_v53 = vadd.f32 %v10583_v48, %v9618_v62 }
0x33f0   : > { %v10584_v36 = vpop.f32.mrb[126].mxu1  ;;  %v7918_v44 = vadd.f32 %v9618_v62, %v7917_v35 }
0x33f1   : > { %v7920_v42 = vpop.f32.mrb[127].mxu1 }
0x33f2   : > { %v7921_v41 = vadd.f32 %v9618_v62, %v7920_v42 }
0x33f4   : > { %v10774_v46 = vpack.c.bf16 %v7921_v41, %v7918_v44  ;;  %v13848_v52 = vpack.i.bf16 %v7921_v41, %v7918_v44 }
0x33f6   : > { %10775 = vmatpush3.bf16.msra.mxu1 %v10774_v46 }
0x33f7   : > { %10598 = vmatprep.subr.mxu1 %v12187_v22 }
0x33fa   : > { %10599 = vmatpush3.msk.msra.mxu1 %vm1879_vm6, %v13851_v53 }
0x33fb   : > { %10776 = vmatprep.subr.bf16.mxu1 %v12184_v13 }
0x345b   : > { %v8109_v9 = vpop.permute.xlu1 %8108 }
0x34bc   : > { %v8016_v54 = vpop.f32.mrb[110].mxu0 }
0x34bd   : > { %v8020_v56 = vmul.f32 0.35355338, %v8016_v54  ;;  %v10593_v58 = vpop.f32.mrb[111].mxu0 }
0x34bf   : > { %v8021_v60 = vsel %vm1835_vm4, %v8020_v56, -inf }
0x34c0   : > { %8022 = vmax.xlane.f32.xlu0 %v8021_v60 }
0x354d   : > { %v8023_v61 = vpop.xlane.xlu0 %8022 }
0x354e   : > { %v8024_v6 = vsub.f32 %v8020_v56, %v8023_v61 }
0x3550   : > { %v8025_v30 = vmul.f32 1.442695, %v8024_v6 }
0x3552   : > { %11479 = vpow2.f32 %v8025_v30 }
0x355c   : > { %v11480_v55 = vpop.eup %11479 }
0x355d   : > { %v8027_v50 = vsel %vm1835_vm4, %v11480_v55, 0.0 }
0x355e   : > { %8028 = vadd.xlane.f32.xlu0 %v8027_v50 }
0x3574   : > { %8114 = vrot.lane.b32.xlu0 %v13817_v19, %s14216_s4 }
0x35eb   : > { %v8029_v1 = vpop.xlane.xlu0 %8028 }
0x35ec   : > { %11481 = vrcp.f32 %v8029_v1 }
0x35ef   : > { %v8115_v8 = vpop.permute.xlu0 %8114 }
0x35f6   : > { %v11482_v3 = vpop.eup %11481 }
0x35f7   : > { %v8031_v12 = vmul.f32 %v11482_v3, %v11480_v55 }
0x35f9   : > { %10601 = vmatmul.mubr.msk.f32.vlgmr.msra.gmra.mrb[118].mxu1 %vm1835_vm4, %v8031_v12 }
0x35fa   : > { %10779 = vmatpush3.bf16.xpose.msk.msra.mxu1 %vm12819_vm3, %v10777_v4  ;;  %10609 = vmatprep.mubr.msk.f32.mxu1 %vm12186_vm1, %v12187_v22 }
0x35fb   : > { %10607 = vmatprep.subr.mxu1 %v12187_v22 }
0x3602   : > { %10608 = vmatpush3.xpose.msk.msra.mxu1 %vm1739_vm2, %v8115_v8 }
0x3603   : > { %10787 = vmatprep.subr.bf16.mxu1 %v12184_v13 }
0x3605   : > { %10610 = vmatmul.mubr.msk.f32.vlgmr.msra.gmra.mrb[128].mxu1 %vm1739_vm2, %v8109_v9 }
0x3606   : > { %10636 = vmatprep.mubr.msk.f32.mxu1 %vm12186_vm1, %v12187_v22 }
0x36cc   : > { %v13871_v5 = vpop.f32.mrb[118].mxu1 }
0x36cd   : > { %v10602_v14 = vpop.f32.mrb[119].mxu1 }
0x36d8   : > { %v8190_v11 = vpop.f32.mrb[128].mxu1 }
0x36d9   : > { %v8194_v15 = vmul.f32 0.35355338, %v8190_v11  ;;  %v10611_v21 = vpop.f32.mrb[129].mxu1 }
0x36db   : > { %v8195_v18 = vsel %vm1835_vm4, %v8194_v15, -inf }
0x36dc   : > { %8196 = vmax.xlane.f32.xlu1 %v8195_v18 }
0x36ed   : > { %8212 = vrot.lane.b32.xlu1 %v13851_v53, %s14216_s4 }
0x36f1   : > { %11220 = vrot.lane.b32.xlu1 %v13812_v16, %s14218_s13 }
0x36f5   : > { %8291 = vrot.lane.b32.xlu1 %v13840_v39, %s14218_s13 }
0x36f9   : > { %8393 = vrot.lane.b32.xlu1 %v13851_v53, %s14218_s13 }
0x3769   : > { %v8197_v49 = vpop.xlane.xlu1 %8196 }
0x376a   : > { %v8198_v20 = vsub.f32 %v8194_v15, %v8197_v49 }
0x376c   : > { %v8199_v23 = vmul.f32 1.442695, %v8198_v20 }
0x376d   : > { %v8213_v29 = vpop.permute.xlu1 %8212 }
0x376e   : > { %11483 = vpow2.f32 %v8199_v23 }
0x3771   : > { %v11221_v63 = vpop.permute.xlu1 %11220 }
0x3772   : > { %v11223_v37 = vunpack.i.h.bf16 %v11221_v63  ;;  %v11222_v38 = vunpack.i.l.bf16 %v11221_v63 }
0x3774   : > { %v10784_v51 = vpack.c.bf16 %v11223_v37, %v11222_v38 }
0x3775   : > { %v8292_v34 = vpop.permute.xlu1 %8291 }
0x3778   : > { %v11484_v24 = vpop.eup %11483 }
0x3779   : > { %v8201_v26 = vsel %vm1835_vm4, %v11484_v24, 0.0  ;;  %v8394_v56 = vpop.permute.xlu1 %8393 }
0x377a   : > { %8202 = vadd.xlane.f32.xlu0 %v8201_v26 }
0x3790   : > { %11215 = vrot.lane.b32.xlu0 %v13848_v52, %s14216_s4 }
0x3794   : > { %8297 = vrot.lane.b32.xlu0 %v13817_v19, %s14218_s13 }
0x3807   : > { %v8203_v7 = vpop.xlane.xlu0 %8202 }
0x3808   : > { %11485 = vrcp.f32 %v8203_v7 }
0x380b   : > { %v11216_v28 = vpop.permute.xlu0 %11215 }
0x380c   : > { %v11218_v59 = vunpack.i.h.bf16 %v11216_v28  ;;  %v11217_v31 = vunpack.i.l.bf16 %v11216_v28 }
0x380e   : > { %v10781_v57 = vpack.c.bf16 %v11218_v59, %v11217_v31 }
0x380f   : > { %v8298_v33 = vpop.permute.xlu0 %8297 }
0x3810   : > { %10782 = vmatpush3.bf16.msra.mxu0 %v10781_v57 }
0x3811   : > { %10616 = vmatprep.subr.mxu0 %v12187_v22 }
0x3812   : > { %v11486_v10 = vpop.eup %11485 }
0x3813   : > { %v8205_v32 = vmul.f32 %v11486_v10, %v11484_v24  ;;  %v11296_v24 = vld [vmem:[#allocation16 + $0x18] sm:$0xff]  }
0x3814   : > { %10617 = vmatpush3.msk.msra.mxu0 %vm1879_vm6, %v8213_v29 }
0x3815   : > { %10619 = vmatmul.mubr.msk.f32.vlgmr.msra.gmra.mrb[120].mxu0 %vm1835_vm4, %v8205_v32  ;;  %10783 = vmatprep.subr.bf16.mxu0 %v12184_v13  ;;  %v9647_v32 = vld [vmem:[#allocation17 + $0x1] ss:$0 sm:$0xff] }
0x3816   : > { %10627 = vmatprep.mubr.msk.f32.mxu0 %vm12186_vm1, %v12187_v22 }
0x381b   : > { %10786 = vmatpush3.bf16.xpose.msk.msra.mxu0 %vm12819_vm3, %v10784_v51 }
0x381c   : > { %10625 = vmatprep.subr.mxu0 %v12187_v22 }
0x3823   : > { %10626 = vmatpush3.xpose.msk.msra.mxu0 %vm1739_vm2, %v8298_v33 }
0x3824   : > { %10794 = vmatprep.subr.bf16.mxu0 %v12184_v13 }
0x3826   : > { %10628 = vmatmul.mubr.msk.f32.vlgmr.msra.gmra.mrb[122].mxu0 %vm1739_vm2, %v8292_v34 }
0x3827   : > { %10654 = vmatprep.mubr.msk.f32.mxu0 %vm12186_vm1, %v12187_v22 }
0x38e8   : > { %v8287_v17 = vpop.f32.mrb[120].mxu0 }
0x38e9   : > { %v10620_v43 = vpop.f32.mrb[121].mxu0 }
0x38f9   : > { %v8373_v40 = vpop.f32.mrb[122].mxu0 }
0x38fa   : > { %v8377_v47 = vmul.f32 0.35355338, %v8373_v40  ;;  %v10629_v48 = vpop.f32.mrb[123].mxu0 }
0x38fc   : > { %v8378_v62 = vsel %vm1835_vm4, %v8377_v47, -inf }
0x38fd   : > { %8379 = vmax.xlane.f32.xlu0 %v8378_v62 }
0x3913   : > { %11225 = vrot.lane.b32.xlu0 %v13848_v52, %s14218_s13  ;;  %s1547_s13 = sand.u32 1, %s12109_s23  }
0x3914   : > { %s8980_s11 = scalar_lea.sflag [#allocation4], %s1547_s13 }
0x3917   : > { %11230 = vrot.lane.b32.xlu0 %v13812_v16, %s14219_s14 }
0x391b   : > { %8472 = vrot.lane.b32.xlu0 %v13840_v39, %s14219_s14 }
0x398a   : > { %v8380_v35 = vpop.xlane.xlu0 %8379 }
0x398b   : > { %v8381_v36 = vsub.f32 %v8377_v47, %v8380_v35  ;;  %v11297_v35 = vld [vmem:[%s14228_s9 + $0x10] sm:$0xff]  }
0x398d   : > { %v8382_v42 = vmul.f32 1.442695, %v8381_v36  ;;  %v11298_v36 = vld [vmem:[%s14228_s9 + $0x18] sm:$0xff]  }
0x398e   : > { %v11226_v44 = vpop.permute.xlu0 %11225 }
0x398f   : > { %11487 = vpow2.f32 %v8382_v42  ;;  %v11228_v41 = vunpack.i.h.bf16 %v11226_v44  ;;  %v11227_v46 = vunpack.i.l.bf16 %v11226_v44  ;;  %v11299_v42 = vld [vmem:[%s14229_s10 + $0x20] sm:$0xff]  }
0x3991   : > { %v10788_v54 = vpack.c.bf16 %v11228_v41, %v11227_v46 }
0x3992   : > { %v11231_v60 = vpop.permute.xlu0 %11230 }
0x3993   : > { %10789 = vmatpush3.bf16.msra.mxu1 %v10788_v54  ;;  %v11233_v61 = vunpack.i.h.bf16 %v11231_v60  ;;  %v11232_v6 = vunpack.i.l.bf16 %v11231_v60 }
0x3994   : > { %10634 = vmatprep.subr.mxu1 %v12187_v22 }
0x3995   : > { %v10791_v50 = vpack.c.bf16 %v11233_v61, %v11232_v6  ;;  %v11301_v6 = vld [vmem:[%s14229_s10 + $0x30] sm:$0xff]  }
0x3997   : > { %10635 = vmatpush3.msk.msra.mxu1 %vm1879_vm6, %v8394_v56  ;;  %v9651_v56 = vld [vmem:[#allocation22 + $0x1] ss:$0 sm:$0xff] }
0x3998   : > { %10790 = vmatprep.subr.bf16.mxu1 %v12184_v13 }
0x3999   : > { %v11488_v16 = vpop.eup %11487 }
0x399a   : > { %v8384_v58 = vsel %vm1835_vm4, %v11488_v16, 0.0 }
0x399b   : > { %8385 = vadd.xlane.f32.xlu1 %v8384_v58  ;;  %v9652_v58 = vld [vmem:[#allocation23 + $0x1] ss:$0 sm:$0xff] }
0x39ac   : > { %8478 = vrot.lane.b32.xlu1 %v13817_v19, %s14219_s14  ;;  %v8473_v19 = vpop.permute.xlu0 %8472 }
0x3a28   : > { %v8386_v39 = vpop.xlane.xlu1 %8385 }
0x3a29   : > { %11489 = vrcp.f32 %v8386_v39 }
0x3a2c   : > { %v8479_v13 = vpop.permute.xlu1 %8478 }
0x3a33   : > { %v11490_v30 = vpop.eup %11489 }
0x3a34   : > { %v8388_v55 = vmul.f32 %v11490_v30, %v11488_v16  ;;  %v11302_v30 = vld [vmem:[%s14229_s10 + $0x38] sm:$0xff]  }
0x3a36   : > { %10637 = vmatmul.mubr.msk.f32.vlgmr.msra.gmra.mrb[130].mxu1 %vm1835_vm4, %v8388_v55  ;;  %v9665_v55 = vld [vmem:[#allocation28 + $0x1] ss:$0 sm:$0xff] }
0x3a37   : > { %10793 = vmatpush3.bf16.xpose.msk.msra.mxu1 %vm12819_vm3, %v10791_v50  ;;  %10645 = vmatprep.mubr.msk.f32.mxu1 %vm12186_vm1, %v12187_v22 }
0x3a38   : > { %10643 = vmatprep.subr.mxu1 %v12187_v22 }
0x3a3f   : > { %10644 = vmatpush3.xpose.msk.msra.mxu1 %vm1739_vm2, %v8479_v13 }
0x3a40   : > { %10665 = vmatprep.subr.bf16.mxu1 %v12187_v22 }
0x3a42   : > { %10646 = vmatmul.mubr.msk.f32.vlgmr.msra.gmra.mrb[132].mxu1 %vm1739_vm2, %v8473_v19 }
0x3a43   : > { %10669 = vmatprep.mubr.msk.bf16.mxu1 %vm12186_vm1, %v12187_v22  ;;  %10666 = vmatpush3.bf16.msra.mxu1 %v11297_v35 }
0x3a44   : > { %10667 = vmatprep.subr.bf16.mxu1 %v12187_v22 }
0x3a47   : > { %10668 = vmatpush3.bf16.msra.mxu1 %v11298_v36 }
0x3b09   : > { %v8468_v1 = vpop.f32.mrb[130].mxu1 }
0x3b0a   : > { %v10638_v25 = vpop.f32.mrb[131].mxu1 }
0x3b15   : > { %v8554_v27 = vpop.f32.mrb[132].mxu1 }
0x3b16   : > { %v8558_v2 = vmul.f32 0.35355338, %v8554_v27  ;;  %v10647_v0 = vpop.f32.mrb[133].mxu1 }
0x3b17   : > { %v9669_v0 = vld [vmem:[#allocation29 + $0x1] ss:$0 sm:$0xff] }
0x3b18   : > { %v8559_v3 = vsel %vm1835_vm4, %v8558_v2, -inf }
0x3b19   : > { %8560 = vmax.xlane.f32.xlu1 %v8559_v3 }
0x3b2a   : > { %8574 = vrot.lane.b32.xlu1 %v13851_v53, %s14219_s14 }
0x3b2e   : > { %8654 = vrot.lane.b32.xlu1 %v8287_v17, %s14220_s18 }
0x3ba6   : > { %v8561_v12 = vpop.xlane.xlu1 %8560 }
0x3ba7   : > { %v8562_v4 = vsub.f32 %v8558_v2, %v8561_v12 }
0x3ba9   : > { %v8563_v8 = vmul.f32 1.442695, %v8562_v4 }
0x3baa   : > { %v8575_v20 = vpop.permute.xlu1 %8574 }
0x3bab   : > { %11491 = vpow2.f32 %v8563_v8 }
0x3bae   : > { %v8655_v28 = vpop.permute.xlu1 %8654 }
0x3baf   : > { %v8665_v59 = vsel %vm1739_vm2, %v13871_v5, %v8655_v28 }
0x3bb5   : > { %v11492_v9 = vpop.eup %11491 }
0x3bb6   : > { %v8565_v14 = vsel %vm1835_vm4, %v11492_v9, 0.0 }
0x3bb7   : > { %8566 = vadd.xlane.f32.xlu0 %v8565_v14 }
0x3bcd   : > { %11235 = vrot.lane.b32.xlu0 %v13848_v52, %s14219_s14  ;;  %v11295_v52 = vld [vmem:[#allocation16 + $0x10] sm:$0xff]   ;;  %s9309_s14 = sshll.u32 %s1547_s13, 3 }
0x3bd1   : > { %8658 = vrot.lane.b32.xlu0 %v8468_v1, %s14221_s19  ;;  %s9680_s19 = sshll.u32 %s12445_s28, 7  ;;  %s12198_s28 = smov [#allocation31]  }
0x3bd2   : > { %s13973_s4 = scalar_lea.hbm %s12422_s21, %s9680_s19  ;;  %s12019_s0 = sshll.u32 %s12198_s28, 4  ;;  %s12020_s0 = int_to_ptr.vmem [resolvable:$false] %s12019_s0 }
0x3bd3   : > { %s12021_s22 = scalar_lea.vmem %s12020_s0, 256 }
0x3c44   : > { %v8567_v11 = vpop.xlane.xlu0 %8566 }
0x3c45   : > { %11493 = vrcp.f32 %v8567_v11 }
0x3c48   : > { %v11236_v15 = vpop.permute.xlu0 %11235 }
0x3c49   : > { %v11238_v21 = vunpack.i.h.bf16 %v11236_v15  ;;  %v11237_v53 = vunpack.i.l.bf16 %v11236_v15 }
0x3c4b   : > { %v10795_v18 = vpack.c.bf16 %v11238_v21, %v11237_v53 }
0x3c4c   : > { %v8659_v29 = vpop.permute.xlu0 %8658 }
0x3c4d   : > { %10796 = vmatpush3.bf16.msra.mxu0 %v10795_v18  ;;  %v8666_v31 = vsel %vm2721_vm7, %v8665_v59, %v8659_v29 }
0x3c4e   : > { %10652 = vmatprep.subr.mxu0 %v12187_v22 }
0x3c4f   : > { %v11494_v49 = vpop.eup %11493 }
0x3c50   : > { %v8569_v23 = vmul.f32 %v11494_v49, %v11492_v9 }
0x3c51   : > { %10653 = vmatpush3.msk.msra.mxu0 %vm1879_vm6, %v8575_v20 }
0x3c52   : > { %10655 = vmatmul.mubr.msk.f32.vlgmr.msra.gmra.mrb[124].mxu0 %vm1835_vm4, %v8569_v23  ;;  %10657 = vmatprep.subr.bf16.mxu0 %v12187_v22 }
0x3c53   : > { %10661 = vmatprep.mubr.msk.bf16.mxu0 %vm12186_vm1, %v12187_v22  ;;  %10658 = vmatpush3.bf16.msra.mxu0 %v11295_v52 }
0x3c54   : > { %10659 = vmatprep.subr.bf16.mxu0 %v12187_v22 }
0x3c57   : > { %10660 = vmatpush3.bf16.msra.mxu0 %v11296_v24  ;;  %v9675_v24 = vld [vmem:[#allocation25 + $0x1] ss:$0 sm:$0xff] }
0x3c58   : > { %10673 = vmatprep.subr.bf16.mxu0 %v12187_v22 }
0x3d25   : > { %v8649_v26 = vpop.f32.mrb[124].mxu0 }
0x3d26   : > { %8662 = vrot.lane.b32.xlu1 %v8649_v26, %s14222_s20  ;;  %v10656_v7 = vpop.f32.mrb[125].mxu0  ;;  %s1549_s20 = scalar_lea.vmem [#allocation31], %s9309_s14 }
0x3d27   : > { %v9676_v7 = vld [vmem:[#allocation26 + $0x1] ss:$0 sm:$0xff]  ;;  %s8993_s18 = sshll.u32 %s1549_s20, 4  ;;  %s13975_s18 = int_to_ptr.vmem [resolvable:$true] %s8993_s18 }
0x3d28   : > { %s12015_s3 = scalar_lea.vmem %s13975_s18, 128  ;;  %p12022_p8 = scmp.lt.s32.totalorder %s13975_s18, %s12020_s0 }
0x3d29   : > { %p12016_p2 = scmp.ne.s32.totalorder %s13975_s18, %s12015_s3  ;;  %p12023_p11 = scmp.lt.s32.totalorder %s12021_s22, %s12015_s3 }
0x3d2b   : > { %p12017_p4 = pnand %p12016_p2, %p14230_p3  ;;  %p12024_p13 = por %p12023_p11, %p12022_p8 }
0x3d2d   : > { %p12018_p7 = pneg %p12017_p4 }
0x3d2f   : > { %p12025_p6 = pnand %p12024_p13, %p12018_p7 }
0x3d98   : > { %v8663_v57 = vpop.permute.xlu1 %8662 }
0x3d99   : > { %v8667_v10 = vsel %vm2725_vm8, %v8666_v31, %v8663_v57 }
0x3d9a   : > { %v8668_v63 = vpack.c.bf16 %v8667_v10, %v8667_v10 }
0x3d9c   : > { %10662 = vmatmul.mubr.msk.bf16.vlgmr.msra.gmra.mrb[128].mxu0 %vm1596_vm0, %v8668_v63 }
0x3d9d   : > { %10681 = vmatprep.mubr.msk.bf16.mxu0 %vm12186_vm1, %v12187_v22  ;;  %10674 = vmatpush3.bf16.msra.mxu0 %v11299_v42 }
0x3d9e   : > { %10675 = vmatprep.subr.bf16.mxu0 %v12187_v22 }
0x3e6f   : > { %v8724_v37 = vpop.f32.mrb[128].mxu0 }
0x3e70   : > { %v8725_v38 = vadd.f32 %v9647_v32, %v8724_v37  ;;  %v10663_v51 = vpop.f32.mrb[129].mxu0 }
0x3e71   : > { %v8727_v33 = vpop.f32.mrb[130].mxu0 }
0x3e72   : > { %v8730_v5 = vadd.f32 %v8725_v38, %v13828_v45  ;;  %v10664_v34 = vpop.f32.mrb[131].mxu0  ;;  %v11300_v45 = vld [vmem:[%s14229_s10 + $0x28] sm:$0xff]  }
0x3e73   : > { %10676 = vmatpush3.bf16.msra.mxu0 %v11300_v45 }
0x3e74   : > { %v8735_v17 = vsel %vm1596_vm0, %v8730_v5, 0.0  ;;  %10677 = vmatprep.subr.bf16.mxu0 %v12187_v22 }
0x3e75   : > { %8736 = vadd.xlane.f32.xlu0 %v8735_v17  ;;  %v9678_v17 = vld [vmem:[%s12417_s5] ss:$0 sm:$0xff] }
0x3e77   : > { %10678 = vmatpush3.bf16.msra.mxu0 %v11301_v6 }
0x3e78   : > { %10679 = vmatprep.subr.bf16.mxu0 %v12187_v22 }
0x3e7b   : > { %10680 = vmatpush3.bf16.msra.mxu0 %v11302_v30 }
0x3f02   : > { %v8737_v43 = vpop.xlane.xlu0 %8736 }
0x3f03   : > { %v8738_v40 = vmul.f32 0.03125, %v8737_v43 }
0x3f05   : > { %v8739_v47 = vsub.f32 %v8730_v5, %v8738_v40  ;;  %v9677_v5 = vld [vmem:[%s12412_s17] ss:$0 sm:$0xff] }
0x3f07   : > { %v8740_v48 = vmul.f32 %v8739_v47, %v8739_v47 }
0x3f09   : > { %v8741_v62 = vsel %vm1596_vm0, %v8740_v48, 0.0 }
0x3f0a   : > { %8742 = vadd.xlane.f32.xlu1 %v8741_v62 }
0x3f97   : > { %v8743_v44 = vpop.xlane.xlu1 %8742 }
0x3f98   : > { %v8744_v41 = vmul.f32 0.03125, %v8743_v44 }
0x3f9a   : > { %v8745_v46 = vadd.f32 1e-05, %v8744_v41 }
0x3f9c   : > { %11495 = vrsqrt.f32 %v8745_v46 }
0x3fa6   : > { %v11496_v54 = vpop.eup %11495 }
0x3fa7   : > { %v8747_v16 = vmul.f32 %v11496_v54, %v8739_v47 }
0x3fa9   : > { %v8754_v39 = vmul.f32 %v9651_v56, %v8747_v16 }
0x3fab   : > { %v8761_v60 = vadd.f32 %v9652_v58, %v8754_v39 }
0x3fad   : > { %v8780_v61 = vpack.c.bf16 %v8761_v60, %v8761_v60 }
0x3faf   : > { %10670 = vmatmul.mubr.msk.bf16.vlgmr.msra.gmra.mrb[136].mxu1 %vm1596_vm0, %v8780_v61 }
0x4082   : > { %v8836_v50 = vpop.f32.mrb[136].mxu1 }
0x4083   : > { %v8837_v13 = vadd.f32 %v9665_v55, %v8836_v50  ;;  %v10671_v19 = vpop.f32.mrb[137].mxu1 }
0x4084   : > { %v8839_v1 = vpop.f32.mrb[138].mxu1 }
0x4085   : > { %v8842_v25 = vmax.f32 %v8837_v13, 0.0  ;;  %v10672_v27 = vpop.f32.mrb[139].mxu1 }
0x4087   : > { %v8843_v2 = vpack.c.bf16 %v8842_v25, %v8842_v25 }
0x4089   : > { %10682 = vmatmul.mubr.msk.bf16.vlgmr.msra.gmra.mrb[132].mxu0 %vm2990_vm10, %v8843_v2 }
0x415c   : > { %v8911_v3 = vpop.f32.mrb[132].mxu0 }
0x415d   : > { %v8912_v12 = vadd.f32 %v9669_v0, %v8911_v3  ;;  %v10683_v4 = vpop.f32.mrb[133].mxu0 }
0x415e   : > { %v8914_v8 = vpop.f32.mrb[134].mxu0 }
0x415f   : > { %v8917_v9 = vadd.f32 %v8912_v12, %v8761_v60  ;;  %v10684_v14 = vpop.f32.mrb[135].mxu0 }
0x4161   : > { %v8922_v22 = vsel %vm1596_vm0, %v8917_v9, 0.0 }
0x4162   : > { %8923 = vadd.xlane.f32.xlu0 %v8922_v22 }
0x41ef   : > { %v8924_v11 = vpop.xlane.xlu0 %8923 }
0x41f0   : > { %v8925_v15 = vmul.f32 0.03125, %v8924_v11 }
0x41f2   : > { %v8926_v21 = vsub.f32 %v8917_v9, %v8925_v15 }
0x41f4   : > { %v8927_v53 = vmul.f32 %v8926_v21, %v8926_v21 }
0x41f6   : > { %v8928_v18 = vsel %vm1596_vm0, %v8927_v53, 0.0 }
0x41f7   : > { %8929 = vadd.xlane.f32.xlu0 %v8928_v18 }
0x4284   : > { %v8930_v49 = vpop.xlane.xlu0 %8929 }
0x4285   : > { %v8931_v20 = vmul.f32 0.03125, %v8930_v49 }
0x4287   : > { %v8932_v23 = vadd.f32 1e-05, %v8931_v20 }
0x4289   : > { %11497 = vrsqrt.f32 %v8932_v23 }
0x4293   : > { %v11498_v52 = vpop.eup %11497 }
0x4294   : > { %v8934_v26 = vmul.f32 %v11498_v52, %v8926_v21 }
0x4296   : > { %v8941_v28 = vmul.f32 %v9675_v24, %v8934_v26 }
0x4298   : > { %v8948_v29 = vadd.f32 %v9676_v7, %v8941_v28 }
0x429a   : > { %v8951_v59 = vsel %vm1596_vm0, %v8948_v29, 0.0 }
0x429b   : > { %8952 = vadd.xlane.f32.xlu1 %v8951_v59 }
0x4328   : > { %v8953_v31 = vpop.xlane.xlu1 %8952 }
0x4329   : > { %v8954_v57 = vmul.f32 0.03125, %v8953_v31 }
0x432b   : > { %v8955_v10 = vsub.f32 %v8948_v29, %v8954_v57 }
0x432d   : > { %v8956_v63 = vmul.f32 %v8955_v10, %v8955_v10 }
0x432f   : > { %v8957_v32 = vsel %vm1596_vm0, %v8956_v63, 0.0 }
0x4330   : > { %8958 = vadd.xlane.f32.xlu0 %v8957_v32 }
0x43bd   : > { %v8959_v37 = vpop.xlane.xlu0 %8958 }
0x43be   : > { %v8960_v38 = vmul.f32 0.03125, %v8959_v37 }
0x43c0   : > { %v8961_v51 = vadd.f32 1e-05, %v8960_v38 }
0x43c2   : > { %11499 = vrsqrt.f32 %v8961_v51 }
0x43cc   : > { %v11500_v33 = vpop.eup %11499 }
0x43cd   : > { %v8963_v34 = vmul.f32 %v11500_v33, %v8955_v10 }
0x43cf   : > { %v8970_v43 = vmul.f32 %v9677_v5, %v8963_v34 }
0x43d1   : > { %v8977_v40 = vadd.f32 %v9678_v17, %v8970_v43 }
0x43d3   : > { %8978 = vst.msk [vmem:[%s1549_s20] sm:$0xff] %vm1596_vm0, %v8977_v40 }
0x43d4   : > { %12028 = shalt.err (!%p12025_p6)
}
0x43d5   : > { %s12029_s13 = scalar_lea.hbm %s13973_s4, 128  ;;  %s12033_s14 = scalar_lea.hbm %s12422_s21, 256 }
0x43d6   : > { %p12030_p0 = scmp.ne.s32.totalorder %s13973_s4, %s12029_s13  ;;  %p12034_p10 = scmp.lt.u32.totalorder %s13973_s4, %s12422_s21 }
0x43d7   : > { %p12035_p12 = scmp.lt.u32.totalorder %s12033_s14, %s12029_s13  ;;  %p12037_p2 = scmp.lt.u32.totalorder %s12029_s13, %s13973_s4 }
0x43d8   : > { %p12031_p5 = pnand %p12030_p0, %p14230_p3 }
0x43d9   : > { %p12036_p1 = por %p12035_p12, %p12034_p10 }
0x43da   : > { %p12032_p9 = pneg %p12031_p5 }
0x43db   : > { %p12038_p4 = por %p12037_p2, %p12036_p1 }
0x43dd   : > { %p12039_p7 = pnand %p12038_p4, %p12032_p9 }
0x43df   : > { %12042 = shalt.err (!%p12039_p7)
}
0x43e0   : > { %10870 = dma.vmem_to_hbm [thread:$0]  (%p14230_p3), %s13975_s18, 128, %s13973_s4, %s8980_s11  }
0x43e1 PF: > { %s14231_s19 = sld [smem:[#allocation83_spill]]  ;;  %s14232_s20 = sld [smem:[#allocation81_spill]] }
0x43e2   : > { %s14233_s3 = sld [smem:[#allocation86_spill]] }
0x43e7   : > { %p10967_p8 = scmp.ge.s32.totalorder %s14231_s19, 2  ;;  %s9005_s28 = sand.u32 1, %s14232_s20  }
0x43e8   : > { %p14234_p11 = scmp.ne.s32.totalorder %s14233_s3, 0  ;;  %s9006_s0 = scalar_lea.sflag [#allocation4], %s9005_s28 }
0x43ea   : > { %p10928_p13 = pnand %p10967_p8, %p14234_p11 }
0x43ec   : > { %12100 = dma.done.wait (!%p10928_p13), %s9006_s0, 128  }
0x43ed   : > { %12102 = vsyncadd (!%p10928_p13), %s9006_s0, 4294967168  ;;  %s14235_s0 = sld [smem:[#allocation84_spill]]  ;;  %s14236_s13 = sld [smem:[#allocation82_spill]] }
0x43ee   : > { %s14237_s14 = sld [smem:[#allocation85_spill]]  ;;  %s14238_s22 = smov %s12109_s23 }
0x43f3   : > { %p107_p6 = scmp.ge.s32.totalorder %s14235_s0, 4   ;;  %s14239_s23 = smov %s14236_s13 }
0x43f4   : > { %14240 = sst [smem:[#allocation81_spill]] %s14237_s14 }
0x43f5   :  { %109 = sbr.rel (!%p107_p6) target bundleno = 98 (0x62), region = 381 }
0x43fc   :  { %9011 = vsyncpa [#allocation3], 1 }
0x43fd   :  { %9013 = vsyncpa [#allocation3 + $0x1], 1 }
0x43fe   :  { %9014 = vsyncpa [#allocation6], 1 }
0x43ff   :  { %9015 = vsyncpa [#allocation9], 1 }
0x4400   :  { %9016 = vsyncpa [#allocation12], 1 }
0x4401   :  { %9017 = vsyncpa [#allocation15], 1 }
0x4402   :  { %9018 = vsyncpa [#allocation18], 1 }
0x4403   :  { %9019 = vsyncpa [#allocation21], 1 }
0x4404   :  { %9020 = vsyncpa [#allocation24], 1 }
0x4405   :  { %9021 = vsyncpa [#allocation27], 1 }
0x4406   :  { %9022 = vsyncpa [#allocation30], 1 }
0x4407   :  { %9023 = vsyncpa [#allocation4], 1 }
0x4408   :  { %9025 = vsyncpa [#allocation4 + $0x1], 1 }

</bundles_post_ra>
